<compile_context>
chip_gen: v7x
topology: tpu7x:2x2x1
jax: 0.10.0
libtpu: 0.0.40
codegen_flags: <defaults>
</compile_context>

<pallas_src>
from functools import partial

import jax
import jax.numpy as jnp
from jax import lax
from jax.experimental import pallas as pl
from jax.experimental.pallas import tpu as pltpu

# bf16 matmul operands (f32 accumulation). Set to jnp.float32 for strict 1e-3.
MATMUL_DTYPE = jnp.bfloat16

# L-row tile for the fused 1x1 heads (bounds the (lb, 1024) f32 intermediate).
HEAD_L_BLOCK = 512


# ---------------------------------------------------------------------------
# Fused InitialStage kernel: trunk (3 x conv3x3+ReLU) + both 1x1 heads.
# One grid step == one batch element.
# ---------------------------------------------------------------------------
def _initial_stage_kernel(xin_ref, wt_ref, bt_ref, w1_ref, b1_ref, w2_ref,
                          b2_ref, o_ref, xpad_ref, *, H, W, n_layers,
                          head_l_block):
    # xin_ref : (1, R, C)   pre-padded, flattened input image (row pitch W+2)
    # wt_ref  : (3, 9, C, C) trunk conv weights, one (C,C) matrix per 3x3 tap
    # bt_ref  : (3, 1, C)   trunk biases (f32)
    # w1_ref  : (C, Hid)    both heads' 1x1 C->512, concatenated (Hid=1024)
    # b1_ref  : (1, Hid)    (f32)
    # w2_ref  : (Hid, Kpad) block-diagonal second 1x1 convs, lane-padded
    # b2_ref  : (1, Kpad)   (f32)
    # o_ref   : (1, L, Kpad) L = H*(W+2) "wide" rows; junk cols dropped later
    # xpad_ref: (R, C)      resident padded activation scratch (f32)
    C = xin_ref.shape[-1]
    Wp = W + 2
    L = H * Wp
    base = Wp + 1                       # flat offset of interior pixel (0, 0)
    mm = MATMUL_DTYPE

    # --- one bulk, aligned copy of the pre-padded input into the scratch ----
    xpad_ref[...] = xin_ref[0]

    # --- valid-column mask, hoisted out of the layer loop --------------------
    # Wide row i = y*Wp + x is valid iff x < W; the 2 junk columns per row map
    # exactly onto the right/left pad positions of the padded layout, so
    # masking them to 0 keeps the zero padding exact for the next layer.
    col = lax.broadcasted_iota(jnp.int32, (L, C), 0) % Wp
    keep = (col < W).astype(jnp.float32)

    # --- trunk: each 3x3 conv (pad=1) as 9 accumulated K=C matmuls -----------
    for layer in range(n_layers):
        acc = jnp.zeros((L, C), jnp.float32)
        for tap in range(9):
            dy, dx = divmod(tap, 3)
            a = xpad_ref[pl.ds(dy * Wp + dx, L), :].astype(mm)
            acc = acc + jnp.dot(a, wt_ref[layer, tap],
                                preferred_element_type=jnp.float32)
        h = jnp.maximum(acc + bt_ref[layer], 0.0)          # f32 epilogue
        # Single masked bulk writeback (replaces H per-row partial stores).
        xpad_ref[pl.ds(base, L), :] = h * keep

    # --- fused heads: 1x1 (C->2*512)+ReLU, block-diag 1x1 (->Kpad), L-tiled --
    l0 = 0
    while l0 < L:
        lb = min(head_l_block, L - l0)
        t = xpad_ref[pl.ds(base + l0, lb), :].astype(mm)    # (lb, C)
        g = jnp.dot(t, w1_ref[...],
                    preferred_element_type=jnp.float32) + b1_ref[...]
        g = jnp.maximum(g, 0.0).astype(mm)                  # (lb, Hid)
        out = jnp.dot(g, w2_ref[...],
                      preferred_element_type=jnp.float32) + b2_ref[...]
        o_ref[0, pl.ds(l0, lb), :] = out.astype(o_ref.dtype)  # lane-dense store
        l0 += lb


# ---------------------------------------------------------------------------
# Wrapper: NCHW in, (landmarks, pafs) NCHW out. One pallas_call for the stage.
# ---------------------------------------------------------------------------
@jax.jit
def initial_stage_forward(x_nchw, params):
    x = jnp.transpose(x_nchw, (0, 2, 3, 1))                 # NCHW -> NHWC
    N, H, W, C = x.shape
    Wp, Hpad = W + 2, H + 2
    L = H * Wp                       # wide rows per image (W valid + 2 junk)
    # scratch rows: padded image + tap-offset slack, rounded to 8 sublanes
    R = ((Hpad * Wp + 2 + 7) // 8) * 8

    # ---- pre-pad + flatten the input (fused by XLA with the transpose) ------
    xp = jnp.pad(x, ((0, 0), (1, 1), (1, 1), (0, 0)))       # (N, Hpad, Wp, C)
    xp = xp.reshape(N, Hpad * Wp, C)
    xp = jnp.pad(xp, ((0, 0), (0, R - Hpad * Wp), (0, 0)))  # (N, R, C)

    # ---- pack parameters for the fused kernel (tiny ops, fused by XLA) ------
    wt = jnp.stack([w.reshape(9, C, C) for w, _ in params["trunk"]])
    wt = wt.astype(MATMUL_DTYPE)                            # (3, 9, C, C)
    bt = jnp.stack([b for _, b in params["trunk"]])         # (3, 1, C)  f32

    w1l, b1l, w2l, b2l = params["landmarks"]
    w1p, b1p, w2p, b2p = params["pafs"]
    h_lm, h_pf = w1l.shape[1], w1p.shape[1]
    Hid = h_lm + h_pf
    Klm, Kpf = w2l.shape[1], w2p.shape[1]
    Ktot = Klm + Kpf
    Kpad = pl.cdiv(Ktot, 128) * 128                         # lane-dense slab

    w1 = jnp.concatenate([w1l, w1p], axis=1).astype(MATMUL_DTYPE)  # (C, Hid)
    b1 = jnp.concatenate([b1l, b1p], axis=1)                        # (1, Hid)
    w2 = jnp.zeros((Hid, Kpad), jnp.float32)
    w2 = w2.at[:h_lm, :Klm].set(w2l).at[h_lm:, Klm:Ktot].set(w2p)   # block-diag
    w2 = w2.astype(MATMUL_DTYPE)
    b2 = jnp.zeros((1, Kpad), jnp.float32)
    b2 = b2.at[:, :Klm].set(b2l).at[:, Klm:Ktot].set(b2p)

    n_layers = len(params["trunk"])
    # Advisory cost: Ktot (not Kpad) for the last matmul, valid output bytes.
    flops = int(N * (n_layers * 2 * L * (9 * C) * C
                     + 2 * L * C * Hid + 2 * L * Hid * Ktot))
    bytes_accessed = int(
        xp.size * xp.dtype.itemsize
        + wt.size * wt.dtype.itemsize + bt.size * bt.dtype.itemsize
        + w1.size * w1.dtype.itemsize + b1.size * b1.dtype.itemsize
        + w2.size * w2.dtype.itemsize + b2.size * b2.dtype.itemsize
        + N * H * W * Ktot * 4)

    kernel = partial(_initial_stage_kernel, H=H, W=W, n_layers=n_layers,
                     head_l_block=HEAD_L_BLOCK)

    out = pl.pallas_call(
        kernel,
        out_shape=jax.ShapeDtypeStruct((N, L, Kpad), jnp.float32),
        grid_spec=pltpu.PrefetchScalarGridSpec(
            num_scalar_prefetch=0,
            grid=(N,),
            in_specs=[
                pl.BlockSpec((1, R, C), lambda n: (n, 0, 0)),
                pl.BlockSpec(wt.shape, lambda n: (0, 0, 0, 0)),
                pl.BlockSpec(bt.shape, lambda n: (0, 0, 0)),
                pl.BlockSpec(w1.shape, lambda n: (0, 0)),
                pl.BlockSpec(b1.shape, lambda n: (0, 0)),
                pl.BlockSpec(w2.shape, lambda n: (0, 0)),
                pl.BlockSpec(b2.shape, lambda n: (0, 0)),
            ],
            out_specs=pl.BlockSpec((1, L, Kpad), lambda n: (n, 0, 0)),
            scratch_shapes=[
                pltpu.VMEM((R, C), jnp.float32),   # resident padded activation
            ],
        ),
        compiler_params=pltpu.CompilerParams(
            dimension_semantics=("parallel",),
            vmem_limit_bytes=32 * 1024 * 1024),    # safe on v5e/v6e/v7x
        cost_estimate=pl.CostEstimate(
            flops=flops, transcendentals=0, bytes_accessed=bytes_accessed),
    )(xp, wt, bt, w1, b1, w2, b2)

    out = out.reshape(N, H, Wp, Kpad)[:, :, :W, :]          # drop wrap-around cols
    lm = out[..., :Klm]
    pf = out[..., Klm:Ktot]
    return (jnp.transpose(lm, (0, 3, 1, 2)),                # back to NCHW
            jnp.transpose(pf, (0, 3, 1, 2)))


# ---------------------------------------------------------------------------
# Parameter construction (deterministic, synthetic weights).
# Trunk conv weights in HWIO; 1x1 conv weights as (Cin, Cout); biases (1, Cout).
# ---------------------------------------------------------------------------
def init_params(key, num_channels, num_landmarks, num_pafs):
    def conv_w(k, kh, kw, cin, cout):
        scale = 1.0 / jnp.sqrt(float(kh * kw * cin))
        return scale * jax.random.normal(k, (kh, kw, cin, cout), jnp.float32)

    keys = jax.random.split(key, 16)
    params = {"trunk": []}
    for i in range(3):
        w = conv_w(keys[2 * i], 3, 3, num_channels, num_channels)
        b = 0.01 * jax.random.normal(keys[2 * i + 1], (1, num_channels),
                                     jnp.float32)
        params["trunk"].append((w, b))

    def head_params(k0, k1, k2, k3, k_out):
        w1 = conv_w(k0, 1, 1, num_channels, 512).reshape(num_channels, 512)
        b1 = 0.01 * jax.random.normal(k1, (1, 512), jnp.float32)
        w2 = conv_w(k2, 1, 1, 512, k_out).reshape(512, k_out)
        b2 = 0.01 * jax.random.normal(k3, (1, k_out), jnp.float32)
        return (w1, b1, w2, b2)

    params["landmarks"] = head_params(keys[6], keys[7], keys[8], keys[9],
                                      num_landmarks)
    params["pafs"] = head_params(keys[10], keys[11], keys[12], keys[13],
                                 num_pafs)
    return params


# ---------------------------------------------------------------------------
# Pure-JAX f32 reference (correctness check).
# ---------------------------------------------------------------------------
def _ref_conv3x3_relu(x, w, b):
    out = lax.conv_general_dilated(
        x, w, (1, 1), ((1, 1), (1, 1)),
        dimension_numbers=("NHWC", "HWIO", "NHWC"))
    return jnp.maximum(out + b.reshape(1, 1, 1, -1), 0.0)


def _ref_forward(x_nchw, params):
    x = jnp.transpose(x_nchw, (0, 2, 3, 1))
    t = x
    for w, b in params["trunk"]:
        t = _ref_conv3x3_relu(t, w, b)

    def ref_head(t, w1, b1, w2, b2):
        h = jnp.maximum(jnp.einsum("nhwc,cd->nhwd", t, w1) + b1, 0.0)
        return jnp.einsum("nhwd,dk->nhwk", h, w2) + b2

    lm = ref_head(t, *params["landmarks"])
    pf = ref_head(t, *params["pafs"])
    return (jnp.transpose(lm, (0, 3, 1, 2)),
            jnp.transpose(pf, (0, 3, 1, 2)))


if __name__ == "__main__":
    N, C, H, W = 2, 32, 16, 16
    NUM_LANDMARKS, NUM_PAFS = 8, 16

    key = jax.random.PRNGKey(0)
    kx, kp = jax.random.split(key)
    x = jax.random.normal(kx, (N, C, H, W), jnp.float32)
    params = init_params(kp, C, NUM_LANDMARKS, NUM_PAFS)

    landmarks, pafs = initial_stage_forward(x, params)
    jax.block_until_ready((landmarks, pafs))

    ref_lm, ref_pf = _ref_forward(x, params)
    assert landmarks.shape == (N, NUM_LANDMARKS, H, W)
    assert pafs.shape == (N, NUM_PAFS, H, W)
    # bf16 matmul operands (f32 accumulation) over 5 stacked matmuls: observed
    # error is a few 1e-3 RMS on O(1) outputs; 3e-2 gives ~6-sigma headroom.
    # With MATMUL_DTYPE = jnp.float32 the strict 1e-3 check holds.
    tol = 3e-2 if MATMUL_DTYPE == jnp.bfloat16 else 1e-3
    assert jnp.allclose(landmarks, ref_lm, atol=tol, rtol=tol)
    assert jnp.allclose(pafs, ref_pf, atol=tol, rtol=tol)

    print("KERNEL_OK")
</pallas_src>

<mosaic_0001>
module attributes {stable_mosaic.version = 11 : i64} {
  func.func @_initial_stage_kernel(%arg0: i32, %arg1: memref<1x328x32xf32, #tpu.memory_space<vmem>>, %arg2: memref<3x9x32x32xbf16, #tpu.memory_space<vmem>>, %arg3: memref<3x1x32xf32, #tpu.memory_space<vmem>>, %arg4: memref<32x1024xbf16, #tpu.memory_space<vmem>>, %arg5: memref<1x1024xf32, #tpu.memory_space<vmem>>, %arg6: memref<1024x128xbf16, #tpu.memory_space<vmem>>, %arg7: memref<1x128xf32, #tpu.memory_space<vmem>>, %arg8: memref<1x288x128xf32, #tpu.memory_space<vmem>>, %arg9: memref<328x32xf32, #tpu.memory_space<vmem>>) attributes {dimension_semantics = [#tpu.dimension_semantics<parallel>], iteration_bounds = array<i64: 2>, scalar_prefetch = 0 : i64, scratch_operands = 1 : i64, tpu.core_type = #tpu.core_type<tc>, window_params = [{transform_indices = @transform_0, window_bounds = array<i64: 1, 328, 32>}, {pipeline_mode = #tpu.pipeline_mode<synchronous>, transform_indices = @transform_1, window_bounds = array<i64: 3, 9, 32, 32>}, {pipeline_mode = #tpu.pipeline_mode<synchronous>, transform_indices = @transform_2, window_bounds = array<i64: 3, 1, 32>}, {pipeline_mode = #tpu.pipeline_mode<synchronous>, transform_indices = @transform_3, window_bounds = array<i64: 32, 1024>}, {pipeline_mode = #tpu.pipeline_mode<synchronous>, transform_indices = @transform_4, window_bounds = array<i64: 1, 1024>}, {pipeline_mode = #tpu.pipeline_mode<synchronous>, transform_indices = @transform_5, window_bounds = array<i64: 1024, 128>}, {pipeline_mode = #tpu.pipeline_mode<synchronous>, transform_indices = @transform_6, window_bounds = array<i64: 1, 128>}, {transform_indices = @transform_7, window_bounds = array<i64: 1, 288, 128>}]} {
    %c0 = arith.constant 0 : index
    %c0_0 = arith.constant 0 : index
    %c0_1 = arith.constant 0 : index
    %0 = vector.load %arg1[%c0, %c0_0, %c0_1] : memref<1x328x32xf32, #tpu.memory_space<vmem>>, vector<1x328x32xf32>
    %1 = vector.shape_cast %0 : vector<1x328x32xf32> to vector<328x32xf32>
    %c0_2 = arith.constant 0 : index
    %c0_3 = arith.constant 0 : index
    %2 = vector.load %arg9[%c0_2, %c0_3] : memref<328x32xf32, #tpu.memory_space<vmem>>, vector<328x32xf32>
    tpu.vector_store %arg9[%c0_2, %c0_3], %1 {strides = array<i32>} : memref<328x32xf32, #tpu.memory_space<vmem>>, vector<328x32xf32>,
    %3 = tpu.iota {dimensions = array<i32: 0>} : vector<288x32xi32>
    %c18_i32 = arith.constant 18 : i32
    %c0_i32 = arith.constant 0 : i32
    %4 = arith.cmpi eq, %c18_i32, %c0_i32 : i32
    %c1_i32 = arith.constant 1 : i32
    %5 = arith.select %4, %c1_i32, %c18_i32 : i32
    %6 = vector.broadcast %5 : i32 to vector<288x32xi32>
    %7 = arith.remsi %3, %6 : vector<288x32xi32>
    %c0_i32_4 = arith.constant 0 : i32
    %8 = vector.broadcast %c0_i32_4 : i32 to vector<288x32xi32>
    %9 = arith.cmpi ne, %7, %8 : vector<288x32xi32>
    %c0_i32_5 = arith.constant 0 : i32
    %10 = vector.broadcast %c0_i32_5 : i32 to vector<288x32xi32>
    %11 = arith.cmpi slt, %7, %10 : vector<288x32xi32>
    %c0_i32_6 = arith.constant 0 : i32
    %12 = arith.cmpi slt, %5, %c0_i32_6 : i32
    %13 = vector.broadcast %12 : i1 to vector<288x32xi1>
    %14 = vector.broadcast %13 : vector<288x32xi1> to vector<288x32xi1>
    %15 = arith.xori %11, %14 : vector<288x32xi1>
    %16 = arith.andi %15, %9 : vector<288x32xi1>
    %17 = vector.broadcast %5 : i32 to vector<288x32xi32>
    %18 = arith.addi %7, %17 : vector<288x32xi32>
    %19 = arith.select %16, %18, %7 : vector<288x32xi1>, vector<288x32xi32>
    %c16_i32 = arith.constant 16 : i32
    %20 = vector.broadcast %c16_i32 : i32 to vector<288x32xi32>
    %21 = arith.cmpi slt, %19, %20 : vector<288x32xi32>
    %22 = arith.extui %21 : vector<288x32xi1> to vector<288x32xi32>
    %23 = arith.sitofp %22 : vector<288x32xi32> to vector<288x32xf32>
    %cst = arith.constant 0.000000e+00 : f32
    %24 = vector.broadcast %cst : f32 to vector<288x32xf32>
    %c0_7 = arith.constant 0 : index
    %c0_8 = arith.constant 0 : index
    %25 = vector.load %arg9[%c0_7, %c0_8] : memref<328x32xf32, #tpu.memory_space<vmem>>, vector<288x32xf32>
    %26 = arith.truncf %25 : vector<288x32xf32> to vector<288x32xbf16>
    %c0_9 = arith.constant 0 : index
    %c0_10 = arith.constant 0 : index
    %c0_11 = arith.constant 0 : index
    %c0_12 = arith.constant 0 : index
    %27 = vector.load %arg2[%c0_9, %c0_10, %c0_11, %c0_12] : memref<3x9x32x32xbf16, #tpu.memory_space<vmem>>, vector<1x1x32x32xbf16>
    %28 = vector.shape_cast %27 : vector<1x1x32x32xbf16> to vector<32x32xbf16>
    %cst_13 = arith.constant dense<0.000000e+00> : vector<288x32xf32>
    %29 = tpu.matmul %26, %28, %cst_13 {dimension_numbers = #tpu.dot_dimension_numbers<[1], [0], [0], [1], [0, 0, 1, 1], [], []>} : vector<288x32xbf16>, vector<32x32xbf16>, vector<288x32xf32> -> vector<288x32xf32>
    %30 = arith.addf %24, %29 : vector<288x32xf32>
    %c1 = arith.constant 1 : index
    %c0_14 = arith.constant 0 : index
    %31 = vector.load %arg9[%c1, %c0_14] : memref<328x32xf32, #tpu.memory_space<vmem>>, vector<288x32xf32>
    %32 = arith.truncf %31 : vector<288x32xf32> to vector<288x32xbf16>
    %c0_15 = arith.constant 0 : index
    %c1_16 = arith.constant 1 : index
    %c0_17 = arith.constant 0 : index
    %c0_18 = arith.constant 0 : index
    %33 = vector.load %arg2[%c0_15, %c1_16, %c0_17, %c0_18] : memref<3x9x32x32xbf16, #tpu.memory_space<vmem>>, vector<1x1x32x32xbf16>
    %34 = vector.shape_cast %33 : vector<1x1x32x32xbf16> to vector<32x32xbf16>
    %cst_19 = arith.constant dense<0.000000e+00> : vector<288x32xf32>
    %35 = tpu.matmul %32, %34, %cst_19 {dimension_numbers = #tpu.dot_dimension_numbers<[1], [0], [0], [1], [0, 0, 1, 1], [], []>} : vector<288x32xbf16>, vector<32x32xbf16>, vector<288x32xf32> -> vector<288x32xf32>
    %36 = arith.addf %30, %35 : vector<288x32xf32>
    %c2 = arith.constant 2 : index
    %c0_20 = arith.constant 0 : index
    %37 = vector.load %arg9[%c2, %c0_20] : memref<328x32xf32, #tpu.memory_space<vmem>>, vector<288x32xf32>
    %38 = arith.truncf %37 : vector<288x32xf32> to vector<288x32xbf16>
    %c0_21 = arith.constant 0 : index
    %c2_22 = arith.constant 2 : index
    %c0_23 = arith.constant 0 : index
    %c0_24 = arith.constant 0 : index
    %39 = vector.load %arg2[%c0_21, %c2_22, %c0_23, %c0_24] : memref<3x9x32x32xbf16, #tpu.memory_space<vmem>>, vector<1x1x32x32xbf16>
    %40 = vector.shape_cast %39 : vector<1x1x32x32xbf16> to vector<32x32xbf16>
    %cst_25 = arith.constant dense<0.000000e+00> : vector<288x32xf32>
    %41 = tpu.matmul %38, %40, %cst_25 {dimension_numbers = #tpu.dot_dimension_numbers<[1], [0], [0], [1], [0, 0, 1, 1], [], []>} : vector<288x32xbf16>, vector<32x32xbf16>, vector<288x32xf32> -> vector<288x32xf32>
    %42 = arith.addf %36, %41 : vector<288x32xf32>
    %c18 = arith.constant 18 : index
    %c0_26 = arith.constant 0 : index
    %43 = vector.load %arg9[%c18, %c0_26] : memref<328x32xf32, #tpu.memory_space<vmem>>, vector<288x32xf32>
    %44 = arith.truncf %43 : vector<288x32xf32> to vector<288x32xbf16>
    %c0_27 = arith.constant 0 : index
    %c3 = arith.constant 3 : index
    %c0_28 = arith.constant 0 : index
    %c0_29 = arith.constant 0 : index
    %45 = vector.load %arg2[%c0_27, %c3, %c0_28, %c0_29] : memref<3x9x32x32xbf16, #tpu.memory_space<vmem>>, vector<1x1x32x32xbf16>
    %46 = vector.shape_cast %45 : vector<1x1x32x32xbf16> to vector<32x32xbf16>
    %cst_30 = arith.constant dense<0.000000e+00> : vector<288x32xf32>
    %47 = tpu.matmul %44, %46, %cst_30 {dimension_numbers = #tpu.dot_dimension_numbers<[1], [0], [0], [1], [0, 0, 1, 1], [], []>} : vector<288x32xbf16>, vector<32x32xbf16>, vector<288x32xf32> -> vector<288x32xf32>
    %48 = arith.addf %42, %47 : vector<288x32xf32>
    %c19 = arith.constant 19 : index
    %c0_31 = arith.constant 0 : index
    %49 = vector.load %arg9[%c19, %c0_31] : memref<328x32xf32, #tpu.memory_space<vmem>>, vector<288x32xf32>
    %50 = arith.truncf %49 : vector<288x32xf32> to vector<288x32xbf16>
    %c0_32 = arith.constant 0 : index
    %c4 = arith.constant 4 : index
    %c0_33 = arith.constant 0 : index
    %c0_34 = arith.constant 0 : index
    %51 = vector.load %arg2[%c0_32, %c4, %c0_33, %c0_34] : memref<3x9x32x32xbf16, #tpu.memory_space<vmem>>, vector<1x1x32x32xbf16>
    %52 = vector.shape_cast %51 : vector<1x1x32x32xbf16> to vector<32x32xbf16>
    %cst_35 = arith.constant dense<0.000000e+00> : vector<288x32xf32>
    %53 = tpu.matmul %50, %52, %cst_35 {dimension_numbers = #tpu.dot_dimension_numbers<[1], [0], [0], [1], [0, 0, 1, 1], [], []>} : vector<288x32xbf16>, vector<32x32xbf16>, vector<288x32xf32> -> vector<288x32xf32>
    %54 = arith.addf %48, %53 : vector<288x32xf32>
    %c20 = arith.constant 20 : index
    %c0_36 = arith.constant 0 : index
    %55 = vector.load %arg9[%c20, %c0_36] : memref<328x32xf32, #tpu.memory_space<vmem>>, vector<288x32xf32>
    %56 = arith.truncf %55 : vector<288x32xf32> to vector<288x32xbf16>
    %c0_37 = arith.constant 0 : index
    %c5 = arith.constant 5 : index
    %c0_38 = arith.constant 0 : index
    %c0_39 = arith.constant 0 : index
    %57 = vector.load %arg2[%c0_37, %c5, %c0_38, %c0_39] : memref<3x9x32x32xbf16, #tpu.memory_space<vmem>>, vector<1x1x32x32xbf16>
    %58 = vector.shape_cast %57 : vector<1x1x32x32xbf16> to vector<32x32xbf16>
    %cst_40 = arith.constant dense<0.000000e+00> : vector<288x32xf32>
    %59 = tpu.matmul %56, %58, %cst_40 {dimension_numbers = #tpu.dot_dimension_numbers<[1], [0], [0], [1], [0, 0, 1, 1], [], []>} : vector<288x32xbf16>, vector<32x32xbf16>, vector<288x32xf32> -> vector<288x32xf32>
    %60 = arith.addf %54, %59 : vector<288x32xf32>
    %c36 = arith.constant 36 : index
    %c0_41 = arith.constant 0 : index
    %61 = vector.load %arg9[%c36, %c0_41] : memref<328x32xf32, #tpu.memory_space<vmem>>, vector<288x32xf32>
    %62 = arith.truncf %61 : vector<288x32xf32> to vector<288x32xbf16>
    %c0_42 = arith.constant 0 : index
    %c6 = arith.constant 6 : index
    %c0_43 = arith.constant 0 : index
    %c0_44 = arith.constant 0 : index
    %63 = vector.load %arg2[%c0_42, %c6, %c0_43, %c0_44] : memref<3x9x32x32xbf16, #tpu.memory_space<vmem>>, vector<1x1x32x32xbf16>
    %64 = vector.shape_cast %63 : vector<1x1x32x32xbf16> to vector<32x32xbf16>
    %cst_45 = arith.constant dense<0.000000e+00> : vector<288x32xf32>
    %65 = tpu.matmul %62, %64, %cst_45 {dimension_numbers = #tpu.dot_dimension_numbers<[1], [0], [0], [1], [0, 0, 1, 1], [], []>} : vector<288x32xbf16>, vector<32x32xbf16>, vector<288x32xf32> -> vector<288x32xf32>
    %66 = arith.addf %60, %65 : vector<288x32xf32>
    %c37 = arith.constant 37 : index
    %c0_46 = arith.constant 0 : index
    %67 = vector.load %arg9[%c37, %c0_46] : memref<328x32xf32, #tpu.memory_space<vmem>>, vector<288x32xf32>
    %68 = arith.truncf %67 : vector<288x32xf32> to vector<288x32xbf16>
    %c0_47 = arith.constant 0 : index
    %c7 = arith.constant 7 : index
    %c0_48 = arith.constant 0 : index
    %c0_49 = arith.constant 0 : index
    %69 = vector.load %arg2[%c0_47, %c7, %c0_48, %c0_49] : memref<3x9x32x32xbf16, #tpu.memory_space<vmem>>, vector<1x1x32x32xbf16>
    %70 = vector.shape_cast %69 : vector<1x1x32x32xbf16> to vector<32x32xbf16>
    %cst_50 = arith.constant dense<0.000000e+00> : vector<288x32xf32>
    %71 = tpu.matmul %68, %70, %cst_50 {dimension_numbers = #tpu.dot_dimension_numbers<[1], [0], [0], [1], [0, 0, 1, 1], [], []>} : vector<288x32xbf16>, vector<32x32xbf16>, vector<288x32xf32> -> vector<288x32xf32>
    %72 = arith.addf %66, %71 : vector<288x32xf32>
    %c38 = arith.constant 38 : index
    %c0_51 = arith.constant 0 : index
    %73 = vector.load %arg9[%c38, %c0_51] : memref<328x32xf32, #tpu.memory_space<vmem>>, vector<288x32xf32>
    %74 = arith.truncf %73 : vector<288x32xf32> to vector<288x32xbf16>
    %c0_52 = arith.constant 0 : index
    %c8 = arith.constant 8 : index
    %c0_53 = arith.constant 0 : index
    %c0_54 = arith.constant 0 : index
    %75 = vector.load %arg2[%c0_52, %c8, %c0_53, %c0_54] : memref<3x9x32x32xbf16, #tpu.memory_space<vmem>>, vector<1x1x32x32xbf16>
    %76 = vector.shape_cast %75 : vector<1x1x32x32xbf16> to vector<32x32xbf16>
    %cst_55 = arith.constant dense<0.000000e+00> : vector<288x32xf32>
    %77 = tpu.matmul %74, %76, %cst_55 {dimension_numbers = #tpu.dot_dimension_numbers<[1], [0], [0], [1], [0, 0, 1, 1], [], []>} : vector<288x32xbf16>, vector<32x32xbf16>, vector<288x32xf32> -> vector<288x32xf32>
    %78 = arith.addf %72, %77 : vector<288x32xf32>
    %c0_56 = arith.constant 0 : index
    %c0_57 = arith.constant 0 : index
    %c0_58 = arith.constant 0 : index
    %79 = vector.load %arg3[%c0_56, %c0_57, %c0_58] : memref<3x1x32xf32, #tpu.memory_space<vmem>>, vector<1x1x32xf32>
    %80 = vector.shape_cast %79 : vector<1x1x32xf32> to vector<1x32xf32>
    %81 = vector.broadcast %80 : vector<1x32xf32> to vector<288x32xf32>
    %82 = arith.addf %78, %81 : vector<288x32xf32>
    %cst_59 = arith.constant 0.000000e+00 : f32
    %83 = vector.broadcast %cst_59 : f32 to vector<288x32xf32>
    %84 = arith.maximumf %82, %83 : vector<288x32xf32>
    %85 = arith.mulf %84, %23 : vector<288x32xf32>
    %c19_60 = arith.constant 19 : index
    %c0_61 = arith.constant 0 : index
    %86 = vector.load %arg9[%c19_60, %c0_61] : memref<328x32xf32, #tpu.memory_space<vmem>>, vector<288x32xf32>
    tpu.vector_store %arg9[%c19_60, %c0_61], %85 {strides = array<i32>} : memref<328x32xf32, #tpu.memory_space<vmem>>, vector<288x32xf32>,
    %cst_62 = arith.constant 0.000000e+00 : f32
    %87 = vector.broadcast %cst_62 : f32 to vector<288x32xf32>
    %c0_63 = arith.constant 0 : index
    %c0_64 = arith.constant 0 : index
    %88 = vector.load %arg9[%c0_63, %c0_64] : memref<328x32xf32, #tpu.memory_space<vmem>>, vector<288x32xf32>
    %89 = arith.truncf %88 : vector<288x32xf32> to vector<288x32xbf16>
    %c1_65 = arith.constant 1 : index
    %c0_66 = arith.constant 0 : index
    %c0_67 = arith.constant 0 : index
    %c0_68 = arith.constant 0 : index
    %90 = vector.load %arg2[%c1_65, %c0_66, %c0_67, %c0_68] : memref<3x9x32x32xbf16, #tpu.memory_space<vmem>>, vector<1x1x32x32xbf16>
    %91 = vector.shape_cast %90 : vector<1x1x32x32xbf16> to vector<32x32xbf16>
    %cst_69 = arith.constant dense<0.000000e+00> : vector<288x32xf32>
    %92 = tpu.matmul %89, %91, %cst_69 {dimension_numbers = #tpu.dot_dimension_numbers<[1], [0], [0], [1], [0, 0, 1, 1], [], []>} : vector<288x32xbf16>, vector<32x32xbf16>, vector<288x32xf32> -> vector<288x32xf32>
    %93 = arith.addf %87, %92 : vector<288x32xf32>
    %c1_70 = arith.constant 1 : index
    %c0_71 = arith.constant 0 : index
    %94 = vector.load %arg9[%c1_70, %c0_71] : memref<328x32xf32, #tpu.memory_space<vmem>>, vector<288x32xf32>
    %95 = arith.truncf %94 : vector<288x32xf32> to vector<288x32xbf16>
    %c1_72 = arith.constant 1 : index
    %c1_73 = arith.constant 1 : index
    %c0_74 = arith.constant 0 : index
    %c0_75 = arith.constant 0 : index
    %96 = vector.load %arg2[%c1_72, %c1_73, %c0_74, %c0_75] : memref<3x9x32x32xbf16, #tpu.memory_space<vmem>>, vector<1x1x32x32xbf16>
    %97 = vector.shape_cast %96 : vector<1x1x32x32xbf16> to vector<32x32xbf16>
    %cst_76 = arith.constant dense<0.000000e+00> : vector<288x32xf32>
    %98 = tpu.matmul %95, %97, %cst_76 {dimension_numbers = #tpu.dot_dimension_numbers<[1], [0], [0], [1], [0, 0, 1, 1], [], []>} : vector<288x32xbf16>, vector<32x32xbf16>, vector<288x32xf32> -> vector<288x32xf32>
    %99 = arith.addf %93, %98 : vector<288x32xf32>
    %c2_77 = arith.constant 2 : index
    %c0_78 = arith.constant 0 : index
    %100 = vector.load %arg9[%c2_77, %c0_78] : memref<328x32xf32, #tpu.memory_space<vmem>>, vector<288x32xf32>
    %101 = arith.truncf %100 : vector<288x32xf32> to vector<288x32xbf16>
    %c1_79 = arith.constant 1 : index
    %c2_80 = arith.constant 2 : index
    %c0_81 = arith.constant 0 : index
    %c0_82 = arith.constant 0 : index
    %102 = vector.load %arg2[%c1_79, %c2_80, %c0_81, %c0_82] : memref<3x9x32x32xbf16, #tpu.memory_space<vmem>>, vector<1x1x32x32xbf16>
    %103 = vector.shape_cast %102 : vector<1x1x32x32xbf16> to vector<32x32xbf16>
    %cst_83 = arith.constant dense<0.000000e+00> : vector<288x32xf32>
    %104 = tpu.matmul %101, %103, %cst_83 {dimension_numbers = #tpu.dot_dimension_numbers<[1], [0], [0], [1], [0, 0, 1, 1], [], []>} : vector<288x32xbf16>, vector<32x32xbf16>, vector<288x32xf32> -> vector<288x32xf32>
    %105 = arith.addf %99, %104 : vector<288x32xf32>
    %c18_84 = arith.constant 18 : index
    %c0_85 = arith.constant 0 : index
    %106 = vector.load %arg9[%c18_84, %c0_85] : memref<328x32xf32, #tpu.memory_space<vmem>>, vector<288x32xf32>
    %107 = arith.truncf %106 : vector<288x32xf32> to vector<288x32xbf16>
    %c1_86 = arith.constant 1 : index
    %c3_87 = arith.constant 3 : index
    %c0_88 = arith.constant 0 : index
    %c0_89 = arith.constant 0 : index
    %108 = vector.load %arg2[%c1_86, %c3_87, %c0_88, %c0_89] : memref<3x9x32x32xbf16, #tpu.memory_space<vmem>>, vector<1x1x32x32xbf16>
    %109 = vector.shape_cast %108 : vector<1x1x32x32xbf16> to vector<32x32xbf16>
    %cst_90 = arith.constant dense<0.000000e+00> : vector<288x32xf32>
    %110 = tpu.matmul %107, %109, %cst_90 {dimension_numbers = #tpu.dot_dimension_numbers<[1], [0], [0], [1], [0, 0, 1, 1], [], []>} : vector<288x32xbf16>, vector<32x32xbf16>, vector<288x32xf32> -> vector<288x32xf32>
    %111 = arith.addf %105, %110 : vector<288x32xf32>
    %c19_91 = arith.constant 19 : index
    %c0_92 = arith.constant 0 : index
    %112 = vector.load %arg9[%c19_91, %c0_92] : memref<328x32xf32, #tpu.memory_space<vmem>>, vector<288x32xf32>
    %113 = arith.truncf %112 : vector<288x32xf32> to vector<288x32xbf16>
    %c1_93 = arith.constant 1 : index
    %c4_94 = arith.constant 4 : index
    %c0_95 = arith.constant 0 : index
    %c0_96 = arith.constant 0 : index
    %114 = vector.load %arg2[%c1_93, %c4_94, %c0_95, %c0_96] : memref<3x9x32x32xbf16, #tpu.memory_space<vmem>>, vector<1x1x32x32xbf16>
    %115 = vector.shape_cast %114 : vector<1x1x32x32xbf16> to vector<32x32xbf16>
    %cst_97 = arith.constant dense<0.000000e+00> : vector<288x32xf32>
    %116 = tpu.matmul %113, %115, %cst_97 {dimension_numbers = #tpu.dot_dimension_numbers<[1], [0], [0], [1], [0, 0, 1, 1], [], []>} : vector<288x32xbf16>, vector<32x32xbf16>, vector<288x32xf32> -> vector<288x32xf32>
    %117 = arith.addf %111, %116 : vector<288x32xf32>
    %c20_98 = arith.constant 20 : index
    %c0_99 = arith.constant 0 : index
    %118 = vector.load %arg9[%c20_98, %c0_99] : memref<328x32xf32, #tpu.memory_space<vmem>>, vector<288x32xf32>
    %119 = arith.truncf %118 : vector<288x32xf32> to vector<288x32xbf16>
    %c1_100 = arith.constant 1 : index
    %c5_101 = arith.constant 5 : index
    %c0_102 = arith.constant 0 : index
    %c0_103 = arith.constant 0 : index
    %120 = vector.load %arg2[%c1_100, %c5_101, %c0_102, %c0_103] : memref<3x9x32x32xbf16, #tpu.memory_space<vmem>>, vector<1x1x32x32xbf16>
    %121 = vector.shape_cast %120 : vector<1x1x32x32xbf16> to vector<32x32xbf16>
    %cst_104 = arith.constant dense<0.000000e+00> : vector<288x32xf32>
    %122 = tpu.matmul %119, %121, %cst_104 {dimension_numbers = #tpu.dot_dimension_numbers<[1], [0], [0], [1], [0, 0, 1, 1], [], []>} : vector<288x32xbf16>, vector<32x32xbf16>, vector<288x32xf32> -> vector<288x32xf32>
    %123 = arith.addf %117, %122 : vector<288x32xf32>
    %c36_105 = arith.constant 36 : index
    %c0_106 = arith.constant 0 : index
    %124 = vector.load %arg9[%c36_105, %c0_106] : memref<328x32xf32, #tpu.memory_space<vmem>>, vector<288x32xf32>
    %125 = arith.truncf %124 : vector<288x32xf32> to vector<288x32xbf16>
    %c1_107 = arith.constant 1 : index
    %c6_108 = arith.constant 6 : index
    %c0_109 = arith.constant 0 : index
    %c0_110 = arith.constant 0 : index
    %126 = vector.load %arg2[%c1_107, %c6_108, %c0_109, %c0_110] : memref<3x9x32x32xbf16, #tpu.memory_space<vmem>>, vector<1x1x32x32xbf16>
    %127 = vector.shape_cast %126 : vector<1x1x32x32xbf16> to vector<32x32xbf16>
    %cst_111 = arith.constant dense<0.000000e+00> : vector<288x32xf32>
    %128 = tpu.matmul %125, %127, %cst_111 {dimension_numbers = #tpu.dot_dimension_numbers<[1], [0], [0], [1], [0, 0, 1, 1], [], []>} : vector<288x32xbf16>, vector<32x32xbf16>, vector<288x32xf32> -> vector<288x32xf32>
    %129 = arith.addf %123, %128 : vector<288x32xf32>
    %c37_112 = arith.constant 37 : index
    %c0_113 = arith.constant 0 : index
    %130 = vector.load %arg9[%c37_112, %c0_113] : memref<328x32xf32, #tpu.memory_space<vmem>>, vector<288x32xf32>
    %131 = arith.truncf %130 : vector<288x32xf32> to vector<288x32xbf16>
    %c1_114 = arith.constant 1 : index
    %c7_115 = arith.constant 7 : index
    %c0_116 = arith.constant 0 : index
    %c0_117 = arith.constant 0 : index
    %132 = vector.load %arg2[%c1_114, %c7_115, %c0_116, %c0_117] : memref<3x9x32x32xbf16, #tpu.memory_space<vmem>>, vector<1x1x32x32xbf16>
    %133 = vector.shape_cast %132 : vector<1x1x32x32xbf16> to vector<32x32xbf16>
    %cst_118 = arith.constant dense<0.000000e+00> : vector<288x32xf32>
    %134 = tpu.matmul %131, %133, %cst_118 {dimension_numbers = #tpu.dot_dimension_numbers<[1], [0], [0], [1], [0, 0, 1, 1], [], []>} : vector<288x32xbf16>, vector<32x32xbf16>, vector<288x32xf32> -> vector<288x32xf32>
    %135 = arith.addf %129, %134 : vector<288x32xf32>
    %c38_119 = arith.constant 38 : index
    %c0_120 = arith.constant 0 : index
    %136 = vector.load %arg9[%c38_119, %c0_120] : memref<328x32xf32, #tpu.memory_space<vmem>>, vector<288x32xf32>
    %137 = arith.truncf %136 : vector<288x32xf32> to vector<288x32xbf16>
    %c1_121 = arith.constant 1 : index
    %c8_122 = arith.constant 8 : index
    %c0_123 = arith.constant 0 : index
    %c0_124 = arith.constant 0 : index
    %138 = vector.load %arg2[%c1_121, %c8_122, %c0_123, %c0_124] : memref<3x9x32x32xbf16, #tpu.memory_space<vmem>>, vector<1x1x32x32xbf16>
    %139 = vector.shape_cast %138 : vector<1x1x32x32xbf16> to vector<32x32xbf16>
    %cst_125 = arith.constant dense<0.000000e+00> : vector<288x32xf32>
    %140 = tpu.matmul %137, %139, %cst_125 {dimension_numbers = #tpu.dot_dimension_numbers<[1], [0], [0], [1], [0, 0, 1, 1], [], []>} : vector<288x32xbf16>, vector<32x32xbf16>, vector<288x32xf32> -> vector<288x32xf32>
    %141 = arith.addf %135, %140 : vector<288x32xf32>
    %c1_126 = arith.constant 1 : index
    %c0_127 = arith.constant 0 : index
    %c0_128 = arith.constant 0 : index
    %142 = vector.load %arg3[%c1_126, %c0_127, %c0_128] : memref<3x1x32xf32, #tpu.memory_space<vmem>>, vector<1x1x32xf32>
    %143 = vector.shape_cast %142 : vector<1x1x32xf32> to vector<1x32xf32>
    %144 = vector.broadcast %143 : vector<1x32xf32> to vector<288x32xf32>
    %145 = arith.addf %141, %144 : vector<288x32xf32>
    %cst_129 = arith.constant 0.000000e+00 : f32
    %146 = vector.broadcast %cst_129 : f32 to vector<288x32xf32>
    %147 = arith.maximumf %145, %146 : vector<288x32xf32>
    %148 = arith.mulf %147, %23 : vector<288x32xf32>
    %c19_130 = arith.constant 19 : index
    %c0_131 = arith.constant 0 : index
    %149 = vector.load %arg9[%c19_130, %c0_131] : memref<328x32xf32, #tpu.memory_space<vmem>>, vector<288x32xf32>
    tpu.vector_store %arg9[%c19_130, %c0_131], %148 {strides = array<i32>} : memref<328x32xf32, #tpu.memory_space<vmem>>, vector<288x32xf32>,
    %cst_132 = arith.constant 0.000000e+00 : f32
    %150 = vector.broadcast %cst_132 : f32 to vector<288x32xf32>
    %c0_133 = arith.constant 0 : index
    %c0_134 = arith.constant 0 : index
    %151 = vector.load %arg9[%c0_133, %c0_134] : memref<328x32xf32, #tpu.memory_space<vmem>>, vector<288x32xf32>
    %152 = arith.truncf %151 : vector<288x32xf32> to vector<288x32xbf16>
    %c2_135 = arith.constant 2 : index
    %c0_136 = arith.constant 0 : index
    %c0_137 = arith.constant 0 : index
    %c0_138 = arith.constant 0 : index
    %153 = vector.load %arg2[%c2_135, %c0_136, %c0_137, %c0_138] : memref<3x9x32x32xbf16, #tpu.memory_space<vmem>>, vector<1x1x32x32xbf16>
    %154 = vector.shape_cast %153 : vector<1x1x32x32xbf16> to vector<32x32xbf16>
    %cst_139 = arith.constant dense<0.000000e+00> : vector<288x32xf32>
    %155 = tpu.matmul %152, %154, %cst_139 {dimension_numbers = #tpu.dot_dimension_numbers<[1], [0], [0], [1], [0, 0, 1, 1], [], []>} : vector<288x32xbf16>, vector<32x32xbf16>, vector<288x32xf32> -> vector<288x32xf32>
    %156 = arith.addf %150, %155 : vector<288x32xf32>
    %c1_140 = arith.constant 1 : index
    %c0_141 = arith.constant 0 : index
    %157 = vector.load %arg9[%c1_140, %c0_141] : memref<328x32xf32, #tpu.memory_space<vmem>>, vector<288x32xf32>
    %158 = arith.truncf %157 : vector<288x32xf32> to vector<288x32xbf16>
    %c2_142 = arith.constant 2 : index
    %c1_143 = arith.constant 1 : index
    %c0_144 = arith.constant 0 : index
    %c0_145 = arith.constant 0 : index
    %159 = vector.load %arg2[%c2_142, %c1_143, %c0_144, %c0_145] : memref<3x9x32x32xbf16, #tpu.memory_space<vmem>>, vector<1x1x32x32xbf16>
    %160 = vector.shape_cast %159 : vector<1x1x32x32xbf16> to vector<32x32xbf16>
    %cst_146 = arith.constant dense<0.000000e+00> : vector<288x32xf32>
    %161 = tpu.matmul %158, %160, %cst_146 {dimension_numbers = #tpu.dot_dimension_numbers<[1], [0], [0], [1], [0, 0, 1, 1], [], []>} : vector<288x32xbf16>, vector<32x32xbf16>, vector<288x32xf32> -> vector<288x32xf32>
    %162 = arith.addf %156, %161 : vector<288x32xf32>
    %c2_147 = arith.constant 2 : index
    %c0_148 = arith.constant 0 : index
    %163 = vector.load %arg9[%c2_147, %c0_148] : memref<328x32xf32, #tpu.memory_space<vmem>>, vector<288x32xf32>
    %164 = arith.truncf %163 : vector<288x32xf32> to vector<288x32xbf16>
    %c2_149 = arith.constant 2 : index
    %c2_150 = arith.constant 2 : index
    %c0_151 = arith.constant 0 : index
    %c0_152 = arith.constant 0 : index
    %165 = vector.load %arg2[%c2_149, %c2_150, %c0_151, %c0_152] : memref<3x9x32x32xbf16, #tpu.memory_space<vmem>>, vector<1x1x32x32xbf16>
    %166 = vector.shape_cast %165 : vector<1x1x32x32xbf16> to vector<32x32xbf16>
    %cst_153 = arith.constant dense<0.000000e+00> : vector<288x32xf32>
    %167 = tpu.matmul %164, %166, %cst_153 {dimension_numbers = #tpu.dot_dimension_numbers<[1], [0], [0], [1], [0, 0, 1, 1], [], []>} : vector<288x32xbf16>, vector<32x32xbf16>, vector<288x32xf32> -> vector<288x32xf32>
    %168 = arith.addf %162, %167 : vector<288x32xf32>
    %c18_154 = arith.constant 18 : index
    %c0_155 = arith.constant 0 : index
    %169 = vector.load %arg9[%c18_154, %c0_155] : memref<328x32xf32, #tpu.memory_space<vmem>>, vector<288x32xf32>
    %170 = arith.truncf %169 : vector<288x32xf32> to vector<288x32xbf16>
    %c2_156 = arith.constant 2 : index
    %c3_157 = arith.constant 3 : index
    %c0_158 = arith.constant 0 : index
    %c0_159 = arith.constant 0 : index
    %171 = vector.load %arg2[%c2_156, %c3_157, %c0_158, %c0_159] : memref<3x9x32x32xbf16, #tpu.memory_space<vmem>>, vector<1x1x32x32xbf16>
    %172 = vector.shape_cast %171 : vector<1x1x32x32xbf16> to vector<32x32xbf16>
    %cst_160 = arith.constant dense<0.000000e+00> : vector<288x32xf32>
    %173 = tpu.matmul %170, %172, %cst_160 {dimension_numbers = #tpu.dot_dimension_numbers<[1], [0], [0], [1], [0, 0, 1, 1], [], []>} : vector<288x32xbf16>, vector<32x32xbf16>, vector<288x32xf32> -> vector<288x32xf32>
    %174 = arith.addf %168, %173 : vector<288x32xf32>
    %c19_161 = arith.constant 19 : index
    %c0_162 = arith.constant 0 : index
    %175 = vector.load %arg9[%c19_161, %c0_162] : memref<328x32xf32, #tpu.memory_space<vmem>>, vector<288x32xf32>
    %176 = arith.truncf %175 : vector<288x32xf32> to vector<288x32xbf16>
    %c2_163 = arith.constant 2 : index
    %c4_164 = arith.constant 4 : index
    %c0_165 = arith.constant 0 : index
    %c0_166 = arith.constant 0 : index
    %177 = vector.load %arg2[%c2_163, %c4_164, %c0_165, %c0_166] : memref<3x9x32x32xbf16, #tpu.memory_space<vmem>>, vector<1x1x32x32xbf16>
    %178 = vector.shape_cast %177 : vector<1x1x32x32xbf16> to vector<32x32xbf16>
    %cst_167 = arith.constant dense<0.000000e+00> : vector<288x32xf32>
    %179 = tpu.matmul %176, %178, %cst_167 {dimension_numbers = #tpu.dot_dimension_numbers<[1], [0], [0], [1], [0, 0, 1, 1], [], []>} : vector<288x32xbf16>, vector<32x32xbf16>, vector<288x32xf32> -> vector<288x32xf32>
    %180 = arith.addf %174, %179 : vector<288x32xf32>
    %c20_168 = arith.constant 20 : index
    %c0_169 = arith.constant 0 : index
    %181 = vector.load %arg9[%c20_168, %c0_169] : memref<328x32xf32, #tpu.memory_space<vmem>>, vector<288x32xf32>
    %182 = arith.truncf %181 : vector<288x32xf32> to vector<288x32xbf16>
    %c2_170 = arith.constant 2 : index
    %c5_171 = arith.constant 5 : index
    %c0_172 = arith.constant 0 : index
    %c0_173 = arith.constant 0 : index
    %183 = vector.load %arg2[%c2_170, %c5_171, %c0_172, %c0_173] : memref<3x9x32x32xbf16, #tpu.memory_space<vmem>>, vector<1x1x32x32xbf16>
    %184 = vector.shape_cast %183 : vector<1x1x32x32xbf16> to vector<32x32xbf16>
    %cst_174 = arith.constant dense<0.000000e+00> : vector<288x32xf32>
    %185 = tpu.matmul %182, %184, %cst_174 {dimension_numbers = #tpu.dot_dimension_numbers<[1], [0], [0], [1], [0, 0, 1, 1], [], []>} : vector<288x32xbf16>, vector<32x32xbf16>, vector<288x32xf32> -> vector<288x32xf32>
    %186 = arith.addf %180, %185 : vector<288x32xf32>
    %c36_175 = arith.constant 36 : index
    %c0_176 = arith.constant 0 : index
    %187 = vector.load %arg9[%c36_175, %c0_176] : memref<328x32xf32, #tpu.memory_space<vmem>>, vector<288x32xf32>
    %188 = arith.truncf %187 : vector<288x32xf32> to vector<288x32xbf16>
    %c2_177 = arith.constant 2 : index
    %c6_178 = arith.constant 6 : index
    %c0_179 = arith.constant 0 : index
    %c0_180 = arith.constant 0 : index
    %189 = vector.load %arg2[%c2_177, %c6_178, %c0_179, %c0_180] : memref<3x9x32x32xbf16, #tpu.memory_space<vmem>>, vector<1x1x32x32xbf16>
    %190 = vector.shape_cast %189 : vector<1x1x32x32xbf16> to vector<32x32xbf16>
    %cst_181 = arith.constant dense<0.000000e+00> : vector<288x32xf32>
    %191 = tpu.matmul %188, %190, %cst_181 {dimension_numbers = #tpu.dot_dimension_numbers<[1], [0], [0], [1], [0, 0, 1, 1], [], []>} : vector<288x32xbf16>, vector<32x32xbf16>, vector<288x32xf32> -> vector<288x32xf32>
    %192 = arith.addf %186, %191 : vector<288x32xf32>
    %c37_182 = arith.constant 37 : index
    %c0_183 = arith.constant 0 : index
    %193 = vector.load %arg9[%c37_182, %c0_183] : memref<328x32xf32, #tpu.memory_space<vmem>>, vector<288x32xf32>
    %194 = arith.truncf %193 : vector<288x32xf32> to vector<288x32xbf16>
    %c2_184 = arith.constant 2 : index
    %c7_185 = arith.constant 7 : index
    %c0_186 = arith.constant 0 : index
    %c0_187 = arith.constant 0 : index
    %195 = vector.load %arg2[%c2_184, %c7_185, %c0_186, %c0_187] : memref<3x9x32x32xbf16, #tpu.memory_space<vmem>>, vector<1x1x32x32xbf16>
    %196 = vector.shape_cast %195 : vector<1x1x32x32xbf16> to vector<32x32xbf16>
    %cst_188 = arith.constant dense<0.000000e+00> : vector<288x32xf32>
    %197 = tpu.matmul %194, %196, %cst_188 {dimension_numbers = #tpu.dot_dimension_numbers<[1], [0], [0], [1], [0, 0, 1, 1], [], []>} : vector<288x32xbf16>, vector<32x32xbf16>, vector<288x32xf32> -> vector<288x32xf32>
    %198 = arith.addf %192, %197 : vector<288x32xf32>
    %c38_189 = arith.constant 38 : index
    %c0_190 = arith.constant 0 : index
    %199 = vector.load %arg9[%c38_189, %c0_190] : memref<328x32xf32, #tpu.memory_space<vmem>>, vector<288x32xf32>
    %200 = arith.truncf %199 : vector<288x32xf32> to vector<288x32xbf16>
    %c2_191 = arith.constant 2 : index
    %c8_192 = arith.constant 8 : index
    %c0_193 = arith.constant 0 : index
    %c0_194 = arith.constant 0 : index
    %201 = vector.load %arg2[%c2_191, %c8_192, %c0_193, %c0_194] : memref<3x9x32x32xbf16, #tpu.memory_space<vmem>>, vector<1x1x32x32xbf16>
    %202 = vector.shape_cast %201 : vector<1x1x32x32xbf16> to vector<32x32xbf16>
    %cst_195 = arith.constant dense<0.000000e+00> : vector<288x32xf32>
    %203 = tpu.matmul %200, %202, %cst_195 {dimension_numbers = #tpu.dot_dimension_numbers<[1], [0], [0], [1], [0, 0, 1, 1], [], []>} : vector<288x32xbf16>, vector<32x32xbf16>, vector<288x32xf32> -> vector<288x32xf32>
    %204 = arith.addf %198, %203 : vector<288x32xf32>
    %c2_196 = arith.constant 2 : index
    %c0_197 = arith.constant 0 : index
    %c0_198 = arith.constant 0 : index
    %205 = vector.load %arg3[%c2_196, %c0_197, %c0_198] : memref<3x1x32xf32, #tpu.memory_space<vmem>>, vector<1x1x32xf32>
    %206 = vector.shape_cast %205 : vector<1x1x32xf32> to vector<1x32xf32>
    %207 = vector.broadcast %206 : vector<1x32xf32> to vector<288x32xf32>
    %208 = arith.addf %204, %207 : vector<288x32xf32>
    %cst_199 = arith.constant 0.000000e+00 : f32
    %209 = vector.broadcast %cst_199 : f32 to vector<288x32xf32>
    %210 = arith.maximumf %208, %209 : vector<288x32xf32>
    %211 = arith.mulf %210, %23 : vector<288x32xf32>
    %c19_200 = arith.constant 19 : index
    %c0_201 = arith.constant 0 : index
    %212 = vector.load %arg9[%c19_200, %c0_201] : memref<328x32xf32, #tpu.memory_space<vmem>>, vector<288x32xf32>
    tpu.vector_store %arg9[%c19_200, %c0_201], %211 {strides = array<i32>} : memref<328x32xf32, #tpu.memory_space<vmem>>, vector<288x32xf32>,
    %c19_202 = arith.constant 19 : index
    %c0_203 = arith.constant 0 : index
    %213 = vector.load %arg9[%c19_202, %c0_203] : memref<328x32xf32, #tpu.memory_space<vmem>>, vector<288x32xf32>
    %214 = arith.truncf %213 : vector<288x32xf32> to vector<288x32xbf16>
    %c0_204 = arith.constant 0 : index
    %c0_205 = arith.constant 0 : index
    %215 = vector.load %arg4[%c0_204, %c0_205] : memref<32x1024xbf16, #tpu.memory_space<vmem>>, vector<32x1024xbf16>
    %cst_206 = arith.constant dense<0.000000e+00> : vector<288x1024xf32>
    %216 = tpu.matmul %214, %215, %cst_206 {dimension_numbers = #tpu.dot_dimension_numbers<[1], [0], [0], [1], [0, 0, 1, 1], [], []>} : vector<288x32xbf16>, vector<32x1024xbf16>, vector<288x1024xf32> -> vector<288x1024xf32>
    %c0_207 = arith.constant 0 : index
    %c0_208 = arith.constant 0 : index
    %217 = vector.load %arg5[%c0_207, %c0_208] : memref<1x1024xf32, #tpu.memory_space<vmem>>, vector<1x1024xf32>
    %218 = vector.broadcast %217 : vector<1x1024xf32> to vector<288x1024xf32>
    %219 = arith.addf %216, %218 : vector<288x1024xf32>
    %cst_209 = arith.constant 0.000000e+00 : f32
    %220 = vector.broadcast %cst_209 : f32 to vector<288x1024xf32>
    %221 = arith.maximumf %219, %220 : vector<288x1024xf32>
    %222 = arith.truncf %221 : vector<288x1024xf32> to vector<288x1024xbf16>
    %c0_210 = arith.constant 0 : index
    %c0_211 = arith.constant 0 : index
    %223 = vector.load %arg6[%c0_210, %c0_211] : memref<1024x128xbf16, #tpu.memory_space<vmem>>, vector<1024x128xbf16>
    %cst_212 = arith.constant dense<0.000000e+00> : vector<288x128xf32>
    %224 = tpu.matmul %222, %223, %cst_212 {dimension_numbers = #tpu.dot_dimension_numbers<[1], [0], [0], [1], [0, 0, 1, 1], [], []>} : vector<288x1024xbf16>, vector<1024x128xbf16>, vector<288x128xf32> -> vector<288x128xf32>
    %c0_213 = arith.constant 0 : index
    %c0_214 = arith.constant 0 : index
    %225 = vector.load %arg7[%c0_213, %c0_214] : memref<1x128xf32, #tpu.memory_space<vmem>>, vector<1x128xf32>
    %226 = vector.broadcast %225 : vector<1x128xf32> to vector<288x128xf32>
    %227 = arith.addf %224, %226 : vector<288x128xf32>
    %c0_215 = arith.constant 0 : index
    %c0_216 = arith.constant 0 : index
    %c0_217 = arith.constant 0 : index
    %228 = vector.load %arg8[%c0_215, %c0_216, %c0_217] : memref<1x288x128xf32, #tpu.memory_space<vmem>>, vector<1x288x128xf32>
    %229 = vector.shape_cast %228 : vector<1x288x128xf32> to vector<288x128xf32>
    %230 = vector.shape_cast %227 : vector<288x128xf32> to vector<1x288x128xf32>
    tpu.vector_store %arg8[%c0_215, %c0_216, %c0_217], %230 {strides = array<i32>} : memref<1x288x128xf32, #tpu.memory_space<vmem>>, vector<1x288x128xf32>,
    return
  }
  func.func @transform_0(%arg0: i32) -> (i32, i32, i32) {
    %c0_i32 = arith.constant 0 : i32
    %c0_i32_0 = arith.constant 0 : i32
    %c0_i32_1 = arith.constant 0 : i32
    return %arg0, %c0_i32, %c0_i32_0 : i32, i32, i32
  }
  func.func @transform_1(%arg0: i32) -> (i32, i32, i32, i32) {
    %c0_i32 = arith.constant 0 : i32
    %c0_i32_0 = arith.constant 0 : i32
    %c0_i32_1 = arith.constant 0 : i32
    %c0_i32_2 = arith.constant 0 : i32
    %c0_i32_3 = arith.constant 0 : i32
    return %c0_i32, %c0_i32_0, %c0_i32_1, %c0_i32_2 : i32, i32, i32, i32
  }
  func.func @transform_2(%arg0: i32) -> (i32, i32, i32) {
    %c0_i32 = arith.constant 0 : i32
    %c0_i32_0 = arith.constant 0 : i32
    %c0_i32_1 = arith.constant 0 : i32
    %c0_i32_2 = arith.constant 0 : i32
    return %c0_i32, %c0_i32_0, %c0_i32_1 : i32, i32, i32
  }
  func.func @transform_3(%arg0: i32) -> (i32, i32) {
    %c0_i32 = arith.constant 0 : i32
    %c0_i32_0 = arith.constant 0 : i32
    %c0_i32_1 = arith.constant 0 : i32
    return %c0_i32, %c0_i32_0 : i32, i32
  }
  func.func @transform_4(%arg0: i32) -> (i32, i32) {
    %c0_i32 = arith.constant 0 : i32
    %c0_i32_0 = arith.constant 0 : i32
    %c0_i32_1 = arith.constant 0 : i32
    return %c0_i32, %c0_i32_0 : i32, i32
  }
  func.func @transform_5(%arg0: i32) -> (i32, i32) {
    %c0_i32 = arith.constant 0 : i32
    %c0_i32_0 = arith.constant 0 : i32
    %c0_i32_1 = arith.constant 0 : i32
    return %c0_i32, %c0_i32_0 : i32, i32
  }
  func.func @transform_6(%arg0: i32) -> (i32, i32) {
    %c0_i32 = arith.constant 0 : i32
    %c0_i32_0 = arith.constant 0 : i32
    %c0_i32_1 = arith.constant 0 : i32
    return %c0_i32, %c0_i32_0 : i32, i32
  }
  func.func @transform_7(%arg0: i32) -> (i32, i32, i32) {
    %c0_i32 = arith.constant 0 : i32
    %c0_i32_0 = arith.constant 0 : i32
    %c0_i32_1 = arith.constant 0 : i32
    return %arg0, %c0_i32, %c0_i32_0 : i32, i32, i32
  }
}

</mosaic_0001>

<bundles_post_ra>
// kernel: initial_stage_forward.1
= control target key start
LH: loop header
LB: loop body
LE: loop exit
PB: predicated region body
PF: predicated region fallthrough
CT: control target
= control target key end

     0   :  { %s17136_s24 = smov 0   ;;  %s20795_s0 = inlined_call_operand.vmem [shape: f32[2,328,32], index: 0, kind: input, shape index: {}]   ;;  %s20796_s1 = inlined_call_operand.vmem [shape: bf16[3,9,32,32], index: 1, kind: input, shape index: {}]   ;;  %s20797_s2 = inlined_call_operand.vmem [shape: f32[3,1,32], index: 2, kind: input, shape index: {}]   ;;  %s20798_s3 = inlined_call_operand.vmem [shape: bf16[32,1024], index: 3, kind: input, shape index: {}]   ;;  %s20799_s4 = inlined_call_operand.vmem [shape: f32[1,1024], index: 4, kind: input, shape index: {}]   ;;  %s20800_s5 = inlined_call_operand.vmem [shape: bf16[1024,128], index: 5, kind: input, shape index: {}]   ;;  %s20801_s6 = inlined_call_operand.vmem [shape: f32[1,128], index: 6, kind: input, shape index: {}]   ;;  %s20802_s7 = inlined_call_operand.vmem [shape: f32[2,288,128], index: 7, kind: output, shape index: {}]  }
   0x1 LB: > { %s13296_s25 = sadd.s32 4294967295, %s17092_s24   ;;  %p13300_p0 = scmp.ge.s32.totalorder %s17092_s24, 1  ;;  %s17092_s24 = sphi %s17136_s24, %s17_s24  }
   0x2   : > { %p237_p1 = scmp.lt.s32.totalorder %s17092_s24, 3 }
   0x4   : > { %p238_p2 = pnand %p13300_p0, %p237_p1 }
   0x6   : > { %241 = sbr.rel (%p238_p2) target bundleno = 3617 (0xe21), region = 48 }
   0xd   : > { %v16967_v0 = vld [vmem:[%s20796_s1 + $0x10] sm:$0xff]   ;;  %p269_p3 = scmp.lt.s32.totalorder %s13296_s25, 1  ;;  %v16968_v1 = vld [vmem:[%s20796_s1 + $0x18] sm:$0xff]   ;;  %v17156_v2 = vld [vmem:[%s20796_s1] sm:$0xff]   ;;  %vm321_vm0 = vcmask 261120  }
   0xe   : > { %14683 = vmatprep.subr.bf16.mxu0 %v16967_v0  ;;  %v16970_v36 = vld [vmem:[%s20796_s1 + $0x8] sm:$0xff]   ;;  %v17224_v42 = vld [vmem:[%s20796_s1 + $0x20] sm:$0xff]  }
   0xf   : > { %s21036_s25 = smov (!%p269_p3, %s13296_s25), 1  ;;  %14684 = vmatpush3.bf16.msra.mxu0 %v16967_v0 }
  0x10   : > { %14685 = vmatprep.subr.bf16.mxu0 %v16968_v1  ;;  %s16883_s30 = smul.u32 328, %s21036_s25 }
  0x11   : > { %s16884_s13 = smul.u32 288, %s21036_s25 }
  0x12   : > { %s17161_s12 = scalar_lea.vmem %s20795_s0, %s16883_s30 }
  0x13   : > { %14686 = vmatpush3.bf16.msra.mxu0 %v16968_v1  ;;  %v280_v3 = vld [vmem:[%s17161_s12] sm:$0xff]  ;;  %v281_v4 = vld [vmem:[%s17161_s12 + $0x8] sm:$0xff]  ;;  %v282_v5 = vld [vmem:[%s17161_s12 + $0x10] sm:$0xff]  ;;  %s20718_s17 = scalar_lea.vmem %s20802_s7, %s16884_s13 }
  0x14   : > { %322 = vst.msk [vmem:[#allocation2] sm:$0xff] %vm321_vm0, %v280_v3  ;;  %323 = vst.msk [vmem:[#allocation2 + $0x8] sm:$0xff] %vm321_vm0, %v281_v4  ;;  %14723 = vmatprep.subr.bf16.mxu0 %v17156_v2  ;;  %v283_v6 = vld [vmem:[%s17161_s12 + $0x18] sm:$0xff]  ;;  %v284_v7 = vld [vmem:[%s17161_s12 + $0x20] sm:$0xff] }
  0x15   : > { %324 = vst.msk [vmem:[#allocation2 + $0x10] sm:$0xff] %vm321_vm0, %v282_v5  ;;  %v285_v8 = vld [vmem:[%s17161_s12 + $0x28] sm:$0xff]  ;;  %325 = vst.msk [vmem:[#allocation2 + $0x18] sm:$0xff] %vm321_vm0, %v283_v6  ;;  %v286_v9 = vld [vmem:[%s17161_s12 + $0x30] sm:$0xff] }
  0x16   : > { %326 = vst.msk [vmem:[#allocation2 + $0x20] sm:$0xff] %vm321_vm0, %v284_v7  ;;  %327 = vst.msk [vmem:[#allocation2 + $0x28] sm:$0xff] %vm321_vm0, %v285_v8  ;;  %v287_v10 = vld [vmem:[%s17161_s12 + $0x38] sm:$0xff]  ;;  %v288_v11 = vld [vmem:[%s17161_s12 + $0x40] sm:$0xff] }
  0x17   : > { %328 = vst.msk [vmem:[#allocation2 + $0x30] sm:$0xff] %vm321_vm0, %v286_v9  ;;  %329 = vst.msk [vmem:[#allocation2 + $0x38] sm:$0xff] %vm321_vm0, %v287_v10  ;;  %v289_v12 = vld [vmem:[%s17161_s12 + $0x48] sm:$0xff]  ;;  %v290_v13 = vld [vmem:[%s17161_s12 + $0x50] sm:$0xff] }
  0x18   : > { %330 = vst.msk [vmem:[#allocation2 + $0x40] sm:$0xff] %vm321_vm0, %v288_v11  ;;  %v291_v14 = vld [vmem:[%s17161_s12 + $0x58] sm:$0xff]  ;;  %331 = vst.msk [vmem:[#allocation2 + $0x48] sm:$0xff] %vm321_vm0, %v289_v12  ;;  %v292_v15 = vld [vmem:[%s17161_s12 + $0x60] sm:$0xff] }
  0x19   : > { %332 = vst.msk [vmem:[#allocation2 + $0x50] sm:$0xff] %vm321_vm0, %v290_v13  ;;  %333 = vst.msk [vmem:[#allocation2 + $0x58] sm:$0xff] %vm321_vm0, %v291_v14  ;;  %v293_v16 = vld [vmem:[%s17161_s12 + $0x68] sm:$0xff]  ;;  %v294_v17 = vld [vmem:[%s17161_s12 + $0x70] sm:$0xff] }
  0x1a   : > { %334 = vst.msk [vmem:[#allocation2 + $0x60] sm:$0xff] %vm321_vm0, %v292_v15  ;;  %335 = vst.msk [vmem:[#allocation2 + $0x68] sm:$0xff] %vm321_vm0, %v293_v16  ;;  %v295_v18 = vld [vmem:[%s17161_s12 + $0x78] sm:$0xff]  ;;  %v296_v19 = vld [vmem:[%s17161_s12 + $0x80] sm:$0xff] }
  0x1b   : > { %336 = vst.msk [vmem:[#allocation2 + $0x70] sm:$0xff] %vm321_vm0, %v294_v17  ;;  %v297_v20 = vld [vmem:[%s17161_s12 + $0x88] sm:$0xff]  ;;  %337 = vst.msk [vmem:[#allocation2 + $0x78] sm:$0xff] %vm321_vm0, %v295_v18  ;;  %v298_v21 = vld [vmem:[%s17161_s12 + $0x90] sm:$0xff] }
  0x1c   : > { %338 = vst.msk [vmem:[#allocation2 + $0x80] sm:$0xff] %vm321_vm0, %v296_v19  ;;  %339 = vst.msk [vmem:[#allocation2 + $0x88] sm:$0xff] %vm321_vm0, %v297_v20  ;;  %v299_v22 = vld [vmem:[%s17161_s12 + $0x98] sm:$0xff]  ;;  %v300_v23 = vld [vmem:[%s17161_s12 + $0xa0] sm:$0xff] }
  0x1d   : > { %340 = vst.msk [vmem:[#allocation2 + $0x90] sm:$0xff] %vm321_vm0, %v298_v21  ;;  %341 = vst.msk [vmem:[#allocation2 + $0x98] sm:$0xff] %vm321_vm0, %v299_v22  ;;  %v301_v24 = vld [vmem:[%s17161_s12 + $0xa8] sm:$0xff]  ;;  %v302_v25 = vld [vmem:[%s17161_s12 + $0xb0] sm:$0xff] }
  0x1e   : > { %342 = vst.msk [vmem:[#allocation2 + $0xa0] sm:$0xff] %vm321_vm0, %v300_v23  ;;  %v303_v26 = vld [vmem:[%s17161_s12 + $0xb8] sm:$0xff]  ;;  %v1142_v27 = vld [vmem:[#allocation2 + $0x1] sm:$0xff]  ;;  %v1143_v28 = vld [vmem:[#allocation2 + $0x9] sm:$0xff] }
  0x1f   : > { %343 = vst.msk [vmem:[#allocation2 + $0xa8] sm:$0xff] %vm321_vm0, %v301_v24  ;;  %344 = vst.msk [vmem:[#allocation2 + $0xb0] sm:$0xff] %vm321_vm0, %v302_v25  ;;  %v304_v29 = vld [vmem:[%s17161_s12 + $0xc0] sm:$0xff]  ;;  %v1178_v30 = vpack.c.bf16 %v1143_v28, %v1142_v27  ;;  %v1144_v31 = vld [vmem:[#allocation2 + $0x11] sm:$0xff] }
  0x20   : > { %345 = vst.msk [vmem:[#allocation2 + $0xb8] sm:$0xff] %vm321_vm0, %v303_v26  ;;  %v1145_v32 = vld [vmem:[#allocation2 + $0x19] sm:$0xff]  ;;  %v1146_v33 = vld [vmem:[#allocation2 + $0x21] sm:$0xff]  ;;  %346 = vst.msk [vmem:[#allocation2 + $0xc0] sm:$0xff] %vm321_vm0, %v304_v29 }
  0x21   : > { %v1179_v34 = vpack.c.bf16 %v1145_v32, %v1144_v31  ;;  %v1147_v35 = vld [vmem:[#allocation2 + $0x29] sm:$0xff]  ;;  %14687 = vmatprep.mubr.msk.bf16.mxu0 %vm321_vm0, %v1178_v30  ;;  %v1148_v38 = vld [vmem:[#allocation2 + $0x31] sm:$0xff]  ;;  %v1149_v39 = vld [vmem:[#allocation2 + $0x39] sm:$0xff] }
  0x22   : > { %v1180_v37 = vpack.c.bf16 %v1147_v35, %v1146_v33  ;;  %v1150_v40 = vld [vmem:[#allocation2 + $0x41] sm:$0xff]  ;;  %v1151_v41 = vld [vmem:[#allocation2 + $0x49] sm:$0xff]  ;;  %v1181_v43 = vpack.c.bf16 %v1149_v39, %v1148_v38  ;;  %v307_v47 = vld [vmem:[%s17161_s12 + $0xd8] sm:$0xff] }
  0x23   : > { %14688 = vmatmul.mubr.msk.bf16.vlgmr.msra.gmra.mrb[0].mxu0 %vm321_vm0, %v1179_v34  ;;  %v305_v44 = vld [vmem:[%s17161_s12 + $0xc8] sm:$0xff]  ;;  %v306_v45 = vld [vmem:[%s17161_s12 + $0xd0] sm:$0xff]  ;;  %v1182_v46 = vpack.c.bf16 %v1151_v41, %v1150_v40  ;;  %v308_v48 = vld [vmem:[%s17161_s12 + $0xe0] sm:$0xff]  ;;  %349 = vst.msk [vmem:[#allocation2 + $0xd8] sm:$0xff] %vm321_vm0, %v307_v47 }
  0x24   : > { %14724 = vmatpush3.bf16.msra.mxu0 %v17156_v2  ;;  %14691 = vmatprep.mubr.msk.bf16.mxu0 %vm321_vm0, %v1180_v37  ;;  %347 = vst.msk [vmem:[#allocation2 + $0xc8] sm:$0xff] %vm321_vm0, %v305_v44  ;;  %348 = vst.msk [vmem:[#allocation2 + $0xd0] sm:$0xff] %vm321_vm0, %v306_v45  ;;  %v309_v49 = vld [vmem:[%s17161_s12 + $0xe8] sm:$0xff]  ;;  %v310_v50 = vld [vmem:[%s17161_s12 + $0xf0] sm:$0xff] }
  0x25   : > { %14725 = vmatprep.subr.bf16.mxu0 %v16970_v36  ;;  %350 = vst.msk [vmem:[#allocation2 + $0xe0] sm:$0xff] %vm321_vm0, %v308_v48  ;;  %351 = vst.msk [vmem:[#allocation2 + $0xe8] sm:$0xff] %vm321_vm0, %v309_v49  ;;  %v311_v51 = vld [vmem:[%s17161_s12 + $0xf8] sm:$0xff]  ;;  %v312_v52 = vld [vmem:[%s17161_s12 + $0x100] sm:$0xff] }
  0x26   : > { %352 = vst.msk [vmem:[#allocation2 + $0xf0] sm:$0xff] %vm321_vm0, %v310_v50  ;;  %353 = vst.msk [vmem:[#allocation2 + $0xf8] sm:$0xff] %vm321_vm0, %v311_v51  ;;  %v313_v53 = vld [vmem:[%s17161_s12 + $0x108] sm:$0xff]  ;;  %v314_v54 = vld [vmem:[%s17161_s12 + $0x110] sm:$0xff] }
  0x27   : > { %354 = vst.msk [vmem:[#allocation2 + $0x100] sm:$0xff] %vm321_vm0, %v312_v52  ;;  %v315_v55 = vld [vmem:[%s17161_s12 + $0x118] sm:$0xff]  ;;  %355 = vst.msk [vmem:[#allocation2 + $0x108] sm:$0xff] %vm321_vm0, %v313_v53  ;;  %v316_v56 = vld [vmem:[%s17161_s12 + $0x120] sm:$0xff] }
  0x28   : > { %14726 = vmatpush3.bf16.msra.mxu0 %v16970_v36  ;;  %356 = vst.msk [vmem:[#allocation2 + $0x110] sm:$0xff] %vm321_vm0, %v314_v54  ;;  %357 = vst.msk [vmem:[#allocation2 + $0x118] sm:$0xff] %vm321_vm0, %v315_v55  ;;  %v1152_v57 = vld [vmem:[#allocation2 + $0x51] sm:$0xff]  ;;  %v1153_v58 = vld [vmem:[#allocation2 + $0x59] sm:$0xff] }
  0x29   : > { %14763 = vmatprep.subr.bf16.mxu0 %v17224_v42  ;;  %358 = vst.msk [vmem:[#allocation2 + $0x120] sm:$0xff] %vm321_vm0, %v316_v56  ;;  %v1154_v59 = vld [vmem:[#allocation2 + $0x61] sm:$0xff]  ;;  %v1155_v60 = vld [vmem:[#allocation2 + $0x69] sm:$0xff]  ;;  %v1183_v61 = vpack.c.bf16 %v1153_v58, %v1152_v57  ;;  %v1156_v63 = vld [vmem:[#allocation2 + $0x71] sm:$0xff] }
  0x2a   : > { %v1184_v62 = vpack.c.bf16 %v1155_v60, %v1154_v59  ;;  %v1157_v0 = vld [vmem:[#allocation2 + $0x79] sm:$0xff]  ;;  %v1158_v1 = vld [vmem:[#allocation2 + $0x81] sm:$0xff]  ;;  %v1159_v2 = vld [vmem:[#allocation2 + $0x89] sm:$0xff] }
  0x2b   : > { %14692 = vmatmul.mubr.msk.bf16.gmra.mrb[4].mxu0 %vm321_vm0, %v1181_v43  ;;  %v1185_v3 = vpack.c.bf16 %v1157_v0, %v1156_v63  ;;  %v1186_v4 = vpack.c.bf16 %v1159_v2, %v1158_v1  ;;  %v1160_v5 = vld [vmem:[#allocation2 + $0x91] sm:$0xff]  ;;  %v1161_v6 = vld [vmem:[#allocation2 + $0x99] sm:$0xff]  ;;  %v1162_v7 = vld [vmem:[#allocation2 + $0xa1] sm:$0xff] }
  0x2c   : > { %14695 = vmatprep.mubr.msk.bf16.mxu0 %vm321_vm0, %v1182_v46  ;;  %v1163_v8 = vld [vmem:[#allocation2 + $0xa9] sm:$0xff]  ;;  %v1187_v9 = vpack.c.bf16 %v1161_v6, %v1160_v5  ;;  %v1164_v11 = vld [vmem:[#allocation2 + $0xb1] sm:$0xff]  ;;  %v1165_v12 = vld [vmem:[#allocation2 + $0xb9] sm:$0xff] }
  0x2d   : > { %v1188_v10 = vpack.c.bf16 %v1163_v8, %v1162_v7  ;;  %v1166_v13 = vld [vmem:[#allocation2 + $0xc1] sm:$0xff]  ;;  %v1167_v14 = vld [vmem:[#allocation2 + $0xc9] sm:$0xff]  ;;  %v1189_v15 = vpack.c.bf16 %v1165_v12, %v1164_v11  ;;  %v1168_v17 = vld [vmem:[#allocation2 + $0xd1] sm:$0xff] }
  0x2e   : > { %v1190_v16 = vpack.c.bf16 %v1167_v14, %v1166_v13  ;;  %v1169_v18 = vld [vmem:[#allocation2 + $0xd9] sm:$0xff]  ;;  %v1170_v19 = vld [vmem:[#allocation2 + $0xe1] sm:$0xff]  ;;  %v1171_v20 = vld [vmem:[#allocation2 + $0xe9] sm:$0xff] }
  0x2f   : > { %v1191_v21 = vpack.c.bf16 %v1169_v18, %v1168_v17  ;;  %v1192_v22 = vpack.c.bf16 %v1171_v20, %v1170_v19  ;;  %v1172_v23 = vld [vmem:[#allocation2 + $0xf1] sm:$0xff]  ;;  %v1173_v24 = vld [vmem:[#allocation2 + $0xf9] sm:$0xff]  ;;  %v1174_v25 = vld [vmem:[#allocation2 + $0x101] sm:$0xff] }
  0x30   : > { %v1175_v26 = vld [vmem:[#allocation2 + $0x109] sm:$0xff]  ;;  %v1193_v27 = vpack.c.bf16 %v1173_v24, %v1172_v23  ;;  %v1084_v29 = vld [vmem:[#allocation2] sm:$0xff]  ;;  %v1176_v31 = vld [vmem:[#allocation2 + $0x111] sm:$0xff] }
  0x31   : > { %v1194_v28 = vpack.c.bf16 %v1175_v26, %v1174_v25  ;;  %v1085_v30 = vld [vmem:[#allocation2 + $0x8] sm:$0xff]  ;;  %v1177_v32 = vld [vmem:[#allocation2 + $0x119] sm:$0xff]  ;;  %v1086_v35 = vld [vmem:[#allocation2 + $0x10] sm:$0xff] }
  0x32   : > { %v1195_v33 = vpack.c.bf16 %v1177_v32, %v1176_v31  ;;  %v1120_v34 = vpack.c.bf16 %v1085_v30, %v1084_v29  ;;  %v1087_v36 = vld [vmem:[#allocation2 + $0x18] sm:$0xff]  ;;  %v1088_v37 = vld [vmem:[#allocation2 + $0x20] sm:$0xff]  ;;  %v1089_v38 = vld [vmem:[#allocation2 + $0x28] sm:$0xff] }
  0x33   : > { %14696 = vmatmul.mubr.msk.bf16.gmra.mrb[8].mxu0 %vm321_vm0, %v1183_v61  ;;  %v1121_v39 = vpack.c.bf16 %v1087_v36, %v1086_v35  ;;  %v16972_v40 = vld [vmem:[%s20796_s1 + $0x28] sm:$0xff]   ;;  %v1122_v41 = vpack.c.bf16 %v1089_v38, %v1088_v37  ;;  %v1090_v43 = vld [vmem:[#allocation2 + $0x30] sm:$0xff]  ;;  %v1091_v44 = vld [vmem:[#allocation2 + $0x38] sm:$0xff] }
  0x34   : > { %14699 = vmatprep.mubr.msk.bf16.mxu0 %vm321_vm0, %v1184_v62  ;;  %v1092_v45 = vld [vmem:[#allocation2 + $0x40] sm:$0xff]  ;;  %v1093_v46 = vld [vmem:[#allocation2 + $0x48] sm:$0xff]  ;;  %v17276_v47 = vld [vmem:[%s20796_s1 + $0x30] sm:$0xff]   ;;  %v1123_v48 = vpack.c.bf16 %v1091_v44, %v1090_v43 }
  0x35   : > { %v1124_v49 = vpack.c.bf16 %v1093_v46, %v1092_v45  ;;  %v1094_v50 = vld [vmem:[#allocation2 + $0x50] sm:$0xff]  ;;  %v1095_v51 = vld [vmem:[#allocation2 + $0x58] sm:$0xff]  ;;  %v1096_v52 = vld [vmem:[#allocation2 + $0x60] sm:$0xff] }
  0x36   : > { %v1125_v53 = vpack.c.bf16 %v1095_v51, %v1094_v50  ;;  %v1098_v55 = vld [vmem:[#allocation2 + $0x70] sm:$0xff]  ;;  %v1099_v56 = vld [vmem:[#allocation2 + $0x78] sm:$0xff]  ;;  %v1100_v57 = vld [vmem:[#allocation2 + $0x80] sm:$0xff] }
  0x37   : > { %v1101_v58 = vld [vmem:[#allocation2 + $0x88] sm:$0xff]  ;;  %v1127_v59 = vpack.c.bf16 %v1099_v56, %v1098_v55  ;;  %v1102_v61 = vld [vmem:[#allocation2 + $0x90] sm:$0xff]  ;;  %v1103_v62 = vld [vmem:[#allocation2 + $0x98] sm:$0xff] }
  0x38   : > { %v1128_v60 = vpack.c.bf16 %v1101_v58, %v1100_v57  ;;  %v1104_v63 = vld [vmem:[#allocation2 + $0xa0] sm:$0xff]  ;;  %v1105_v0 = vld [vmem:[#allocation2 + $0xa8] sm:$0xff]  ;;  %v1129_v1 = vpack.c.bf16 %v1103_v62, %v1102_v61  ;;  %v16974_v35 = vld [vmem:[%s20796_s1 + $0x38] sm:$0xff]  }
  0x39   : > { %v1130_v2 = vpack.c.bf16 %v1105_v0, %v1104_v63  ;;  %v1108_v5 = vld [vmem:[#allocation2 + $0xc0] sm:$0xff]  ;;  %v1109_v6 = vld [vmem:[#allocation2 + $0xc8] sm:$0xff]  ;;  %v1693_v36 = vld [vmem:[#allocation2 + $0x32] sm:$0xff] }
  0x3a   : > { %v1132_v8 = vpack.c.bf16 %v1109_v6, %v1108_v5  ;;  %v1112_v11 = vld [vmem:[#allocation2 + $0xe0] sm:$0xff]  ;;  %v1113_v12 = vld [vmem:[#allocation2 + $0xe8] sm:$0xff]  ;;  %v1697_v44 = vld [vmem:[#allocation2 + $0x52] sm:$0xff] }
  0x3b   : > { %14700 = vmatmul.mubr.msk.bf16.gmra.mrb[12].mxu0 %vm321_vm0, %v1185_v3  ;;  %v1106_v3 = vld [vmem:[#allocation2 + $0xb0] sm:$0xff]  ;;  %v1134_v14 = vpack.c.bf16 %v1113_v12, %v1112_v11  ;;  %v1116_v17 = vld [vmem:[#allocation2 + $0x100] sm:$0xff]  ;;  %v1117_v18 = vld [vmem:[#allocation2 + $0x108] sm:$0xff] }
  0x3c   : > { %14703 = vmatprep.mubr.msk.bf16.mxu0 %vm321_vm0, %v1186_v4  ;;  %v1107_v4 = vld [vmem:[#allocation2 + $0xb8] sm:$0xff]  ;;  %v1136_v20 = vpack.c.bf16 %v1117_v18, %v1116_v17  ;;  %v1687_v23 = vld [vmem:[#allocation2 + $0x2] sm:$0xff]  ;;  %v1688_v24 = vld [vmem:[#allocation2 + $0xa] sm:$0xff] }
  0x3d   : > { %v1131_v7 = vpack.c.bf16 %v1107_v4, %v1106_v3  ;;  %v1723_v26 = vpack.c.bf16 %v1688_v24, %v1687_v23  ;;  %v1691_v29 = vld [vmem:[#allocation2 + $0x22] sm:$0xff]  ;;  %v1692_v30 = vld [vmem:[#allocation2 + $0x2a] sm:$0xff]  ;;  %v1694_v37 = vld [vmem:[#allocation2 + $0x3a] sm:$0xff] }
  0x3e   : > { %v17297_v32 = vpack.c.bf16 %v1692_v30, %v1691_v29  ;;  %v1695_v38 = vld [vmem:[#allocation2 + $0x42] sm:$0xff]  ;;  %v1698_v45 = vld [vmem:[#allocation2 + $0x5a] sm:$0xff]  ;;  %v1701_v50 = vld [vmem:[#allocation2 + $0x72] sm:$0xff] }
  0x3f   : > { %v1699_v46 = vld [vmem:[#allocation2 + $0x62] sm:$0xff]  ;;  %v1702_v51 = vld [vmem:[#allocation2 + $0x7a] sm:$0xff]  ;;  %v1705_v55 = vld [vmem:[#allocation2 + $0x92] sm:$0xff] }
  0x40   : > { %v1706_v56 = vld [vmem:[#allocation2 + $0x9a] sm:$0xff]  ;;  %v1707_v57 = vld [vmem:[#allocation2 + $0xa2] sm:$0xff]  ;;  %v1708_v58 = vld [vmem:[#allocation2 + $0xaa] sm:$0xff] }
  0x41   : > { %v1709_v61 = vld [vmem:[#allocation2 + $0xb2] sm:$0xff]  ;;  %v1710_v62 = vld [vmem:[#allocation2 + $0xba] sm:$0xff]  ;;  %v1711_v63 = vld [vmem:[#allocation2 + $0xc2] sm:$0xff] }
  0x42   : > { %v1712_v0 = vld [vmem:[#allocation2 + $0xca] sm:$0xff]  ;;  %v1713_v3 = vld [vmem:[#allocation2 + $0xd2] sm:$0xff]  ;;  %v1714_v4 = vld [vmem:[#allocation2 + $0xda] sm:$0xff] }
  0x43   : > { %14704 = vmatmul.mubr.msk.bf16.gmra.mrb[16].mxu0 %vm321_vm0, %v1187_v9  ;;  %v1110_v9 = vld [vmem:[#allocation2 + $0xd0] sm:$0xff]  ;;  %v1715_v5 = vld [vmem:[#allocation2 + $0xe2] sm:$0xff] }
  0x44   : > { %14707 = vmatprep.mubr.msk.bf16.mxu0 %vm321_vm0, %v1188_v10  ;;  %v1111_v10 = vld [vmem:[#allocation2 + $0xd8] sm:$0xff]  ;;  %v1716_v6 = vld [vmem:[#allocation2 + $0xea] sm:$0xff]  ;;  %v1719_v11 = vld [vmem:[#allocation2 + $0x102] sm:$0xff] }
  0x45   : > { %v1133_v13 = vpack.c.bf16 %v1111_v10, %v1110_v9  ;;  %v1717_v9 = vld [vmem:[#allocation2 + $0xf2] sm:$0xff]  ;;  %v1718_v10 = vld [vmem:[#allocation2 + $0xfa] sm:$0xff]  ;;  %v1720_v12 = vld [vmem:[#allocation2 + $0x10a] sm:$0xff] }
  0x46   : > { %v16976_v18 = vld [vmem:[%s20796_s1 + $0x48] sm:$0xff]   ;;  %v2364_v23 = vld [vmem:[#allocation2 + $0x1b] sm:$0xff] }
  0x47   : > { %v2368_v29 = vld [vmem:[#allocation2 + $0x3b] sm:$0xff] }
  0x4b   : > { %14708 = vmatmul.mubr.msk.bf16.gmra.mrb[20].mxu0 %vm321_vm0, %v1189_v15  ;;  %v1114_v15 = vld [vmem:[#allocation2 + $0xf0] sm:$0xff] }
  0x4c   : > { %14711 = vmatprep.mubr.msk.bf16.mxu0 %vm321_vm0, %v1190_v16  ;;  %v1115_v16 = vld [vmem:[#allocation2 + $0xf8] sm:$0xff] }
  0x4d   : > { %v1135_v19 = vpack.c.bf16 %v1115_v16, %v1114_v15  ;;  %v1721_v15 = vld [vmem:[#allocation2 + $0x112] sm:$0xff]  ;;  %v1722_v16 = vld [vmem:[#allocation2 + $0x11a] sm:$0xff] }
  0x4e   : > { %v1740_v17 = vpack.c.bf16 %v1722_v16, %v1721_v15  ;;  %v2702_v15 = vld [vmem:[#allocation2 + $0x1c] sm:$0xff] }
  0x53   : > { %14712 = vmatmul.mubr.msk.bf16.gmra.mrb[24].mxu0 %vm321_vm0, %v1191_v21  ;;  %v1118_v21 = vld [vmem:[#allocation2 + $0x110] sm:$0xff] }
  0x54   : > { %14715 = vmatprep.mubr.msk.bf16.mxu0 %vm321_vm0, %v1192_v22  ;;  %v1119_v22 = vld [vmem:[#allocation2 + $0x118] sm:$0xff] }
  0x55   : > { %v1137_v25 = vpack.c.bf16 %v1119_v22, %v1118_v21  ;;  %v2363_v22 = vld [vmem:[#allocation2 + $0x13] sm:$0xff] }
  0x5b   : > { %14716 = vmatmul.mubr.msk.bf16.gmra.mrb[28].mxu0 %vm321_vm0, %v1193_v27  ;;  %v1689_v27 = vld [vmem:[#allocation2 + $0x12] sm:$0xff] }
  0x5c   : > { %14719 = vmatprep.mubr.msk.bf16.mxu0 %vm321_vm0, %v1194_v28  ;;  %v1690_v28 = vld [vmem:[#allocation2 + $0x1a] sm:$0xff] }
  0x5d   : > { %v17295_v31 = vpack.c.bf16 %v1690_v28, %v1689_v27  ;;  %v2366_v27 = vld [vmem:[#allocation2 + $0x2b] sm:$0xff]  ;;  %v2367_v28 = vld [vmem:[#allocation2 + $0x33] sm:$0xff] }
  0x63   : > { %14720 = vmatmul.mubr.msk.bf16.gmra.mrb[32].mxu0 %vm321_vm0, %v1195_v33  ;;  %v317_v33 = vld [vmem:[%s17161_s12 + $0x128] sm:$0xff] }
  0x64   : > { %14727 = vmatprep.mubr.msk.bf16.mxu0 %vm321_vm0, %v1120_v34  ;;  %v318_v34 = vld [vmem:[%s17161_s12 + $0x130] sm:$0xff]  ;;  %359 = vst.msk [vmem:[#allocation2 + $0x128] sm:$0xff] %vm321_vm0, %v317_v33  ;;  %v2369_v33 = vld [vmem:[#allocation2 + $0x43] sm:$0xff] }
  0x65   : > { %360 = vst.msk [vmem:[#allocation2 + $0x130] sm:$0xff] %vm321_vm0, %v318_v34  ;;  %v2370_v34 = vld [vmem:[#allocation2 + $0x4b] sm:$0xff] }
  0x6b   : > { %14728 = vmatmul.mubr.msk.bf16.vlgmr.msra.gmra.mrb[0].mxu0 %vm321_vm0, %v1121_v39  ;;  %v1696_v39 = vld [vmem:[#allocation2 + $0x4a] sm:$0xff] }
  0x6c   : > { %14764 = vmatpush3.bf16.msra.mxu0 %v17224_v42  ;;  %14731 = vmatprep.mubr.msk.bf16.mxu0 %vm321_vm0, %v1122_v41  ;;  %v1097_v42 = vld [vmem:[#allocation2 + $0x68] sm:$0xff]  ;;  %v1726_v41 = vpack.c.bf16 %v1694_v37, %v1693_v36  ;;  %v17314_v43 = vpack.c.bf16 %v1696_v39, %v1695_v38  ;;  %v2372_v36 = vld [vmem:[#allocation2 + $0x5b] sm:$0xff]  ;;  %v2402_v38 = vpack.c.bf16 %v2370_v34, %v2369_v33 }
  0x6d   : > { %14765 = vmatprep.subr.bf16.mxu0 %v16972_v40  ;;  %v1126_v54 = vpack.c.bf16 %v1097_v42, %v1096_v52  ;;  %v1703_v52 = vld [vmem:[#allocation2 + $0x82] sm:$0xff]  ;;  %v1704_v42 = vld [vmem:[#allocation2 + $0x8a] sm:$0xff] }
  0x6e   : > { %v2060_v21 = vld [vmem:[#allocation2 + $0x12a] sm:$0xff]  ;;  %v17368_v37 = vld [vmem:[%s20796_s1 + $0x60] sm:$0xff]  }
  0x6f   : > { %v2711_v34 = vld [vmem:[#allocation2 + $0x64] sm:$0xff] }
  0x70   : > { %14766 = vmatpush3.bf16.msra.mxu0 %v16972_v40  ;;  %v16975_v40 = vld [vmem:[%s20796_s1 + $0x40] sm:$0xff]  }
  0x71   : > { %14803 = vmatprep.subr.bf16.mxu0 %v17276_v47 }
  0x73   : > { %14732 = vmatmul.mubr.msk.bf16.gmra.mrb[4].mxu0 %vm321_vm0, %v1123_v48  ;;  %v1728_v48 = vpack.c.bf16 %v1698_v45, %v1697_v44  ;;  %v2376_v44 = vld [vmem:[#allocation2 + $0x7b] sm:$0xff] }
  0x74   : > { %14735 = vmatprep.mubr.msk.bf16.mxu0 %vm321_vm0, %v1124_v49 }
  0x7b   : > { %14736 = vmatmul.mubr.msk.bf16.gmra.mrb[8].mxu0 %vm321_vm0, %v1125_v53  ;;  %v1730_v53 = vpack.c.bf16 %v1702_v51, %v1701_v50  ;;  %v2380_v50 = vld [vmem:[#allocation2 + $0x9b] sm:$0xff] }
  0x7c   : > { %14739 = vmatprep.mubr.msk.bf16.mxu0 %vm321_vm0, %v1126_v54  ;;  %v1731_v54 = vpack.c.bf16 %v1704_v42, %v1703_v52  ;;  %v2381_v42 = vld [vmem:[#allocation2 + $0xa3] sm:$0xff] }
  0x83   : > { %14740 = vmatmul.mubr.msk.bf16.gmra.mrb[12].mxu0 %vm321_vm0, %v1127_v59  ;;  %v1732_v59 = vpack.c.bf16 %v1706_v56, %v1705_v55  ;;  %v2384_v55 = vld [vmem:[#allocation2 + $0xbb] sm:$0xff] }
  0x84   : > { %14743 = vmatprep.mubr.msk.bf16.mxu0 %vm321_vm0, %v1128_v60  ;;  %v1733_v60 = vpack.c.bf16 %v1708_v58, %v1707_v57  ;;  %v2385_v58 = vld [vmem:[#allocation2 + $0xc3] sm:$0xff] }
  0x8b   : > { %14744 = vmatmul.mubr.msk.bf16.gmra.mrb[16].mxu0 %vm321_vm0, %v1129_v1  ;;  %v1734_v1 = vpack.c.bf16 %v1710_v62, %v1709_v61  ;;  %v2388_v61 = vld [vmem:[#allocation2 + $0xdb] sm:$0xff] }
  0x8c   : > { %14747 = vmatprep.mubr.msk.bf16.mxu0 %vm321_vm0, %v1130_v2  ;;  %v1735_v2 = vpack.c.bf16 %v1712_v0, %v1711_v63  ;;  %v2389_v0 = vld [vmem:[#allocation2 + $0xe3] sm:$0xff] }
  0x93   : > { %14748 = vmatmul.mubr.msk.bf16.gmra.mrb[20].mxu0 %vm321_vm0, %v1131_v7  ;;  %v1736_v7 = vpack.c.bf16 %v1714_v4, %v1713_v3  ;;  %v2392_v3 = vld [vmem:[#allocation2 + $0xfb] sm:$0xff] }
  0x94   : > { %14751 = vmatprep.mubr.msk.bf16.mxu0 %vm321_vm0, %v1132_v8  ;;  %v1737_v8 = vpack.c.bf16 %v1716_v6, %v1715_v5  ;;  %v2393_v6 = vld [vmem:[#allocation2 + $0x103] sm:$0xff] }
  0x9b   : > { %14752 = vmatmul.mubr.msk.bf16.gmra.mrb[24].mxu0 %vm321_vm0, %v1133_v13  ;;  %v1738_v13 = vpack.c.bf16 %v1718_v10, %v1717_v9  ;;  %v2396_v9 = vld [vmem:[#allocation2 + $0x11b] sm:$0xff] }
  0x9c   : > { %14755 = vmatprep.mubr.msk.bf16.mxu0 %vm321_vm0, %v1134_v14  ;;  %v1739_v14 = vpack.c.bf16 %v1720_v12, %v1719_v11  ;;  %v2397_v12 = vld [vmem:[#allocation2 + $0x123] sm:$0xff] }
  0xa3   : > { %14756 = vmatmul.mubr.msk.bf16.gmra.mrb[28].mxu0 %vm321_vm0, %v1135_v19  ;;  %v16977_v19 = vld [vmem:[%s20796_s1 + $0x50] sm:$0xff]  }
  0xa4   : > { %14759 = vmatprep.mubr.msk.bf16.mxu0 %vm321_vm0, %v1136_v20  ;;  %v2059_v20 = vld [vmem:[#allocation2 + $0x122] sm:$0xff] }
  0xa5   : > { %v2078_v24 = vpack.c.bf16 %v2060_v21, %v2059_v20  ;;  %v2705_v20 = vld [vmem:[#allocation2 + $0x34] sm:$0xff]  ;;  %v2706_v21 = vld [vmem:[#allocation2 + $0x3c] sm:$0xff] }
  0xab   : > { %14760 = vmatmul.mubr.msk.bf16.gmra.mrb[32].mxu0 %vm321_vm0, %v1137_v25  ;;  %v2399_v25 = vpack.c.bf16 %v2364_v23, %v2363_v22  ;;  %v17389_v23 = vpack.c.bf16 %v2706_v21, %v2705_v20  ;;  %v3382_v20 = vld [vmem:[#allocation2 + $0x4d] sm:$0xff] }
  0xac   : > { %14767 = vmatprep.mubr.msk.bf16.mxu0 %vm321_vm0, %v1723_v26  ;;  %v2365_v26 = vld [vmem:[#allocation2 + $0x23] sm:$0xff] }
  0xad   : > { %v2400_v30 = vpack.c.bf16 %v2366_v27, %v2365_v26  ;;  %v16980_v26 = vld [vmem:[%s20796_s1 + $0x68] sm:$0xff]  }
  0xae   : > { %v2707_v27 = vld [vmem:[#allocation2 + $0x44] sm:$0xff] }
  0xb3   : > { %14768 = vmatmul.mubr.msk.bf16.vlgmr.msra.gmra.mrb[0].mxu0 %vm321_vm0, %v17295_v31 }
  0xb4   : > { %14804 = vmatpush3.bf16.msra.mxu0 %v17276_v47  ;;  %14771 = vmatprep.mubr.msk.bf16.mxu0 %vm321_vm0, %v17297_v32  ;;  %v1700_v47 = vld [vmem:[#allocation2 + $0x6a] sm:$0xff] }
  0xb5   : > { %14805 = vmatprep.subr.bf16.mxu0 %v16974_v35  ;;  %v1729_v49 = vpack.c.bf16 %v1700_v47, %v1699_v46  ;;  %v2377_v47 = vld [vmem:[#allocation2 + $0x83] sm:$0xff] }
  0xb8   : > { %14806 = vmatpush3.bf16.msra.mxu0 %v16974_v35  ;;  %v2371_v35 = vld [vmem:[#allocation2 + $0x53] sm:$0xff] }
  0xb9   : > { %14843 = vmatprep.subr.bf16.mxu0 %v16975_v40  ;;  %v2403_v39 = vpack.c.bf16 %v2372_v36, %v2371_v35  ;;  %v2712_v35 = vld [vmem:[#allocation2 + $0x6c] sm:$0xff]  ;;  %v2713_v36 = vld [vmem:[#allocation2 + $0x74] sm:$0xff] }
  0xbb   : > { %14772 = vmatmul.mubr.msk.bf16.gmra.mrb[4].mxu0 %vm321_vm0, %v1726_v41 }
  0xbc   : > { %14775 = vmatprep.mubr.msk.bf16.mxu0 %vm321_vm0, %v17314_v43 }
  0xc3   : > { %14776 = vmatmul.mubr.msk.bf16.gmra.mrb[8].mxu0 %vm321_vm0, %v1728_v48 }
  0xc4   : > { %14779 = vmatprep.mubr.msk.bf16.mxu0 %vm321_vm0, %v1729_v49 }
  0xcb   : > { %14780 = vmatmul.mubr.msk.bf16.gmra.mrb[12].mxu0 %vm321_vm0, %v1730_v53 }
  0xcc   : > { %14783 = vmatprep.mubr.msk.bf16.mxu0 %vm321_vm0, %v1731_v54 }
  0xd3   : > { %14784 = vmatmul.mubr.msk.bf16.gmra.mrb[16].mxu0 %vm321_vm0, %v1732_v59 }
  0xd4   : > { %14787 = vmatprep.mubr.msk.bf16.mxu0 %vm321_vm0, %v1733_v60 }
  0xdb   : > { %14788 = vmatmul.mubr.msk.bf16.gmra.mrb[20].mxu0 %vm321_vm0, %v1734_v1 }
  0xdc   : > { %14791 = vmatprep.mubr.msk.bf16.mxu0 %vm321_vm0, %v1735_v2 }
  0xe3   : > { %14792 = vmatmul.mubr.msk.bf16.gmra.mrb[24].mxu0 %vm321_vm0, %v1736_v7 }
  0xe4   : > { %14795 = vmatprep.mubr.msk.bf16.mxu0 %vm321_vm0, %v1737_v8 }
  0xeb   : > { %14796 = vmatmul.mubr.msk.bf16.gmra.mrb[28].mxu0 %vm321_vm0, %v1738_v13 }
  0xec   : > { %14799 = vmatprep.mubr.msk.bf16.mxu0 %vm321_vm0, %v1739_v14 }
  0xf3   : > { %14800 = vmatmul.mubr.msk.bf16.gmra.mrb[32].mxu0 %vm321_vm0, %v1740_v17 }
  0xf4   : > { %14807 = vmatprep.mubr.msk.bf16.mxu0 %vm321_vm0, %v17295_v31  ;;  %v2401_v31 = vpack.c.bf16 %v2368_v29, %v2367_v28  ;;  %v2708_v28 = vld [vmem:[#allocation2 + $0x4c] sm:$0xff]  ;;  %v2709_v29 = vld [vmem:[#allocation2 + $0x54] sm:$0xff] }
  0xfb   : > { %14808 = vmatmul.mubr.msk.bf16.vlgmr.msra.gmra.mrb[0].mxu0 %vm321_vm0, %v17297_v32  ;;  %v16978_v32 = vld [vmem:[%s20796_s1 + $0x58] sm:$0xff]  }
  0xfc   : > { %14844 = vmatpush3.bf16.msra.mxu0 %v16975_v40  ;;  %14811 = vmatprep.mubr.msk.bf16.mxu0 %vm321_vm0, %v1726_v41  ;;  %v2373_v40 = vld [vmem:[#allocation2 + $0x63] sm:$0xff]  ;;  %v2374_v41 = vld [vmem:[#allocation2 + $0x6b] sm:$0xff] }
  0xfd   : > { %14845 = vmatprep.subr.bf16.mxu0 %v16976_v18  ;;  %v2404_v45 = vpack.c.bf16 %v2374_v41, %v2373_v40  ;;  %v2715_v40 = vld [vmem:[#allocation2 + $0x84] sm:$0xff]  ;;  %v2716_v41 = vld [vmem:[#allocation2 + $0x8c] sm:$0xff] }
 0x100   : > { %14846 = vmatpush3.bf16.msra.mxu0 %v16976_v18  ;;  %v2703_v18 = vld [vmem:[#allocation2 + $0x24] sm:$0xff] }
 0x101   : > { %14883 = vmatprep.subr.bf16.mxu0 %v16977_v19 }
 0x103   : > { %14812 = vmatmul.mubr.msk.bf16.gmra.mrb[4].mxu0 %vm321_vm0, %v17314_v43  ;;  %v2375_v43 = vld [vmem:[#allocation2 + $0x73] sm:$0xff] }
 0x104   : > { %14815 = vmatprep.mubr.msk.bf16.mxu0 %vm321_vm0, %v1728_v48  ;;  %v2405_v46 = vpack.c.bf16 %v2376_v44, %v2375_v43  ;;  %v2378_v48 = vld [vmem:[#allocation2 + $0x8b] sm:$0xff]  ;;  %v2717_v43 = vld [vmem:[#allocation2 + $0x94] sm:$0xff]  ;;  %v2718_v44 = vld [vmem:[#allocation2 + $0x9c] sm:$0xff] }
 0x105   : > { %v2406_v51 = vpack.c.bf16 %v2378_v48, %v2377_v47  ;;  %v2719_v47 = vld [vmem:[#allocation2 + $0xa4] sm:$0xff]  ;;  %v2720_v48 = vld [vmem:[#allocation2 + $0xac] sm:$0xff] }
 0x10b   : > { %14816 = vmatmul.mubr.msk.bf16.gmra.mrb[8].mxu0 %vm321_vm0, %v1729_v49  ;;  %v2379_v49 = vld [vmem:[#allocation2 + $0x93] sm:$0xff] }
 0x10c   : > { %14819 = vmatprep.mubr.msk.bf16.mxu0 %vm321_vm0, %v1730_v53  ;;  %v2407_v52 = vpack.c.bf16 %v2380_v50, %v2379_v49  ;;  %v2382_v53 = vld [vmem:[#allocation2 + $0xab] sm:$0xff]  ;;  %v2721_v49 = vld [vmem:[#allocation2 + $0xb4] sm:$0xff]  ;;  %v2722_v50 = vld [vmem:[#allocation2 + $0xbc] sm:$0xff] }
 0x10d   : > { %v2408_v56 = vpack.c.bf16 %v2382_v53, %v2381_v42  ;;  %v2723_v42 = vld [vmem:[#allocation2 + $0xc4] sm:$0xff]  ;;  %v2724_v53 = vld [vmem:[#allocation2 + $0xcc] sm:$0xff] }
 0x113   : > { %14820 = vmatmul.mubr.msk.bf16.gmra.mrb[12].mxu0 %vm321_vm0, %v1731_v54  ;;  %v2383_v54 = vld [vmem:[#allocation2 + $0xb3] sm:$0xff] }
 0x114   : > { %14823 = vmatprep.mubr.msk.bf16.mxu0 %vm321_vm0, %v1732_v59  ;;  %v2409_v57 = vpack.c.bf16 %v2384_v55, %v2383_v54  ;;  %v2386_v59 = vld [vmem:[#allocation2 + $0xcb] sm:$0xff]  ;;  %v2725_v54 = vld [vmem:[#allocation2 + $0xd4] sm:$0xff]  ;;  %v2726_v55 = vld [vmem:[#allocation2 + $0xdc] sm:$0xff] }
 0x115   : > { %v2410_v62 = vpack.c.bf16 %v2386_v59, %v2385_v58  ;;  %v2727_v58 = vld [vmem:[#allocation2 + $0xe4] sm:$0xff]  ;;  %v2728_v59 = vld [vmem:[#allocation2 + $0xec] sm:$0xff] }
 0x11b   : > { %14824 = vmatmul.mubr.msk.bf16.gmra.mrb[16].mxu0 %vm321_vm0, %v1733_v60  ;;  %v2387_v60 = vld [vmem:[#allocation2 + $0xd3] sm:$0xff] }
 0x11c   : > { %14827 = vmatprep.mubr.msk.bf16.mxu0 %vm321_vm0, %v1734_v1  ;;  %v2411_v63 = vpack.c.bf16 %v2388_v61, %v2387_v60  ;;  %v2390_v1 = vld [vmem:[#allocation2 + $0xeb] sm:$0xff]  ;;  %v2729_v60 = vld [vmem:[#allocation2 + $0xf4] sm:$0xff]  ;;  %v2730_v61 = vld [vmem:[#allocation2 + $0xfc] sm:$0xff] }
 0x11d   : > { %v2412_v4 = vpack.c.bf16 %v2390_v1, %v2389_v0  ;;  %v2731_v0 = vld [vmem:[#allocation2 + $0x104] sm:$0xff]  ;;  %v2732_v1 = vld [vmem:[#allocation2 + $0x10c] sm:$0xff] }
 0x123   : > { %14828 = vmatmul.mubr.msk.bf16.gmra.mrb[20].mxu0 %vm321_vm0, %v1735_v2  ;;  %v2391_v2 = vld [vmem:[#allocation2 + $0xf3] sm:$0xff] }
 0x124   : > { %14831 = vmatprep.mubr.msk.bf16.mxu0 %vm321_vm0, %v1736_v7  ;;  %v2413_v5 = vpack.c.bf16 %v2392_v3, %v2391_v2  ;;  %v2394_v7 = vld [vmem:[#allocation2 + $0x10b] sm:$0xff]  ;;  %v2733_v2 = vld [vmem:[#allocation2 + $0x114] sm:$0xff]  ;;  %v2734_v3 = vld [vmem:[#allocation2 + $0x11c] sm:$0xff] }
 0x125   : > { %v2414_v10 = vpack.c.bf16 %v2394_v7, %v2393_v6  ;;  %v2735_v6 = vld [vmem:[#allocation2 + $0x124] sm:$0xff]  ;;  %v2736_v7 = vld [vmem:[#allocation2 + $0x12c] sm:$0xff] }
 0x12b   : > { %14832 = vmatmul.mubr.msk.bf16.gmra.mrb[24].mxu0 %vm321_vm0, %v1737_v8  ;;  %v2395_v8 = vld [vmem:[#allocation2 + $0x113] sm:$0xff] }
 0x12c   : > { %14835 = vmatprep.mubr.msk.bf16.mxu0 %vm321_vm0, %v1738_v13  ;;  %v2415_v11 = vpack.c.bf16 %v2396_v9, %v2395_v8  ;;  %v2398_v13 = vld [vmem:[#allocation2 + $0x12b] sm:$0xff]  ;;  %v2754_v8 = vpack.c.bf16 %v2736_v7, %v2735_v6  ;;  %v16982_v9 = vld [vmem:[%s20796_s1 + $0x78] sm:$0xff]  }
 0x12d   : > { %v2416_v16 = vpack.c.bf16 %v2398_v13, %v2397_v12  ;;  %v3377_v13 = vld [vmem:[#allocation2 + $0x25] sm:$0xff] }
 0x133   : > { %14836 = vmatmul.mubr.msk.bf16.gmra.mrb[28].mxu0 %vm321_vm0, %v1739_v14  ;;  %v2701_v14 = vld [vmem:[#allocation2 + $0x14] sm:$0xff] }
 0x134   : > { %14839 = vmatprep.mubr.msk.bf16.mxu0 %vm321_vm0, %v1740_v17  ;;  %v2737_v17 = vpack.c.bf16 %v2702_v15, %v2701_v14  ;;  %v3378_v14 = vld [vmem:[#allocation2 + $0x2d] sm:$0xff] }
 0x13b   : > { %14840 = vmatmul.mubr.msk.bf16.gmra.mrb[32].mxu0 %vm321_vm0, %v2078_v24  ;;  %v319_v24 = vld [vmem:[%s17161_s12 + $0x138] sm:$0xff] }
 0x13c   : > { %14847 = vmatprep.mubr.msk.bf16.mxu0 %vm321_vm0, %v2399_v25  ;;  %v320_v25 = vld [vmem:[%s17161_s12 + $0x140] sm:$0xff]  ;;  %361 = vst.msk [vmem:[#allocation2 + $0x138] sm:$0xff] %vm321_vm0, %v319_v24  ;;  %v3383_v24 = vld [vmem:[#allocation2 + $0x55] sm:$0xff] }
 0x13d   : > { %362 = vst.msk [vmem:[#allocation2 + $0x140] sm:$0xff] %vm321_vm0, %v320_v25  ;;  %v3384_v25 = vld [vmem:[#allocation2 + $0x5d] sm:$0xff] }
 0x143   : > { %14848 = vmatmul.mubr.msk.bf16.vlgmr.msra.gmra.mrb[0].mxu0 %vm321_vm0, %v2400_v30  ;;  %v2710_v30 = vld [vmem:[#allocation2 + $0x5c] sm:$0xff] }
 0x144   : > { %14884 = vmatpush3.bf16.msra.mxu0 %v16977_v19  ;;  %14851 = vmatprep.mubr.msk.bf16.mxu0 %vm321_vm0, %v2401_v31  ;;  %v2704_v19 = vld [vmem:[#allocation2 + $0x2c] sm:$0xff]  ;;  %v17406_v33 = vpack.c.bf16 %v2710_v30, %v2709_v29  ;;  %v3074_v12 = vld [vmem:[#allocation2 + $0x13c] sm:$0xff] }
 0x145   : > { %14885 = vmatprep.subr.bf16.mxu0 %v16978_v32  ;;  %v17387_v22 = vpack.c.bf16 %v2704_v19, %v2703_v18  ;;  %v16981_v31 = vld [vmem:[%s20796_s1 + $0x70] sm:$0xff]   ;;  %v3380_v18 = vld [vmem:[#allocation2 + $0x3d] sm:$0xff]  ;;  %v3381_v19 = vld [vmem:[#allocation2 + $0x45] sm:$0xff] }
 0x146   : > { %v3387_v30 = vld [vmem:[#allocation2 + $0x75] sm:$0xff] }
 0x148   : > { %14886 = vmatpush3.bf16.msra.mxu0 %v16978_v32  ;;  %v2740_v32 = vpack.c.bf16 %v2708_v28, %v2707_v27  ;;  %v3386_v27 = vld [vmem:[#allocation2 + $0x6d] sm:$0xff]  ;;  %v3416_v28 = vpack.c.bf16 %v3384_v25, %v3383_v24 }
 0x149   : > { %14923 = vmatprep.subr.bf16.mxu0 %v17368_v37 }
 0x14b   : > { %14852 = vmatmul.mubr.msk.bf16.gmra.mrb[4].mxu0 %vm321_vm0, %v2402_v38  ;;  %v2742_v38 = vpack.c.bf16 %v2712_v35, %v2711_v34 }
 0x14c   : > { %14855 = vmatprep.mubr.msk.bf16.mxu0 %vm321_vm0, %v2403_v39 }
 0x153   : > { %14856 = vmatmul.mubr.msk.bf16.gmra.mrb[8].mxu0 %vm321_vm0, %v2404_v45  ;;  %v2744_v45 = vpack.c.bf16 %v2716_v41, %v2715_v40 }
 0x154   : > { %14859 = vmatprep.mubr.msk.bf16.mxu0 %vm321_vm0, %v2405_v46  ;;  %v2745_v46 = vpack.c.bf16 %v2718_v44, %v2717_v43  ;;  %v3395_v43 = vld [vmem:[#allocation2 + $0xb5] sm:$0xff]  ;;  %v3396_v44 = vld [vmem:[#allocation2 + $0xbd] sm:$0xff] }
 0x15b   : > { %14860 = vmatmul.mubr.msk.bf16.gmra.mrb[12].mxu0 %vm321_vm0, %v2406_v51  ;;  %v2746_v51 = vpack.c.bf16 %v2720_v48, %v2719_v47  ;;  %v3422_v47 = vpack.c.bf16 %v3396_v44, %v3395_v43 }
 0x15c   : > { %14863 = vmatprep.mubr.msk.bf16.mxu0 %vm321_vm0, %v2407_v52  ;;  %v2747_v52 = vpack.c.bf16 %v2722_v50, %v2721_v49  ;;  %v3399_v49 = vld [vmem:[#allocation2 + $0xd5] sm:$0xff]  ;;  %v3400_v50 = vld [vmem:[#allocation2 + $0xdd] sm:$0xff] }
 0x163   : > { %14864 = vmatmul.mubr.msk.bf16.gmra.mrb[16].mxu0 %vm321_vm0, %v2408_v56  ;;  %v2748_v56 = vpack.c.bf16 %v2724_v53, %v2723_v42  ;;  %v3424_v42 = vpack.c.bf16 %v3400_v50, %v3399_v49 }
 0x164   : > { %14867 = vmatprep.mubr.msk.bf16.mxu0 %vm321_vm0, %v2409_v57  ;;  %v2749_v57 = vpack.c.bf16 %v2726_v55, %v2725_v54  ;;  %v3403_v54 = vld [vmem:[#allocation2 + $0xf5] sm:$0xff]  ;;  %v3404_v55 = vld [vmem:[#allocation2 + $0xfd] sm:$0xff] }
 0x16b   : > { %14868 = vmatmul.mubr.msk.bf16.gmra.mrb[20].mxu0 %vm321_vm0, %v2410_v62  ;;  %v2750_v62 = vpack.c.bf16 %v2728_v59, %v2727_v58  ;;  %v3426_v58 = vpack.c.bf16 %v3404_v55, %v3403_v54 }
 0x16c   : > { %14871 = vmatprep.mubr.msk.bf16.mxu0 %vm321_vm0, %v2411_v63  ;;  %v2751_v63 = vpack.c.bf16 %v2730_v61, %v2729_v60  ;;  %v3407_v60 = vld [vmem:[#allocation2 + $0x115] sm:$0xff]  ;;  %v3408_v61 = vld [vmem:[#allocation2 + $0x11d] sm:$0xff] }
 0x173   : > { %14872 = vmatmul.mubr.msk.bf16.gmra.mrb[24].mxu0 %vm321_vm0, %v2412_v4  ;;  %v2752_v4 = vpack.c.bf16 %v2732_v1, %v2731_v0  ;;  %v3428_v0 = vpack.c.bf16 %v3408_v61, %v3407_v60  ;;  %v16986_v60 = vld [vmem:[%s20796_s1 + $0xa8] sm:$0xff]  }
 0x174   : > { %14875 = vmatprep.mubr.msk.bf16.mxu0 %vm321_vm0, %v2413_v5  ;;  %v2753_v5 = vpack.c.bf16 %v2734_v3, %v2733_v2  ;;  %v3411_v2 = vld [vmem:[#allocation2 + $0x135] sm:$0xff]  ;;  %v3412_v3 = vld [vmem:[#allocation2 + $0x13d] sm:$0xff] }
 0x175   : > { %v3430_v6 = vpack.c.bf16 %v3412_v3, %v3411_v2  ;;  %v4263_v61 = vld [vmem:[#allocation2 + $0x1] sm:$0xff] }
 0x17b   : > { %14876 = vmatmul.mubr.msk.bf16.gmra.mrb[28].mxu0 %vm321_vm0, %v2414_v10  ;;  %v16983_v10 = vld [vmem:[%s20796_s1 + $0x80] sm:$0xff]  }
 0x17c   : > { %14879 = vmatprep.mubr.msk.bf16.mxu0 %vm321_vm0, %v2415_v11  ;;  %v3073_v11 = vld [vmem:[#allocation2 + $0x134] sm:$0xff] }
 0x17d   : > { %v3092_v15 = vpack.c.bf16 %v3074_v12, %v3073_v11  ;;  %v3720_v11 = vld [vmem:[#allocation2 + $0x4e] sm:$0xff] }
 0x183   : > { %14880 = vmatmul.mubr.msk.bf16.gmra.mrb[32].mxu0 %vm321_vm0, %v2416_v16  ;;  %v3413_v16 = vpack.c.bf16 %v3378_v14, %v3377_v13  ;;  %v3721_v14 = vld [vmem:[#allocation2 + $0x56] sm:$0xff] }
 0x184   : > { %14887 = vmatprep.mubr.msk.bf16.mxu0 %vm321_vm0, %v2737_v17  ;;  %v3379_v17 = vld [vmem:[#allocation2 + $0x35] sm:$0xff] }
 0x185   : > { %v3414_v21 = vpack.c.bf16 %v3380_v18, %v3379_v17  ;;  %v3724_v17 = vld [vmem:[#allocation2 + $0x6e] sm:$0xff] }
 0x18b   : > { %14888 = vmatmul.mubr.msk.bf16.vlgmr.msra.gmra.mrb[0].mxu0 %vm321_vm0, %v17387_v22 }
 0x18c   : > { %14924 = vmatpush3.bf16.msra.mxu0 %v17368_v37  ;;  %14891 = vmatprep.mubr.msk.bf16.mxu0 %vm321_vm0, %v17389_v23  ;;  %v2714_v37 = vld [vmem:[#allocation2 + $0x7c] sm:$0xff] }
 0x18d   : > { %14925 = vmatprep.subr.bf16.mxu0 %v16980_v26  ;;  %v2743_v39 = vpack.c.bf16 %v2714_v37, %v2713_v36  ;;  %v3391_v36 = vld [vmem:[#allocation2 + $0x95] sm:$0xff]  ;;  %v3392_v37 = vld [vmem:[#allocation2 + $0x9d] sm:$0xff] }
 0x18e   : > { %v3420_v40 = vpack.c.bf16 %v3392_v37, %v3391_v36 }
 0x190   : > { %14926 = vmatpush3.bf16.msra.mxu0 %v16980_v26  ;;  %v3385_v26 = vld [vmem:[#allocation2 + $0x65] sm:$0xff] }
 0x191   : > { %14963 = vmatprep.subr.bf16.mxu0 %v16981_v31  ;;  %v3417_v29 = vpack.c.bf16 %v3386_v27, %v3385_v26  ;;  %v3729_v26 = vld [vmem:[#allocation2 + $0x96] sm:$0xff]  ;;  %v3730_v27 = vld [vmem:[#allocation2 + $0x9e] sm:$0xff] }
 0x193   : > { %14892 = vmatmul.mubr.msk.bf16.gmra.mrb[4].mxu0 %vm321_vm0, %v2740_v32 }
 0x194   : > { %14895 = vmatprep.mubr.msk.bf16.mxu0 %vm321_vm0, %v17406_v33 }
 0x19b   : > { %14896 = vmatmul.mubr.msk.bf16.gmra.mrb[8].mxu0 %vm321_vm0, %v2742_v38 }
 0x19c   : > { %14899 = vmatprep.mubr.msk.bf16.mxu0 %vm321_vm0, %v2743_v39 }
 0x1a3   : > { %14900 = vmatmul.mubr.msk.bf16.gmra.mrb[12].mxu0 %vm321_vm0, %v2744_v45 }
 0x1a4   : > { %14903 = vmatprep.mubr.msk.bf16.mxu0 %vm321_vm0, %v2745_v46 }
 0x1ab   : > { %14904 = vmatmul.mubr.msk.bf16.gmra.mrb[16].mxu0 %vm321_vm0, %v2746_v51 }
 0x1ac   : > { %14907 = vmatprep.mubr.msk.bf16.mxu0 %vm321_vm0, %v2747_v52 }
 0x1b3   : > { %14908 = vmatmul.mubr.msk.bf16.gmra.mrb[20].mxu0 %vm321_vm0, %v2748_v56 }
 0x1b4   : > { %14911 = vmatprep.mubr.msk.bf16.mxu0 %vm321_vm0, %v2749_v57 }
 0x1bb   : > { %14912 = vmatmul.mubr.msk.bf16.gmra.mrb[24].mxu0 %vm321_vm0, %v2750_v62 }
 0x1bc   : > { %14915 = vmatprep.mubr.msk.bf16.mxu0 %vm321_vm0, %v2751_v63 }
 0x1c3   : > { %14916 = vmatmul.mubr.msk.bf16.gmra.mrb[28].mxu0 %vm321_vm0, %v2752_v4 }
 0x1c4   : > { %14919 = vmatprep.mubr.msk.bf16.mxu0 %vm321_vm0, %v2753_v5 }
 0x1cb   : > { %14920 = vmatmul.mubr.msk.bf16.gmra.mrb[32].mxu0 %vm321_vm0, %v2754_v8 }
 0x1cc   : > { %14927 = vmatprep.mubr.msk.bf16.mxu0 %vm321_vm0, %v17387_v22  ;;  %v3415_v22 = vpack.c.bf16 %v3382_v20, %v3381_v19  ;;  %v3725_v20 = vld [vmem:[#allocation2 + $0x76] sm:$0xff] }
 0x1d3   : > { %14928 = vmatmul.mubr.msk.bf16.vlgmr.msra.gmra.mrb[0].mxu0 %vm321_vm0, %v17389_v23  ;;  %v16984_v23 = vld [vmem:[%s20796_s1 + $0x88] sm:$0xff]  }
 0x1d4   : > { %14964 = vmatpush3.bf16.msra.mxu0 %v16981_v31  ;;  %14931 = vmatprep.mubr.msk.bf16.mxu0 %vm321_vm0, %v2740_v32  ;;  %v3388_v31 = vld [vmem:[#allocation2 + $0x7d] sm:$0xff]  ;;  %v3389_v32 = vld [vmem:[#allocation2 + $0x85] sm:$0xff] }
 0x1d5   : > { %14965 = vmatprep.subr.bf16.mxu0 %v16982_v9  ;;  %v3418_v34 = vpack.c.bf16 %v3388_v31, %v3387_v30  ;;  %v3758_v30 = vpack.c.bf16 %v3730_v27, %v3729_v26 }
 0x1d8   : > { %14966 = vmatpush3.bf16.msra.mxu0 %v16982_v9  ;;  %v3718_v9 = vld [vmem:[#allocation2 + $0x3e] sm:$0xff] }
 0x1d9   : > { %15003 = vmatprep.subr.bf16.mxu0 %v16983_v10 }
 0x1db   : > { %14932 = vmatmul.mubr.msk.bf16.gmra.mrb[4].mxu0 %vm321_vm0, %v17406_v33  ;;  %v3390_v33 = vld [vmem:[#allocation2 + $0x8d] sm:$0xff] }
 0x1dc   : > { %14935 = vmatprep.mubr.msk.bf16.mxu0 %vm321_vm0, %v2742_v38  ;;  %v3419_v35 = vpack.c.bf16 %v3390_v33, %v3389_v32  ;;  %v3393_v38 = vld [vmem:[#allocation2 + $0xa5] sm:$0xff]  ;;  %v3733_v32 = vld [vmem:[#allocation2 + $0xb6] sm:$0xff] }
 0x1dd   : > { %v3734_v33 = vld [vmem:[#allocation2 + $0xbe] sm:$0xff] }
 0x1de   : > { %v3760_v36 = vpack.c.bf16 %v3734_v33, %v3733_v32 }
 0x1e3   : > { %14936 = vmatmul.mubr.msk.bf16.gmra.mrb[8].mxu0 %vm321_vm0, %v2743_v39  ;;  %v3394_v39 = vld [vmem:[#allocation2 + $0xad] sm:$0xff] }
 0x1e4   : > { %14939 = vmatprep.mubr.msk.bf16.mxu0 %vm321_vm0, %v2744_v45  ;;  %v3421_v41 = vpack.c.bf16 %v3394_v39, %v3393_v38  ;;  %v3397_v45 = vld [vmem:[#allocation2 + $0xc5] sm:$0xff]  ;;  %v3737_v38 = vld [vmem:[#allocation2 + $0xd6] sm:$0xff] }
 0x1e5   : > { %v3738_v39 = vld [vmem:[#allocation2 + $0xde] sm:$0xff] }
 0x1e6   : > { %v3762_v43 = vpack.c.bf16 %v3738_v39, %v3737_v38 }
 0x1eb   : > { %14940 = vmatmul.mubr.msk.bf16.gmra.mrb[12].mxu0 %vm321_vm0, %v2745_v46  ;;  %v3398_v46 = vld [vmem:[#allocation2 + $0xcd] sm:$0xff] }
 0x1ec   : > { %14943 = vmatprep.mubr.msk.bf16.mxu0 %vm321_vm0, %v2746_v51  ;;  %v3423_v48 = vpack.c.bf16 %v3398_v46, %v3397_v45  ;;  %v3401_v51 = vld [vmem:[#allocation2 + $0xe5] sm:$0xff]  ;;  %v3741_v45 = vld [vmem:[#allocation2 + $0xf6] sm:$0xff] }
 0x1ed   : > { %v3742_v46 = vld [vmem:[#allocation2 + $0xfe] sm:$0xff] }
 0x1ee   : > { %v3764_v49 = vpack.c.bf16 %v3742_v46, %v3741_v45 }
 0x1f3   : > { %14944 = vmatmul.mubr.msk.bf16.gmra.mrb[16].mxu0 %vm321_vm0, %v2747_v52  ;;  %v3402_v52 = vld [vmem:[#allocation2 + $0xed] sm:$0xff] }
 0x1f4   : > { %14947 = vmatprep.mubr.msk.bf16.mxu0 %vm321_vm0, %v2748_v56  ;;  %v3425_v53 = vpack.c.bf16 %v3402_v52, %v3401_v51  ;;  %v3405_v56 = vld [vmem:[#allocation2 + $0x105] sm:$0xff]  ;;  %v3745_v51 = vld [vmem:[#allocation2 + $0x116] sm:$0xff] }
 0x1f5   : > { %v3746_v52 = vld [vmem:[#allocation2 + $0x11e] sm:$0xff] }
 0x1f6   : > { %v3766_v54 = vpack.c.bf16 %v3746_v52, %v3745_v51 }
 0x1fb   : > { %14948 = vmatmul.mubr.msk.bf16.gmra.mrb[20].mxu0 %vm321_vm0, %v2749_v57  ;;  %v3406_v57 = vld [vmem:[#allocation2 + $0x10d] sm:$0xff] }
 0x1fc   : > { %14951 = vmatprep.mubr.msk.bf16.mxu0 %vm321_vm0, %v2750_v62  ;;  %v3427_v59 = vpack.c.bf16 %v3406_v57, %v3405_v56  ;;  %v3409_v62 = vld [vmem:[#allocation2 + $0x125] sm:$0xff]  ;;  %v3749_v56 = vld [vmem:[#allocation2 + $0x136] sm:$0xff] }
 0x1fd   : > { %v3750_v57 = vld [vmem:[#allocation2 + $0x13e] sm:$0xff] }
 0x203   : > { %14952 = vmatmul.mubr.msk.bf16.gmra.mrb[24].mxu0 %vm321_vm0, %v2751_v63  ;;  %v3410_v63 = vld [vmem:[#allocation2 + $0x12d] sm:$0xff] }
 0x204   : > { %14955 = vmatprep.mubr.msk.bf16.mxu0 %vm321_vm0, %v2752_v4  ;;  %v3429_v1 = vpack.c.bf16 %v3410_v63, %v3409_v62  ;;  %v3715_v4 = vld [vmem:[#allocation2 + $0x26] sm:$0xff] }
 0x205   : > { %v4264_v62 = vld [vmem:[#allocation2 + $0x9] sm:$0xff] }
 0x206   : > { %v4299_v63 = vpack.c.bf16 %v4264_v62, %v4263_v61 }
 0x208   : > { %15047 = vmatprep.mubr.msk.bf16.mxu1 %vm321_vm0, %v4299_v63 }
 0x20b   : > { %14956 = vmatmul.mubr.msk.bf16.gmra.mrb[28].mxu0 %vm321_vm0, %v2753_v5  ;;  %v3716_v5 = vld [vmem:[#allocation2 + $0x2e] sm:$0xff] }
 0x20c   : > { %14959 = vmatprep.mubr.msk.bf16.mxu0 %vm321_vm0, %v2754_v8  ;;  %v3751_v7 = vpack.c.bf16 %v3716_v5, %v3715_v4  ;;  %v3717_v8 = vld [vmem:[#allocation2 + $0x36] sm:$0xff] }
 0x20d   : > { %v3752_v12 = vpack.c.bf16 %v3718_v9, %v3717_v8 }
 0x213   : > { %14960 = vmatmul.mubr.msk.bf16.gmra.mrb[32].mxu0 %vm321_vm0, %v3092_v15  ;;  %v3722_v15 = vld [vmem:[#allocation2 + $0x5e] sm:$0xff] }
 0x214   : > { %14967 = vmatprep.mubr.msk.bf16.mxu0 %vm321_vm0, %v3413_v16  ;;  %v3723_v16 = vld [vmem:[#allocation2 + $0x66] sm:$0xff]  ;;  %v3754_v18 = vpack.c.bf16 %v3722_v15, %v3721_v14 }
 0x215   : > { %v3755_v19 = vpack.c.bf16 %v3724_v17, %v3723_v16 }
 0x21b   : > { %14968 = vmatmul.mubr.msk.bf16.vlgmr.msra.gmra.mrb[0].mxu0 %vm321_vm0, %v3414_v21  ;;  %v3726_v21 = vld [vmem:[#allocation2 + $0x7e] sm:$0xff] }
 0x21c   : > { %15004 = vmatpush3.bf16.msra.mxu0 %v16983_v10  ;;  %14971 = vmatprep.mubr.msk.bf16.mxu0 %vm321_vm0, %v3415_v22  ;;  %v3719_v10 = vld [vmem:[#allocation2 + $0x46] sm:$0xff]  ;;  %v3756_v24 = vpack.c.bf16 %v3726_v21, %v3725_v20 }
 0x21d   : > { %15005 = vmatprep.subr.bf16.mxu0 %v16984_v23  ;;  %v3753_v13 = vpack.c.bf16 %v3720_v11, %v3719_v10  ;;  %v3727_v22 = vld [vmem:[#allocation2 + $0x86] sm:$0xff] }
 0x220   : > { %15006 = vmatpush3.bf16.msra.mxu0 %v16984_v23  ;;  %v3728_v23 = vld [vmem:[#allocation2 + $0x8e] sm:$0xff] }
 0x221   : > { %v3757_v25 = vpack.c.bf16 %v3728_v23, %v3727_v22 }
 0x223   : > { %14972 = vmatmul.mubr.msk.bf16.gmra.mrb[4].mxu0 %vm321_vm0, %v3416_v28  ;;  %v3731_v28 = vld [vmem:[#allocation2 + $0xa6] sm:$0xff] }
 0x224   : > { %14975 = vmatprep.mubr.msk.bf16.mxu0 %vm321_vm0, %v3417_v29  ;;  %v3732_v29 = vld [vmem:[#allocation2 + $0xae] sm:$0xff] }
 0x225   : > { %v3759_v31 = vpack.c.bf16 %v3732_v29, %v3731_v28 }
 0x22b   : > { %14976 = vmatmul.mubr.msk.bf16.gmra.mrb[8].mxu0 %vm321_vm0, %v3418_v34  ;;  %v3735_v34 = vld [vmem:[#allocation2 + $0xc6] sm:$0xff] }
 0x22c   : > { %14979 = vmatprep.mubr.msk.bf16.mxu0 %vm321_vm0, %v3419_v35  ;;  %v3736_v35 = vld [vmem:[#allocation2 + $0xce] sm:$0xff] }
 0x22d   : > { %v3761_v37 = vpack.c.bf16 %v3736_v35, %v3735_v34 }
 0x233   : > { %14980 = vmatmul.mubr.msk.bf16.gmra.mrb[12].mxu0 %vm321_vm0, %v3420_v40  ;;  %v3739_v40 = vld [vmem:[#allocation2 + $0xe6] sm:$0xff] }
 0x234   : > { %14983 = vmatprep.mubr.msk.bf16.mxu0 %vm321_vm0, %v3421_v41  ;;  %v3740_v41 = vld [vmem:[#allocation2 + $0xee] sm:$0xff] }
 0x235   : > { %v3763_v44 = vpack.c.bf16 %v3740_v41, %v3739_v40 }
 0x23b   : > { %14984 = vmatmul.mubr.msk.bf16.gmra.mrb[16].mxu0 %vm321_vm0, %v3422_v47  ;;  %v3743_v47 = vld [vmem:[#allocation2 + $0x106] sm:$0xff] }
 0x23c   : > { %14987 = vmatprep.mubr.msk.bf16.mxu0 %vm321_vm0, %v3423_v48  ;;  %v3744_v48 = vld [vmem:[#allocation2 + $0x10e] sm:$0xff] }
 0x23d   : > { %v3765_v50 = vpack.c.bf16 %v3744_v48, %v3743_v47 }
 0x243   : > { %14988 = vmatmul.mubr.msk.bf16.gmra.mrb[20].mxu0 %vm321_vm0, %v3424_v42  ;;  %v3747_v42 = vld [vmem:[#allocation2 + $0x126] sm:$0xff] }
 0x244   : > { %14991 = vmatprep.mubr.msk.bf16.mxu0 %vm321_vm0, %v3425_v53  ;;  %v3748_v53 = vld [vmem:[#allocation2 + $0x12e] sm:$0xff] }
 0x245   : > { %v3767_v55 = vpack.c.bf16 %v3748_v53, %v3747_v42 }
 0x24b   : > { %14992 = vmatmul.mubr.msk.bf16.gmra.mrb[24].mxu0 %vm321_vm0, %v3426_v58  ;;  %v3768_v58 = vpack.c.bf16 %v3750_v57, %v3749_v56 }
 0x24c   : > { %14995 = vmatprep.mubr.msk.bf16.mxu0 %vm321_vm0, %v3427_v59  ;;  %v16985_v59 = vld [vmem:[%s20796_s1 + $0xa0] sm:$0xff]  }
 0x24d   : > { %15043 = vmatprep.subr.bf16.mxu1 %v16985_v59 }
 0x24e   : > { %15044 = vmatpush3.bf16.msra.mxu1 %v16985_v59 }
 0x24f   : > { %15045 = vmatprep.subr.bf16.mxu1 %v16986_v60 }
 0x252   : > { %15046 = vmatpush3.bf16.msra.mxu1 %v16986_v60 }
 0x253   : > { %14996 = vmatmul.mubr.msk.bf16.gmra.mrb[28].mxu0 %vm321_vm0, %v3428_v0  ;;  %v17500_v0 = vld [vmem:[%s20796_s1 + $0x90] sm:$0xff]  }
 0x254   : > { %14999 = vmatprep.mubr.msk.bf16.mxu0 %vm321_vm0, %v3429_v1  ;;  %15083 = vmatprep.subr.bf16.mxu1 %v17500_v0  ;;  %v363_v1 = vlaneseq }
 0x256   : > { %v17503_v2 = vshrl.u32 %v363_v1, 7 }
 0x258   : > { %20809 = vst [vmem:[#allocation3_spill] sm:$0xff] %v17503_v2  ;;  %v366_v3 = vadd.s32 16, %v17503_v2  ;;  %v365_v11 = vadd.s32 8, %v17503_v2  ;;  %v371_v21 = vadd.s32 56, %v17503_v2  ;;  %v17531_v23 = vadd.s32 40, %v17503_v2 }
 0x259   : > { %v17559_v46 = vadd.s32 88, %v17503_v2  ;;  %v17587_v1 = vadd.s32 72, %v17503_v2 }
 0x25a   : > { %v17506_v4 = vmul.u32.u64.low 3817748708, %v366_v3  ;;  %v17507_v5 = vmul.u32.u64.high 3817748708, %v366_v3, %v17506_v4  ;;  %v17520_v14 = vmul.u32.u64.low 3817748708, %v365_v11  ;;  %v17521_v15 = vmul.u32.u64.high 3817748708, %v365_v11, %v17520_v14 }
 0x25b   : > { %15000 = vmatmul.mubr.msk.bf16.gmra.mrb[32].mxu0 %vm321_vm0, %v3430_v6  ;;  %v367_v6 = vadd.s32 24, %v17503_v2  ;;  %v17536_v28 = vmul.u32.u64.low 3817748708, %v371_v21  ;;  %v17537_v29 = vmul.u32.u64.high 3817748708, %v371_v21, %v17536_v28  ;;  %v20803_v4 = vmov 0.0  }
 0x25c   : > { %15007 = vmatprep.mubr.msk.bf16.mxu0 %vm321_vm0, %v3751_v7  ;;  %v17511_v7 = vmul.u32.u64.low 3817748708, %v17503_v2  ;;  %v17512_v8 = vmul.u32.u64.high 3817748708, %v17503_v2, %v17511_v7  ;;  %v17541_v32 = vmul.u32.u64.low 3817748708, %v17531_v23  ;;  %v17542_v33 = vmul.u32.u64.high 3817748708, %v17531_v23, %v17541_v32 }
 0x25d   : > { %v17514_v9 = vmul.u32.u64.low 3817748708, %v367_v6  ;;  %v17515_v10 = vmul.u32.u64.high 3817748708, %v367_v6, %v17514_v9  ;;  %v483_v45 = vshrl.u32 %v17537_v29, 4  ;;  %v17636_v28 = vadd.s32 120, %v17503_v2 }
 0x25e   : > { %v406_v17 = vshrl.u32 %v17512_v8, 4  ;;  %v461_v52 = vshrl.u32 %v17542_v33, 4  ;;  %v17721_v7 = vadd.s32 152, %v17503_v2 }
 0x25f   : > { %v439_v22 = vshrl.u32 %v17515_v10, 4  ;;  %v484_v57 = vmul.u32 18, %v483_v45 }
 0x260   : > { %v462_v63 = vmul.u32 18, %v461_v52 }
 0x263   : > { %15008 = vmatmul.mubr.msk.bf16.vlgmr.msra.gmra.mrb[0].mxu0 %vm321_vm0, %v3752_v12  ;;  %v428_v12 = vshrl.u32 %v17507_v5, 4 }
 0x264   : > { %15011 = vmatprep.mubr.msk.bf16.mxu0 %vm321_vm0, %v3753_v13  ;;  %v370_v13 = vadd.s32 48, %v17503_v2 }
 0x265   : > { %v429_v16 = vmul.u32 18, %v428_v12 }
 0x26b   : > { %15012 = vmatmul.mubr.msk.bf16.gmra.mrb[4].mxu0 %vm321_vm0, %v3754_v18  ;;  %v368_v18 = vadd.s32 32, %v17503_v2 }
 0x26c   : > { %15015 = vmatprep.mubr.msk.bf16.mxu0 %vm321_vm0, %v3755_v19  ;;  %v17525_v19 = vmul.u32.u64.low 3817748708, %v370_v13  ;;  %v17526_v20 = vmul.u32.u64.high 3817748708, %v370_v13, %v17525_v19 }
 0x26d   : > { %v17533_v26 = vmul.u32.u64.low 3817748708, %v368_v18  ;;  %v17534_v27 = vmul.u32.u64.high 3817748708, %v368_v18, %v17533_v26 }
 0x26e   : > { %v472_v35 = vshrl.u32 %v17526_v20, 4  ;;  %v17620_v20 = vadd.s32 96, %v17503_v2 }
 0x26f   : > { %v450_v41 = vshrl.u32 %v17534_v27, 4 }
 0x271   : > { %v451_v53 = vmul.u32 18, %v450_v41 }
 0x273   : > { %15016 = vmatmul.mubr.msk.bf16.gmra.mrb[8].mxu0 %vm321_vm0, %v3756_v24  ;;  %v430_v24 = vsub.s32 %v366_v3, %v429_v16  ;;  %v452_v3 = vsub.s32 %v368_v18, %v451_v53  ;;  %v17616_v18 = vadd.s32 112, %v17503_v2  ;;  %v17746_v16 = vadd.s32 176, %v17503_v2 }
 0x274   : > { %15019 = vmatprep.mubr.msk.bf16.mxu0 %vm321_vm0, %v3757_v25  ;;  %v407_v25 = vmul.u32 18, %v406_v17 }
 0x275   : > { %vm798_vm1 = vcmp.ne.s32.totalorder %v430_v24, 0  ;;  %vm834_vm2 = vcmp.lt.s32.totalorder %v430_v24, 0 }
 0x276   : > { %v408_v34 = vsub.s32 %v17503_v2, %v407_v25  ;;  %vm17549_vm3 = vmand %vm834_vm2, %vm798_vm1 }
 0x278   : > { %vm796_vm4 = vcmp.ne.s32.totalorder %v408_v34, 0  ;;  %vm832_vm5 = vcmp.lt.s32.totalorder %v408_v34, 0 }
 0x279   : > { %vm17568_vm7 = vmand %vm832_vm5, %vm796_vm4  ;;  %vm836_vm4 = vcmp.lt.s32.totalorder %v452_v3, 0 }
 0x27b   : > { %15020 = vmatmul.mubr.msk.bf16.gmra.mrb[12].mxu0 %vm321_vm0, %v3758_v30  ;;  %v440_v30 = vmul.u32 18, %v439_v22 }
 0x27c   : > { %15023 = vmatprep.mubr.msk.bf16.mxu0 %vm321_vm0, %v3759_v31  ;;  %v417_v31 = vshrl.u32 %v17521_v15, 4  ;;  %v17607_v14 = vmul.u32.u64.low 3817748708, %v17587_v1  ;;  %v17608_v15 = vmul.u32.u64.high 3817748708, %v17587_v1, %v17607_v14 }
 0x27d   : > { %v441_v39 = vsub.s32 %v367_v6, %v440_v30  ;;  %v485_v6 = vsub.s32 %v371_v21, %v484_v57 }
 0x27e   : > { %v418_v40 = vmul.u32 18, %v417_v31  ;;  %v17644_v31 = vmul.u32.u64.low 3817748708, %v17616_v18  ;;  %v17645_v32 = vmul.u32.u64.high 3817748708, %v17616_v18, %v17644_v31 }
 0x27f   : > { %vm799_vm6 = vcmp.ne.s32.totalorder %v441_v39, 0  ;;  %vm835_vm8 = vcmp.lt.s32.totalorder %v441_v39, 0  ;;  %v907_v60 = vadd.s32 18, %v441_v39  ;;  %vm803_vm5 = vcmp.ne.s32.totalorder %v485_v6, 0 }
 0x280   : > { %v419_v51 = vsub.s32 %v365_v11, %v418_v40  ;;  %vm17582_vm10 = vmand %vm835_vm8, %vm799_vm6  ;;  %vm839_vm6 = vcmp.lt.s32.totalorder %v485_v6, 0  ;;  %v911_v27 = vadd.s32 18, %v485_v6 }
 0x281   : > { %v943_v8 = vsel %vm17582_vm10, %v907_v60, %v441_v39  ;;  %vm17638_vm10 = vmand %vm839_vm6, %vm803_vm5 }
 0x282   : > { %vm797_vm11 = vcmp.ne.s32.totalorder %v419_v51, 0  ;;  %vm833_vm12 = vcmp.lt.s32.totalorder %v419_v51, 0  ;;  %v905_v9 = vadd.s32 18, %v419_v51  ;;  %v947_v40 = vsel %vm17638_vm10, %v911_v27, %v485_v6 }
 0x283   : > { %15024 = vmatmul.mubr.msk.bf16.gmra.mrb[16].mxu0 %vm321_vm0, %v3760_v36  ;;  %v906_v36 = vadd.s32 18, %v430_v24  ;;  %vm17599_vm1 = vmand %vm833_vm12, %vm797_vm11  ;;  %v17766_v27 = vadd.s32 160, %v17503_v2 }
 0x284   : > { %15027 = vmatprep.mubr.msk.bf16.mxu0 %vm321_vm0, %v3761_v37  ;;  %v17547_v37 = vadd.s32 80, %v17503_v2  ;;  %v941_v22 = vsel %vm17599_vm1, %v905_v9, %v419_v51 }
 0x285   : > { %v942_v47 = vsel %vm17549_vm3, %v906_v36, %v430_v24  ;;  %vm800_vm3 = vcmp.ne.s32.totalorder %v452_v3, 0  ;;  %vm977_vm12 = vcmp.lt.s32.totalorder %v941_v22, 16 }
 0x286   : > { %vm978_vm9 = vcmp.lt.s32.totalorder %v942_v47, 16  ;;  %vm17630_vm8 = vmand %vm836_vm4, %vm800_vm3  ;;  %v17665_v45 = vmul.u32.u64.low 3817748708, %v17636_v28  ;;  %v17666_v47 = vmul.u32.u64.high 3817748708, %v17636_v28, %v17665_v45  ;;  %v17683_v51 = vsel %vm977_vm12, 1.0, %v20803_v4 }
 0x287   : > { %v17590_v5 = vsel %vm978_vm9, 1.0, %v20803_v4 }
 0x288   : > { %v571_v9 = vshrl.u32 %v17666_v47, 4  ;;  %v17803_v45 = vmul.u32.u64.low 3817748708, %v17766_v27  ;;  %v17804_v47 = vmul.u32.u64.high 3817748708, %v17766_v27, %v17803_v45 }
 0x28b   : > { %15028 = vmatmul.mubr.msk.bf16.gmra.mrb[20].mxu0 %vm321_vm0, %v3762_v43  ;;  %v17555_v43 = vadd.s32 64, %v17503_v2 }
 0x28c   : > { %15031 = vmatprep.mubr.msk.bf16.mxu0 %vm321_vm0, %v3763_v44  ;;  %v473_v44 = vmul.u32 18, %v472_v35 }
 0x28e   : > { %v474_v56 = vsub.s32 %v370_v13, %v473_v44  ;;  %v17604_v13 = vsub.s32 %v17531_v23, %v462_v63  ;;  %v908_v23 = vadd.s32 18, %v452_v3  ;;  %v505_v44 = vshrl.u32 %v17608_v15, 4 }
 0x290   : > { %vm802_vm13 = vcmp.ne.s32.totalorder %v474_v56, 0  ;;  %vm838_vm14 = vcmp.lt.s32.totalorder %v474_v56, 0  ;;  %v910_v12 = vadd.s32 18, %v474_v56  ;;  %vm801_vm9 = vcmp.ne.s32.totalorder %v17604_v13, 0 }
 0x291   : > { %vm17610_vm2 = vmand %vm838_vm14, %vm802_vm13  ;;  %vm837_vm11 = vcmp.lt.s32.totalorder %v17604_v13, 0  ;;  %v944_v36 = vsel %vm17630_vm8, %v908_v23, %v452_v3  ;;  %v909_v38 = vadd.s32 18, %v17604_v13  ;;  %v506_v57 = vmul.u32 18, %v505_v44 }
 0x292   : > { %v946_v25 = vsel %vm17610_vm2, %v910_v12, %v474_v56  ;;  %vm17659_vm14 = vmand %vm837_vm11, %vm801_vm9  ;;  %vm17688_vm1 = vcmp.lt.s32.totalorder %v944_v36, 16  ;;  %v17733_v12 = vadd.s32 136, %v17503_v2 }
 0x293   : > { %15032 = vmatmul.mubr.msk.bf16.gmra.mrb[24].mxu0 %vm321_vm0, %v3764_v49  ;;  %v17564_v48 = vmul.u32.u64.low 3817748708, %v17547_v37  ;;  %v17565_v49 = vmul.u32.u64.high 3817748708, %v17547_v37, %v17564_v48  ;;  %vm982_vm13 = vcmp.lt.s32.totalorder %v946_v25, 16  ;;  %v17769_v29 = vsub.s32 %v17587_v1, %v506_v57 }
 0x294   : > { %15035 = vmatprep.mubr.msk.bf16.mxu0 %vm321_vm0, %v3765_v50  ;;  %v904_v50 = vadd.s32 18, %v408_v34  ;;  %v17686_v52 = vsel %vm982_vm13, 1.0, %v20803_v4  ;;  %v17762_v25 = vmul.u32.u64.low 3817748708, %v17721_v7  ;;  %v17763_v26 = vmul.u32.u64.high 3817748708, %v17721_v7, %v17762_v25 }
 0x295   : > { %v516_v10 = vshrl.u32 %v17565_v49, 4  ;;  %v913_v42 = vadd.s32 18, %v17769_v29  ;;  %v17912_v1 = vadd.s32 208, %v17503_v2 }
 0x296   : > { %v940_v61 = vsel %vm17568_vm7, %v904_v50, %v408_v34  ;;  %vm17622_vm7 = vcmp.lt.s32.totalorder %v943_v8, 16  ;;  %v17648_v34 = vmul.u32.u64.low 3817748708, %v17620_v20  ;;  %v17649_v35 = vmul.u32.u64.high 3817748708, %v17620_v20, %v17648_v34 }
 0x297   : > { %vm17592_vm15 = vcmp.lt.s32.totalorder %v940_v61, 16  ;;  %v517_v24 = vmul.u32 18, %v516_v10  ;;  %v17680_v50 = vadd.s32 104, %v17503_v2  ;;  %v560_v61 = vshrl.u32 %v17645_v32, 4 }
 0x298   : > { %v17671_v48 = vsel %vm17592_vm15, 1.0, %v20803_v4  ;;  %vm17693_vm15 = vcmp.lt.s32.totalorder %v947_v40, 16  ;;  %v538_v62 = vshrl.u32 %v17649_v35, 4  ;;  %v615_v57 = vshrl.u32 %v17763_v26, 4 }
 0x299   : > { %v518_v39 = vsub.s32 %v17547_v37, %v517_v24  ;;  %v17676_v37 = vsel %vm17622_vm7, 1.0, %v20803_v4  ;;  %v17743_v14 = vsel %vm17693_vm15, 1.0, %v20803_v4  ;;  %v561_v22 = vmul.u32 18, %v560_v61 }
 0x29a   : > { %v539_v23 = vmul.u32 18, %v538_v62  ;;  %v17772_v31 = vmul.u32.u64.low 3817748708, %v17733_v12  ;;  %v17773_v32 = vmul.u32.u64.high 3817748708, %v17733_v12, %v17772_v31  ;;  %vm841_vm15 = vcmp.lt.s32.totalorder %v17769_v29, 0 }
 0x29b   : > { %15036 = vmatmul.mubr.msk.bf16.gmra.mrb[28].mxu0 %vm321_vm0, %v3766_v54  ;;  %vm806_vm2 = vcmp.ne.s32.totalorder %v518_v39, 0  ;;  %vm842_vm3 = vcmp.lt.s32.totalorder %v518_v39, 0  ;;  %v914_v56 = vadd.s32 18, %v518_v39  ;;  %v616_v21 = vmul.u32 18, %v615_v57 }
 0x29c   : > { %15039 = vmatprep.mubr.msk.bf16.mxu0 %vm321_vm0, %v3767_v55  ;;  %v17573_v54 = vmul.u32.u64.low 3817748708, %v17555_v43  ;;  %v17574_v55 = vmul.u32.u64.high 3817748708, %v17555_v43, %v17573_v54  ;;  %vm17712_vm7 = vmand %vm842_vm3, %vm806_vm2  ;;  %v17779_v35 = vmul.u32.u64.low 3817748708, %v17746_v16  ;;  %v17780_v36 = vmul.u32.u64.high 3817748708, %v17746_v16, %v17779_v35 }
 0x29d   : > { %v17795_v40 = vsub.s32 %v17620_v20, %v539_v23  ;;  %v17818_v54 = vadd.s32 184, %v17503_v2  ;;  %v18049_v35 = vadd.s32 200, %v17503_v2 }
 0x29e   : > { %v494_v17 = vshrl.u32 %v17574_v55, 4  ;;  %v17701_v55 = vadd.s32 144, %v17503_v2  ;;  %v648_v63 = vshrl.u32 %v17780_v36, 4 }
 0x2a0   : > { %v495_v30 = vmul.u32 18, %v494_v17  ;;  %v17717_v3 = vmul.u32.u64.low 3817748708, %v17701_v55  ;;  %v17718_v6 = vmul.u32.u64.high 3817748708, %v17701_v55, %v17717_v3 }
 0x2a2   : > { %v496_v49 = vsub.s32 %v17555_v43, %v495_v30  ;;  %v945_v43 = vsel %vm17659_vm14, %v909_v38, %v17604_v13  ;;  %v17738_v13 = vsel %vm17688_vm1, 1.0, %v20803_v4  ;;  %v572_v30 = vmul.u32 18, %v571_v9 }
 0x2a3   : > { %15040 = vmatmul.mubr.msk.bf16.gmra.mrb[32].mxu0 %vm321_vm0, %v3768_v58  ;;  %v17577_v58 = vmul.u32.u64.low 3817748708, %v17559_v46  ;;  %v17578_v59 = vmul.u32.u64.high 3817748708, %v17559_v46, %v17577_v58  ;;  %vm17748_vm10 = vcmp.lt.s32.totalorder %v945_v43, 16  ;;  %v604_v44 = vshrl.u32 %v17718_v6, 4 }
 0x2a4   : > { %v17704_v58 = vadd.s32 128, %v17503_v2  ;;  %vm804_vm4 = vcmp.ne.s32.totalorder %v496_v49, 0  ;;  %vm840_vm5 = vcmp.lt.s32.totalorder %v496_v49, 0  ;;  %v912_v60 = vadd.s32 18, %v496_v49 }
 0x2a5   : > { %v527_v19 = vshrl.u32 %v17578_v59, 4  ;;  %vm17723_vm9 = vmand %vm840_vm5, %vm804_vm4  ;;  %v17785_v38 = vsel %vm17748_vm10, 1.0, %v20803_v4  ;;  %vm805_vm1 = vcmp.ne.s32.totalorder %v17769_v29, 0  ;;  %vm808_vm4 = vcmp.ne.s32.totalorder %v17795_v40, 0 }
 0x2a6   : > { %v17729_v10 = vmul.u32.u64.low 3817748708, %v17704_v58  ;;  %v17730_v11 = vmul.u32.u64.high 3817748708, %v17704_v58, %v17729_v10  ;;  %v948_v24 = vsel %vm17723_vm9, %v912_v60, %v496_v49  ;;  %vm844_vm5 = vcmp.lt.s32.totalorder %v17795_v40, 0 }
 0x2a7   : > { %v528_v33 = vmul.u32 18, %v527_v19  ;;  %v950_v19 = vsel %vm17712_vm7, %v914_v56, %v518_v39  ;;  %v17792_v39 = vsub.s32 %v17616_v18, %v561_v22  ;;  %vm17797_vm13 = vcmp.lt.s32.totalorder %v948_v24, 16  ;;  %vm17862_vm10 = vmand %vm844_vm5, %vm808_vm4 }
 0x2a8   : > { %vm17787_vm12 = vcmp.lt.s32.totalorder %v950_v19, 16  ;;  %v17812_v18 = vsub.s32 %v17636_v28, %v572_v30  ;;  %v582_v20 = vshrl.u32 %v17730_v11, 4  ;;  %v916_v28 = vadd.s32 18, %v17795_v40 }
 0x2a9   : > { %v529_v53 = vsub.s32 %v17559_v46, %v528_v33  ;;  %v17707_v46 = vmul.u32.u64.low 3817748708, %v17680_v50  ;;  %v17708_v59 = vmul.u32.u64.high 3817748708, %v17680_v50, %v17707_v46  ;;  %vm810_vm2 = vcmp.ne.s32.totalorder %v17792_v39, 0 }
 0x2aa   : > { %vm846_vm3 = vcmp.lt.s32.totalorder %v17792_v39, 0  ;;  %v918_v43 = vadd.s32 18, %v17792_v39  ;;  %v605_v56 = vmul.u32 18, %v604_v44  ;;  %vm811_vm7 = vcmp.ne.s32.totalorder %v17812_v18, 0 }
 0x2ab   : > { %vm807_vm6 = vcmp.ne.s32.totalorder %v529_v53, 0  ;;  %vm843_vm8 = vcmp.lt.s32.totalorder %v529_v53, 0  ;;  %v915_v15 = vadd.s32 18, %v529_v53  ;;  %v549_v34 = vshrl.u32 %v17708_v59, 4  ;;  %vm17836_vm9 = vmand %vm846_vm3, %vm810_vm2 }
 0x2ac   : > { %vm17755_vm11 = vmand %vm843_vm8, %vm807_vm6  ;;  %vm847_vm8 = vcmp.lt.s32.totalorder %v17812_v18, 0  ;;  %v583_v59 = vmul.u32 18, %v582_v20  ;;  %v593_v60 = vshrl.u32 %v17773_v32, 4  ;;  %v17851_v8 = vsel %vm17787_vm12, 1.0, %v20803_v4 }
 0x2ad   : > { %v951_v33 = vsel %vm17755_vm11, %v915_v15, %v529_v53  ;;  %v550_v53 = vmul.u32 18, %v549_v34  ;;  %vm17829_vm6 = vmand %vm841_vm15, %vm805_vm1  ;;  %v17845_v3 = vmul.u32.u64.low 3817748708, %v17818_v54  ;;  %v17846_v6 = vmul.u32.u64.high 3817748708, %v17818_v54, %v17845_v3 }
 0x2ae   : > { %vm17806_vm14 = vcmp.lt.s32.totalorder %v951_v33, 16  ;;  %v17856_v9 = vsel %vm17797_vm13, 1.0, %v20803_v4  ;;  %v919_v10 = vadd.s32 18, %v17812_v18  ;;  %v17868_v11 = vadd.s32 168, %v17503_v2  ;;  %vm17875_vm11 = vmand %vm847_vm8, %vm811_vm7 }
 0x2af   : > { %v17841_v62 = vsub.s32 %v17680_v50, %v550_v53  ;;  %v17873_v15 = vsel %vm17806_vm14, 1.0, %v20803_v4  ;;  %v606_v19 = vsub.s32 %v17701_v55, %v605_v56  ;;  %v626_v22 = vshrl.u32 %v17804_v47, 4 }
 0x2b0   : > { %v949_v23 = vsel %vm17829_vm6, %v913_v42, %v17769_v29  ;;  %v954_v24 = vsel %vm17836_vm9, %v918_v43, %v17792_v39  ;;  %v584_v25 = vsub.s32 %v17704_v58, %v583_v59  ;;  %v594_v26 = vmul.u32 18, %v593_v60 }
 0x2b1   : > { %v952_v30 = vsel %vm17862_vm10, %v916_v28, %v17795_v40  ;;  %vm809_vm12 = vcmp.ne.s32.totalorder %v17841_v62, 0  ;;  %vm845_vm13 = vcmp.lt.s32.totalorder %v17841_v62, 0  ;;  %v649_v55 = vmul.u32 18, %v648_v63 }
 0x2b2   : > { %v955_v29 = vsel %vm17875_vm11, %v919_v10, %v17812_v18  ;;  %v917_v31 = vadd.s32 18, %v17841_v62  ;;  %v17898_v32 = vmul.u32.u64.low 3817748708, %v17868_v11  ;;  %v17899_v33 = vmul.u32.u64.high 3817748708, %v17868_v11, %v17898_v32  ;;  %vm17904_vm15 = vmand %vm845_vm13, %vm809_vm12 }
 0x2b3   : > { %vm814_vm14 = vcmp.ne.s32.totalorder %v606_v19, 0  ;;  %vm850_vm1 = vcmp.lt.s32.totalorder %v606_v19, 0  ;;  %v17902_v58 = vsub.s32 %v17721_v7, %v616_v21  ;;  %v627_v34 = vmul.u32 18, %v626_v22 }
 0x2b4   : > { %vm812_vm2 = vcmp.ne.s32.totalorder %v584_v25, 0  ;;  %vm848_vm3 = vcmp.lt.s32.totalorder %v584_v25, 0  ;;  %v17909_v36 = vsub.s32 %v17733_v12, %v594_v26  ;;  %vm17914_vm4 = vcmp.lt.s32.totalorder %v949_v23, 16  ;;  %vm17934_vm8 = vmand %vm850_vm1, %vm814_vm14 }
 0x2b5   : > { %v922_v40 = vadd.s32 18, %v606_v19  ;;  %v650_v7 = vsub.s32 %v17746_v16, %v649_v55  ;;  %v659_v41 = vshrl.u32 %v17846_v6, 4  ;;  %vm17920_vm5 = vcmp.lt.s32.totalorder %v954_v24, 16  ;;  %vm17942_vm9 = vmand %vm848_vm3, %vm812_vm2 }
 0x2b6   : > { %vm17924_vm6 = vcmp.lt.s32.totalorder %v952_v30, 16  ;;  %vm17928_vm7 = vcmp.lt.s32.totalorder %v955_v29, 16  ;;  %v920_v16 = vadd.s32 18, %v584_v25  ;;  %v953_v49 = vsel %vm17904_vm15, %v917_v31, %v17841_v62  ;;  %v18030_v29 = vld [vmem:[%s20797_s2] ss:$0 sm:$0xff] }
 0x2b7   : > { %vm815_vm10 = vcmp.ne.s32.totalorder %v17902_v58, 0  ;;  %vm851_vm11 = vcmp.lt.s32.totalorder %v17902_v58, 0  ;;  %v628_v20 = vsub.s32 %v17766_v27, %v627_v34  ;;  %vm813_vm12 = vcmp.ne.s32.totalorder %v17909_v36, 0 }
 0x2b8   : > { %vm849_vm13 = vcmp.lt.s32.totalorder %v17909_v36, 0  ;;  %v17952_v42 = vmul.u32.u64.low 3817748708, %v17912_v1  ;;  %v17953_v53 = vmul.u32.u64.high 3817748708, %v17912_v1, %v17952_v42  ;;  %v958_v43 = vsel %vm17934_vm8, %v922_v40, %v606_v19  ;;  %vm17959_vm15 = vmand %vm851_vm11, %vm815_vm10 }
 0x2b9   : > { %vm818_vm14 = vcmp.ne.s32.totalorder %v650_v7, 0  ;;  %vm854_vm1 = vcmp.lt.s32.totalorder %v650_v7, 0  ;;  %v660_v28 = vmul.u32 18, %v659_v41  ;;  %v956_v56 = vsel %vm17942_vm9, %v920_v16, %v584_v25  ;;  %vm17966_vm2 = vmand %vm849_vm13, %vm813_vm12 }
 0x2ba   : > { %v923_v27 = vadd.s32 18, %v17902_v58  ;;  %v921_v46 = vadd.s32 18, %v17909_v36  ;;  %v637_v59 = vshrl.u32 %v17899_v33, 4  ;;  %v926_v61 = vadd.s32 18, %v650_v7  ;;  %vm17994_vm10 = vmand %vm854_vm1, %vm818_vm14 }
 0x2bb   : > { %vm816_vm3 = vcmp.ne.s32.totalorder %v628_v20, 0  ;;  %vm852_vm8 = vcmp.lt.s32.totalorder %v628_v20, 0  ;;  %v17971_v62 = vadd.s32 192, %v17503_v2  ;;  %v17976_v63 = vsel %vm17914_vm4, 1.0, %v20803_v4 }
 0x2bc   : > { %v17981_v3 = vsel %vm17920_vm5, 1.0, %v20803_v4  ;;  %v17986_v6 = vsel %vm17924_vm6, 1.0, %v20803_v4  ;;  %vm17988_vm9 = vcmp.lt.s32.totalorder %v953_v49, 16  ;;  %vm994_vm4 = vcmp.lt.s32.totalorder %v958_v43, 16  ;;  %vm18014_vm5 = vmand %vm852_vm8, %vm816_vm3 }
 0x2bd   : > { %vm992_vm11 = vcmp.lt.s32.totalorder %v956_v56, 16  ;;  %v924_v17 = vadd.s32 18, %v628_v20  ;;  %v17999_v19 = vsub.s32 %v17818_v54, %v660_v28  ;;  %v18004_v21 = vsel %vm17928_vm7, 1.0, %v20803_v4 }
 0x2be   : > { %v959_v22 = vsel %vm17959_vm15, %v923_v27, %v17902_v58  ;;  %v957_v23 = vsel %vm17966_vm2, %v921_v46, %v17909_v36  ;;  %v638_v54 = vmul.u32 18, %v637_v59  ;;  %v962_v25 = vsel %vm17994_vm10, %v926_v61, %v650_v7 }
 0x2bf   : > { %v18021_v26 = vmul.u32.u64.low 3817748708, %v17971_v62  ;;  %v18022_v30 = vmul.u32.u64.high 3817748708, %v17971_v62, %v18021_v26  ;;  %v18025_v55 = vadd.s32 216, %v17503_v2  ;;  %v18035_v31 = vsel %vm17988_vm9, 1.0, %v20803_v4 }
 0x2c0   : > { %v18038_v32 = vsel %vm994_vm4, 1.0, %v20803_v4  ;;  %v18041_v33 = vsel %vm992_vm11, 1.0, %v20803_v4  ;;  %v692_v58 = vshrl.u32 %v17953_v53, 4  ;;  %v960_v34 = vsel %vm18014_vm5, %v924_v17, %v628_v20 }
 0x2c1   : > { %vm819_vm6 = vcmp.ne.s32.totalorder %v17999_v19, 0  ;;  %vm855_vm7 = vcmp.lt.s32.totalorder %v17999_v19, 0  ;;  %vm18051_vm12 = vcmp.lt.s32.totalorder %v959_v22, 16  ;;  %vm18055_vm13 = vcmp.lt.s32.totalorder %v957_v23, 16 }
 0x2c2   : > { %vm18059_vm14 = vcmp.lt.s32.totalorder %v962_v25, 16  ;;  %v18064_v41 = vsub.s32 %v17868_v11, %v638_v54  ;;  %v927_v12 = vadd.s32 18, %v17999_v19  ;;  %vm18073_vm1 = vcmp.lt.s32.totalorder %v960_v34, 16  ;;  %vm18081_vm15 = vmand %vm855_vm7, %vm819_vm6 }
 0x2c3   : > { %v18069_v47 = vmul.u32.u64.low 3817748708, %v18025_v55  ;;  %v18070_v16 = vmul.u32.u64.high 3817748708, %v18025_v55, %v18069_v47  ;;  %v693_v42 = vmul.u32 18, %v692_v58  ;;  %v18086_v53 = vadd.s32 240, %v17503_v2 }
 0x2c4   : > { %v18090_v57 = vmul.u32.u64.low 3817748708, %v18049_v35  ;;  %v18091_v27 = vmul.u32.u64.high 3817748708, %v18049_v35, %v18090_v57  ;;  %vm817_vm2 = vcmp.ne.s32.totalorder %v18064_v41, 0  ;;  %vm853_vm3 = vcmp.lt.s32.totalorder %v18064_v41, 0 }
 0x2c5   : > { %v963_v50 = vsel %vm18081_vm15, %v927_v12, %v17999_v19  ;;  %v670_v10 = vshrl.u32 %v18022_v30, 4  ;;  %v925_v23 = vadd.s32 18, %v18064_v41  ;;  %v18104_v24 = vsub.s32 %v17912_v1, %v693_v42  ;;  %vm18113_vm8 = vmand %vm853_vm3, %vm817_vm2 }
 0x2c6   : > { %v18111_v25 = vsel %vm18051_vm12, 1.0, %v20803_v4  ;;  %v18118_v26 = vmul.u32.u64.low 3817748708, %v18086_v53  ;;  %v18119_v30 = vmul.u32.u64.high 3817748708, %v18086_v53, %v18118_v26  ;;  %v18126_v34 = vsel %vm18055_vm13, 1.0, %v20803_v4 }
 0x2c7   : > { %v18136_v39 = vsel %vm18073_vm1, 1.0, %v20803_v4  ;;  %vm18140_vm9 = vcmp.lt.s32.totalorder %v963_v50, 16  ;;  %v671_v40 = vmul.u32 18, %v670_v10  ;;  %v703_v47 = vshrl.u32 %v18070_v16, 4 }
 0x2c8   : > { %vm822_vm10 = vcmp.ne.s32.totalorder %v18104_v24, 0  ;;  %vm858_vm4 = vcmp.lt.s32.totalorder %v18104_v24, 0  ;;  %v18157_v16 = vadd.s32 224, %v17503_v2  ;;  %v681_v57 = vshrl.u32 %v18091_v27, 4 }
 0x2c9   : > { %vm18167_vm5 = vmand %vm858_vm4, %vm822_vm10  ;;  %v18175_v27 = vsel %vm18140_vm9, 1.0, %v20803_v4 }
 0x336   : > { %v15009_v36 = vpop.f32.mrb[0].mxu0 }
 0x337   : > { %v4062_v44 = vadd.f32 %v15009_v36, %v18030_v29  ;;  %v3874_v45 = vpop.f32.mrb[1].mxu0  ;;  %v18131_v36 = vsel %vm18059_vm14, 1.0, %v20803_v4 }
 0x338   : > { %v4060_v49 = vadd.f32 %v18030_v29, %v3874_v45  ;;  %v15010_v18 = vpop.f32.mrb[2].mxu0 }
 0x339   : > { %v4098_v43 = vmax.f32 %v4062_v44, 0.0  ;;  %v4063_v28 = vadd.f32 %v15010_v18, %v18030_v29  ;;  %v3877_v56 = vpop.f32.mrb[3].mxu0  ;;  %v961_v18 = vsel %vm18113_vm8, %v925_v23, %v18064_v41  ;;  %v18162_v41 = vadd.s32 248, %v17503_v2 }
 0x33a   : > { %v4096_v46 = vmax.f32 %v4060_v49, 0.0  ;;  %v4061_v59 = vadd.f32 %v18030_v29, %v3877_v56  ;;  %vm997_vm11 = vcmp.lt.s32.totalorder %v961_v18, 16  ;;  %v736_v23 = vshrl.u32 %v18119_v30, 4 }
 0x33b   : > { %v4134_v60 = vmul.f32 %v17590_v5, %v4098_v43  ;;  %v4099_v61 = vmax.f32 %v4063_v28, 0.0  ;;  %v18154_v43 = vadd.s32 18, %v18104_v24 }
 0x33c   : > { %v4132_v17 = vmul.f32 %v17671_v48, %v4096_v46  ;;  %v4097_v22 = vmax.f32 %v4061_v59, 0.0 }
 0x33d   : > { %4170 = vst.msk [vmem:[#allocation2 + $0x23] sm:$0xff] %vm321_vm0, %v4134_v60  ;;  %v4135_v54 = vmul.f32 %v17676_v37, %v4099_v61  ;;  %v704_v61 = vmul.u32 18, %v703_v47 }
 0x33e   : > { %4168 = vst.msk [vmem:[#allocation2 + $0x13] sm:$0xff] %vm321_vm0, %v4132_v17  ;;  %v4133_v1 = vmul.f32 %v17683_v51, %v4097_v22  ;;  %v15013_v58 = vpop.f32.mrb[4].mxu0  ;;  %v18178_v17 = vsub.s32 %v17971_v62, %v671_v40  ;;  %v966_v62 = vsel %vm18167_vm5, %v18154_v43, %v18104_v24  ;;  %v18294_v24 = vadd.s32 280, %v17503_v2 }
 0x33f   : > { %4171 = vst.msk [vmem:[#allocation2 + $0x2b] sm:$0xff] %vm321_vm0, %v4135_v54  ;;  %v4066_v44 = vadd.f32 %v15013_v58, %v18030_v29  ;;  %v3890_v45 = vpop.f32.mrb[5].mxu0  ;;  %v18184_v54 = vmul.u32.u64.low 3817748708, %v18157_v16  ;;  %v18185_v19 = vmul.u32.u64.high 3817748708, %v18157_v16, %v18184_v54  ;;  %vm18279_vm2 = vcmp.lt.s32.totalorder %v966_v62, 16 }
 0x340   : > { %4169 = vst.msk [vmem:[#allocation2 + $0x1b] sm:$0xff] %vm321_vm0, %v4133_v1  ;;  %v4064_v7 = vadd.f32 %v18030_v29, %v3890_v45  ;;  %v15014_v49 = vpop.f32.mrb[6].mxu0  ;;  %v682_v45 = vmul.u32 18, %v681_v57  ;;  %vm820_vm6 = vcmp.ne.s32.totalorder %v18178_v17, 0  ;;  %v16988_v57 = vld [vmem:[%s20796_s1 + $0x98] sm:$0xff]   ;;  %vm856_vm7 = vcmp.lt.s32.totalorder %v18178_v17, 0 }
 0x341   : > { %v4102_v20 = vmax.f32 %v4066_v44, 0.0  ;;  %v4067_v11 = vadd.f32 %v15014_v49, %v18030_v29  ;;  %v3893_v42 = vpop.f32.mrb[7].mxu0  ;;  %v18190_v44 = vsel %vm997_vm11, 1.0, %v20803_v4  ;;  %v18199_v49 = vsub.s32 %v18025_v55, %v704_v61  ;;  %vm18231_vm13 = vmand %vm856_vm7, %vm820_vm6 }
 0x342   : > { %v4100_v28 = vmax.f32 %v4064_v7, 0.0  ;;  %v4065_v56 = vadd.f32 %v18030_v29, %v3893_v42  ;;  %v737_v61 = vmul.u32 18, %v736_v23  ;;  %v18219_v54 = vadd.s32 232, %v17503_v2 }
 0x343   : > { %v4138_v46 = vmul.f32 %v17686_v52, %v4102_v20  ;;  %v4103_v59 = vmax.f32 %v4067_v11, 0.0  ;;  %v18202_v18 = vmul.u32.u64.low 3817748708, %v18162_v41  ;;  %v18203_v20 = vmul.u32.u64.high 3817748708, %v18162_v41, %v18202_v18 }
 0x344   : > { %v4136_v50 = vmul.f32 %v17738_v13, %v4100_v28  ;;  %v4101_v10 = vmax.f32 %v4065_v56, 0.0  ;;  %v928_v23 = vadd.s32 18, %v18178_v17  ;;  %vm823_vm12 = vcmp.ne.s32.totalorder %v18199_v49, 0 }
 0x345   : > { %4174 = vst.msk [vmem:[#allocation2 + $0x43] sm:$0xff] %vm321_vm0, %v4138_v46  ;;  %v4139_v22 = vmul.f32 %v17743_v14, %v4103_v59  ;;  %v4265_v40 = vld [vmem:[#allocation2 + $0x11] sm:$0xff]  ;;  %vm859_vm14 = vcmp.lt.s32.totalorder %v18199_v49, 0 }
 0x346   : > { %4172 = vst.msk [vmem:[#allocation2 + $0x33] sm:$0xff] %vm321_vm0, %v4136_v50  ;;  %v4137_v26 = vmul.f32 %v17785_v38, %v4101_v10  ;;  %v15017_v1 = vpop.f32.mrb[8].mxu0  ;;  %v4268_v58 = vld [vmem:[#allocation2 + $0x29] sm:$0xff]  ;;  %vm18304_vm10 = vmand %vm859_vm14, %vm823_vm12 }
 0x347   : > { %4175 = vst.msk [vmem:[#allocation2 + $0x4b] sm:$0xff] %vm321_vm0, %v4139_v22  ;;  %v4070_v30 = vadd.f32 %v15017_v1, %v18030_v29  ;;  %v3906_v12 = vpop.f32.mrb[9].mxu0  ;;  %v4266_v47 = vld [vmem:[#allocation2 + $0x19] sm:$0xff]  ;;  %v4267_v7 = vld [vmem:[#allocation2 + $0x21] sm:$0xff]  ;;  %v18216_v22 = vsub.s32 %v18049_v35, %v682_v45  ;;  %v18242_v45 = vld [vmem:[%s20796_s1 + $0xb0] sm:$0xff]   ;;  %v18284_v35 = vadd.s32 256, %v17503_v2 }
 0x348   : > { %4173 = vst.msk [vmem:[#allocation2 + $0x3b] sm:$0xff] %vm321_vm0, %v4137_v26  ;;  %v4068_v11 = vadd.f32 %v18030_v29, %v3906_v12  ;;  %v15018_v42 = vpop.f32.mrb[10].mxu0  ;;  %v4300_v28 = vpack.c.bf16 %v4266_v47, %v4265_v40  ;;  %v4301_v56 = vpack.c.bf16 %v4268_v58, %v4267_v7  ;;  %v18247_v40 = vsub.s32 %v18086_v53, %v737_v61 }
 0x349   : > { %v4106_v46 = vmax.f32 %v4070_v30, 0.0  ;;  %v4071_v55 = vadd.f32 %v15018_v42, %v18030_v29  ;;  %v3909_v59 = vpop.f32.mrb[11].mxu0  ;;  %v714_v47 = vshrl.u32 %v18185_v19, 4  ;;  %v18251_v7 = vadd.s32 272, %v17503_v2 }
 0x34a   : > { %v4104_v50 = vmax.f32 %v4068_v11, 0.0  ;;  %v4069_v10 = vadd.f32 %v18030_v29, %v3909_v59  ;;  %15048 = vmatmul.mubr.msk.bf16.vlgmr.msra.gmra.mrb[0].mxu1 %vm321_vm0, %v4300_v28  ;;  %vm821_vm1 = vcmp.ne.s32.totalorder %v18216_v22, 0  ;;  %v964_v61 = vsel %vm18231_vm13, %v928_v23, %v18178_v17 }
 0x34b   : > { %v4142_v26 = vmul.f32 %v17851_v8, %v4106_v46  ;;  %v4107_v1 = vmax.f32 %v4071_v55, 0.0  ;;  %15084 = vmatpush3.bf16.msra.mxu1 %v17500_v0  ;;  %15051 = vmatprep.mubr.msk.bf16.mxu1 %vm321_vm0, %v4301_v56  ;;  %v18237_v0 = vadd.s32 18, %v18199_v49  ;;  %vm857_vm15 = vcmp.lt.s32.totalorder %v18216_v22, 0 }
 0x34c   : > { %v4140_v58 = vmul.f32 %v17856_v9, %v4104_v50  ;;  %v4105_v30 = vmax.f32 %v4069_v10, 0.0  ;;  %15085 = vmatprep.subr.bf16.mxu1 %v16988_v57  ;;  %v18257_v28 = vmul.u32.u64.low 3817748708, %v18219_v54  ;;  %v18258_v56 = vmul.u32.u64.high 3817748708, %v18219_v54, %v18257_v28  ;;  %vm18318_vm4 = vmand %vm857_vm15, %vm821_vm1 }
 0x34d   : > { %4178 = vst.msk [vmem:[#allocation2 + $0x63] sm:$0xff] %vm321_vm0, %v4142_v26  ;;  %v4143_v12 = vmul.f32 %v17873_v15, %v4107_v1  ;;  %v4269_v46 = vld [vmem:[#allocation2 + $0x31] sm:$0xff]  ;;  %v747_v50 = vshrl.u32 %v18203_v20, 4  ;;  %vm18288_vm3 = vcmp.lt.s32.totalorder %v964_v61, 16  ;;  %vm826_vm8 = vcmp.ne.s32.totalorder %v18247_v40, 0 }
 0x34e   : > { %4176 = vst.msk [vmem:[#allocation2 + $0x53] sm:$0xff] %vm321_vm0, %v4140_v58  ;;  %v4141_v18 = vmul.f32 %v17976_v63, %v4105_v30  ;;  %v15021_v11 = vpop.f32.mrb[12].mxu0  ;;  %v4272_v42 = vld [vmem:[#allocation2 + $0x49] sm:$0xff]  ;;  %v18270_v30 = vadd.s32 18, %v18216_v22  ;;  %vm862_vm9 = vcmp.lt.s32.totalorder %v18247_v40, 0  ;;  %v18388_v20 = vsel %vm18288_vm3, 1.0, %v20803_v4 }
 0x34f   : > { %4179 = vst.msk [vmem:[#allocation2 + $0x6b] sm:$0xff] %vm321_vm0, %v4143_v12  ;;  %v4074_v53 = vadd.f32 %v15021_v11, %v18030_v29  ;;  %v3922_v19 = vpop.f32.mrb[13].mxu0  ;;  %v4270_v55 = vld [vmem:[#allocation2 + $0x39] sm:$0xff]  ;;  %v4271_v59 = vld [vmem:[#allocation2 + $0x41] sm:$0xff]  ;;  %15086 = vmatpush3.bf16.msra.mxu1 %v16988_v57  ;;  %v715_v57 = vmul.u32 18, %v714_v47  ;;  %v748_v62 = vmul.u32 18, %v747_v50  ;;  %vm18378_vm6 = vmand %vm862_vm9, %vm826_vm8 }
 0x350   : > { %4177 = vst.msk [vmem:[#allocation2 + $0x5b] sm:$0xff] %vm321_vm0, %v4141_v18  ;;  %v4072_v10 = vadd.f32 %v18030_v29, %v3922_v19  ;;  %v15022_v26 = vpop.f32.mrb[14].mxu0  ;;  %v4302_v1 = vpack.c.bf16 %v4270_v55, %v4269_v46  ;;  %v4303_v58 = vpack.c.bf16 %v4272_v42, %v4271_v59  ;;  %15123 = vmatprep.subr.bf16.mxu1 %v18242_v45 }
 0x351   : > { %v4110_v12 = vmax.f32 %v4074_v53, 0.0  ;;  %v4075_v17 = vadd.f32 %v15022_v26, %v18030_v29  ;;  %v3925_v23 = vpop.f32.mrb[15].mxu0  ;;  %v18309_v19 = vmul.u32.u64.low 3817748708, %v18251_v7  ;;  %v18310_v46 = vmul.u32.u64.high 3817748708, %v18251_v7, %v18309_v19 }
 0x352   : > { %v4108_v18 = vmax.f32 %v4072_v10, 0.0  ;;  %v4073_v11 = vadd.f32 %v18030_v29, %v3925_v23  ;;  %15052 = vmatmul.mubr.msk.bf16.gmra.mrb[4].mxu1 %vm321_vm0, %v4302_v1  ;;  %v18323_v61 = vsub.s32 %v18157_v16, %v715_v57 }
 0x353   : > { %v4146_v43 = vmul.f32 %v17981_v3, %v4110_v12  ;;  %v4111_v60 = vmax.f32 %v4075_v17, 0.0  ;;  %15055 = vmatprep.mubr.msk.bf16.mxu1 %vm321_vm0, %v4303_v58  ;;  %v18326_v50 = vmul.u32.u64.low 3817748708, %v18284_v35  ;;  %v18327_v10 = vmul.u32.u64.high 3817748708, %v18284_v35, %v18326_v50 }
 0x354   : > { %v4144_v47 = vmul.f32 %v17986_v6, %v4108_v18  ;;  %v4109_v28 = vmax.f32 %v4073_v11, 0.0  ;;  %v725_v12 = vshrl.u32 %v18258_v56, 4  ;;  %v18346_v56 = vadd.s32 264, %v17503_v2 }
 0x355   : > { %4182 = vst.msk [vmem:[#allocation2 + $0x83] sm:$0xff] %vm321_vm0, %v4146_v43  ;;  %v4147_v55 = vmul.f32 %v18004_v21, %v4111_v60  ;;  %v18333_v17 = vmul.u32.u64.low 3817748708, %v18294_v24  ;;  %v18334_v23 = vmul.u32.u64.high 3817748708, %v18294_v24, %v18333_v17  ;;  %v4273_v18 = vld [vmem:[#allocation2 + $0x51] sm:$0xff]  ;;  %v967_v60 = vsel %vm18304_vm10, %v18237_v0, %v18199_v49 }
 0x356   : > { %4180 = vst.msk [vmem:[#allocation2 + $0x73] sm:$0xff] %vm321_vm0, %v4144_v47  ;;  %v4145_v26 = vmul.f32 %v18035_v31, %v4109_v28  ;;  %v15025_v1 = vpop.f32.mrb[16].mxu0  ;;  %v4276_v58 = vld [vmem:[#allocation2 + $0x69] sm:$0xff]  ;;  %v18343_v47 = vadd.s32 18, %v18247_v40  ;;  %vm824_vm11 = vcmp.ne.s32.totalorder %v18323_v61, 0  ;;  %v18357_v17 = vsub.s32 %v18162_v41, %v748_v62 }
 0x357   : > { %4183 = vst.msk [vmem:[#allocation2 + $0x8b] sm:$0xff] %vm321_vm0, %v4147_v55  ;;  %v4078_v16 = vadd.f32 %v15025_v1, %v18030_v29  ;;  %v3938_v57 = vpop.f32.mrb[17].mxu0  ;;  %v4274_v11 = vld [vmem:[#allocation2 + $0x59] sm:$0xff]  ;;  %v4275_v43 = vld [vmem:[#allocation2 + $0x61] sm:$0xff]  ;;  %v965_v1 = vsel %vm18318_vm4, %v18270_v30, %v18216_v22  ;;  %vm860_vm5 = vcmp.lt.s32.totalorder %v18323_v61, 0  ;;  %vm18390_vm7 = vcmp.lt.s32.totalorder %v967_v60, 16 }
 0x358   : > { %4181 = vst.msk [vmem:[#allocation2 + $0x7b] sm:$0xff] %vm321_vm0, %v4145_v26  ;;  %v4076_v28 = vadd.f32 %v18030_v29, %v3938_v57  ;;  %v15026_v19 = vpop.f32.mrb[18].mxu0  ;;  %v4304_v55 = vpack.c.bf16 %v4274_v11, %v4273_v18  ;;  %v4305_v50 = vpack.c.bf16 %v4276_v58, %v4275_v43  ;;  %v726_v58 = vmul.u32 18, %v725_v12  ;;  %vm18398_vm12 = vmand %vm860_vm5, %vm824_vm11 }
 0x359   : > { %v4114_v53 = vmax.f32 %v4078_v16, 0.0  ;;  %v4079_v49 = vadd.f32 %v15026_v19, %v18030_v29  ;;  %v3941_v0 = vpop.f32.mrb[19].mxu0  ;;  %v18365_v30 = vmul.u32.u64.low 3817748708, %v18346_v56  ;;  %v18366_v16 = vmul.u32.u64.high 3817748708, %v18346_v56, %v18365_v30 }
 0x35a   : > { %v4112_v26 = vmax.f32 %v4076_v28, 0.0  ;;  %v4077_v57 = vadd.f32 %v18030_v29, %v3941_v0  ;;  %15056 = vmatmul.mubr.msk.bf16.gmra.mrb[8].mxu1 %vm321_vm0, %v4304_v55  ;;  %v18372_v18 = vsel %vm18279_vm2, 1.0, %v20803_v4  ;;  %v932_v11 = vadd.s32 18, %v18323_v61 }
 0x35b   : > { %v4150_v59 = vmul.f32 %v18038_v32, %v4114_v53  ;;  %v4115_v22 = vmax.f32 %v4079_v49, 0.0  ;;  %15059 = vmatprep.mubr.msk.bf16.mxu1 %vm321_vm0, %v4305_v50  ;;  %v780_v55 = vshrl.u32 %v18310_v46, 4  ;;  %vm18405_vm13 = vcmp.lt.s32.totalorder %v965_v1, 16 }
 0x35c   : > { %v4148_v41 = vmul.f32 %v18041_v33, %v4112_v26  ;;  %v4113_v62 = vmax.f32 %v4077_v57, 0.0  ;;  %vm827_vm14 = vcmp.ne.s32.totalorder %v18357_v17, 0  ;;  %v18411_v49 = vsub.s32 %v18219_v54, %v726_v58 }
 0x35d   : > { %4186 = vst.msk [vmem:[#allocation2 + $0xa3] sm:$0xff] %vm321_vm0, %v4150_v59  ;;  %v4151_v43 = vmul.f32 %v18111_v25, %v4115_v22  ;;  %v4277_v26 = vld [vmem:[#allocation2 + $0x71] sm:$0xff]  ;;  %v970_v1 = vsel %vm18378_vm6, %v18343_v47, %v18247_v40  ;;  %vm863_vm1 = vcmp.lt.s32.totalorder %v18357_v17, 0  ;;  %v18421_v22 = vadd.s32 18, %v18357_v17 }
 0x35e   : > { %4184 = vst.msk [vmem:[#allocation2 + $0x93] sm:$0xff] %vm321_vm0, %v4148_v41  ;;  %v4149_v42 = vmul.f32 %v18126_v34, %v4113_v62  ;;  %v15029_v50 = vpop.f32.mrb[20].mxu0  ;;  %v4280_v53 = vld [vmem:[#allocation2 + $0x89] sm:$0xff]  ;;  %v968_v62 = vsel %vm18398_vm12, %v932_v11, %v18323_v61  ;;  %v781_v47 = vmul.u32 18, %v780_v55  ;;  %vm825_vm15 = vcmp.ne.s32.totalorder %v18411_v49, 0  ;;  %vm18452_vm8 = vmand %vm863_vm1, %vm827_vm14 }
 0x35f   : > { %4187 = vst.msk [vmem:[#allocation2 + $0xab] sm:$0xff] %vm321_vm0, %v4151_v43  ;;  %v4082_v0 = vadd.f32 %v15029_v50, %v18030_v29  ;;  %v3954_v46 = vpop.f32.mrb[21].mxu0  ;;  %v4278_v57 = vld [vmem:[#allocation2 + $0x79] sm:$0xff]  ;;  %v4279_v59 = vld [vmem:[#allocation2 + $0x81] sm:$0xff]  ;;  %v758_v50 = vshrl.u32 %v18327_v10, 4  ;;  %vm861_vm2 = vcmp.lt.s32.totalorder %v18411_v49, 0 }
 0x360   : > { %4185 = vst.msk [vmem:[#allocation2 + $0x9b] sm:$0xff] %vm321_vm0, %v4149_v42  ;;  %v4080_v54 = vadd.f32 %v18030_v29, %v3954_v46  ;;  %v15030_v58 = vpop.f32.mrb[22].mxu0  ;;  %v4306_v30 = vpack.c.bf16 %v4278_v57, %v4277_v26  ;;  %v4307_v41 = vpack.c.bf16 %v4280_v53, %v4279_v59  ;;  %v791_v42 = vshrl.u32 %v18334_v23, 4  ;;  %vm18474_vm10 = vmand %vm861_vm2, %vm825_vm15 }
 0x361   : > { %v4118_v43 = vmax.f32 %v4082_v0, 0.0  ;;  %v4083_v12 = vadd.f32 %v15030_v58, %v18030_v29  ;;  %v3957_v40 = vpop.f32.mrb[23].mxu0  ;;  %v769_v61 = vshrl.u32 %v18366_v16, 4  ;;  %v20914_v55 = vmov 0.0  }
 0x362   : > { %v4116_v4 = vmax.f32 %v4080_v54, 0.0  ;;  %v4081_v2 = vadd.f32 %v18030_v29, %v3957_v40  ;;  %15060 = vmatmul.mubr.msk.bf16.gmra.mrb[12].mxu1 %vm321_vm0, %v4306_v30  ;;  %v18442_v0 = vsel %vm18390_vm7, 1.0, %v20914_v55  ;;  %vm18444_vm3 = vcmp.lt.s32.totalorder %v970_v1, 16 }
 0x363   : > { %v4154_v53 = vmul.f32 %v18131_v36, %v4118_v43  ;;  %v4119_v19 = vmax.f32 %v4083_v12, 0.0  ;;  %15063 = vmatprep.mubr.msk.bf16.mxu1 %vm321_vm0, %v4307_v41  ;;  %vm18458_vm9 = vcmp.lt.s32.totalorder %v968_v62, 16  ;;  %v933_v16 = vadd.s32 18, %v18411_v49 }
 0x364   : > { %v4152_v10 = vmul.f32 %v18136_v39, %v4116_v4  ;;  %v4117_v11 = vmax.f32 %v4081_v2, 0.0  ;;  %v759_v28 = vmul.u32 18, %v758_v50  ;;  %v18468_v59 = vsel %vm18405_vm13, 1.0, %v20914_v55 }
 0x365   : > { %4190 = vst.msk [vmem:[#allocation2 + $0xc3] sm:$0xff] %vm321_vm0, %v4154_v53  ;;  %v4155_v2 = vmul.f32 %v18175_v27, %v4119_v19  ;;  %v18479_v58 = vsub.s32 %v18251_v7, %v781_v47  ;;  %v792_v30 = vmul.u32 18, %v791_v42  ;;  %v4281_v62 = vld [vmem:[#allocation2 + $0x91] sm:$0xff]  ;;  %v18486_v40 = vsel %vm18444_vm3, 1.0, %v20914_v55 }
 0x366   : > { %4188 = vst.msk [vmem:[#allocation2 + $0xb3] sm:$0xff] %vm321_vm0, %v4152_v10  ;;  %v4153_v26 = vmul.f32 %v18190_v44, %v4117_v11  ;;  %v15033_v57 = vpop.f32.mrb[24].mxu0  ;;  %v4284_v1 = vld [vmem:[#allocation2 + $0xa9] sm:$0xff]  ;;  %v971_v7 = vsel %vm18452_vm8, %v18421_v22, %v18357_v17  ;;  %v770_v47 = vmul.u32 18, %v769_v61  ;;  %v18497_v10 = vsel %vm18458_vm9, 1.0, %v20914_v55 }
 0x367   : > { %4191 = vst.msk [vmem:[#allocation2 + $0xcb] sm:$0xff] %vm321_vm0, %v4155_v2  ;;  %v4086_v41 = vadd.f32 %v15033_v57, %v18030_v29  ;;  %v3970_v60 = vpop.f32.mrb[25].mxu0  ;;  %v4282_v43 = vld [vmem:[#allocation2 + $0x99] sm:$0xff]  ;;  %v4283_v12 = vld [vmem:[#allocation2 + $0xa1] sm:$0xff]  ;;  %v969_v17 = vsel %vm18474_vm10, %v933_v16, %v18411_v49  ;;  %v18504_v22 = vsub.s32 %v18284_v35, %v759_v28  ;;  %vm830_vm4 = vcmp.ne.s32.totalorder %v18479_v58, 0 }
 0x368   : > { %4189 = vst.msk [vmem:[#allocation2 + $0xbb] sm:$0xff] %vm321_vm0, %v4153_v26  ;;  %v4084_v50 = vadd.f32 %v18030_v29, %v3970_v60  ;;  %v15034_v42 = vpop.f32.mrb[26].mxu0  ;;  %v4308_v53 = vpack.c.bf16 %v4282_v43, %v4281_v62  ;;  %v4309_v19 = vpack.c.bf16 %v4284_v1, %v4283_v12  ;;  %v18510_v4 = vsub.s32 %v18294_v24, %v792_v30 }
 0x369   : > { %v4122_v11 = vmax.f32 %v4086_v41, 0.0  ;;  %v4087_v46 = vadd.f32 %v15034_v42, %v18030_v29  ;;  %v3973_v2 = vpop.f32.mrb[27].mxu0  ;;  %vm866_vm11 = vcmp.lt.s32.totalorder %v18479_v58, 0  ;;  %v18516_v35 = vsub.s32 %v18346_v56, %v770_v47 }
 0x36a   : > { %v4120_v61 = vmax.f32 %v4084_v50, 0.0  ;;  %v4085_v23 = vadd.f32 %v18030_v29, %v3973_v2  ;;  %15064 = vmatmul.mubr.msk.bf16.gmra.mrb[16].mxu1 %vm321_vm0, %v4308_v53  ;;  %vm18519_vm5 = vcmp.lt.s32.totalorder %v971_v7, 16  ;;  %v938_v24 = vadd.s32 18, %v18479_v58  ;;  %vm18538_vm13 = vmand %vm866_vm11, %vm830_vm4 }
 0x36b   : > { %v4158_v26 = vmul.f32 %v18372_v18, %v4122_v11  ;;  %v4123_v57 = vmax.f32 %v4087_v46, 0.0  ;;  %15067 = vmatprep.mubr.msk.bf16.mxu1 %vm321_vm0, %v4309_v19  ;;  %vm18526_vm6 = vcmp.lt.s32.totalorder %v969_v17, 16  ;;  %vm828_vm7 = vcmp.ne.s32.totalorder %v18504_v22, 0 }
 0x36c   : > { %v4156_v49 = vmul.f32 %v18388_v20, %v4120_v61  ;;  %v4121_v16 = vmax.f32 %v4085_v23, 0.0  ;;  %vm864_vm12 = vcmp.lt.s32.totalorder %v18504_v22, 0  ;;  %v936_v62 = vadd.s32 18, %v18504_v22 }
 0x36d   : > { %4194 = vst.msk [vmem:[#allocation2 + $0xe3] sm:$0xff] %vm321_vm0, %v4158_v26  ;;  %v4159_v1 = vmul.f32 %v18442_v0, %v4123_v57  ;;  %vm831_vm14 = vcmp.ne.s32.totalorder %v18510_v4, 0  ;;  %vm867_vm1 = vcmp.lt.s32.totalorder %v18510_v4, 0  ;;  %v4285_v7 = vld [vmem:[#allocation2 + $0xb1] sm:$0xff]  ;;  %vm829_vm15 = vcmp.ne.s32.totalorder %v18516_v35, 0  ;;  %vm18555_vm3 = vmand %vm864_vm12, %vm828_vm7 }
 0x36e   : > { %4192 = vst.msk [vmem:[#allocation2 + $0xd3] sm:$0xff] %vm321_vm0, %v4156_v49  ;;  %v4157_v56 = vmul.f32 %v18468_v59, %v4121_v16  ;;  %v15037_v30 = vpop.f32.mrb[28].mxu0  ;;  %v4288_v41 = vld [vmem:[#allocation2 + $0xc9] sm:$0xff]  ;;  %vm865_vm2 = vcmp.lt.s32.totalorder %v18516_v35, 0  ;;  %v939_v2 = vadd.s32 18, %v18510_v4  ;;  %v974_v26 = vsel %vm18538_vm13, %v938_v24, %v18479_v58  ;;  %vm18568_vm8 = vmand %vm867_vm1, %vm831_vm14 }
 0x36f   : > { %4195 = vst.msk [vmem:[#allocation2 + $0xeb] sm:$0xff] %vm321_vm0, %v4159_v1  ;;  %v4090_v43 = vadd.f32 %v15037_v30, %v18030_v29  ;;  %v3986_v12 = vpop.f32.mrb[29].mxu0  ;;  %v4286_v47 = vld [vmem:[#allocation2 + $0xb9] sm:$0xff]  ;;  %v4287_v50 = vld [vmem:[#allocation2 + $0xc1] sm:$0xff]  ;;  %v937_v49 = vadd.s32 18, %v18516_v35  ;;  %v18576_v1 = vsel %vm18519_vm5, 1.0, %v20914_v55  ;;  %vm18584_vm9 = vmand %vm865_vm2, %vm829_vm15 }
 0x370   : > { %4193 = vst.msk [vmem:[#allocation2 + $0xdb] sm:$0xff] %vm321_vm0, %v4157_v56  ;;  %v4088_v42 = vadd.f32 %v18030_v29, %v3986_v12  ;;  %v15038_v53 = vpop.f32.mrb[30].mxu0  ;;  %v4310_v19 = vpack.c.bf16 %v4286_v47, %v4285_v7  ;;  %v4311_v11 = vpack.c.bf16 %v4288_v41, %v4287_v50  ;;  %v18592_v28 = vsel %vm18526_vm6, 1.0, %v20914_v55 }
 0x371   : > { %v4126_v17 = vmax.f32 %v4090_v43, 0.0  ;;  %v4091_v61 = vadd.f32 %v15038_v53, %v18030_v29  ;;  %v3989_v23 = vpop.f32.mrb[31].mxu0  ;;  %v972_v41 = vsel %vm18555_vm3, %v936_v62, %v18504_v22  ;;  %vm1010_vm10 = vcmp.lt.s32.totalorder %v974_v26, 16 }
 0x372   : > { %v4124_v16 = vmax.f32 %v4088_v42, 0.0  ;;  %v4089_v56 = vadd.f32 %v18030_v29, %v3989_v23  ;;  %15068 = vmatmul.mubr.msk.bf16.gmra.mrb[20].mxu1 %vm321_vm0, %v4310_v19  ;;  %v975_v12 = vsel %vm18568_vm8, %v939_v2, %v18510_v4  ;;  %v973_v7 = vsel %vm18584_vm9, %v937_v49, %v18516_v35 }
 0x373   : > { %v4162_v24 = vmul.f32 %v18486_v40, %v4126_v17  ;;  %v4127_v30 = vmax.f32 %v4091_v61, 0.0  ;;  %15071 = vmatprep.mubr.msk.bf16.mxu1 %vm321_vm0, %v4311_v11  ;;  %vm18609_vm4 = vcmp.lt.s32.totalorder %v972_v41, 16  ;;  %v18615_v4 = vsel %vm1010_vm10, 1.0, %v20914_v55 }
 0x374   : > { %v4160_v60 = vmul.f32 %v18497_v10, %v4124_v16  ;;  %v4125_v43 = vmax.f32 %v4089_v56, 0.0  ;;  %vm1011_vm11 = vcmp.lt.s32.totalorder %v975_v12, 16  ;;  %vm1009_vm5 = vcmp.lt.s32.totalorder %v973_v7, 16 }
 0x375   : > { %4198 = vst.msk [vmem:[#allocation2 + $0x103] sm:$0xff] %vm321_vm0, %v4162_v24  ;;  %v4163_v54 = vmul.f32 %v18576_v1, %v4127_v30  ;;  %v4289_v35 = vld [vmem:[#allocation2 + $0xd1] sm:$0xff]  ;;  %v18623_v26 = vsel %vm18609_vm4, 1.0, %v20914_v55  ;;  %v18627_v56 = vsel %vm1011_vm11, 1.0, %v20914_v55  ;;  %v18633_v41 = vsel %vm1009_vm5, 1.0, %v20914_v55 }
 0x376   : > { %4196 = vst.msk [vmem:[#allocation2 + $0xf3] sm:$0xff] %vm321_vm0, %v4160_v60  ;;  %v4161_v22 = vmul.f32 %v18592_v28, %v4125_v43  ;;  %v15041_v62 = vpop.f32.mrb[32].mxu0  ;;  %v4292_v50 = vld [vmem:[#allocation2 + $0xe9] sm:$0xff] }
 0x377   : > { %4199 = vst.msk [vmem:[#allocation2 + $0x10b] sm:$0xff] %vm321_vm0, %v4163_v54  ;;  %v4094_v42 = vadd.f32 %v15041_v62, %v18030_v29  ;;  %v4002_v53 = vpop.f32.mrb[33].mxu0  ;;  %v4290_v19 = vld [vmem:[#allocation2 + $0xd9] sm:$0xff]  ;;  %v4291_v11 = vld [vmem:[#allocation2 + $0xe1] sm:$0xff] }
 0x378   : > { %4197 = vst.msk [vmem:[#allocation2 + $0xfb] sm:$0xff] %vm321_vm0, %v4161_v22  ;;  %v4092_v46 = vadd.f32 %v18030_v29, %v4002_v53  ;;  %v15042_v2 = vpop.f32.mrb[34].mxu0  ;;  %v4312_v17 = vpack.c.bf16 %v4290_v19, %v4289_v35  ;;  %v4313_v61 = vpack.c.bf16 %v4292_v50, %v4291_v11  ;;  %v4204_v50 = vld [vmem:[#allocation2] sm:$0xff] }
 0x379   : > { %v4130_v23 = vmax.f32 %v4094_v42, 0.0  ;;  %v4095_v57 = vadd.f32 %v15042_v2, %v18030_v29  ;;  %v4005_v49 = vpop.f32.mrb[35].mxu0  ;;  %v4205_v42 = vld [vmem:[#allocation2 + $0x8] sm:$0xff]  ;;  %v4208_v2 = vld [vmem:[#allocation2 + $0x20] sm:$0xff] }
 0x37a   : > { %v4128_v16 = vmax.f32 %v4092_v46, 0.0  ;;  %v4093_v58 = vadd.f32 %v18030_v29, %v4005_v49  ;;  %15072 = vmatmul.mubr.msk.bf16.gmra.mrb[24].mxu1 %vm321_vm0, %v4312_v17  ;;  %v4240_v19 = vpack.c.bf16 %v4205_v42, %v4204_v50  ;;  %v4207_v46 = vld [vmem:[#allocation2 + $0x18] sm:$0xff]  ;;  %v4209_v17 = vld [vmem:[#allocation2 + $0x28] sm:$0xff]  ;;  %v4218_v42 = vld [vmem:[#allocation2 + $0x70] sm:$0xff] }
 0x37b   : > { %v4166_v24 = vmul.f32 %v18615_v4, %v4130_v23  ;;  %v4131_v30 = vmax.f32 %v4095_v57, 0.0  ;;  %15075 = vmatprep.mubr.msk.bf16.mxu1 %vm321_vm0, %v4313_v61  ;;  %v4206_v61 = vld [vmem:[#allocation2 + $0x10] sm:$0xff]  ;;  %v16990_v57 = vld [vmem:[%s20796_s1 + $0xb8] sm:$0xff]   ;;  %v4242_v49 = vpack.c.bf16 %v4209_v17, %v4208_v2  ;;  %v4221_v50 = vld [vmem:[#allocation2 + $0x88] sm:$0xff] }
 0x37c   : > { %v4164_v60 = vmul.f32 %v18623_v26, %v4128_v16  ;;  %v4129_v43 = vmax.f32 %v4093_v58, 0.0  ;;  %v4241_v23 = vpack.c.bf16 %v4207_v46, %v4206_v61  ;;  %v18656_v16 = vld [vmem:[%s20796_s1 + $0xc0] sm:$0xff]   ;;  %v4211_v58 = vld [vmem:[#allocation2 + $0x38] sm:$0xff]  ;;  %v4225_v46 = vld [vmem:[#allocation2 + $0xa8] sm:$0xff] }
 0x37d   : > { %4202 = vst.msk [vmem:[#allocation2 + $0x123] sm:$0xff] %vm321_vm0, %v4166_v24  ;;  %v4167_v12 = vmul.f32 %v18627_v56, %v4131_v30  ;;  %v4293_v7 = vld [vmem:[#allocation2 + $0xf1] sm:$0xff]  ;;  %v4212_v24 = vld [vmem:[#allocation2 + $0x40] sm:$0xff]  ;;  %v4213_v30 = vld [vmem:[#allocation2 + $0x48] sm:$0xff] }
 0x37e   : > { %4200 = vst.msk [vmem:[#allocation2 + $0x113] sm:$0xff] %vm321_vm0, %v4164_v60  ;;  %v4165_v29 = vmul.f32 %v18633_v41, %v4129_v43  ;;  %v4296_v54 = vld [vmem:[#allocation2 + $0x109] sm:$0xff] }
 0x37f   : > { %4203 = vst.msk [vmem:[#allocation2 + $0x12b] sm:$0xff] %vm321_vm0, %v4167_v12  ;;  %v4294_v22 = vld [vmem:[#allocation2 + $0xf9] sm:$0xff]  ;;  %v4295_v55 = vld [vmem:[#allocation2 + $0x101] sm:$0xff]  ;;  %v4210_v60 = vld [vmem:[#allocation2 + $0x30] sm:$0xff]  ;;  %v4244_v12 = vpack.c.bf16 %v4213_v30, %v4212_v24 }
 0x380   : > { %4201 = vst.msk [vmem:[#allocation2 + $0x11b] sm:$0xff] %vm321_vm0, %v4165_v29  ;;  %v4314_v62 = vpack.c.bf16 %v4294_v22, %v4293_v7  ;;  %v4315_v47 = vpack.c.bf16 %v4296_v54, %v4295_v55  ;;  %v4243_v43 = vpack.c.bf16 %v4211_v58, %v4210_v60  ;;  %v4216_v29 = vld [vmem:[#allocation2 + $0x60] sm:$0xff]  ;;  %v4217_v54 = vld [vmem:[#allocation2 + $0x68] sm:$0xff]  ;;  %v4214_v7 = vld [vmem:[#allocation2 + $0x50] sm:$0xff] }
 0x381   : > { %v4246_v55 = vpack.c.bf16 %v4217_v54, %v4216_v29  ;;  %v4222_v2 = vld [vmem:[#allocation2 + $0x90] sm:$0xff]  ;;  %v4231_v60 = vld [vmem:[#allocation2 + $0xd8] sm:$0xff] }
 0x382   : > { %15076 = vmatmul.mubr.msk.bf16.gmra.mrb[28].mxu1 %vm321_vm0, %v4314_v62  ;;  %v4219_v62 = vld [vmem:[#allocation2 + $0x78] sm:$0xff]  ;;  %v4226_v58 = vld [vmem:[#allocation2 + $0xb0] sm:$0xff] }
 0x383   : > { %15079 = vmatprep.mubr.msk.bf16.mxu1 %vm321_vm0, %v4315_v47  ;;  %v4220_v47 = vld [vmem:[#allocation2 + $0x80] sm:$0xff] }
 0x385   : > { %v4297_v53 = vld [vmem:[#allocation2 + $0x111] sm:$0xff] }
 0x387   : > { %v4298_v35 = vld [vmem:[#allocation2 + $0x119] sm:$0xff] }
 0x388   : > { %v4316_v11 = vpack.c.bf16 %v4298_v35, %v4297_v53  ;;  %v4247_v53 = vpack.c.bf16 %v4219_v62, %v4218_v42  ;;  %v4248_v35 = vpack.c.bf16 %v4221_v50, %v4220_v47  ;;  %v4234_v62 = vld [vmem:[#allocation2 + $0xf0] sm:$0xff]  ;;  %v4808_v42 = vld [vmem:[#allocation2 + $0x2] sm:$0xff] }
 0x38a   : > { %15080 = vmatmul.mubr.msk.bf16.gmra.mrb[32].mxu1 %vm321_vm0, %v4316_v11  ;;  %v4224_v11 = vld [vmem:[#allocation2 + $0xa0] sm:$0xff] }
 0x38b   : > { %15087 = vmatprep.mubr.msk.bf16.mxu1 %vm321_vm0, %v4240_v19  ;;  %v4223_v19 = vld [vmem:[#allocation2 + $0x98] sm:$0xff]  ;;  %v4250_v61 = vpack.c.bf16 %v4225_v46, %v4224_v11 }
 0x38c   : > { %v4249_v17 = vpack.c.bf16 %v4223_v19, %v4222_v2  ;;  %v4238_v19 = vld [vmem:[#allocation2 + $0x110] sm:$0xff]  ;;  %v4811_v2 = vld [vmem:[#allocation2 + $0x1a] sm:$0xff] }
 0x392   : > { %15088 = vmatmul.mubr.msk.bf16.vlgmr.msra.gmra.mrb[0].mxu1 %vm321_vm0, %v4241_v23  ;;  %v4227_v23 = vld [vmem:[#allocation2 + $0xb8] sm:$0xff] }
 0x393   : > { %15124 = vmatpush3.bf16.msra.mxu1 %v18242_v45  ;;  %15091 = vmatprep.mubr.msk.bf16.mxu1 %vm321_vm0, %v4242_v49  ;;  %v4215_v45 = vld [vmem:[#allocation2 + $0x58] sm:$0xff]  ;;  %v4229_v49 = vld [vmem:[#allocation2 + $0xc8] sm:$0xff]  ;;  %v4251_v24 = vpack.c.bf16 %v4227_v23, %v4226_v58 }
 0x394   : > { %15125 = vmatprep.subr.bf16.mxu1 %v16990_v57  ;;  %v4245_v22 = vpack.c.bf16 %v4215_v45, %v4214_v7  ;;  %v4230_v45 = vld [vmem:[#allocation2 + $0xd0] sm:$0xff]  ;;  %v4235_v7 = vld [vmem:[#allocation2 + $0xf8] sm:$0xff] }
 0x395   : > { %v4253_v29 = vpack.c.bf16 %v4231_v60, %v4230_v45  ;;  %v4255_v47 = vpack.c.bf16 %v4235_v7, %v4234_v62  ;;  %v4810_v23 = vld [vmem:[#allocation2 + $0x12] sm:$0xff]  ;;  %v4816_v60 = vld [vmem:[#allocation2 + $0x42] sm:$0xff]  ;;  %v4821_v7 = vld [vmem:[#allocation2 + $0x6a] sm:$0xff] }
 0x397   : > { %15126 = vmatpush3.bf16.msra.mxu1 %v16990_v57  ;;  %v4228_v57 = vld [vmem:[#allocation2 + $0xc0] sm:$0xff] }
 0x398   : > { %15163 = vmatprep.subr.bf16.mxu1 %v18656_v16  ;;  %v4252_v30 = vpack.c.bf16 %v4229_v49, %v4228_v57  ;;  %v18675_v57 = vpack.c.bf16 %v4811_v2, %v4810_v23  ;;  %v16992_v49 = vld [vmem:[%s20796_s1 + $0xc8] sm:$0xff]  }
 0x399   : > { %v4829_v2 = vld [vmem:[#allocation2 + $0xaa] sm:$0xff] }
 0x39a   : > { %15092 = vmatmul.mubr.msk.bf16.gmra.mrb[4].mxu1 %vm321_vm0, %v4243_v43  ;;  %v4232_v43 = vld [vmem:[#allocation2 + $0xe0] sm:$0xff] }
 0x39b   : > { %15095 = vmatprep.mubr.msk.bf16.mxu1 %vm321_vm0, %v4244_v12  ;;  %v4233_v12 = vld [vmem:[#allocation2 + $0xe8] sm:$0xff] }
 0x39c   : > { %v4254_v54 = vpack.c.bf16 %v4233_v12, %v4232_v43  ;;  %v4817_v43 = vld [vmem:[#allocation2 + $0x4a] sm:$0xff]  ;;  %v4814_v12 = vld [vmem:[#allocation2 + $0x32] sm:$0xff] }
 0x3a2   : > { %15096 = vmatmul.mubr.msk.bf16.gmra.mrb[8].mxu1 %vm321_vm0, %v4245_v22  ;;  %v4236_v22 = vld [vmem:[#allocation2 + $0x100] sm:$0xff] }
 0x3a3   : > { %15099 = vmatprep.mubr.msk.bf16.mxu1 %vm321_vm0, %v4246_v55  ;;  %v4237_v55 = vld [vmem:[#allocation2 + $0x108] sm:$0xff] }
 0x3a4   : > { %v4256_v50 = vpack.c.bf16 %v4237_v55, %v4236_v22  ;;  %v4818_v22 = vld [vmem:[#allocation2 + $0x52] sm:$0xff] }
 0x3aa   : > { %15100 = vmatmul.mubr.msk.bf16.gmra.mrb[12].mxu1 %vm321_vm0, %v4247_v53  ;;  %v4809_v53 = vld [vmem:[#allocation2 + $0xa] sm:$0xff] }
 0x3ab   : > { %15103 = vmatprep.mubr.msk.bf16.mxu1 %vm321_vm0, %v4248_v35  ;;  %v4239_v35 = vld [vmem:[#allocation2 + $0x118] sm:$0xff]  ;;  %v4844_v11 = vpack.c.bf16 %v4809_v53, %v4808_v42  ;;  %v4825_v42 = vld [vmem:[#allocation2 + $0x8a] sm:$0xff] }
 0x3ac   : > { %v4257_v46 = vpack.c.bf16 %v4239_v35, %v4238_v19  ;;  %v4822_v53 = vld [vmem:[#allocation2 + $0x72] sm:$0xff] }
 0x3b2   : > { %15104 = vmatmul.mubr.msk.bf16.gmra.mrb[16].mxu1 %vm321_vm0, %v4249_v17  ;;  %v4812_v17 = vld [vmem:[#allocation2 + $0x22] sm:$0xff] }
 0x3b3   : > { %15107 = vmatprep.mubr.msk.bf16.mxu1 %vm321_vm0, %v4250_v61  ;;  %v4813_v61 = vld [vmem:[#allocation2 + $0x2a] sm:$0xff] }
 0x3b4   : > { %v18680_v58 = vpack.c.bf16 %v4813_v61, %v4812_v17  ;;  %v4826_v17 = vld [vmem:[#allocation2 + $0x92] sm:$0xff] }
 0x3ba   : > { %15108 = vmatmul.mubr.msk.bf16.gmra.mrb[20].mxu1 %vm321_vm0, %v4251_v24  ;;  %v18690_v24 = vld [vmem:[%s20796_s1 + $0xd0] sm:$0xff]  }
 0x3bb   : > { %15111 = vmatprep.mubr.msk.bf16.mxu1 %vm321_vm0, %v4252_v30  ;;  %v4815_v30 = vld [vmem:[#allocation2 + $0x3a] sm:$0xff] }
 0x3bc   : > { %v4847_v45 = vpack.c.bf16 %v4815_v30, %v4814_v12  ;;  %v4832_v30 = vld [vmem:[#allocation2 + $0xc2] sm:$0xff] }
 0x3c2   : > { %15112 = vmatmul.mubr.msk.bf16.gmra.mrb[24].mxu1 %vm321_vm0, %v4253_v29  ;;  %v18693_v29 = vpack.c.bf16 %v4817_v43, %v4816_v60  ;;  %v4833_v60 = vld [vmem:[#allocation2 + $0xca] sm:$0xff]  ;;  %v4830_v43 = vld [vmem:[#allocation2 + $0xb2] sm:$0xff] }
 0x3c3   : > { %15115 = vmatprep.mubr.msk.bf16.mxu1 %vm321_vm0, %v4254_v54  ;;  %v4820_v54 = vld [vmem:[#allocation2 + $0x62] sm:$0xff] }
 0x3c4   : > { %v4850_v62 = vpack.c.bf16 %v4821_v7, %v4820_v54  ;;  %v4835_v54 = vld [vmem:[#allocation2 + $0xda] sm:$0xff]  ;;  %v4836_v7 = vld [vmem:[#allocation2 + $0xe2] sm:$0xff] }
 0x3ca   : > { %15116 = vmatmul.mubr.msk.bf16.gmra.mrb[28].mxu1 %vm321_vm0, %v4255_v47  ;;  %v4823_v47 = vld [vmem:[#allocation2 + $0x7a] sm:$0xff] }
 0x3cb   : > { %15119 = vmatprep.mubr.msk.bf16.mxu1 %vm321_vm0, %v4256_v50  ;;  %v4824_v50 = vld [vmem:[#allocation2 + $0x82] sm:$0xff]  ;;  %v4851_v35 = vpack.c.bf16 %v4823_v47, %v4822_v53  ;;  %v4834_v47 = vld [vmem:[#allocation2 + $0xd2] sm:$0xff]  ;;  %v4839_v53 = vld [vmem:[#allocation2 + $0xfa] sm:$0xff] }
 0x3cc   : > { %v4852_v19 = vpack.c.bf16 %v4825_v42, %v4824_v50  ;;  %v4857_v50 = vpack.c.bf16 %v4835_v54, %v4834_v47  ;;  %v16994_v54 = vld [vmem:[%s20796_s1 + $0xd8] sm:$0xff]   ;;  %v5491_v47 = vld [vmem:[#allocation2 + $0x4b] sm:$0xff] }
 0x3d2   : > { %15120 = vmatmul.mubr.msk.bf16.gmra.mrb[32].mxu1 %vm321_vm0, %v4257_v46  ;;  %v4828_v46 = vld [vmem:[#allocation2 + $0xa2] sm:$0xff] }
 0x3d3   : > { %15127 = vmatprep.mubr.msk.bf16.mxu1 %vm321_vm0, %v4844_v11  ;;  %v4827_v11 = vld [vmem:[#allocation2 + $0x9a] sm:$0xff]  ;;  %v4854_v23 = vpack.c.bf16 %v4829_v2, %v4828_v46  ;;  %v4841_v46 = vld [vmem:[#allocation2 + $0x10a] sm:$0xff]  ;;  %v4838_v2 = vld [vmem:[#allocation2 + $0xf2] sm:$0xff] }
 0x3d4   : > { %v4853_v61 = vpack.c.bf16 %v4827_v11, %v4826_v17  ;;  %v4840_v11 = vld [vmem:[#allocation2 + $0x102] sm:$0xff]  ;;  %v4859_v17 = vpack.c.bf16 %v4839_v53, %v4838_v2  ;;  %v5495_v2 = vld [vmem:[#allocation2 + $0x6b] sm:$0xff] }
 0x3da   : > { %15128 = vmatmul.mubr.msk.bf16.vlgmr.msra.gmra.mrb[0].mxu1 %vm321_vm0, %v18675_v57 }
 0x3db   : > { %15164 = vmatpush3.bf16.msra.mxu1 %v18656_v16  ;;  %15131 = vmatprep.mubr.msk.bf16.mxu1 %vm321_vm0, %v18680_v58  ;;  %v4819_v16 = vld [vmem:[#allocation2 + $0x5a] sm:$0xff] }
 0x3dc   : > { %15165 = vmatprep.subr.bf16.mxu1 %v16992_v49  ;;  %v4849_v55 = vpack.c.bf16 %v4819_v16, %v4818_v22  ;;  %v4856_v16 = vpack.c.bf16 %v4833_v60, %v4832_v30  ;;  %v4837_v22 = vld [vmem:[#allocation2 + $0xea] sm:$0xff]  ;;  %v4843_v30 = vld [vmem:[#allocation2 + $0x11a] sm:$0xff]  ;;  %v4842_v60 = vld [vmem:[#allocation2 + $0x112] sm:$0xff] }
 0x3dd   : > { %v4858_v42 = vpack.c.bf16 %v4837_v22, %v4836_v7  ;;  %v16995_v7 = vld [vmem:[%s20796_s1 + $0xe0] sm:$0xff]   ;;  %v18748_v22 = vld [vmem:[%s20796_s1 + $0xf0] sm:$0xff]  }
 0x3df   : > { %15166 = vmatpush3.bf16.msra.mxu1 %v16992_v49  ;;  %v4831_v49 = vld [vmem:[#allocation2 + $0xba] sm:$0xff] }
 0x3e0   : > { %15203 = vmatprep.subr.bf16.mxu1 %v18690_v24  ;;  %v4855_v12 = vpack.c.bf16 %v4831_v49, %v4830_v43  ;;  %v4860_v49 = vpack.c.bf16 %v4841_v46, %v4840_v11  ;;  %v4861_v43 = vpack.c.bf16 %v4843_v30, %v4842_v60  ;;  %v5492_v11 = vld [vmem:[#allocation2 + $0x53] sm:$0xff] }
 0x3e1   : > { %v5496_v60 = vld [vmem:[#allocation2 + $0x73] sm:$0xff] }
 0x3e2   : > { %15132 = vmatmul.mubr.msk.bf16.gmra.mrb[4].mxu1 %vm321_vm0, %v4847_v45 }
 0x3e3   : > { %15135 = vmatprep.mubr.msk.bf16.mxu1 %vm321_vm0, %v18693_v29 }
 0x3ea   : > { %15136 = vmatmul.mubr.msk.bf16.gmra.mrb[8].mxu1 %vm321_vm0, %v4849_v55 }
 0x3eb   : > { %15139 = vmatprep.mubr.msk.bf16.mxu1 %vm321_vm0, %v4850_v62 }
 0x3f2   : > { %15140 = vmatmul.mubr.msk.bf16.gmra.mrb[12].mxu1 %vm321_vm0, %v4851_v35 }
 0x3f3   : > { %15143 = vmatprep.mubr.msk.bf16.mxu1 %vm321_vm0, %v4852_v19 }
 0x3fa   : > { %15144 = vmatmul.mubr.msk.bf16.gmra.mrb[16].mxu1 %vm321_vm0, %v4853_v61 }
 0x3fb   : > { %15147 = vmatprep.mubr.msk.bf16.mxu1 %vm321_vm0, %v4854_v23 }
 0x402   : > { %15148 = vmatmul.mubr.msk.bf16.gmra.mrb[20].mxu1 %vm321_vm0, %v4855_v12 }
 0x403   : > { %15151 = vmatprep.mubr.msk.bf16.mxu1 %vm321_vm0, %v4856_v16 }
 0x40a   : > { %15152 = vmatmul.mubr.msk.bf16.gmra.mrb[24].mxu1 %vm321_vm0, %v4857_v50 }
 0x40b   : > { %15155 = vmatprep.mubr.msk.bf16.mxu1 %vm321_vm0, %v4858_v42 }
 0x412   : > { %15156 = vmatmul.mubr.msk.bf16.gmra.mrb[28].mxu1 %vm321_vm0, %v4859_v17 }
 0x413   : > { %15159 = vmatprep.mubr.msk.bf16.mxu1 %vm321_vm0, %v4860_v49 }
 0x41a   : > { %15160 = vmatmul.mubr.msk.bf16.gmra.mrb[32].mxu1 %vm321_vm0, %v4861_v43 }
 0x41b   : > { %15167 = vmatprep.mubr.msk.bf16.mxu1 %vm321_vm0, %v18675_v57  ;;  %v5180_v57 = vld [vmem:[#allocation2 + $0x122] sm:$0xff] }
 0x422   : > { %15168 = vmatmul.mubr.msk.bf16.vlgmr.msra.gmra.mrb[0].mxu1 %vm321_vm0, %v18680_v58  ;;  %v5181_v58 = vld [vmem:[#allocation2 + $0x12a] sm:$0xff] }
 0x423   : > { %15204 = vmatpush3.bf16.msra.mxu1 %v18690_v24  ;;  %15171 = vmatprep.mubr.msk.bf16.mxu1 %vm321_vm0, %v4847_v45  ;;  %v5485_v24 = vld [vmem:[#allocation2 + $0x1b] sm:$0xff]  ;;  %v5199_v45 = vpack.c.bf16 %v5181_v58, %v5180_v57  ;;  %v5498_v57 = vld [vmem:[#allocation2 + $0x83] sm:$0xff] }
 0x424   : > { %15205 = vmatprep.subr.bf16.mxu1 %v16994_v54 }
 0x427   : > { %15206 = vmatpush3.bf16.msra.mxu1 %v16994_v54  ;;  %v5499_v54 = vld [vmem:[#allocation2 + $0x8b] sm:$0xff] }
 0x428   : > { %15243 = vmatprep.subr.bf16.mxu1 %v16995_v7  ;;  %v5527_v58 = vpack.c.bf16 %v5499_v54, %v5498_v57 }
 0x42a   : > { %15172 = vmatmul.mubr.msk.bf16.gmra.mrb[4].mxu1 %vm321_vm0, %v18693_v29  ;;  %v5484_v29 = vld [vmem:[#allocation2 + $0x13] sm:$0xff] }
 0x42b   : > { %15175 = vmatprep.mubr.msk.bf16.mxu1 %vm321_vm0, %v4849_v55  ;;  %v5520_v55 = vpack.c.bf16 %v5485_v24, %v5484_v29  ;;  %v5500_v24 = vld [vmem:[#allocation2 + $0x93] sm:$0xff]  ;;  %v5503_v29 = vld [vmem:[#allocation2 + $0xab] sm:$0xff] }
 0x432   : > { %15176 = vmatmul.mubr.msk.bf16.gmra.mrb[8].mxu1 %vm321_vm0, %v4850_v62  ;;  %v5487_v62 = vld [vmem:[#allocation2 + $0x2b] sm:$0xff] }
 0x433   : > { %15179 = vmatprep.mubr.msk.bf16.mxu1 %vm321_vm0, %v4851_v35  ;;  %v5489_v35 = vld [vmem:[#allocation2 + $0x3b] sm:$0xff] }
 0x43a   : > { %15180 = vmatmul.mubr.msk.bf16.gmra.mrb[12].mxu1 %vm321_vm0, %v4852_v19  ;;  %v5486_v19 = vld [vmem:[#allocation2 + $0x23] sm:$0xff] }
 0x43b   : > { %15183 = vmatprep.mubr.msk.bf16.mxu1 %vm321_vm0, %v4853_v61  ;;  %v5521_v61 = vpack.c.bf16 %v5487_v62, %v5486_v19  ;;  %v5502_v62 = vld [vmem:[#allocation2 + $0xa3] sm:$0xff]  ;;  %v5504_v19 = vld [vmem:[#allocation2 + $0xb3] sm:$0xff] }
 0x442   : > { %15184 = vmatmul.mubr.msk.bf16.gmra.mrb[16].mxu1 %vm321_vm0, %v4854_v23  ;;  %v5488_v23 = vld [vmem:[#allocation2 + $0x33] sm:$0xff] }
 0x443   : > { %15187 = vmatprep.mubr.msk.bf16.mxu1 %vm321_vm0, %v4855_v12  ;;  %v16996_v12 = vld [vmem:[%s20796_s1 + $0xe8] sm:$0xff]  }
 0x44a   : > { %15188 = vmatmul.mubr.msk.bf16.gmra.mrb[20].mxu1 %vm321_vm0, %v4856_v16  ;;  %v5522_v16 = vpack.c.bf16 %v5489_v35, %v5488_v23  ;;  %v5529_v35 = vpack.c.bf16 %v5503_v29, %v5502_v62  ;;  %v5507_v23 = vld [vmem:[#allocation2 + $0xcb] sm:$0xff]  ;;  %v5518_v29 = vld [vmem:[#allocation2 + $0x123] sm:$0xff] }
 0x44b   : > { %15191 = vmatprep.mubr.msk.bf16.mxu1 %vm321_vm0, %v4857_v50  ;;  %v5493_v50 = vld [vmem:[#allocation2 + $0x5b] sm:$0xff] }
 0x44c   : > { %v5524_v46 = vpack.c.bf16 %v5493_v50, %v5492_v11  ;;  %v5508_v50 = vld [vmem:[#allocation2 + $0xd3] sm:$0xff]  ;;  %v5513_v11 = vld [vmem:[#allocation2 + $0xfb] sm:$0xff] }
 0x452   : > { %15192 = vmatmul.mubr.msk.bf16.gmra.mrb[24].mxu1 %vm321_vm0, %v4858_v42  ;;  %v5490_v42 = vld [vmem:[#allocation2 + $0x43] sm:$0xff] }
 0x453   : > { %15195 = vmatprep.mubr.msk.bf16.mxu1 %vm321_vm0, %v4859_v17  ;;  %v5523_v53 = vpack.c.bf16 %v5491_v47, %v5490_v42  ;;  %v5497_v17 = vld [vmem:[#allocation2 + $0x7b] sm:$0xff] }
 0x45a   : > { %15196 = vmatmul.mubr.msk.bf16.gmra.mrb[28].mxu1 %vm321_vm0, %v4860_v49  ;;  %v5494_v49 = vld [vmem:[#allocation2 + $0x63] sm:$0xff] }
 0x45b   : > { %15199 = vmatprep.mubr.msk.bf16.mxu1 %vm321_vm0, %v4861_v43  ;;  %v5525_v30 = vpack.c.bf16 %v5495_v2, %v5494_v49  ;;  %v5526_v43 = vpack.c.bf16 %v5497_v17, %v5496_v60  ;;  %v5512_v17 = vld [vmem:[#allocation2 + $0xf3] sm:$0xff]  ;;  %v5517_v60 = vld [vmem:[#allocation2 + $0x11b] sm:$0xff] }
 0x45c   : > { %v5534_v49 = vpack.c.bf16 %v5513_v11, %v5512_v17  ;;  %v5831_v11 = vld [vmem:[#allocation2 + $0x5c] sm:$0xff] }
 0x462   : > { %15200 = vmatmul.mubr.msk.bf16.gmra.mrb[32].mxu1 %vm321_vm0, %v5199_v45 }
 0x463   : > { %15207 = vmatprep.mubr.msk.bf16.mxu1 %vm321_vm0, %v5520_v55  ;;  %v5505_v55 = vld [vmem:[#allocation2 + $0xbb] sm:$0xff] }
 0x46a   : > { %15208 = vmatmul.mubr.msk.bf16.vlgmr.msra.gmra.mrb[0].mxu1 %vm321_vm0, %v5521_v61  ;;  %v5530_v61 = vpack.c.bf16 %v5505_v55, %v5504_v19  ;;  %v5826_v19 = vld [vmem:[#allocation2 + $0x34] sm:$0xff] }
 0x46b   : > { %15244 = vmatpush3.bf16.msra.mxu1 %v16995_v7  ;;  %15211 = vmatprep.mubr.msk.bf16.mxu1 %vm321_vm0, %v5522_v16  ;;  %v5501_v7 = vld [vmem:[#allocation2 + $0x9b] sm:$0xff]  ;;  %v5506_v16 = vld [vmem:[#allocation2 + $0xc3] sm:$0xff] }
 0x46c   : > { %15245 = vmatprep.subr.bf16.mxu1 %v16996_v12  ;;  %v5528_v45 = vpack.c.bf16 %v5501_v7, %v5500_v24  ;;  %v5531_v47 = vpack.c.bf16 %v5507_v23, %v5506_v16  ;;  %v5516_v7 = vld [vmem:[#allocation2 + $0x113] sm:$0xff]  ;;  %v5824_v23 = vld [vmem:[#allocation2 + $0x24] sm:$0xff] }
 0x46d   : > { %v5536_v57 = vpack.c.bf16 %v5517_v60, %v5516_v7  ;;  %v5822_v24 = vld [vmem:[#allocation2 + $0x14] sm:$0xff]  ;;  %v5832_v60 = vld [vmem:[#allocation2 + $0x64] sm:$0xff]  ;;  %v5837_v7 = vld [vmem:[#allocation2 + $0x8c] sm:$0xff] }
 0x46e   : > { %v16998_v16 = vld [vmem:[%s20796_s1 + $0xf8] sm:$0xff]  }
 0x46f   : > { %15246 = vmatpush3.bf16.msra.mxu1 %v16996_v12  ;;  %v5509_v12 = vld [vmem:[#allocation2 + $0xdb] sm:$0xff] }
 0x470   : > { %15283 = vmatprep.subr.bf16.mxu1 %v18748_v22  ;;  %v5532_v42 = vpack.c.bf16 %v5509_v12, %v5508_v50  ;;  %v18782_v50 = vld [vmem:[%s20796_s1 + $0x100] sm:$0xff]  }
 0x472   : > { %15212 = vmatmul.mubr.msk.bf16.gmra.mrb[4].mxu1 %vm321_vm0, %v5523_v53  ;;  %v5511_v53 = vld [vmem:[#allocation2 + $0xeb] sm:$0xff] }
 0x473   : > { %15215 = vmatprep.mubr.msk.bf16.mxu1 %vm321_vm0, %v5524_v46  ;;  %v5510_v46 = vld [vmem:[#allocation2 + $0xe3] sm:$0xff] }
 0x474   : > { %v5533_v2 = vpack.c.bf16 %v5511_v53, %v5510_v46  ;;  %v5830_v53 = vld [vmem:[#allocation2 + $0x54] sm:$0xff]  ;;  %v5828_v46 = vld [vmem:[#allocation2 + $0x44] sm:$0xff] }
 0x475   : > { %v18785_v17 = vpack.c.bf16 %v5831_v11, %v5830_v53  ;;  %v5847_v53 = vld [vmem:[#allocation2 + $0xdc] sm:$0xff]  ;;  %v5844_v11 = vld [vmem:[#allocation2 + $0xc4] sm:$0xff] }
 0x47a   : > { %15216 = vmatmul.mubr.msk.bf16.gmra.mrb[8].mxu1 %vm321_vm0, %v5525_v30  ;;  %v5515_v30 = vld [vmem:[#allocation2 + $0x10b] sm:$0xff] }
 0x47b   : > { %15219 = vmatprep.mubr.msk.bf16.mxu1 %vm321_vm0, %v5526_v43  ;;  %v5514_v43 = vld [vmem:[#allocation2 + $0x103] sm:$0xff] }
 0x47c   : > { %v5535_v54 = vpack.c.bf16 %v5515_v30, %v5514_v43  ;;  %v5835_v30 = vld [vmem:[#allocation2 + $0x7c] sm:$0xff] }
 0x482   : > { %15220 = vmatmul.mubr.msk.bf16.gmra.mrb[12].mxu1 %vm321_vm0, %v5527_v58  ;;  %v5519_v58 = vld [vmem:[#allocation2 + $0x12b] sm:$0xff] }
 0x483   : > { %15223 = vmatprep.mubr.msk.bf16.mxu1 %vm321_vm0, %v5528_v45  ;;  %v5823_v45 = vld [vmem:[#allocation2 + $0x1c] sm:$0xff]  ;;  %v5537_v55 = vpack.c.bf16 %v5519_v58, %v5518_v29 }
 0x484   : > { %v5858_v62 = vpack.c.bf16 %v5823_v45, %v5822_v24  ;;  %v5839_v58 = vld [vmem:[#allocation2 + $0x9c] sm:$0xff]  ;;  %v5836_v24 = vld [vmem:[#allocation2 + $0x84] sm:$0xff] }
 0x485   : > { %v5865_v45 = vpack.c.bf16 %v5837_v7, %v5836_v24  ;;  %v5848_v7 = vld [vmem:[#allocation2 + $0xe4] sm:$0xff]  ;;  %v5853_v24 = vld [vmem:[#allocation2 + $0x10c] sm:$0xff] }
 0x48a   : > { %15224 = vmatmul.mubr.msk.bf16.gmra.mrb[16].mxu1 %vm321_vm0, %v5529_v35  ;;  %v5825_v35 = vld [vmem:[#allocation2 + $0x2c] sm:$0xff] }
 0x48b   : > { %15227 = vmatprep.mubr.msk.bf16.mxu1 %vm321_vm0, %v5530_v61  ;;  %v5827_v61 = vld [vmem:[#allocation2 + $0x3c] sm:$0xff]  ;;  %v18767_v12 = vpack.c.bf16 %v5825_v35, %v5824_v23 }
 0x48c   : > { %v5843_v35 = vld [vmem:[#allocation2 + $0xbc] sm:$0xff] }
 0x492   : > { %15228 = vmatmul.mubr.msk.bf16.gmra.mrb[20].mxu1 %vm321_vm0, %v5531_v47  ;;  %v18772_v47 = vpack.c.bf16 %v5827_v61, %v5826_v19  ;;  %v5840_v19 = vld [vmem:[#allocation2 + $0xa4] sm:$0xff] }
 0x493   : > { %15231 = vmatprep.mubr.msk.bf16.mxu1 %vm321_vm0, %v5532_v42  ;;  %v5829_v42 = vld [vmem:[#allocation2 + $0x4c] sm:$0xff] }
 0x49a   : > { %15232 = vmatmul.mubr.msk.bf16.gmra.mrb[24].mxu1 %vm321_vm0, %v5533_v2  ;;  %v5861_v2 = vpack.c.bf16 %v5829_v42, %v5828_v46  ;;  %v5846_v42 = vld [vmem:[#allocation2 + $0xd4] sm:$0xff] }
 0x49b   : > { %15235 = vmatprep.mubr.msk.bf16.mxu1 %vm321_vm0, %v5534_v49  ;;  %v5834_v49 = vld [vmem:[#allocation2 + $0x74] sm:$0xff] }
 0x4a2   : > { %15236 = vmatmul.mubr.msk.bf16.gmra.mrb[28].mxu1 %vm321_vm0, %v5535_v54  ;;  %v5864_v54 = vpack.c.bf16 %v5835_v30, %v5834_v49  ;;  %v5849_v49 = vld [vmem:[#allocation2 + $0xec] sm:$0xff]  ;;  %v5850_v30 = vld [vmem:[#allocation2 + $0xf4] sm:$0xff] }
 0x4a3   : > { %15239 = vmatprep.mubr.msk.bf16.mxu1 %vm321_vm0, %v5536_v57  ;;  %v5838_v57 = vld [vmem:[#allocation2 + $0x94] sm:$0xff] }
 0x4a4   : > { %v5866_v29 = vpack.c.bf16 %v5839_v58, %v5838_v57  ;;  %v5871_v57 = vpack.c.bf16 %v5849_v49, %v5848_v7  ;;  %v17000_v49 = vld [vmem:[%s20796_s1 + $0x108] sm:$0xff]   ;;  %v6505_v7 = vld [vmem:[#allocation2 + $0x5d] sm:$0xff] }
 0x4aa   : > { %15240 = vmatmul.mubr.msk.bf16.gmra.mrb[32].mxu1 %vm321_vm0, %v5537_v55  ;;  %v5841_v55 = vld [vmem:[#allocation2 + $0xac] sm:$0xff] }
 0x4ab   : > { %15247 = vmatprep.mubr.msk.bf16.mxu1 %vm321_vm0, %v5858_v62  ;;  %v5842_v62 = vld [vmem:[#allocation2 + $0xb4] sm:$0xff]  ;;  %v5867_v61 = vpack.c.bf16 %v5841_v55, %v5840_v19 }
 0x4ac   : > { %v5868_v23 = vpack.c.bf16 %v5843_v35, %v5842_v62  ;;  %v5854_v55 = vld [vmem:[#allocation2 + $0x114] sm:$0xff]  ;;  %v5855_v62 = vld [vmem:[#allocation2 + $0x11c] sm:$0xff]  ;;  %v5852_v35 = vld [vmem:[#allocation2 + $0x104] sm:$0xff] }
 0x4ad   : > { %v5873_v19 = vpack.c.bf16 %v5853_v24, %v5852_v35  ;;  %v6506_v24 = vld [vmem:[#allocation2 + $0x65] sm:$0xff]  ;;  %v17004_v35 = vld [vmem:[%s20796_s1 + $0x138] sm:$0xff]  }
 0x4b2   : > { %15248 = vmatmul.mubr.msk.bf16.vlgmr.msra.gmra.mrb[0].mxu1 %vm321_vm0, %v18767_v12 }
 0x4b3   : > { %15284 = vmatpush3.bf16.msra.mxu1 %v18748_v22  ;;  %15251 = vmatprep.mubr.msk.bf16.mxu1 %vm321_vm0, %v18772_v47  ;;  %v5833_v22 = vld [vmem:[#allocation2 + $0x6c] sm:$0xff] }
 0x4b4   : > { %15285 = vmatprep.subr.bf16.mxu1 %v16998_v16  ;;  %v5863_v43 = vpack.c.bf16 %v5833_v22, %v5832_v60  ;;  %v5870_v22 = vpack.c.bf16 %v5847_v53, %v5846_v42  ;;  %v5851_v60 = vld [vmem:[#allocation2 + $0xfc] sm:$0xff]  ;;  %v5856_v42 = vld [vmem:[#allocation2 + $0x124] sm:$0xff]  ;;  %v5857_v53 = vld [vmem:[#allocation2 + $0x12c] sm:$0xff] }
 0x4b5   : > { %v5872_v58 = vpack.c.bf16 %v5851_v60, %v5850_v30  ;;  %v17001_v30 = vld [vmem:[%s20796_s1 + $0x110] sm:$0xff]  }
 0x4b6   : > { %v6504_v60 = vld [vmem:[#allocation2 + $0x55] sm:$0xff] }
 0x4b7   : > { %15286 = vmatpush3.bf16.msra.mxu1 %v16998_v16  ;;  %v5845_v16 = vld [vmem:[#allocation2 + $0xcc] sm:$0xff] }
 0x4b8   : > { %15323 = vmatprep.subr.bf16.mxu1 %v18782_v50  ;;  %v5869_v46 = vpack.c.bf16 %v5845_v16, %v5844_v11  ;;  %v5874_v16 = vpack.c.bf16 %v5855_v62, %v5854_v55  ;;  %v5875_v11 = vpack.c.bf16 %v5857_v53, %v5856_v42  ;;  %v17003_v62 = vld [vmem:[%s20796_s1 + $0x130] sm:$0xff]  }
 0x4b9   : > { %15403 = vmatprep.subr.bf16.mxu0 %v17003_v62  ;;  %v6511_v42 = vld [vmem:[#allocation2 + $0x8d] sm:$0xff] }
 0x4ba   : > { %15252 = vmatmul.mubr.msk.bf16.gmra.mrb[4].mxu1 %vm321_vm0, %v5861_v2  ;;  %15404 = vmatpush3.bf16.msra.mxu0 %v17003_v62  ;;  %v6527_v62 = vld [vmem:[#allocation2 + $0x10d] sm:$0xff] }
 0x4bb   : > { %15255 = vmatprep.mubr.msk.bf16.mxu1 %vm321_vm0, %v18785_v17  ;;  %15405 = vmatprep.subr.bf16.mxu0 %v17004_v35 }
 0x4be   : > { %15406 = vmatpush3.bf16.msra.mxu0 %v17004_v35 }
 0x4c2   : > { %15256 = vmatmul.mubr.msk.bf16.gmra.mrb[8].mxu1 %vm321_vm0, %v5863_v43 }
 0x4c3   : > { %15259 = vmatprep.mubr.msk.bf16.mxu1 %vm321_vm0, %v5864_v54 }
 0x4ca   : > { %15260 = vmatmul.mubr.msk.bf16.gmra.mrb[12].mxu1 %vm321_vm0, %v5865_v45 }
 0x4cb   : > { %15263 = vmatprep.mubr.msk.bf16.mxu1 %vm321_vm0, %v5866_v29 }
 0x4d2   : > { %15264 = vmatmul.mubr.msk.bf16.gmra.mrb[16].mxu1 %vm321_vm0, %v5867_v61 }
 0x4d3   : > { %15267 = vmatprep.mubr.msk.bf16.mxu1 %vm321_vm0, %v5868_v23 }
 0x4da   : > { %15268 = vmatmul.mubr.msk.bf16.gmra.mrb[20].mxu1 %vm321_vm0, %v5869_v46 }
 0x4db   : > { %15271 = vmatprep.mubr.msk.bf16.mxu1 %vm321_vm0, %v5870_v22 }
 0x4e2   : > { %15272 = vmatmul.mubr.msk.bf16.gmra.mrb[24].mxu1 %vm321_vm0, %v5871_v57 }
 0x4e3   : > { %15275 = vmatprep.mubr.msk.bf16.mxu1 %vm321_vm0, %v5872_v58 }
 0x4ea   : > { %15276 = vmatmul.mubr.msk.bf16.gmra.mrb[28].mxu1 %vm321_vm0, %v5873_v19 }
 0x4eb   : > { %15279 = vmatprep.mubr.msk.bf16.mxu1 %vm321_vm0, %v5874_v16 }
 0x4f2   : > { %15280 = vmatmul.mubr.msk.bf16.gmra.mrb[32].mxu1 %vm321_vm0, %v5875_v11 }
 0x4f3   : > { %15287 = vmatprep.mubr.msk.bf16.mxu1 %vm321_vm0, %v18767_v12  ;;  %v6194_v12 = vld [vmem:[#allocation2 + $0x134] sm:$0xff] }
 0x4fa   : > { %15288 = vmatmul.mubr.msk.bf16.vlgmr.msra.gmra.mrb[0].mxu1 %vm321_vm0, %v18772_v47  ;;  %v6195_v47 = vld [vmem:[#allocation2 + $0x13c] sm:$0xff] }
 0x4fb   : > { %15324 = vmatpush3.bf16.msra.mxu1 %v18782_v50  ;;  %15291 = vmatprep.mubr.msk.bf16.mxu1 %vm321_vm0, %v5861_v2  ;;  %v6213_v50 = vpack.c.bf16 %v6195_v47, %v6194_v12  ;;  %v6499_v2 = vld [vmem:[#allocation2 + $0x2d] sm:$0xff]  ;;  %v6513_v12 = vld [vmem:[#allocation2 + $0x9d] sm:$0xff] }
 0x4fc   : > { %15325 = vmatprep.subr.bf16.mxu1 %v17000_v49  ;;  %v6515_v47 = vld [vmem:[#allocation2 + $0xad] sm:$0xff] }
 0x4ff   : > { %15326 = vmatpush3.bf16.msra.mxu1 %v17000_v49 }
 0x500   : > { %15363 = vmatprep.subr.bf16.mxu1 %v17001_v30 }
 0x502   : > { %15292 = vmatmul.mubr.msk.bf16.gmra.mrb[4].mxu1 %vm321_vm0, %v18785_v17  ;;  %v6498_v17 = vld [vmem:[#allocation2 + $0x25] sm:$0xff] }
 0x503   : > { %15295 = vmatprep.mubr.msk.bf16.mxu1 %vm321_vm0, %v5863_v43  ;;  %v6534_v43 = vpack.c.bf16 %v6499_v2, %v6498_v17  ;;  %v6514_v2 = vld [vmem:[#allocation2 + $0xa5] sm:$0xff] }
 0x504   : > { %v6542_v17 = vpack.c.bf16 %v6515_v47, %v6514_v2  ;;  %v6532_v47 = vld [vmem:[#allocation2 + $0x135] sm:$0xff] }
 0x50a   : > { %15296 = vmatmul.mubr.msk.bf16.gmra.mrb[8].mxu1 %vm321_vm0, %v5864_v54  ;;  %v6500_v54 = vld [vmem:[#allocation2 + $0x35] sm:$0xff] }
 0x50b   : > { %15299 = vmatprep.mubr.msk.bf16.mxu1 %vm321_vm0, %v5865_v45  ;;  %v6501_v45 = vld [vmem:[#allocation2 + $0x3d] sm:$0xff] }
 0x512   : > { %15300 = vmatmul.mubr.msk.bf16.gmra.mrb[12].mxu1 %vm321_vm0, %v5866_v29  ;;  %v6503_v29 = vld [vmem:[#allocation2 + $0x4d] sm:$0xff] }
 0x513   : > { %15303 = vmatprep.mubr.msk.bf16.mxu1 %vm321_vm0, %v5867_v61  ;;  %v6535_v61 = vpack.c.bf16 %v6501_v45, %v6500_v54  ;;  %v6517_v54 = vld [vmem:[#allocation2 + $0xbd] sm:$0xff]  ;;  %v6519_v45 = vld [vmem:[#allocation2 + $0xcd] sm:$0xff] }
 0x51a   : > { %15304 = vmatmul.mubr.msk.bf16.gmra.mrb[16].mxu1 %vm321_vm0, %v5868_v23  ;;  %v6502_v23 = vld [vmem:[#allocation2 + $0x45] sm:$0xff] }
 0x51b   : > { %15307 = vmatprep.mubr.msk.bf16.mxu1 %vm321_vm0, %v5869_v46  ;;  %v17002_v46 = vld [vmem:[%s20796_s1 + $0x118] sm:$0xff]  }
 0x522   : > { %15308 = vmatmul.mubr.msk.bf16.gmra.mrb[20].mxu1 %vm321_vm0, %v5870_v22  ;;  %v6536_v22 = vpack.c.bf16 %v6503_v29, %v6502_v23 }
 0x523   : > { %15311 = vmatprep.mubr.msk.bf16.mxu1 %vm321_vm0, %v5871_v57  ;;  %v6507_v57 = vld [vmem:[#allocation2 + $0x6d] sm:$0xff] }
 0x524   : > { %v6538_v55 = vpack.c.bf16 %v6507_v57, %v6506_v24  ;;  %v6522_v57 = vld [vmem:[#allocation2 + $0xe5] sm:$0xff]  ;;  %v6524_v24 = vld [vmem:[#allocation2 + $0xf5] sm:$0xff] }
 0x52a   : > { %15312 = vmatmul.mubr.msk.bf16.gmra.mrb[24].mxu1 %vm321_vm0, %v5872_v58  ;;  %v6537_v58 = vpack.c.bf16 %v6505_v7, %v6504_v60  ;;  %v6523_v60 = vld [vmem:[#allocation2 + $0xed] sm:$0xff] }
 0x52b   : > { %15315 = vmatprep.mubr.msk.bf16.mxu1 %vm321_vm0, %v5873_v19  ;;  %v6508_v19 = vld [vmem:[#allocation2 + $0x75] sm:$0xff] }
 0x532   : > { %15316 = vmatmul.mubr.msk.bf16.gmra.mrb[28].mxu1 %vm321_vm0, %v5874_v16  ;;  %v6509_v16 = vld [vmem:[#allocation2 + $0x7d] sm:$0xff] }
 0x533   : > { %15319 = vmatprep.mubr.msk.bf16.mxu1 %vm321_vm0, %v5875_v11  ;;  %v6539_v53 = vpack.c.bf16 %v6509_v16, %v6508_v19  ;;  %v6510_v11 = vld [vmem:[#allocation2 + $0x85] sm:$0xff] }
 0x534   : > { %v6540_v49 = vpack.c.bf16 %v6511_v42, %v6510_v11  ;;  %v6526_v19 = vld [vmem:[#allocation2 + $0x105] sm:$0xff]  ;;  %v6528_v42 = vld [vmem:[#allocation2 + $0x115] sm:$0xff] }
 0x535   : > { %v6548_v16 = vpack.c.bf16 %v6527_v62, %v6526_v19  ;;  %v6530_v11 = vld [vmem:[#allocation2 + $0x125] sm:$0xff]  ;;  %v6846_v62 = vld [vmem:[#allocation2 + $0x76] sm:$0xff]  ;;  %v6849_v19 = vld [vmem:[#allocation2 + $0x8e] sm:$0xff] }
 0x53a   : > { %15320 = vmatmul.mubr.msk.bf16.gmra.mrb[32].mxu1 %vm321_vm0, %v6213_v50 }
 0x53b   : > { %15327 = vmatprep.mubr.msk.bf16.mxu1 %vm321_vm0, %v6534_v43  ;;  %v6516_v43 = vld [vmem:[#allocation2 + $0xb5] sm:$0xff] }
 0x53c   : > { %v6543_v29 = vpack.c.bf16 %v6517_v54, %v6516_v43  ;;  %v6836_v43 = vld [vmem:[#allocation2 + $0x26] sm:$0xff] }
 0x542   : > { %15328 = vmatmul.mubr.msk.bf16.vlgmr.msra.gmra.mrb[0].mxu1 %vm321_vm0, %v6535_v61  ;;  %v6518_v61 = vld [vmem:[#allocation2 + $0xc5] sm:$0xff] }
 0x543   : > { %15364 = vmatpush3.bf16.msra.mxu1 %v17001_v30  ;;  %15331 = vmatprep.mubr.msk.bf16.mxu1 %vm321_vm0, %v6536_v22  ;;  %v6512_v30 = vld [vmem:[#allocation2 + $0x95] sm:$0xff]  ;;  %v6544_v23 = vpack.c.bf16 %v6519_v45, %v6518_v61  ;;  %v6521_v22 = vld [vmem:[#allocation2 + $0xdd] sm:$0xff] }
 0x544   : > { %15365 = vmatprep.subr.bf16.mxu1 %v17002_v46  ;;  %v6541_v50 = vpack.c.bf16 %v6513_v12, %v6512_v30  ;;  %v6838_v45 = vld [vmem:[#allocation2 + $0x36] sm:$0xff]  ;;  %v6841_v61 = vld [vmem:[#allocation2 + $0x4e] sm:$0xff] }
 0x547   : > { %15366 = vmatpush3.bf16.msra.mxu1 %v17002_v46  ;;  %v6520_v46 = vld [vmem:[#allocation2 + $0xd5] sm:$0xff] }
 0x548   : > { %v6545_v7 = vpack.c.bf16 %v6521_v22, %v6520_v46  ;;  %v6840_v46 = vld [vmem:[#allocation2 + $0x46] sm:$0xff] }
 0x549   : > { %v6874_v22 = vpack.c.bf16 %v6841_v61, %v6840_v46  ;;  %v6858_v61 = vld [vmem:[#allocation2 + $0xd6] sm:$0xff]  ;;  %v6861_v46 = vld [vmem:[#allocation2 + $0xee] sm:$0xff] }
 0x54a   : > { %15332 = vmatmul.mubr.msk.bf16.gmra.mrb[4].mxu1 %vm321_vm0, %v6537_v58  ;;  %v6546_v58 = vpack.c.bf16 %v6523_v60, %v6522_v57  ;;  %v6842_v60 = vld [vmem:[#allocation2 + $0x56] sm:$0xff]  ;;  %v6845_v57 = vld [vmem:[#allocation2 + $0x6e] sm:$0xff] }
 0x54b   : > { %15335 = vmatprep.mubr.msk.bf16.mxu1 %vm321_vm0, %v6538_v55  ;;  %v6525_v55 = vld [vmem:[#allocation2 + $0xfd] sm:$0xff] }
 0x54c   : > { %v6547_v35 = vpack.c.bf16 %v6525_v55, %v6524_v24  ;;  %v6844_v24 = vld [vmem:[#allocation2 + $0x66] sm:$0xff] }
 0x54d   : > { %v6876_v55 = vpack.c.bf16 %v6845_v57, %v6844_v24  ;;  %v6862_v57 = vld [vmem:[#allocation2 + $0xf6] sm:$0xff]  ;;  %v6865_v24 = vld [vmem:[#allocation2 + $0x10e] sm:$0xff] }
 0x552   : > { %15336 = vmatmul.mubr.msk.bf16.gmra.mrb[8].mxu1 %vm321_vm0, %v6539_v53  ;;  %v6529_v53 = vld [vmem:[#allocation2 + $0x11d] sm:$0xff] }
 0x553   : > { %15339 = vmatprep.mubr.msk.bf16.mxu1 %vm321_vm0, %v6540_v49  ;;  %v6531_v49 = vld [vmem:[#allocation2 + $0x12d] sm:$0xff]  ;;  %v6549_v30 = vpack.c.bf16 %v6529_v53, %v6528_v42 }
 0x554   : > { %v6550_v12 = vpack.c.bf16 %v6531_v49, %v6530_v11  ;;  %v6848_v42 = vld [vmem:[#allocation2 + $0x86] sm:$0xff]  ;;  %v6850_v11 = vld [vmem:[#allocation2 + $0x96] sm:$0xff]  ;;  %v6851_v49 = vld [vmem:[#allocation2 + $0x9e] sm:$0xff] }
 0x555   : > { %v6878_v53 = vpack.c.bf16 %v6849_v19, %v6848_v42  ;;  %v6866_v19 = vld [vmem:[#allocation2 + $0x116] sm:$0xff]  ;;  %v6868_v42 = vld [vmem:[#allocation2 + $0x126] sm:$0xff] }
 0x55a   : > { %15340 = vmatmul.mubr.msk.bf16.gmra.mrb[12].mxu1 %vm321_vm0, %v6541_v50  ;;  %v6533_v50 = vld [vmem:[#allocation2 + $0x13d] sm:$0xff] }
 0x55b   : > { %15343 = vmatprep.mubr.msk.bf16.mxu1 %vm321_vm0, %v6542_v17  ;;  %v6551_v2 = vpack.c.bf16 %v6533_v50, %v6532_v47  ;;  %v6837_v17 = vld [vmem:[#allocation2 + $0x2e] sm:$0xff]  ;;  %v6852_v47 = vld [vmem:[#allocation2 + $0xa6] sm:$0xff] }
 0x55c   : > { %v6872_v54 = vpack.c.bf16 %v6837_v17, %v6836_v43  ;;  %v6855_v17 = vld [vmem:[#allocation2 + $0xbe] sm:$0xff]  ;;  %v6857_v43 = vld [vmem:[#allocation2 + $0xce] sm:$0xff] }
 0x562   : > { %15344 = vmatmul.mubr.msk.bf16.gmra.mrb[16].mxu1 %vm321_vm0, %v6543_v29  ;;  %v6839_v29 = vld [vmem:[#allocation2 + $0x3e] sm:$0xff] }
 0x563   : > { %15347 = vmatprep.mubr.msk.bf16.mxu1 %vm321_vm0, %v6544_v23  ;;  %v6873_v23 = vpack.c.bf16 %v6839_v29, %v6838_v45  ;;  %v6856_v45 = vld [vmem:[#allocation2 + $0xc6] sm:$0xff] }
 0x564   : > { %v6882_v29 = vpack.c.bf16 %v6857_v43, %v6856_v45 }
 0x56a   : > { %15348 = vmatmul.mubr.msk.bf16.gmra.mrb[20].mxu1 %vm321_vm0, %v6545_v7  ;;  %v6843_v7 = vld [vmem:[#allocation2 + $0x5e] sm:$0xff] }
 0x56b   : > { %15351 = vmatprep.mubr.msk.bf16.mxu1 %vm321_vm0, %v6546_v58  ;;  %v6875_v58 = vpack.c.bf16 %v6843_v7, %v6842_v60  ;;  %v6860_v60 = vld [vmem:[#allocation2 + $0xe6] sm:$0xff] }
 0x56c   : > { %v6884_v7 = vpack.c.bf16 %v6861_v46, %v6860_v60 }
 0x572   : > { %15352 = vmatmul.mubr.msk.bf16.gmra.mrb[24].mxu1 %vm321_vm0, %v6547_v35  ;;  %v6847_v35 = vld [vmem:[#allocation2 + $0x7e] sm:$0xff] }
 0x573   : > { %15355 = vmatprep.mubr.msk.bf16.mxu1 %vm321_vm0, %v6548_v16  ;;  %v6877_v16 = vpack.c.bf16 %v6847_v35, %v6846_v62  ;;  %v6864_v62 = vld [vmem:[#allocation2 + $0x106] sm:$0xff] }
 0x574   : > { %v6886_v35 = vpack.c.bf16 %v6865_v24, %v6864_v62 }
 0x57a   : > { %15356 = vmatmul.mubr.msk.bf16.gmra.mrb[28].mxu1 %vm321_vm0, %v6549_v30  ;;  %v6853_v30 = vld [vmem:[#allocation2 + $0xae] sm:$0xff] }
 0x57b   : > { %15359 = vmatprep.mubr.msk.bf16.mxu1 %vm321_vm0, %v6550_v12  ;;  %v6879_v12 = vpack.c.bf16 %v6851_v49, %v6850_v11  ;;  %v6880_v50 = vpack.c.bf16 %v6853_v30, %v6852_v47  ;;  %v6870_v30 = vld [vmem:[#allocation2 + $0x136] sm:$0xff] }
 0x582   : > { %15360 = vmatmul.mubr.msk.bf16.gmra.mrb[32].mxu1 %vm321_vm0, %v6551_v2  ;;  %v6854_v2 = vld [vmem:[#allocation2 + $0xb6] sm:$0xff] }
 0x583   : > { %15367 = vmatprep.mubr.msk.bf16.mxu1 %vm321_vm0, %v6872_v54  ;;  %v6881_v54 = vpack.c.bf16 %v6855_v17, %v6854_v2  ;;  %v7386_v2 = vld [vmem:[#allocation2 + $0x9] sm:$0xff]  ;;  %v18879_v17 = vld [vmem:[%s20796_s1 + $0x120] sm:$0xff]  }
 0x584   : > { %15443 = vmatprep.subr.bf16.mxu0 %v18879_v17 }
 0x58a   : > { %15368 = vmatmul.mubr.msk.bf16.vlgmr.msra.gmra.mrb[0].mxu1 %vm321_vm0, %v6873_v23  ;;  %v6859_v23 = vld [vmem:[#allocation2 + $0xde] sm:$0xff] }
 0x58b   : > { %15371 = vmatprep.mubr.msk.bf16.mxu1 %vm321_vm0, %v6874_v22  ;;  %v6883_v22 = vpack.c.bf16 %v6859_v23, %v6858_v61 }
 0x592   : > { %15372 = vmatmul.mubr.msk.bf16.gmra.mrb[4].mxu1 %vm321_vm0, %v6875_v58  ;;  %v6863_v58 = vld [vmem:[#allocation2 + $0xfe] sm:$0xff] }
 0x593   : > { %15375 = vmatprep.mubr.msk.bf16.mxu1 %vm321_vm0, %v6876_v55  ;;  %v6885_v55 = vpack.c.bf16 %v6863_v58, %v6862_v57 }
 0x59a   : > { %15376 = vmatmul.mubr.msk.bf16.gmra.mrb[8].mxu1 %vm321_vm0, %v6877_v16  ;;  %v6867_v16 = vld [vmem:[#allocation2 + $0x11e] sm:$0xff] }
 0x59b   : > { %15379 = vmatprep.mubr.msk.bf16.mxu1 %vm321_vm0, %v6878_v53  ;;  %v6869_v53 = vld [vmem:[#allocation2 + $0x12e] sm:$0xff]  ;;  %v6887_v11 = vpack.c.bf16 %v6867_v16, %v6866_v19 }
 0x59c   : > { %v6888_v49 = vpack.c.bf16 %v6869_v53, %v6868_v42 }
 0x5a2   : > { %15380 = vmatmul.mubr.msk.bf16.gmra.mrb[12].mxu1 %vm321_vm0, %v6879_v12  ;;  %v6871_v12 = vld [vmem:[#allocation2 + $0x13e] sm:$0xff] }
 0x5a3   : > { %15383 = vmatprep.mubr.msk.bf16.mxu1 %vm321_vm0, %v6880_v50  ;;  %v6889_v47 = vpack.c.bf16 %v6871_v12, %v6870_v30  ;;  %v7385_v50 = vld [vmem:[#allocation2 + $0x1] sm:$0xff] }
 0x5a4   : > { %v7421_v43 = vpack.c.bf16 %v7386_v2, %v7385_v50 }
 0x5a6   : > { %15407 = vmatprep.mubr.msk.bf16.mxu0 %vm321_vm0, %v7421_v43 }
 0x5aa   : > { %15384 = vmatmul.mubr.msk.bf16.gmra.mrb[16].mxu1 %vm321_vm0, %v6881_v54  ;;  %v18886_v54 = vld [vmem:[%s20797_s2 + $0x1] ss:$0 sm:$0xff] }
 0x5ab   : > { %15387 = vmatprep.mubr.msk.bf16.mxu1 %vm321_vm0, %v6882_v29 }
 0x5b2   : > { %15388 = vmatmul.mubr.msk.bf16.gmra.mrb[20].mxu1 %vm321_vm0, %v6883_v22 }
 0x5b3   : > { %15391 = vmatprep.mubr.msk.bf16.mxu1 %vm321_vm0, %v6884_v7 }
 0x5ba   : > { %15392 = vmatmul.mubr.msk.bf16.gmra.mrb[24].mxu1 %vm321_vm0, %v6885_v55 }
 0x5bb   : > { %15395 = vmatprep.mubr.msk.bf16.mxu1 %vm321_vm0, %v6886_v35 }
 0x5c2   : > { %15396 = vmatmul.mubr.msk.bf16.gmra.mrb[28].mxu1 %vm321_vm0, %v6887_v11 }
 0x5c3   : > { %15399 = vmatprep.mubr.msk.bf16.mxu1 %vm321_vm0, %v6888_v49 }
 0x5ca   : > { %15400 = vmatmul.mubr.msk.bf16.gmra.mrb[32].mxu1 %vm321_vm0, %v6889_v47 }
 0x65d   : > { %v15369_v45 = vpop.f32.mrb[0].mxu1 }
 0x65e   : > { %v7184_v29 = vadd.f32 %v15369_v45, %v18886_v54  ;;  %v6995_v61 = vpop.f32.mrb[1].mxu1 }
 0x65f   : > { %v7182_v23 = vadd.f32 %v18886_v54, %v6995_v61  ;;  %v15370_v46 = vpop.f32.mrb[2].mxu1 }
 0x660   : > { %v7220_v22 = vmax.f32 %v7184_v29, 0.0  ;;  %v7185_v60 = vadd.f32 %v15370_v46, %v18886_v54  ;;  %v6998_v7 = vpop.f32.mrb[3].mxu1 }
 0x661   : > { %v7218_v57 = vmax.f32 %v7182_v23, 0.0  ;;  %v7183_v58 = vadd.f32 %v18886_v54, %v6998_v7 }
 0x662   : > { %v7256_v24 = vmul.f32 %v17590_v5, %v7220_v22  ;;  %v7221_v55 = vmax.f32 %v7185_v60, 0.0 }
 0x663   : > { %v7254_v62 = vmul.f32 %v17671_v48, %v7218_v57  ;;  %v7219_v35 = vmax.f32 %v7183_v58, 0.0 }
 0x664   : > { %7292 = vst.msk [vmem:[#allocation2 + $0x23] sm:$0xff] %vm321_vm0, %v7256_v24  ;;  %v7257_v19 = vmul.f32 %v17676_v37, %v7221_v55 }
 0x665   : > { %7290 = vst.msk [vmem:[#allocation2 + $0x13] sm:$0xff] %vm321_vm0, %v7254_v62  ;;  %v7255_v16 = vmul.f32 %v17683_v51, %v7219_v35  ;;  %v15373_v42 = vpop.f32.mrb[4].mxu1 }
 0x666   : > { %7293 = vst.msk [vmem:[#allocation2 + $0x2b] sm:$0xff] %vm321_vm0, %v7257_v19  ;;  %v7188_v53 = vadd.f32 %v15373_v42, %v18886_v54  ;;  %v7011_v11 = vpop.f32.mrb[5].mxu1 }
 0x667   : > { %7291 = vst.msk [vmem:[#allocation2 + $0x1b] sm:$0xff] %vm321_vm0, %v7255_v16  ;;  %v7186_v49 = vadd.f32 %v18886_v54, %v7011_v11  ;;  %v15374_v30 = vpop.f32.mrb[6].mxu1 }
 0x668   : > { %v7224_v12 = vmax.f32 %v7188_v53, 0.0  ;;  %v7189_v47 = vadd.f32 %v15374_v30, %v18886_v54  ;;  %v7014_v50 = vpop.f32.mrb[7].mxu1  ;;  %v17006_v53 = vld [vmem:[%s20796_s1 + $0x128] sm:$0xff]  }
 0x669   : > { %v7222_v2 = vmax.f32 %v7186_v49, 0.0  ;;  %v7187_v43 = vadd.f32 %v18886_v54, %v7014_v50 }
 0x66a   : > { %v7260_v45 = vmul.f32 %v17686_v52, %v7224_v12  ;;  %v7225_v29 = vmax.f32 %v7189_v47, 0.0 }
 0x66b   : > { %v7258_v61 = vmul.f32 %v17738_v13, %v7222_v2  ;;  %v7223_v23 = vmax.f32 %v7187_v43, 0.0 }
 0x66c   : > { %7296 = vst.msk [vmem:[#allocation2 + $0x43] sm:$0xff] %vm321_vm0, %v7260_v45  ;;  %v7261_v46 = vmul.f32 %v17743_v14, %v7225_v29  ;;  %v7387_v24 = vld [vmem:[#allocation2 + $0x11] sm:$0xff]  ;;  %v18927_v29 = vld [vmem:[%s20796_s1 + $0x140] sm:$0xff]  }
 0x66d   : > { %7294 = vst.msk [vmem:[#allocation2 + $0x33] sm:$0xff] %vm321_vm0, %v7258_v61  ;;  %v7259_v22 = vmul.f32 %v17785_v38, %v7223_v23  ;;  %v15377_v60 = vpop.f32.mrb[8].mxu1  ;;  %v7390_v7 = vld [vmem:[#allocation2 + $0x29] sm:$0xff] }
 0x66e   : > { %7297 = vst.msk [vmem:[#allocation2 + $0x4b] sm:$0xff] %vm321_vm0, %v7261_v46  ;;  %v7192_v57 = vadd.f32 %v15377_v60, %v18886_v54  ;;  %v7027_v58 = vpop.f32.mrb[9].mxu1  ;;  %v7388_v55 = vld [vmem:[#allocation2 + $0x19] sm:$0xff]  ;;  %v7389_v62 = vld [vmem:[#allocation2 + $0x21] sm:$0xff] }
 0x66f   : > { %7295 = vst.msk [vmem:[#allocation2 + $0x3b] sm:$0xff] %vm321_vm0, %v7259_v22  ;;  %v7190_v35 = vadd.f32 %v18886_v54, %v7027_v58  ;;  %v15378_v19 = vpop.f32.mrb[10].mxu1  ;;  %v7422_v16 = vpack.c.bf16 %v7388_v55, %v7387_v24  ;;  %v7423_v42 = vpack.c.bf16 %v7390_v7, %v7389_v62 }
 0x670   : > { %v7228_v11 = vmax.f32 %v7192_v57, 0.0  ;;  %v7193_v49 = vadd.f32 %v15378_v19, %v18886_v54  ;;  %v7030_v30 = vpop.f32.mrb[11].mxu1 }
 0x671   : > { %v7226_v12 = vmax.f32 %v7190_v35, 0.0  ;;  %v7191_v47 = vadd.f32 %v18886_v54, %v7030_v30  ;;  %15408 = vmatmul.mubr.msk.bf16.vlgmr.msra.gmra.mrb[36].mxu0 %vm321_vm0, %v7422_v16 }
 0x672   : > { %v7264_v50 = vmul.f32 %v17851_v8, %v7228_v11  ;;  %v7229_v2 = vmax.f32 %v7193_v49, 0.0  ;;  %15444 = vmatpush3.bf16.msra.mxu0 %v18879_v17  ;;  %15411 = vmatprep.mubr.msk.bf16.mxu0 %vm321_vm0, %v7423_v42 }
 0x673   : > { %v7262_v43 = vmul.f32 %v17856_v9, %v7226_v12  ;;  %v7227_v45 = vmax.f32 %v7191_v47, 0.0  ;;  %15445 = vmatprep.subr.bf16.mxu0 %v17006_v53 }
 0x674   : > { %7300 = vst.msk [vmem:[#allocation2 + $0x63] sm:$0xff] %vm321_vm0, %v7264_v50  ;;  %v7265_v61 = vmul.f32 %v17873_v15, %v7229_v2  ;;  %v7391_v7 = vld [vmem:[#allocation2 + $0x31] sm:$0xff] }
 0x675   : > { %7298 = vst.msk [vmem:[#allocation2 + $0x53] sm:$0xff] %vm321_vm0, %v7262_v43  ;;  %v7263_v23 = vmul.f32 %v17976_v63, %v7227_v45  ;;  %v15381_v17 = vpop.f32.mrb[12].mxu1  ;;  %v7394_v46 = vld [vmem:[#allocation2 + $0x49] sm:$0xff] }
 0x676   : > { %7301 = vst.msk [vmem:[#allocation2 + $0x6b] sm:$0xff] %vm321_vm0, %v7265_v61  ;;  %v7196_v22 = vadd.f32 %v15381_v17, %v18886_v54  ;;  %v7043_v60 = vpop.f32.mrb[13].mxu1  ;;  %v7392_v57 = vld [vmem:[#allocation2 + $0x39] sm:$0xff]  ;;  %v7393_v58 = vld [vmem:[#allocation2 + $0x41] sm:$0xff]  ;;  %15446 = vmatpush3.bf16.msra.mxu0 %v17006_v53 }
 0x677   : > { %7299 = vst.msk [vmem:[#allocation2 + $0x5b] sm:$0xff] %vm321_vm0, %v7263_v23  ;;  %v7194_v24 = vadd.f32 %v18886_v54, %v7043_v60  ;;  %v15382_v55 = vpop.f32.mrb[14].mxu1  ;;  %v7424_v62 = vpack.c.bf16 %v7392_v57, %v7391_v7  ;;  %v7425_v35 = vpack.c.bf16 %v7394_v46, %v7393_v58  ;;  %15483 = vmatprep.subr.bf16.mxu0 %v18927_v29 }
 0x678   : > { %v7232_v19 = vmax.f32 %v7196_v22, 0.0  ;;  %v7197_v16 = vadd.f32 %v15382_v55, %v18886_v54  ;;  %v7046_v42 = vpop.f32.mrb[15].mxu1 }
 0x679   : > { %v7230_v11 = vmax.f32 %v7194_v24, 0.0  ;;  %v7195_v49 = vadd.f32 %v18886_v54, %v7046_v42  ;;  %15412 = vmatmul.mubr.msk.bf16.gmra.mrb[40].mxu0 %vm321_vm0, %v7424_v62 }
 0x67a   : > { %v7268_v53 = vmul.f32 %v17981_v3, %v7232_v19  ;;  %v7233_v30 = vmax.f32 %v7197_v16, 0.0  ;;  %15415 = vmatprep.mubr.msk.bf16.mxu0 %vm321_vm0, %v7425_v35 }
 0x67b   : > { %v7266_v12 = vmul.f32 %v17986_v6, %v7230_v11  ;;  %v7231_v47 = vmax.f32 %v7195_v49, 0.0 }
 0x67c   : > { %7304 = vst.msk [vmem:[#allocation2 + $0x83] sm:$0xff] %vm321_vm0, %v7268_v53  ;;  %v7269_v50 = vmul.f32 %v18004_v21, %v7233_v30  ;;  %v7395_v17 = vld [vmem:[#allocation2 + $0x51] sm:$0xff] }
 0x67d   : > { %7302 = vst.msk [vmem:[#allocation2 + $0x73] sm:$0xff] %vm321_vm0, %v7266_v12  ;;  %v7267_v2 = vmul.f32 %v18035_v31, %v7231_v47  ;;  %v15385_v43 = vpop.f32.mrb[16].mxu1  ;;  %v7398_v45 = vld [vmem:[#allocation2 + $0x69] sm:$0xff] }
 0x67e   : > { %7305 = vst.msk [vmem:[#allocation2 + $0x8b] sm:$0xff] %vm321_vm0, %v7269_v50  ;;  %v7200_v61 = vadd.f32 %v15385_v43, %v18886_v54  ;;  %v7059_v23 = vpop.f32.mrb[17].mxu1  ;;  %v7396_v46 = vld [vmem:[#allocation2 + $0x59] sm:$0xff]  ;;  %v7397_v22 = vld [vmem:[#allocation2 + $0x61] sm:$0xff] }
 0x67f   : > { %7303 = vst.msk [vmem:[#allocation2 + $0x7b] sm:$0xff] %vm321_vm0, %v7267_v2  ;;  %v7198_v60 = vadd.f32 %v18886_v54, %v7059_v23  ;;  %v15386_v7 = vpop.f32.mrb[18].mxu1  ;;  %v7426_v57 = vpack.c.bf16 %v7396_v46, %v7395_v17  ;;  %v7427_v58 = vpack.c.bf16 %v7398_v45, %v7397_v22 }
 0x680   : > { %v7236_v24 = vmax.f32 %v7200_v61, 0.0  ;;  %v7201_v55 = vadd.f32 %v15386_v7, %v18886_v54  ;;  %v7062_v62 = vpop.f32.mrb[19].mxu1 }
 0x681   : > { %v7234_v35 = vmax.f32 %v7198_v60, 0.0  ;;  %v7199_v19 = vadd.f32 %v18886_v54, %v7062_v62  ;;  %15416 = vmatmul.mubr.msk.bf16.gmra.mrb[44].mxu0 %vm321_vm0, %v7426_v57 }
 0x682   : > { %v7272_v16 = vmul.f32 %v18038_v32, %v7236_v24  ;;  %v7237_v42 = vmax.f32 %v7201_v55, 0.0  ;;  %15419 = vmatprep.mubr.msk.bf16.mxu0 %vm321_vm0, %v7427_v58 }
 0x683   : > { %v7270_v11 = vmul.f32 %v18041_v33, %v7234_v35  ;;  %v7235_v49 = vmax.f32 %v7199_v19, 0.0 }
 0x684   : > { %7308 = vst.msk [vmem:[#allocation2 + $0xa3] sm:$0xff] %vm321_vm0, %v7272_v16  ;;  %v7273_v53 = vmul.f32 %v18111_v25, %v7237_v42  ;;  %v7399_v43 = vld [vmem:[#allocation2 + $0x71] sm:$0xff] }
 0x685   : > { %7306 = vst.msk [vmem:[#allocation2 + $0x93] sm:$0xff] %vm321_vm0, %v7270_v11  ;;  %v7271_v30 = vmul.f32 %v18126_v34, %v7235_v49  ;;  %v15389_v12 = vpop.f32.mrb[20].mxu1  ;;  %v7402_v47 = vld [vmem:[#allocation2 + $0x89] sm:$0xff] }
 0x686   : > { %7309 = vst.msk [vmem:[#allocation2 + $0xab] sm:$0xff] %vm321_vm0, %v7273_v53  ;;  %v7204_v50 = vadd.f32 %v15389_v12, %v18886_v54  ;;  %v7075_v2 = vpop.f32.mrb[21].mxu1  ;;  %v7400_v45 = vld [vmem:[#allocation2 + $0x79] sm:$0xff]  ;;  %v7401_v61 = vld [vmem:[#allocation2 + $0x81] sm:$0xff] }
 0x687   : > { %7307 = vst.msk [vmem:[#allocation2 + $0x9b] sm:$0xff] %vm321_vm0, %v7271_v30  ;;  %v7202_v23 = vadd.f32 %v18886_v54, %v7075_v2  ;;  %v15390_v17 = vpop.f32.mrb[22].mxu1  ;;  %v7428_v46 = vpack.c.bf16 %v7400_v45, %v7399_v43  ;;  %v7429_v22 = vpack.c.bf16 %v7402_v47, %v7401_v61 }
 0x688   : > { %v7240_v60 = vmax.f32 %v7204_v50, 0.0  ;;  %v7205_v7 = vadd.f32 %v15390_v17, %v18886_v54  ;;  %v7078_v57 = vpop.f32.mrb[23].mxu1 }
 0x689   : > { %v7238_v58 = vmax.f32 %v7202_v23, 0.0  ;;  %v7203_v24 = vadd.f32 %v18886_v54, %v7078_v57  ;;  %15420 = vmatmul.mubr.msk.bf16.gmra.mrb[48].mxu0 %vm321_vm0, %v7428_v46 }
 0x68a   : > { %v7276_v55 = vmul.f32 %v18131_v36, %v7240_v60  ;;  %v7241_v62 = vmax.f32 %v7205_v7, 0.0  ;;  %15423 = vmatprep.mubr.msk.bf16.mxu0 %vm321_vm0, %v7429_v22 }
 0x68b   : > { %v7274_v35 = vmul.f32 %v18136_v39, %v7238_v58  ;;  %v7239_v19 = vmax.f32 %v7203_v24, 0.0 }
 0x68c   : > { %7312 = vst.msk [vmem:[#allocation2 + $0xc3] sm:$0xff] %vm321_vm0, %v7276_v55  ;;  %v7277_v16 = vmul.f32 %v18175_v27, %v7241_v62  ;;  %v7403_v12 = vld [vmem:[#allocation2 + $0x91] sm:$0xff] }
 0x68d   : > { %7310 = vst.msk [vmem:[#allocation2 + $0xb3] sm:$0xff] %vm321_vm0, %v7274_v35  ;;  %v7275_v42 = vmul.f32 %v18190_v44, %v7239_v19  ;;  %v15393_v11 = vpop.f32.mrb[24].mxu1  ;;  %v7406_v49 = vld [vmem:[#allocation2 + $0xa9] sm:$0xff] }
 0x68e   : > { %7313 = vst.msk [vmem:[#allocation2 + $0xcb] sm:$0xff] %vm321_vm0, %v7277_v16  ;;  %v7208_v53 = vadd.f32 %v15393_v11, %v18886_v54  ;;  %v7091_v30 = vpop.f32.mrb[25].mxu1  ;;  %v7404_v47 = vld [vmem:[#allocation2 + $0x99] sm:$0xff]  ;;  %v7405_v50 = vld [vmem:[#allocation2 + $0xa1] sm:$0xff] }
 0x68f   : > { %7311 = vst.msk [vmem:[#allocation2 + $0xbb] sm:$0xff] %vm321_vm0, %v7275_v42  ;;  %v7206_v2 = vadd.f32 %v18886_v54, %v7091_v30  ;;  %v15394_v43 = vpop.f32.mrb[26].mxu1  ;;  %v7430_v45 = vpack.c.bf16 %v7404_v47, %v7403_v12  ;;  %v7431_v61 = vpack.c.bf16 %v7406_v49, %v7405_v50 }
 0x690   : > { %v7244_v23 = vmax.f32 %v7208_v53, 0.0  ;;  %v7209_v17 = vadd.f32 %v15394_v43, %v18886_v54  ;;  %v7094_v46 = vpop.f32.mrb[27].mxu1 }
 0x691   : > { %v7242_v22 = vmax.f32 %v7206_v2, 0.0  ;;  %v7207_v60 = vadd.f32 %v18886_v54, %v7094_v46  ;;  %15424 = vmatmul.mubr.msk.bf16.gmra.mrb[52].mxu0 %vm321_vm0, %v7430_v45 }
 0x692   : > { %v7280_v7 = vmul.f32 %v18372_v18, %v7244_v23  ;;  %v7245_v57 = vmax.f32 %v7209_v17, 0.0  ;;  %15427 = vmatprep.mubr.msk.bf16.mxu0 %vm321_vm0, %v7431_v61 }
 0x693   : > { %v7278_v58 = vmul.f32 %v18388_v20, %v7242_v22  ;;  %v7243_v24 = vmax.f32 %v7207_v60, 0.0 }
 0x694   : > { %7316 = vst.msk [vmem:[#allocation2 + $0xe3] sm:$0xff] %vm321_vm0, %v7280_v7  ;;  %v7281_v55 = vmul.f32 %v18442_v0, %v7245_v57  ;;  %v7407_v11 = vld [vmem:[#allocation2 + $0xb1] sm:$0xff] }
 0x695   : > { %7314 = vst.msk [vmem:[#allocation2 + $0xd3] sm:$0xff] %vm321_vm0, %v7278_v58  ;;  %v7279_v62 = vmul.f32 %v18468_v59, %v7243_v24  ;;  %v15397_v35 = vpop.f32.mrb[28].mxu1  ;;  %v7410_v19 = vld [vmem:[#allocation2 + $0xc9] sm:$0xff] }
 0x696   : > { %7317 = vst.msk [vmem:[#allocation2 + $0xeb] sm:$0xff] %vm321_vm0, %v7281_v55  ;;  %v7212_v16 = vadd.f32 %v15397_v35, %v18886_v54  ;;  %v7107_v42 = vpop.f32.mrb[29].mxu1  ;;  %v7408_v49 = vld [vmem:[#allocation2 + $0xb9] sm:$0xff]  ;;  %v7409_v53 = vld [vmem:[#allocation2 + $0xc1] sm:$0xff] }
 0x697   : > { %7315 = vst.msk [vmem:[#allocation2 + $0xdb] sm:$0xff] %vm321_vm0, %v7279_v62  ;;  %v7210_v30 = vadd.f32 %v18886_v54, %v7107_v42  ;;  %v15398_v12 = vpop.f32.mrb[30].mxu1  ;;  %v7432_v47 = vpack.c.bf16 %v7408_v49, %v7407_v11  ;;  %v7433_v50 = vpack.c.bf16 %v7410_v19, %v7409_v53 }
 0x698   : > { %v7248_v2 = vmax.f32 %v7212_v16, 0.0  ;;  %v7213_v43 = vadd.f32 %v15398_v12, %v18886_v54  ;;  %v7110_v45 = vpop.f32.mrb[31].mxu1 }
 0x699   : > { %v7246_v61 = vmax.f32 %v7210_v30, 0.0  ;;  %v7211_v23 = vadd.f32 %v18886_v54, %v7110_v45  ;;  %15428 = vmatmul.mubr.msk.bf16.gmra.mrb[56].mxu0 %vm321_vm0, %v7432_v47 }
 0x69a   : > { %v7284_v17 = vmul.f32 %v18486_v40, %v7248_v2  ;;  %v7249_v46 = vmax.f32 %v7213_v43, 0.0  ;;  %15431 = vmatprep.mubr.msk.bf16.mxu0 %vm321_vm0, %v7433_v50 }
 0x69b   : > { %v7282_v22 = vmul.f32 %v18497_v10, %v7246_v61  ;;  %v7247_v60 = vmax.f32 %v7211_v23, 0.0 }
 0x69c   : > { %7320 = vst.msk [vmem:[#allocation2 + $0x103] sm:$0xff] %vm321_vm0, %v7284_v17  ;;  %v7285_v7 = vmul.f32 %v18576_v1, %v7249_v46  ;;  %v7411_v35 = vld [vmem:[#allocation2 + $0xd1] sm:$0xff] }
 0x69d   : > { %7318 = vst.msk [vmem:[#allocation2 + $0xf3] sm:$0xff] %vm321_vm0, %v7282_v22  ;;  %v7283_v57 = vmul.f32 %v18592_v28, %v7247_v60  ;;  %v15401_v58 = vpop.f32.mrb[32].mxu1  ;;  %v7414_v24 = vld [vmem:[#allocation2 + $0xe9] sm:$0xff] }
 0x69e   : > { %7321 = vst.msk [vmem:[#allocation2 + $0x10b] sm:$0xff] %vm321_vm0, %v7285_v7  ;;  %v7216_v55 = vadd.f32 %v15401_v58, %v18886_v54  ;;  %v7123_v62 = vpop.f32.mrb[33].mxu1  ;;  %v7412_v19 = vld [vmem:[#allocation2 + $0xd9] sm:$0xff]  ;;  %v7413_v16 = vld [vmem:[#allocation2 + $0xe1] sm:$0xff] }
 0x69f   : > { %7319 = vst.msk [vmem:[#allocation2 + $0xfb] sm:$0xff] %vm321_vm0, %v7283_v57  ;;  %v7214_v42 = vadd.f32 %v18886_v54, %v7123_v62  ;;  %v15402_v11 = vpop.f32.mrb[34].mxu1  ;;  %v7434_v49 = vpack.c.bf16 %v7412_v19, %v7411_v35  ;;  %v7435_v53 = vpack.c.bf16 %v7414_v24, %v7413_v16  ;;  %v7326_v24 = vld [vmem:[#allocation2] sm:$0xff] }
 0x6a0   : > { %v7252_v30 = vmax.f32 %v7216_v55, 0.0  ;;  %v7217_v12 = vadd.f32 %v15402_v11, %v18886_v54  ;;  %v7126_v47 = vpop.f32.mrb[35].mxu1  ;;  %v7327_v55 = vld [vmem:[#allocation2 + $0x8] sm:$0xff]  ;;  %v7330_v11 = vld [vmem:[#allocation2 + $0x20] sm:$0xff] }
 0x6a1   : > { %v7250_v50 = vmax.f32 %v7214_v42, 0.0  ;;  %v7215_v2 = vadd.f32 %v18886_v54, %v7126_v47  ;;  %15432 = vmatmul.mubr.msk.bf16.gmra.mrb[60].mxu0 %vm321_vm0, %v7434_v49  ;;  %v7362_v19 = vpack.c.bf16 %v7327_v55, %v7326_v24  ;;  %v7329_v42 = vld [vmem:[#allocation2 + $0x18] sm:$0xff]  ;;  %v7331_v49 = vld [vmem:[#allocation2 + $0x28] sm:$0xff]  ;;  %v7340_v55 = vld [vmem:[#allocation2 + $0x70] sm:$0xff] }
 0x6a2   : > { %v7288_v43 = vmul.f32 %v18615_v4, %v7252_v30  ;;  %v7253_v45 = vmax.f32 %v7217_v12, 0.0  ;;  %15435 = vmatprep.mubr.msk.bf16.mxu0 %vm321_vm0, %v7435_v53  ;;  %v7328_v53 = vld [vmem:[#allocation2 + $0x10] sm:$0xff]  ;;  %v17008_v12 = vld [vmem:[%s20796_s1 + $0x148] sm:$0xff]   ;;  %v7364_v47 = vpack.c.bf16 %v7331_v49, %v7330_v11 }
 0x6a3   : > { %v7286_v61 = vmul.f32 %v18623_v26, %v7250_v50  ;;  %v7251_v23 = vmax.f32 %v7215_v2, 0.0  ;;  %v7363_v30 = vpack.c.bf16 %v7329_v42, %v7328_v53  ;;  %v19033_v50 = vld [vmem:[%s20796_s1 + $0x150] sm:$0xff]   ;;  %v7333_v2 = vld [vmem:[#allocation2 + $0x38] sm:$0xff]  ;;  %v7343_v24 = vld [vmem:[#allocation2 + $0x88] sm:$0xff] }
 0x6a4   : > { %7324 = vst.msk [vmem:[#allocation2 + $0x123] sm:$0xff] %vm321_vm0, %v7288_v43  ;;  %v7289_v17 = vmul.f32 %v18627_v56, %v7253_v45  ;;  %v7415_v54 = vld [vmem:[#allocation2 + $0xf1] sm:$0xff]  ;;  %v7334_v43 = vld [vmem:[#allocation2 + $0x40] sm:$0xff]  ;;  %v7335_v45 = vld [vmem:[#allocation2 + $0x48] sm:$0xff] }
 0x6a5   : > { %7322 = vst.msk [vmem:[#allocation2 + $0x113] sm:$0xff] %vm321_vm0, %v7286_v61  ;;  %v7287_v46 = vmul.f32 %v18633_v41, %v7251_v23  ;;  %v7418_v22 = vld [vmem:[#allocation2 + $0x109] sm:$0xff] }
 0x6a6   : > { %7325 = vst.msk [vmem:[#allocation2 + $0x12b] sm:$0xff] %vm321_vm0, %v7289_v17  ;;  %v7416_v60 = vld [vmem:[#allocation2 + $0xf9] sm:$0xff]  ;;  %v7417_v7 = vld [vmem:[#allocation2 + $0x101] sm:$0xff]  ;;  %v7332_v61 = vld [vmem:[#allocation2 + $0x30] sm:$0xff]  ;;  %v7366_v17 = vpack.c.bf16 %v7335_v45, %v7334_v43 }
 0x6a7   : > { %7323 = vst.msk [vmem:[#allocation2 + $0x11b] sm:$0xff] %vm321_vm0, %v7287_v46  ;;  %v7436_v57 = vpack.c.bf16 %v7416_v60, %v7415_v54  ;;  %v7437_v58 = vpack.c.bf16 %v7418_v22, %v7417_v7  ;;  %v7365_v23 = vpack.c.bf16 %v7333_v2, %v7332_v61  ;;  %v7338_v46 = vld [vmem:[#allocation2 + $0x60] sm:$0xff]  ;;  %v7339_v22 = vld [vmem:[#allocation2 + $0x68] sm:$0xff]  ;;  %v7336_v54 = vld [vmem:[#allocation2 + $0x50] sm:$0xff] }
 0x6a8   : > { %v7368_v7 = vpack.c.bf16 %v7339_v22, %v7338_v46  ;;  %v7347_v42 = vld [vmem:[#allocation2 + $0xa8] sm:$0xff]  ;;  %v7344_v11 = vld [vmem:[#allocation2 + $0x90] sm:$0xff]  ;;  %v7353_v61 = vld [vmem:[#allocation2 + $0xd8] sm:$0xff] }
 0x6a9   : > { %15436 = vmatmul.mubr.msk.bf16.gmra.mrb[64].mxu0 %vm321_vm0, %v7436_v57  ;;  %v7341_v57 = vld [vmem:[#allocation2 + $0x78] sm:$0xff]  ;;  %v7348_v2 = vld [vmem:[#allocation2 + $0xb0] sm:$0xff] }
 0x6aa   : > { %15439 = vmatprep.mubr.msk.bf16.mxu0 %vm321_vm0, %v7437_v58  ;;  %v7342_v58 = vld [vmem:[#allocation2 + $0x80] sm:$0xff] }
 0x6ac   : > { %v7419_v62 = vld [vmem:[#allocation2 + $0x111] sm:$0xff] }
 0x6ae   : > { %v7420_v35 = vld [vmem:[#allocation2 + $0x119] sm:$0xff] }
 0x6af   : > { %v7438_v16 = vpack.c.bf16 %v7420_v35, %v7419_v62  ;;  %v7369_v62 = vpack.c.bf16 %v7341_v57, %v7340_v55  ;;  %v7370_v35 = vpack.c.bf16 %v7343_v24, %v7342_v58  ;;  %v7356_v57 = vld [vmem:[#allocation2 + $0xf0] sm:$0xff]  ;;  %v7930_v55 = vld [vmem:[#allocation2 + $0x2] sm:$0xff] }
 0x6b1   : > { %15440 = vmatmul.mubr.msk.bf16.gmra.mrb[68].mxu0 %vm321_vm0, %v7438_v16  ;;  %v7346_v16 = vld [vmem:[#allocation2 + $0xa0] sm:$0xff] }
 0x6b2   : > { %15447 = vmatprep.mubr.msk.bf16.mxu0 %vm321_vm0, %v7362_v19  ;;  %v7345_v19 = vld [vmem:[#allocation2 + $0x98] sm:$0xff]  ;;  %v7372_v53 = vpack.c.bf16 %v7347_v42, %v7346_v16 }
 0x6b3   : > { %v7371_v49 = vpack.c.bf16 %v7345_v19, %v7344_v11  ;;  %v7360_v19 = vld [vmem:[#allocation2 + $0x110] sm:$0xff]  ;;  %v7933_v11 = vld [vmem:[#allocation2 + $0x1a] sm:$0xff] }
 0x6b9   : > { %15448 = vmatmul.mubr.msk.bf16.vlgmr.msra.gmra.mrb[36].mxu0 %vm321_vm0, %v7363_v30  ;;  %v7349_v30 = vld [vmem:[#allocation2 + $0xb8] sm:$0xff] }
 0x6ba   : > { %15484 = vmatpush3.bf16.msra.mxu0 %v18927_v29  ;;  %15451 = vmatprep.mubr.msk.bf16.mxu0 %vm321_vm0, %v7364_v47  ;;  %v7337_v29 = vld [vmem:[#allocation2 + $0x58] sm:$0xff]  ;;  %v7351_v47 = vld [vmem:[#allocation2 + $0xc8] sm:$0xff]  ;;  %v7373_v43 = vpack.c.bf16 %v7349_v30, %v7348_v2 }
 0x6bb   : > { %15485 = vmatprep.subr.bf16.mxu0 %v17008_v12  ;;  %v7367_v60 = vpack.c.bf16 %v7337_v29, %v7336_v54  ;;  %v7352_v29 = vld [vmem:[#allocation2 + $0xd0] sm:$0xff]  ;;  %v7357_v54 = vld [vmem:[#allocation2 + $0xf8] sm:$0xff] }
 0x6bc   : > { %v7375_v46 = vpack.c.bf16 %v7353_v61, %v7352_v29  ;;  %v7377_v58 = vpack.c.bf16 %v7357_v54, %v7356_v57  ;;  %v7932_v30 = vld [vmem:[#allocation2 + $0x12] sm:$0xff]  ;;  %v7938_v61 = vld [vmem:[#allocation2 + $0x42] sm:$0xff]  ;;  %v7943_v54 = vld [vmem:[#allocation2 + $0x6a] sm:$0xff] }
 0x6be   : > { %15486 = vmatpush3.bf16.msra.mxu0 %v17008_v12  ;;  %v7350_v12 = vld [vmem:[#allocation2 + $0xc0] sm:$0xff] }
 0x6bf   : > { %15523 = vmatprep.subr.bf16.mxu0 %v19033_v50  ;;  %v7374_v45 = vpack.c.bf16 %v7351_v47, %v7350_v12  ;;  %v19052_v12 = vpack.c.bf16 %v7933_v11, %v7932_v30  ;;  %v17010_v47 = vld [vmem:[%s20796_s1 + $0x158] sm:$0xff]   ;;  %v7951_v11 = vld [vmem:[#allocation2 + $0xaa] sm:$0xff] }
 0x6c1   : > { %15452 = vmatmul.mubr.msk.bf16.gmra.mrb[40].mxu0 %vm321_vm0, %v7365_v23  ;;  %v7354_v23 = vld [vmem:[#allocation2 + $0xe0] sm:$0xff] }
 0x6c2   : > { %15455 = vmatprep.mubr.msk.bf16.mxu0 %vm321_vm0, %v7366_v17  ;;  %v7355_v17 = vld [vmem:[#allocation2 + $0xe8] sm:$0xff] }
 0x6c3   : > { %v7376_v22 = vpack.c.bf16 %v7355_v17, %v7354_v23  ;;  %v7939_v23 = vld [vmem:[#allocation2 + $0x4a] sm:$0xff]  ;;  %v7936_v17 = vld [vmem:[#allocation2 + $0x32] sm:$0xff] }
 0x6c9   : > { %15456 = vmatmul.mubr.msk.bf16.gmra.mrb[44].mxu0 %vm321_vm0, %v7367_v60  ;;  %v7358_v60 = vld [vmem:[#allocation2 + $0x100] sm:$0xff] }
 0x6ca   : > { %15459 = vmatprep.mubr.msk.bf16.mxu0 %vm321_vm0, %v7368_v7  ;;  %v7359_v7 = vld [vmem:[#allocation2 + $0x108] sm:$0xff] }
 0x6cb   : > { %v7378_v24 = vpack.c.bf16 %v7359_v7, %v7358_v60  ;;  %v7940_v60 = vld [vmem:[#allocation2 + $0x52] sm:$0xff] }
 0x6d1   : > { %15460 = vmatmul.mubr.msk.bf16.gmra.mrb[48].mxu0 %vm321_vm0, %v7369_v62  ;;  %v7931_v62 = vld [vmem:[#allocation2 + $0xa] sm:$0xff] }
 0x6d2   : > { %15463 = vmatprep.mubr.msk.bf16.mxu0 %vm321_vm0, %v7370_v35  ;;  %v7361_v35 = vld [vmem:[#allocation2 + $0x118] sm:$0xff]  ;;  %v7966_v16 = vpack.c.bf16 %v7931_v62, %v7930_v55  ;;  %v7947_v55 = vld [vmem:[#allocation2 + $0x8a] sm:$0xff] }
 0x6d3   : > { %v7379_v42 = vpack.c.bf16 %v7361_v35, %v7360_v19  ;;  %v7944_v62 = vld [vmem:[#allocation2 + $0x72] sm:$0xff] }
 0x6d9   : > { %15464 = vmatmul.mubr.msk.bf16.gmra.mrb[52].mxu0 %vm321_vm0, %v7371_v49  ;;  %v7934_v49 = vld [vmem:[#allocation2 + $0x22] sm:$0xff] }
 0x6da   : > { %15467 = vmatprep.mubr.msk.bf16.mxu0 %vm321_vm0, %v7372_v53  ;;  %v7935_v53 = vld [vmem:[#allocation2 + $0x2a] sm:$0xff] }
 0x6db   : > { %v19057_v2 = vpack.c.bf16 %v7935_v53, %v7934_v49  ;;  %v7948_v49 = vld [vmem:[#allocation2 + $0x92] sm:$0xff] }
 0x6e1   : > { %15468 = vmatmul.mubr.msk.bf16.gmra.mrb[56].mxu0 %vm321_vm0, %v7373_v43  ;;  %v19067_v43 = vld [vmem:[%s20796_s1 + $0x160] sm:$0xff]  }
 0x6e2   : > { %15471 = vmatprep.mubr.msk.bf16.mxu0 %vm321_vm0, %v7374_v45  ;;  %v7937_v45 = vld [vmem:[#allocation2 + $0x3a] sm:$0xff] }
 0x6e3   : > { %v7969_v29 = vpack.c.bf16 %v7937_v45, %v7936_v17  ;;  %v7954_v45 = vld [vmem:[#allocation2 + $0xc2] sm:$0xff] }
 0x6e9   : > { %15472 = vmatmul.mubr.msk.bf16.gmra.mrb[60].mxu0 %vm321_vm0, %v7375_v46  ;;  %v19070_v46 = vpack.c.bf16 %v7939_v23, %v7938_v61  ;;  %v7955_v61 = vld [vmem:[#allocation2 + $0xca] sm:$0xff]  ;;  %v7952_v23 = vld [vmem:[#allocation2 + $0xb2] sm:$0xff] }
 0x6ea   : > { %15475 = vmatprep.mubr.msk.bf16.mxu0 %vm321_vm0, %v7376_v22  ;;  %v7942_v22 = vld [vmem:[#allocation2 + $0x62] sm:$0xff] }
 0x6eb   : > { %v7972_v57 = vpack.c.bf16 %v7943_v54, %v7942_v22  ;;  %v7957_v22 = vld [vmem:[#allocation2 + $0xda] sm:$0xff]  ;;  %v7958_v54 = vld [vmem:[#allocation2 + $0xe2] sm:$0xff] }
 0x6f1   : > { %15476 = vmatmul.mubr.msk.bf16.gmra.mrb[64].mxu0 %vm321_vm0, %v7377_v58  ;;  %v7945_v58 = vld [vmem:[#allocation2 + $0x7a] sm:$0xff] }
 0x6f2   : > { %15479 = vmatprep.mubr.msk.bf16.mxu0 %vm321_vm0, %v7378_v24  ;;  %v7946_v24 = vld [vmem:[#allocation2 + $0x82] sm:$0xff]  ;;  %v7973_v35 = vpack.c.bf16 %v7945_v58, %v7944_v62  ;;  %v7956_v58 = vld [vmem:[#allocation2 + $0xd2] sm:$0xff]  ;;  %v7961_v62 = vld [vmem:[#allocation2 + $0xfa] sm:$0xff] }
 0x6f3   : > { %v7974_v19 = vpack.c.bf16 %v7947_v55, %v7946_v24  ;;  %v7979_v24 = vpack.c.bf16 %v7957_v22, %v7956_v58  ;;  %v17012_v22 = vld [vmem:[%s20796_s1 + $0x168] sm:$0xff]  }
 0x6f4   : > { %v8613_v58 = vld [vmem:[#allocation2 + $0x4b] sm:$0xff] }
 0x6f9   : > { %15480 = vmatmul.mubr.msk.bf16.gmra.mrb[68].mxu0 %vm321_vm0, %v7379_v42  ;;  %v7950_v42 = vld [vmem:[#allocation2 + $0xa2] sm:$0xff] }
 0x6fa   : > { %15487 = vmatprep.mubr.msk.bf16.mxu0 %vm321_vm0, %v7966_v16  ;;  %v7949_v16 = vld [vmem:[#allocation2 + $0x9a] sm:$0xff]  ;;  %v7976_v30 = vpack.c.bf16 %v7951_v11, %v7950_v42  ;;  %v7963_v42 = vld [vmem:[#allocation2 + $0x10a] sm:$0xff]  ;;  %v7960_v11 = vld [vmem:[#allocation2 + $0xf2] sm:$0xff] }
 0x6fb   : > { %v7975_v53 = vpack.c.bf16 %v7949_v16, %v7948_v49  ;;  %v7962_v16 = vld [vmem:[#allocation2 + $0x102] sm:$0xff]  ;;  %v7981_v49 = vpack.c.bf16 %v7961_v62, %v7960_v11  ;;  %v8617_v11 = vld [vmem:[#allocation2 + $0x6b] sm:$0xff] }
 0x701   : > { %15488 = vmatmul.mubr.msk.bf16.vlgmr.msra.gmra.mrb[36].mxu0 %vm321_vm0, %v19052_v12 }
 0x702   : > { %15524 = vmatpush3.bf16.msra.mxu0 %v19033_v50  ;;  %15491 = vmatprep.mubr.msk.bf16.mxu0 %vm321_vm0, %v19057_v2  ;;  %v7941_v50 = vld [vmem:[#allocation2 + $0x5a] sm:$0xff] }
 0x703   : > { %15525 = vmatprep.subr.bf16.mxu0 %v17010_v47  ;;  %v7971_v7 = vpack.c.bf16 %v7941_v50, %v7940_v60  ;;  %v7978_v50 = vpack.c.bf16 %v7955_v61, %v7954_v45  ;;  %v7959_v60 = vld [vmem:[#allocation2 + $0xea] sm:$0xff]  ;;  %v7965_v45 = vld [vmem:[#allocation2 + $0x11a] sm:$0xff]  ;;  %v7964_v61 = vld [vmem:[#allocation2 + $0x112] sm:$0xff] }
 0x704   : > { %v7980_v55 = vpack.c.bf16 %v7959_v60, %v7958_v54  ;;  %v17013_v54 = vld [vmem:[%s20796_s1 + $0x170] sm:$0xff]   ;;  %v19125_v60 = vld [vmem:[%s20796_s1 + $0x180] sm:$0xff]  }
 0x706   : > { %15526 = vmatpush3.bf16.msra.mxu0 %v17010_v47  ;;  %v7953_v47 = vld [vmem:[#allocation2 + $0xba] sm:$0xff] }
 0x707   : > { %15563 = vmatprep.subr.bf16.mxu0 %v19067_v43  ;;  %v7977_v17 = vpack.c.bf16 %v7953_v47, %v7952_v23  ;;  %v7982_v47 = vpack.c.bf16 %v7963_v42, %v7962_v16  ;;  %v7983_v23 = vpack.c.bf16 %v7965_v45, %v7964_v61  ;;  %v8614_v16 = vld [vmem:[#allocation2 + $0x53] sm:$0xff] }
 0x708   : > { %v8618_v61 = vld [vmem:[#allocation2 + $0x73] sm:$0xff] }
 0x709   : > { %15492 = vmatmul.mubr.msk.bf16.gmra.mrb[40].mxu0 %vm321_vm0, %v7969_v29 }
 0x70a   : > { %15495 = vmatprep.mubr.msk.bf16.mxu0 %vm321_vm0, %v19070_v46 }
 0x711   : > { %15496 = vmatmul.mubr.msk.bf16.gmra.mrb[44].mxu0 %vm321_vm0, %v7971_v7 }
 0x712   : > { %15499 = vmatprep.mubr.msk.bf16.mxu0 %vm321_vm0, %v7972_v57 }
 0x719   : > { %15500 = vmatmul.mubr.msk.bf16.gmra.mrb[48].mxu0 %vm321_vm0, %v7973_v35 }
 0x71a   : > { %15503 = vmatprep.mubr.msk.bf16.mxu0 %vm321_vm0, %v7974_v19 }
 0x721   : > { %15504 = vmatmul.mubr.msk.bf16.gmra.mrb[52].mxu0 %vm321_vm0, %v7975_v53 }
 0x722   : > { %15507 = vmatprep.mubr.msk.bf16.mxu0 %vm321_vm0, %v7976_v30 }
 0x729   : > { %15508 = vmatmul.mubr.msk.bf16.gmra.mrb[56].mxu0 %vm321_vm0, %v7977_v17 }
 0x72a   : > { %15511 = vmatprep.mubr.msk.bf16.mxu0 %vm321_vm0, %v7978_v50 }
 0x731   : > { %15512 = vmatmul.mubr.msk.bf16.gmra.mrb[60].mxu0 %vm321_vm0, %v7979_v24 }
 0x732   : > { %15515 = vmatprep.mubr.msk.bf16.mxu0 %vm321_vm0, %v7980_v55 }
 0x739   : > { %15516 = vmatmul.mubr.msk.bf16.gmra.mrb[64].mxu0 %vm321_vm0, %v7981_v49 }
 0x73a   : > { %15519 = vmatprep.mubr.msk.bf16.mxu0 %vm321_vm0, %v7982_v47 }
 0x741   : > { %15520 = vmatmul.mubr.msk.bf16.gmra.mrb[68].mxu0 %vm321_vm0, %v7983_v23 }
 0x742   : > { %15527 = vmatprep.mubr.msk.bf16.mxu0 %vm321_vm0, %v19052_v12  ;;  %v8302_v12 = vld [vmem:[#allocation2 + $0x122] sm:$0xff] }
 0x749   : > { %15528 = vmatmul.mubr.msk.bf16.vlgmr.msra.gmra.mrb[36].mxu0 %vm321_vm0, %v19057_v2  ;;  %v8303_v2 = vld [vmem:[#allocation2 + $0x12a] sm:$0xff] }
 0x74a   : > { %15564 = vmatpush3.bf16.msra.mxu0 %v19067_v43  ;;  %15531 = vmatprep.mubr.msk.bf16.mxu0 %vm321_vm0, %v7969_v29  ;;  %v8607_v43 = vld [vmem:[#allocation2 + $0x1b] sm:$0xff]  ;;  %v8321_v29 = vpack.c.bf16 %v8303_v2, %v8302_v12  ;;  %v8620_v12 = vld [vmem:[#allocation2 + $0x83] sm:$0xff] }
 0x74b   : > { %15565 = vmatprep.subr.bf16.mxu0 %v17012_v22 }
 0x74e   : > { %15566 = vmatpush3.bf16.msra.mxu0 %v17012_v22  ;;  %v8621_v22 = vld [vmem:[#allocation2 + $0x8b] sm:$0xff] }
 0x74f   : > { %15603 = vmatprep.subr.bf16.mxu0 %v17013_v54  ;;  %v8649_v2 = vpack.c.bf16 %v8621_v22, %v8620_v12 }
 0x751   : > { %15532 = vmatmul.mubr.msk.bf16.gmra.mrb[40].mxu0 %vm321_vm0, %v19070_v46  ;;  %v8606_v46 = vld [vmem:[#allocation2 + $0x13] sm:$0xff] }
 0x752   : > { %15535 = vmatprep.mubr.msk.bf16.mxu0 %vm321_vm0, %v7971_v7  ;;  %v8642_v7 = vpack.c.bf16 %v8607_v43, %v8606_v46  ;;  %v8622_v43 = vld [vmem:[#allocation2 + $0x93] sm:$0xff]  ;;  %v8625_v46 = vld [vmem:[#allocation2 + $0xab] sm:$0xff] }
 0x759   : > { %15536 = vmatmul.mubr.msk.bf16.gmra.mrb[44].mxu0 %vm321_vm0, %v7972_v57  ;;  %v8609_v57 = vld [vmem:[#allocation2 + $0x2b] sm:$0xff] }
 0x75a   : > { %15539 = vmatprep.mubr.msk.bf16.mxu0 %vm321_vm0, %v7973_v35  ;;  %v8611_v35 = vld [vmem:[#allocation2 + $0x3b] sm:$0xff] }
 0x761   : > { %15540 = vmatmul.mubr.msk.bf16.gmra.mrb[48].mxu0 %vm321_vm0, %v7974_v19  ;;  %v8608_v19 = vld [vmem:[#allocation2 + $0x23] sm:$0xff] }
 0x762   : > { %15543 = vmatprep.mubr.msk.bf16.mxu0 %vm321_vm0, %v7975_v53  ;;  %v8643_v53 = vpack.c.bf16 %v8609_v57, %v8608_v19  ;;  %v8624_v57 = vld [vmem:[#allocation2 + $0xa3] sm:$0xff]  ;;  %v8626_v19 = vld [vmem:[#allocation2 + $0xb3] sm:$0xff] }
 0x769   : > { %15544 = vmatmul.mubr.msk.bf16.gmra.mrb[52].mxu0 %vm321_vm0, %v7976_v30  ;;  %v8610_v30 = vld [vmem:[#allocation2 + $0x33] sm:$0xff] }
 0x76a   : > { %15547 = vmatprep.mubr.msk.bf16.mxu0 %vm321_vm0, %v7977_v17  ;;  %v17014_v17 = vld [vmem:[%s20796_s1 + $0x178] sm:$0xff]  }
 0x771   : > { %15548 = vmatmul.mubr.msk.bf16.gmra.mrb[56].mxu0 %vm321_vm0, %v7978_v50  ;;  %v8644_v50 = vpack.c.bf16 %v8611_v35, %v8610_v30  ;;  %v8651_v35 = vpack.c.bf16 %v8625_v46, %v8624_v57  ;;  %v8629_v30 = vld [vmem:[#allocation2 + $0xcb] sm:$0xff]  ;;  %v8640_v46 = vld [vmem:[#allocation2 + $0x123] sm:$0xff] }
 0x772   : > { %15551 = vmatprep.mubr.msk.bf16.mxu0 %vm321_vm0, %v7979_v24  ;;  %v8615_v24 = vld [vmem:[#allocation2 + $0x5b] sm:$0xff] }
 0x773   : > { %v8646_v42 = vpack.c.bf16 %v8615_v24, %v8614_v16  ;;  %v8630_v24 = vld [vmem:[#allocation2 + $0xd3] sm:$0xff]  ;;  %v8635_v16 = vld [vmem:[#allocation2 + $0xfb] sm:$0xff] }
 0x779   : > { %15552 = vmatmul.mubr.msk.bf16.gmra.mrb[60].mxu0 %vm321_vm0, %v7980_v55  ;;  %v8612_v55 = vld [vmem:[#allocation2 + $0x43] sm:$0xff] }
 0x77a   : > { %15555 = vmatprep.mubr.msk.bf16.mxu0 %vm321_vm0, %v7981_v49  ;;  %v8645_v62 = vpack.c.bf16 %v8613_v58, %v8612_v55  ;;  %v8619_v49 = vld [vmem:[#allocation2 + $0x7b] sm:$0xff] }
 0x781   : > { %15556 = vmatmul.mubr.msk.bf16.gmra.mrb[64].mxu0 %vm321_vm0, %v7982_v47  ;;  %v8616_v47 = vld [vmem:[#allocation2 + $0x63] sm:$0xff] }
 0x782   : > { %15559 = vmatprep.mubr.msk.bf16.mxu0 %vm321_vm0, %v7983_v23  ;;  %v8647_v45 = vpack.c.bf16 %v8617_v11, %v8616_v47  ;;  %v8648_v23 = vpack.c.bf16 %v8619_v49, %v8618_v61  ;;  %v8634_v49 = vld [vmem:[#allocation2 + $0xf3] sm:$0xff]  ;;  %v8639_v61 = vld [vmem:[#allocation2 + $0x11b] sm:$0xff] }
 0x783   : > { %v8656_v47 = vpack.c.bf16 %v8635_v16, %v8634_v49  ;;  %v8953_v16 = vld [vmem:[#allocation2 + $0x5c] sm:$0xff] }
 0x789   : > { %15560 = vmatmul.mubr.msk.bf16.gmra.mrb[68].mxu0 %vm321_vm0, %v8321_v29 }
 0x78a   : > { %15567 = vmatprep.mubr.msk.bf16.mxu0 %vm321_vm0, %v8642_v7  ;;  %v8627_v7 = vld [vmem:[#allocation2 + $0xbb] sm:$0xff] }
 0x791   : > { %15568 = vmatmul.mubr.msk.bf16.vlgmr.msra.gmra.mrb[36].mxu0 %vm321_vm0, %v8643_v53  ;;  %v8652_v53 = vpack.c.bf16 %v8627_v7, %v8626_v19  ;;  %v8948_v19 = vld [vmem:[#allocation2 + $0x34] sm:$0xff] }
 0x792   : > { %15604 = vmatpush3.bf16.msra.mxu0 %v17013_v54  ;;  %15571 = vmatprep.mubr.msk.bf16.mxu0 %vm321_vm0, %v8644_v50  ;;  %v8623_v54 = vld [vmem:[#allocation2 + $0x9b] sm:$0xff]  ;;  %v8628_v50 = vld [vmem:[#allocation2 + $0xc3] sm:$0xff] }
 0x793   : > { %15605 = vmatprep.subr.bf16.mxu0 %v17014_v17  ;;  %v8650_v29 = vpack.c.bf16 %v8623_v54, %v8622_v43  ;;  %v8653_v58 = vpack.c.bf16 %v8629_v30, %v8628_v50  ;;  %v8638_v54 = vld [vmem:[#allocation2 + $0x113] sm:$0xff]  ;;  %v8946_v30 = vld [vmem:[#allocation2 + $0x24] sm:$0xff] }
 0x794   : > { %v8658_v12 = vpack.c.bf16 %v8639_v61, %v8638_v54  ;;  %v8944_v43 = vld [vmem:[#allocation2 + $0x14] sm:$0xff]  ;;  %v17016_v50 = vld [vmem:[%s20796_s1 + $0x188] sm:$0xff]  }
 0x795   : > { %v8954_v61 = vld [vmem:[#allocation2 + $0x64] sm:$0xff]  ;;  %v8959_v54 = vld [vmem:[#allocation2 + $0x8c] sm:$0xff] }
 0x796   : > { %15606 = vmatpush3.bf16.msra.mxu0 %v17014_v17  ;;  %v8631_v17 = vld [vmem:[#allocation2 + $0xdb] sm:$0xff] }
 0x797   : > { %15643 = vmatprep.subr.bf16.mxu0 %v19125_v60  ;;  %v8654_v55 = vpack.c.bf16 %v8631_v17, %v8630_v24  ;;  %v19159_v24 = vld [vmem:[%s20796_s1 + $0x190] sm:$0xff]  }
 0x799   : > { %15572 = vmatmul.mubr.msk.bf16.gmra.mrb[40].mxu0 %vm321_vm0, %v8645_v62  ;;  %v8633_v62 = vld [vmem:[#allocation2 + $0xeb] sm:$0xff] }
 0x79a   : > { %15575 = vmatprep.mubr.msk.bf16.mxu0 %vm321_vm0, %v8646_v42  ;;  %v8632_v42 = vld [vmem:[#allocation2 + $0xe3] sm:$0xff] }
 0x79b   : > { %v8655_v11 = vpack.c.bf16 %v8633_v62, %v8632_v42  ;;  %v8952_v62 = vld [vmem:[#allocation2 + $0x54] sm:$0xff]  ;;  %v8950_v42 = vld [vmem:[#allocation2 + $0x44] sm:$0xff] }
 0x79c   : > { %v19162_v49 = vpack.c.bf16 %v8953_v16, %v8952_v62  ;;  %v8969_v62 = vld [vmem:[#allocation2 + $0xdc] sm:$0xff]  ;;  %v8966_v16 = vld [vmem:[#allocation2 + $0xc4] sm:$0xff] }
 0x7a1   : > { %15576 = vmatmul.mubr.msk.bf16.gmra.mrb[44].mxu0 %vm321_vm0, %v8647_v45  ;;  %v8637_v45 = vld [vmem:[#allocation2 + $0x10b] sm:$0xff] }
 0x7a2   : > { %15579 = vmatprep.mubr.msk.bf16.mxu0 %vm321_vm0, %v8648_v23  ;;  %v8636_v23 = vld [vmem:[#allocation2 + $0x103] sm:$0xff] }
 0x7a3   : > { %v8657_v22 = vpack.c.bf16 %v8637_v45, %v8636_v23  ;;  %v8957_v45 = vld [vmem:[#allocation2 + $0x7c] sm:$0xff] }
 0x7a9   : > { %15580 = vmatmul.mubr.msk.bf16.gmra.mrb[48].mxu0 %vm321_vm0, %v8649_v2  ;;  %v8641_v2 = vld [vmem:[#allocation2 + $0x12b] sm:$0xff] }
 0x7aa   : > { %15583 = vmatprep.mubr.msk.bf16.mxu0 %vm321_vm0, %v8650_v29  ;;  %v8945_v29 = vld [vmem:[#allocation2 + $0x1c] sm:$0xff]  ;;  %v8659_v7 = vpack.c.bf16 %v8641_v2, %v8640_v46 }
 0x7ab   : > { %v8980_v57 = vpack.c.bf16 %v8945_v29, %v8944_v43  ;;  %v8961_v2 = vld [vmem:[#allocation2 + $0x9c] sm:$0xff]  ;;  %v8958_v43 = vld [vmem:[#allocation2 + $0x84] sm:$0xff] }
 0x7ac   : > { %v8987_v29 = vpack.c.bf16 %v8959_v54, %v8958_v43  ;;  %v8970_v54 = vld [vmem:[#allocation2 + $0xe4] sm:$0xff]  ;;  %v8975_v43 = vld [vmem:[#allocation2 + $0x10c] sm:$0xff] }
 0x7b1   : > { %15584 = vmatmul.mubr.msk.bf16.gmra.mrb[52].mxu0 %vm321_vm0, %v8651_v35  ;;  %v8947_v35 = vld [vmem:[#allocation2 + $0x2c] sm:$0xff] }
 0x7b2   : > { %15587 = vmatprep.mubr.msk.bf16.mxu0 %vm321_vm0, %v8652_v53  ;;  %v8949_v53 = vld [vmem:[#allocation2 + $0x3c] sm:$0xff]  ;;  %v19144_v17 = vpack.c.bf16 %v8947_v35, %v8946_v30 }
 0x7b3   : > { %v8965_v35 = vld [vmem:[#allocation2 + $0xbc] sm:$0xff] }
 0x7b9   : > { %15588 = vmatmul.mubr.msk.bf16.gmra.mrb[56].mxu0 %vm321_vm0, %v8653_v58  ;;  %v19149_v58 = vpack.c.bf16 %v8949_v53, %v8948_v19  ;;  %v8962_v19 = vld [vmem:[#allocation2 + $0xa4] sm:$0xff] }
 0x7ba   : > { %15591 = vmatprep.mubr.msk.bf16.mxu0 %vm321_vm0, %v8654_v55  ;;  %v8951_v55 = vld [vmem:[#allocation2 + $0x4c] sm:$0xff] }
 0x7c1   : > { %15592 = vmatmul.mubr.msk.bf16.gmra.mrb[60].mxu0 %vm321_vm0, %v8655_v11  ;;  %v8983_v11 = vpack.c.bf16 %v8951_v55, %v8950_v42  ;;  %v8968_v55 = vld [vmem:[#allocation2 + $0xd4] sm:$0xff] }
 0x7c2   : > { %15595 = vmatprep.mubr.msk.bf16.mxu0 %vm321_vm0, %v8656_v47  ;;  %v8956_v47 = vld [vmem:[#allocation2 + $0x74] sm:$0xff] }
 0x7c9   : > { %15596 = vmatmul.mubr.msk.bf16.gmra.mrb[64].mxu0 %vm321_vm0, %v8657_v22  ;;  %v8986_v22 = vpack.c.bf16 %v8957_v45, %v8956_v47  ;;  %v8971_v47 = vld [vmem:[#allocation2 + $0xec] sm:$0xff]  ;;  %v8972_v45 = vld [vmem:[#allocation2 + $0xf4] sm:$0xff] }
 0x7ca   : > { %15599 = vmatprep.mubr.msk.bf16.mxu0 %vm321_vm0, %v8658_v12  ;;  %v8960_v12 = vld [vmem:[#allocation2 + $0x94] sm:$0xff] }
 0x7cb   : > { %v8988_v46 = vpack.c.bf16 %v8961_v2, %v8960_v12  ;;  %v8993_v12 = vpack.c.bf16 %v8971_v47, %v8970_v54  ;;  %v17018_v47 = vld [vmem:[%s20796_s1 + $0x198] sm:$0xff]  }
 0x7cc   : > { %v9627_v54 = vld [vmem:[#allocation2 + $0x5d] sm:$0xff] }
 0x7d1   : > { %15600 = vmatmul.mubr.msk.bf16.gmra.mrb[68].mxu0 %vm321_vm0, %v8659_v7  ;;  %v8963_v7 = vld [vmem:[#allocation2 + $0xac] sm:$0xff] }
 0x7d2   : > { %15607 = vmatprep.mubr.msk.bf16.mxu0 %vm321_vm0, %v8980_v57  ;;  %v8964_v57 = vld [vmem:[#allocation2 + $0xb4] sm:$0xff]  ;;  %v8989_v53 = vpack.c.bf16 %v8963_v7, %v8962_v19 }
 0x7d3   : > { %v8990_v30 = vpack.c.bf16 %v8965_v35, %v8964_v57  ;;  %v8976_v7 = vld [vmem:[#allocation2 + $0x114] sm:$0xff]  ;;  %v8977_v57 = vld [vmem:[#allocation2 + $0x11c] sm:$0xff]  ;;  %v8974_v35 = vld [vmem:[#allocation2 + $0x104] sm:$0xff] }
 0x7d4   : > { %v8995_v19 = vpack.c.bf16 %v8975_v43, %v8974_v35  ;;  %v9628_v43 = vld [vmem:[#allocation2 + $0x65] sm:$0xff] }
 0x7d5   : > { %v10507_v35 = vld [vmem:[%s20798_s3 + $0x28] sm:$0xff] }
 0x7d9   : > { %15608 = vmatmul.mubr.msk.bf16.vlgmr.msra.gmra.mrb[36].mxu0 %vm321_vm0, %v19144_v17 }
 0x7da   : > { %15644 = vmatpush3.bf16.msra.mxu0 %v19125_v60  ;;  %15611 = vmatprep.mubr.msk.bf16.mxu0 %vm321_vm0, %v19149_v58  ;;  %v8955_v60 = vld [vmem:[#allocation2 + $0x6c] sm:$0xff] }
 0x7db   : > { %15645 = vmatprep.subr.bf16.mxu0 %v17016_v50  ;;  %v8985_v23 = vpack.c.bf16 %v8955_v60, %v8954_v61  ;;  %v8992_v60 = vpack.c.bf16 %v8969_v62, %v8968_v55  ;;  %v8973_v61 = vld [vmem:[#allocation2 + $0xfc] sm:$0xff]  ;;  %v8978_v55 = vld [vmem:[#allocation2 + $0x124] sm:$0xff]  ;;  %v8979_v62 = vld [vmem:[#allocation2 + $0x12c] sm:$0xff] }
 0x7dc   : > { %v8994_v2 = vpack.c.bf16 %v8973_v61, %v8972_v45  ;;  %v17019_v45 = vld [vmem:[%s20796_s1 + $0x1a0] sm:$0xff]   ;;  %v9626_v61 = vld [vmem:[#allocation2 + $0x55] sm:$0xff] }
 0x7de   : > { %15646 = vmatpush3.bf16.msra.mxu0 %v17016_v50  ;;  %v8967_v50 = vld [vmem:[#allocation2 + $0xcc] sm:$0xff] }
 0x7df   : > { %15683 = vmatprep.subr.bf16.mxu0 %v19159_v24  ;;  %v8991_v42 = vpack.c.bf16 %v8967_v50, %v8966_v16  ;;  %v8996_v50 = vpack.c.bf16 %v8977_v57, %v8976_v7  ;;  %v8997_v16 = vpack.c.bf16 %v8979_v62, %v8978_v55  ;;  %v10503_v57 = vld [vmem:[%s20798_s3 + $0x8] sm:$0xff]  ;;  %v9630_v55 = vld [vmem:[#allocation2 + $0x75] sm:$0xff]  ;;  %v9631_v62 = vld [vmem:[#allocation2 + $0x7d] sm:$0xff] }
 0x7e1   : > { %15612 = vmatmul.mubr.msk.bf16.gmra.mrb[40].mxu0 %vm321_vm0, %v8983_v11 }
 0x7e2   : > { %15615 = vmatprep.mubr.msk.bf16.mxu0 %vm321_vm0, %v19162_v49 }
 0x7e9   : > { %15616 = vmatmul.mubr.msk.bf16.gmra.mrb[44].mxu0 %vm321_vm0, %v8985_v23 }
 0x7ea   : > { %15619 = vmatprep.mubr.msk.bf16.mxu0 %vm321_vm0, %v8986_v22 }
 0x7f1   : > { %15620 = vmatmul.mubr.msk.bf16.gmra.mrb[48].mxu0 %vm321_vm0, %v8987_v29 }
 0x7f2   : > { %15623 = vmatprep.mubr.msk.bf16.mxu0 %vm321_vm0, %v8988_v46 }
 0x7f9   : > { %15624 = vmatmul.mubr.msk.bf16.gmra.mrb[52].mxu0 %vm321_vm0, %v8989_v53 }
 0x7fa   : > { %15627 = vmatprep.mubr.msk.bf16.mxu0 %vm321_vm0, %v8990_v30 }
 0x801   : > { %15628 = vmatmul.mubr.msk.bf16.gmra.mrb[56].mxu0 %vm321_vm0, %v8991_v42 }
 0x802   : > { %15631 = vmatprep.mubr.msk.bf16.mxu0 %vm321_vm0, %v8992_v60 }
 0x809   : > { %15632 = vmatmul.mubr.msk.bf16.gmra.mrb[60].mxu0 %vm321_vm0, %v8993_v12 }
 0x80a   : > { %15635 = vmatprep.mubr.msk.bf16.mxu0 %vm321_vm0, %v8994_v2 }
 0x811   : > { %15636 = vmatmul.mubr.msk.bf16.gmra.mrb[64].mxu0 %vm321_vm0, %v8995_v19 }
 0x812   : > { %15639 = vmatprep.mubr.msk.bf16.mxu0 %vm321_vm0, %v8996_v50 }
 0x819   : > { %15640 = vmatmul.mubr.msk.bf16.gmra.mrb[68].mxu0 %vm321_vm0, %v8997_v16 }
 0x81a   : > { %15647 = vmatprep.mubr.msk.bf16.mxu0 %vm321_vm0, %v19144_v17  ;;  %v9316_v17 = vld [vmem:[#allocation2 + $0x134] sm:$0xff] }
 0x821   : > { %15648 = vmatmul.mubr.msk.bf16.vlgmr.msra.gmra.mrb[36].mxu0 %vm321_vm0, %v19149_v58  ;;  %v9317_v58 = vld [vmem:[#allocation2 + $0x13c] sm:$0xff] }
 0x822   : > { %15684 = vmatpush3.bf16.msra.mxu0 %v19159_v24  ;;  %15651 = vmatprep.mubr.msk.bf16.mxu0 %vm321_vm0, %v8983_v11  ;;  %v9335_v24 = vpack.c.bf16 %v9317_v58, %v9316_v17  ;;  %v9621_v11 = vld [vmem:[#allocation2 + $0x2d] sm:$0xff]  ;;  %v9634_v58 = vld [vmem:[#allocation2 + $0x95] sm:$0xff] }
 0x823   : > { %15685 = vmatprep.subr.bf16.mxu0 %v17018_v47 }
 0x826   : > { %15686 = vmatpush3.bf16.msra.mxu0 %v17018_v47  ;;  %v9661_v47 = vpack.c.bf16 %v9631_v62, %v9630_v55  ;;  %v9649_v55 = vld [vmem:[#allocation2 + $0x10d] sm:$0xff] }
 0x827   : > { %15723 = vmatprep.subr.bf16.mxu0 %v17019_v45 }
 0x829   : > { %15652 = vmatmul.mubr.msk.bf16.gmra.mrb[40].mxu0 %vm321_vm0, %v19162_v49  ;;  %v9620_v49 = vld [vmem:[#allocation2 + $0x25] sm:$0xff] }
 0x82a   : > { %15655 = vmatprep.mubr.msk.bf16.mxu0 %vm321_vm0, %v8985_v23  ;;  %v9656_v23 = vpack.c.bf16 %v9621_v11, %v9620_v49  ;;  %v9637_v11 = vld [vmem:[#allocation2 + $0xad] sm:$0xff] }
 0x831   : > { %15656 = vmatmul.mubr.msk.bf16.gmra.mrb[44].mxu0 %vm321_vm0, %v8986_v22  ;;  %v9622_v22 = vld [vmem:[#allocation2 + $0x35] sm:$0xff] }
 0x832   : > { %15659 = vmatprep.mubr.msk.bf16.mxu0 %vm321_vm0, %v8987_v29  ;;  %v9623_v29 = vld [vmem:[#allocation2 + $0x3d] sm:$0xff] }
 0x839   : > { %15660 = vmatmul.mubr.msk.bf16.gmra.mrb[48].mxu0 %vm321_vm0, %v8988_v46  ;;  %v9625_v46 = vld [vmem:[#allocation2 + $0x4d] sm:$0xff] }
 0x83a   : > { %15663 = vmatprep.mubr.msk.bf16.mxu0 %vm321_vm0, %v8989_v53  ;;  %v9657_v53 = vpack.c.bf16 %v9623_v29, %v9622_v22  ;;  %v9638_v29 = vld [vmem:[#allocation2 + $0xb5] sm:$0xff] }
 0x841   : > { %15664 = vmatmul.mubr.msk.bf16.gmra.mrb[52].mxu0 %vm321_vm0, %v8990_v30  ;;  %v9624_v30 = vld [vmem:[#allocation2 + $0x45] sm:$0xff] }
 0x842   : > { %15667 = vmatprep.mubr.msk.bf16.mxu0 %vm321_vm0, %v8991_v42  ;;  %v17020_v42 = vld [vmem:[%s20796_s1 + $0x1a8] sm:$0xff]  }
 0x849   : > { %15668 = vmatmul.mubr.msk.bf16.gmra.mrb[56].mxu0 %vm321_vm0, %v8992_v60  ;;  %v9658_v60 = vpack.c.bf16 %v9625_v46, %v9624_v30  ;;  %v9639_v46 = vld [vmem:[#allocation2 + $0xbd] sm:$0xff] }
 0x84a   : > { %15671 = vmatprep.mubr.msk.bf16.mxu0 %vm321_vm0, %v8993_v12  ;;  %v9629_v12 = vld [vmem:[#allocation2 + $0x6d] sm:$0xff]  ;;  %v9665_v30 = vpack.c.bf16 %v9639_v46, %v9638_v29 }
 0x84b   : > { %v9660_v7 = vpack.c.bf16 %v9629_v12, %v9628_v43  ;;  %v9645_v12 = vld [vmem:[#allocation2 + $0xed] sm:$0xff]  ;;  %v9644_v43 = vld [vmem:[#allocation2 + $0xe5] sm:$0xff] }
 0x84c   : > { %v9959_v46 = vld [vmem:[#allocation2 + $0x2e] sm:$0xff] }
 0x851   : > { %15672 = vmatmul.mubr.msk.bf16.gmra.mrb[60].mxu0 %vm321_vm0, %v8994_v2  ;;  %v9659_v2 = vpack.c.bf16 %v9627_v54, %v9626_v61  ;;  %v9642_v61 = vld [vmem:[#allocation2 + $0xd5] sm:$0xff]  ;;  %v9643_v54 = vld [vmem:[#allocation2 + $0xdd] sm:$0xff] }
 0x852   : > { %15675 = vmatprep.mubr.msk.bf16.mxu0 %vm321_vm0, %v8995_v19  ;;  %v19222_v19 = vcombine.low %v10503_v57, %v10507_v35 }
 0x859   : > { %15676 = vmatmul.mubr.msk.bf16.gmra.mrb[64].mxu0 %vm321_vm0, %v8996_v50  ;;  %v19224_v50 = vcombine.high %v10503_v57, %v10507_v35  ;;  %v9646_v57 = vld [vmem:[#allocation2 + $0xf5] sm:$0xff]  ;;  %v9647_v35 = vld [vmem:[#allocation2 + $0xfd] sm:$0xff] }
 0x85a   : > { %15679 = vmatprep.mubr.msk.bf16.mxu0 %vm321_vm0, %v8997_v16  ;;  %v9633_v16 = vld [vmem:[#allocation2 + $0x8d] sm:$0xff]  ;;  %v9669_v62 = vpack.c.bf16 %v9647_v35, %v9646_v57 }
 0x85b   : > { %15763 = vmatprep.subr.bf16.mxu1 %v19224_v50  ;;  %v9967_v57 = vld [vmem:[#allocation2 + $0x6e] sm:$0xff] }
 0x85c   : > { %15765 = vmatpush1.bf16.msra.mxu1 %v19222_v19 }
 0x861   : > { %15680 = vmatmul.mubr.msk.bf16.gmra.mrb[68].mxu0 %vm321_vm0, %v9335_v24  ;;  %v9635_v24 = vld [vmem:[#allocation2 + $0x9d] sm:$0xff] }
 0x862   : > { %15687 = vmatprep.mubr.msk.bf16.mxu0 %vm321_vm0, %v9656_v23  ;;  %v9663_v49 = vpack.c.bf16 %v9635_v24, %v9634_v58  ;;  %v9636_v23 = vld [vmem:[#allocation2 + $0xa5] sm:$0xff]  ;;  %v9653_v24 = vld [vmem:[#allocation2 + $0x12d] sm:$0xff] }
 0x863   : > { %v9664_v22 = vpack.c.bf16 %v9637_v11, %v9636_v23  ;;  %v9652_v58 = vld [vmem:[#allocation2 + $0x125] sm:$0xff]  ;;  %v9654_v23 = vld [vmem:[#allocation2 + $0x135] sm:$0xff] }
 0x869   : > { %15688 = vmatmul.mubr.msk.bf16.vlgmr.msra.gmra.mrb[36].mxu0 %vm321_vm0, %v9657_v53  ;;  %v9641_v53 = vld [vmem:[#allocation2 + $0xcd] sm:$0xff] }
 0x86a   : > { %15724 = vmatpush3.bf16.msra.mxu0 %v17019_v45  ;;  %15691 = vmatprep.mubr.msk.bf16.mxu0 %vm321_vm0, %v9658_v60  ;;  %v9632_v45 = vld [vmem:[#allocation2 + $0x85] sm:$0xff] }
 0x86b   : > { %15725 = vmatprep.subr.bf16.mxu0 %v17020_v42  ;;  %v9662_v17 = vpack.c.bf16 %v9633_v16, %v9632_v45  ;;  %v9648_v16 = vld [vmem:[#allocation2 + $0x105] sm:$0xff]  ;;  %v9650_v45 = vld [vmem:[#allocation2 + $0x115] sm:$0xff] }
 0x86e   : > { %15726 = vmatpush3.bf16.msra.mxu0 %v17020_v42  ;;  %v9640_v42 = vld [vmem:[#allocation2 + $0xc5] sm:$0xff] }
 0x86f   : > { %v9666_v60 = vpack.c.bf16 %v9641_v53, %v9640_v42  ;;  %v9958_v53 = vld [vmem:[#allocation2 + $0x26] sm:$0xff]  ;;  %v9960_v42 = vld [vmem:[#allocation2 + $0x36] sm:$0xff] }
 0x871   : > { %15692 = vmatmul.mubr.msk.bf16.gmra.mrb[40].mxu0 %vm321_vm0, %v9659_v2  ;;  %v9667_v2 = vpack.c.bf16 %v9643_v54, %v9642_v61  ;;  %v9963_v61 = vld [vmem:[#allocation2 + $0x4e] sm:$0xff] }
 0x872   : > { %15695 = vmatprep.mubr.msk.bf16.mxu0 %vm321_vm0, %v9660_v7  ;;  %v9668_v7 = vpack.c.bf16 %v9645_v12, %v9644_v43  ;;  %v9962_v12 = vld [vmem:[#allocation2 + $0x46] sm:$0xff]  ;;  %v9964_v43 = vld [vmem:[#allocation2 + $0x56] sm:$0xff] }
 0x879   : > { %15696 = vmatmul.mubr.msk.bf16.gmra.mrb[44].mxu0 %vm321_vm0, %v9661_v47  ;;  %v9670_v47 = vpack.c.bf16 %v9649_v55, %v9648_v16  ;;  %v9966_v55 = vld [vmem:[#allocation2 + $0x66] sm:$0xff]  ;;  %v9968_v16 = vld [vmem:[#allocation2 + $0x76] sm:$0xff] }
 0x87a   : > { %15699 = vmatprep.mubr.msk.bf16.mxu0 %vm321_vm0, %v9662_v17  ;;  %v9651_v17 = vld [vmem:[#allocation2 + $0x11d] sm:$0xff] }
 0x87b   : > { %v9671_v11 = vpack.c.bf16 %v9651_v17, %v9650_v45  ;;  %v9971_v45 = vld [vmem:[#allocation2 + $0x8e] sm:$0xff] }
 0x881   : > { %15700 = vmatmul.mubr.msk.bf16.gmra.mrb[48].mxu0 %vm321_vm0, %v9663_v49  ;;  %v9672_v49 = vpack.c.bf16 %v9653_v24, %v9652_v58  ;;  %v9970_v58 = vld [vmem:[#allocation2 + $0x86] sm:$0xff] }
 0x882   : > { %15703 = vmatprep.mubr.msk.bf16.mxu0 %vm321_vm0, %v9664_v22  ;;  %v9655_v22 = vld [vmem:[#allocation2 + $0x13d] sm:$0xff]  ;;  %v10000_v24 = vpack.c.bf16 %v9971_v45, %v9970_v58  ;;  %v9986_v45 = vld [vmem:[#allocation2 + $0x106] sm:$0xff] }
 0x883   : > { %v9673_v29 = vpack.c.bf16 %v9655_v22, %v9654_v23  ;;  %v9975_v23 = vld [vmem:[#allocation2 + $0xae] sm:$0xff]  ;;  %v9988_v58 = vld [vmem:[#allocation2 + $0x116] sm:$0xff] }
 0x889   : > { %15704 = vmatmul.mubr.msk.bf16.gmra.mrb[52].mxu0 %vm321_vm0, %v9665_v30  ;;  %v9994_v30 = vpack.c.bf16 %v9959_v46, %v9958_v53  ;;  %v9976_v53 = vld [vmem:[#allocation2 + $0xb6] sm:$0xff] }
 0x88a   : > { %15707 = vmatprep.mubr.msk.bf16.mxu0 %vm321_vm0, %v9666_v60  ;;  %v9961_v60 = vld [vmem:[#allocation2 + $0x3e] sm:$0xff] }
 0x88b   : > { %v9995_v54 = vpack.c.bf16 %v9961_v60, %v9960_v42  ;;  %v9979_v42 = vld [vmem:[#allocation2 + $0xce] sm:$0xff] }
 0x891   : > { %15708 = vmatmul.mubr.msk.bf16.gmra.mrb[56].mxu0 %vm321_vm0, %v9667_v2  ;;  %v9996_v2 = vpack.c.bf16 %v9963_v61, %v9962_v12  ;;  %v9978_v61 = vld [vmem:[#allocation2 + $0xc6] sm:$0xff]  ;;  %v9980_v12 = vld [vmem:[#allocation2 + $0xd6] sm:$0xff] }
 0x892   : > { %15711 = vmatprep.mubr.msk.bf16.mxu0 %vm321_vm0, %v9668_v7  ;;  %v9965_v7 = vld [vmem:[#allocation2 + $0x5e] sm:$0xff] }
 0x893   : > { %v9997_v35 = vpack.c.bf16 %v9965_v7, %v9964_v43  ;;  %v9983_v43 = vld [vmem:[#allocation2 + $0xee] sm:$0xff] }
 0x899   : > { %15712 = vmatmul.mubr.msk.bf16.gmra.mrb[60].mxu0 %vm321_vm0, %v9669_v62  ;;  %v9998_v62 = vpack.c.bf16 %v9967_v57, %v9966_v55  ;;  %v9982_v57 = vld [vmem:[#allocation2 + $0xe6] sm:$0xff]  ;;  %v9984_v55 = vld [vmem:[#allocation2 + $0xf6] sm:$0xff] }
 0x89a   : > { %15715 = vmatprep.mubr.msk.bf16.mxu0 %vm321_vm0, %v9670_v47  ;;  %v9969_v47 = vld [vmem:[#allocation2 + $0x7e] sm:$0xff] }
 0x89b   : > { %v9999_v17 = vpack.c.bf16 %v9969_v47, %v9968_v16  ;;  %v9987_v16 = vld [vmem:[#allocation2 + $0x10e] sm:$0xff] }
 0x8a1   : > { %15716 = vmatmul.mubr.msk.bf16.gmra.mrb[64].mxu0 %vm321_vm0, %v9671_v11  ;;  %v9972_v11 = vld [vmem:[#allocation2 + $0x96] sm:$0xff] }
 0x8a2   : > { %15719 = vmatprep.mubr.msk.bf16.mxu0 %vm321_vm0, %v9672_v49  ;;  %v9973_v49 = vld [vmem:[#allocation2 + $0x9e] sm:$0xff] }
 0x8a3   : > { %v10001_v22 = vpack.c.bf16 %v9973_v49, %v9972_v11  ;;  %v9990_v11 = vld [vmem:[#allocation2 + $0x126] sm:$0xff]  ;;  %v9991_v49 = vld [vmem:[#allocation2 + $0x12e] sm:$0xff] }
 0x8a9   : > { %15720 = vmatmul.mubr.msk.bf16.gmra.mrb[68].mxu0 %vm321_vm0, %v9673_v29  ;;  %v9974_v29 = vld [vmem:[#allocation2 + $0xa6] sm:$0xff] }
 0x8aa   : > { %15727 = vmatprep.mubr.msk.bf16.mxu0 %vm321_vm0, %v9994_v30  ;;  %v10002_v46 = vpack.c.bf16 %v9975_v23, %v9974_v29  ;;  %v9977_v30 = vld [vmem:[#allocation2 + $0xbe] sm:$0xff]  ;;  %v9992_v29 = vld [vmem:[#allocation2 + $0x136] sm:$0xff] }
 0x8ab   : > { %v10003_v60 = vpack.c.bf16 %v9977_v30, %v9976_v53  ;;  %v10502_v30 = vld [vmem:[%s20798_s3] sm:$0xff] }
 0x8b1   : > { %15728 = vmatmul.mubr.msk.bf16.vlgmr.msra.gmra.mrb[36].mxu0 %vm321_vm0, %v9995_v54  ;;  %v10004_v54 = vpack.c.bf16 %v9979_v42, %v9978_v61  ;;  %v10506_v42 = vld [vmem:[%s20798_s3 + $0x20] sm:$0xff] }
 0x8b2   : > { %15731 = vmatprep.mubr.msk.bf16.mxu0 %vm321_vm0, %v9996_v2  ;;  %v9981_v2 = vld [vmem:[#allocation2 + $0xde] sm:$0xff]  ;;  %v13989_v61 = vcombine.high %v10502_v30, %v10506_v42 }
 0x8b3   : > { %v10005_v7 = vpack.c.bf16 %v9981_v2, %v9980_v12  ;;  %v10514_v12 = vld [vmem:[%s20798_s3 + $0x60] sm:$0xff] }
 0x8b4   : > { %10694 = vmatprep.subr.bf16.mxu0 %v13989_v61 }
 0x8b9   : > { %15732 = vmatmul.mubr.msk.bf16.gmra.mrb[40].mxu0 %vm321_vm0, %v9997_v35  ;;  %v10006_v35 = vpack.c.bf16 %v9983_v43, %v9982_v57  ;;  %v10511_v57 = vld [vmem:[%s20798_s3 + $0x48] sm:$0xff] }
 0x8ba   : > { %15735 = vmatprep.mubr.msk.bf16.mxu0 %vm321_vm0, %v9998_v62  ;;  %v9985_v62 = vld [vmem:[#allocation2 + $0xfe] sm:$0xff] }
 0x8bb   : > { %v10007_v47 = vpack.c.bf16 %v9985_v62, %v9984_v55 }
 0x8c1   : > { %15736 = vmatmul.mubr.msk.bf16.gmra.mrb[44].mxu0 %vm321_vm0, %v9999_v17  ;;  %v10008_v17 = vpack.c.bf16 %v9987_v16, %v9986_v45  ;;  %v19294_v16 = vld [vmem:[%s20798_s3 + $0x30] sm:$0xff] }
 0x8c2   : > { %15739 = vmatprep.mubr.msk.bf16.mxu0 %vm321_vm0, %v10000_v24  ;;  %v9989_v24 = vld [vmem:[#allocation2 + $0x11e] sm:$0xff] }
 0x8c3   : > { %v10009_v23 = vpack.c.bf16 %v9989_v24, %v9988_v58 }
 0x8c9   : > { %15740 = vmatmul.mubr.msk.bf16.gmra.mrb[48].mxu0 %vm321_vm0, %v10001_v22  ;;  %v10010_v22 = vpack.c.bf16 %v9991_v49, %v9990_v11 }
 0x8ca   : > { %15743 = vmatprep.mubr.msk.bf16.mxu0 %vm321_vm0, %v10002_v46  ;;  %v9993_v46 = vld [vmem:[#allocation2 + $0x13e] sm:$0xff] }
 0x8cb   : > { %v10011_v53 = vpack.c.bf16 %v9993_v46, %v9992_v29 }
 0x8d1   : > { %15744 = vmatmul.mubr.msk.bf16.gmra.mrb[52].mxu0 %vm321_vm0, %v10003_v60  ;;  %v13988_v60 = vcombine.low %v10502_v30, %v10506_v42 }
 0x8d2   : > { %15747 = vmatprep.mubr.msk.bf16.mxu0 %vm321_vm0, %v10004_v54  ;;  %v10510_v54 = vld [vmem:[%s20798_s3 + $0x40] sm:$0xff] }
 0x8d3   : > { %10695 = vmatpush1.bf16.msra.mxu0 %v13988_v60  ;;  %v13996_v2 = vcombine.low %v10510_v54, %v10514_v12  ;;  %v13997_v43 = vcombine.high %v10510_v54, %v10514_v12 }
 0x8d5   : > { %10696 = vmatprep.subr.bf16.mxu0 %v13997_v43 }
 0x8d7   : > { %10697 = vmatpush1.bf16.msra.mxu0 %v13996_v2 }
 0x8d8   : > { %10907 = vmatprep.subr.bf16.mxu0 %v19224_v50  ;;  %v19289_v50 = vld [vmem:[%s20798_s3 + $0x10] sm:$0xff] }
 0x8d9   : > { %15748 = vmatmul.mubr.msk.bf16.gmra.mrb[56].mxu0 %vm321_vm0, %v10005_v7  ;;  %v20807_v7 = vmov 0   ;;  %v13993_v45 = vcombine.high %v19289_v50, %v19294_v16 }
 0x8da   : > { %15751 = vmatprep.mubr.msk.bf16.mxu0 %vm321_vm0, %v10006_v35  ;;  %11069 = vmatprep.mubr.bf16.mxu1 %v20807_v7  ;;  %v10515_v35 = vld [vmem:[%s20798_s3 + $0x68] sm:$0xff] }
 0x8db   : > { %v19280_v55 = vcombine.low %v10511_v57, %v10515_v35  ;;  %v19282_v62 = vcombine.high %v10511_v57, %v10515_v35 }
 0x8dd   : > { %15764 = vmatprep.subr.bf16.mxu1 %v19282_v62 }
 0x8de   : > { %15766 = vmatpush1.bf16.msra.mxu1 %v19280_v55 }
 0x8df   : > { %11120 = vmatprep.subr.bf16.mxu1 %v13993_v45 }
 0x8e1   : > { %15752 = vmatmul.mubr.msk.bf16.gmra.mrb[60].mxu0 %vm321_vm0, %v10007_v47  ;;  %v13992_v47 = vcombine.low %v19289_v50, %v19294_v16 }
 0x8e2   : > { %15755 = vmatprep.mubr.msk.bf16.mxu0 %vm321_vm0, %v10008_v17  ;;  %v19303_v17 = vld [vmem:[%s20797_s2 + $0x2] ss:$0 sm:$0xff] }
 0x8e9   : > { %15756 = vmatmul.mubr.msk.bf16.gmra.mrb[64].mxu0 %vm321_vm0, %v10009_v23 }
 0x8ea   : > { %15759 = vmatprep.mubr.msk.bf16.mxu0 %vm321_vm0, %v10010_v22 }
 0x8f1   : > { %15760 = vmatmul.mubr.msk.bf16.gmra.mrb[68].mxu0 %vm321_vm0, %v10011_v53 }
 0x8f2   : > { %10726 = vmatprep.mubr.bf16.mxu0 %v20807_v7 }
 0x984   : > { %v15729_v58 = vpop.f32.mrb[36].mxu0 }
 0x985   : > { %v10306_v24 = vadd.f32 %v15729_v58, %v19303_v17  ;;  %v10117_v11 = vpop.f32.mrb[37].mxu0 }
 0x986   : > { %v10304_v49 = vadd.f32 %v19303_v17, %v10117_v11  ;;  %v15730_v23 = vpop.f32.mrb[38].mxu0 }
 0x987   : > { %v10342_v22 = vmax.f32 %v10306_v24, 0.0  ;;  %v10307_v29 = vadd.f32 %v15730_v23, %v19303_v17  ;;  %v10120_v46 = vpop.f32.mrb[39].mxu0 }
 0x988   : > { %v10340_v53 = vmax.f32 %v10304_v49, 0.0  ;;  %v10305_v30 = vadd.f32 %v19303_v17, %v10120_v46 }
 0x989   : > { %v10378_v42 = vmul.f32 %v17590_v5, %v10342_v22  ;;  %v10343_v60 = vmax.f32 %v10307_v29, 0.0 }
 0x98a   : > { %v10376_v61 = vmul.f32 %v17671_v48, %v10340_v53  ;;  %v10341_v54 = vmax.f32 %v10305_v30, 0.0 }
 0x98b   : > { %10414 = vst.msk [vmem:[#allocation2 + $0x23] sm:$0xff] %vm321_vm0, %v10378_v42  ;;  %v10379_v12 = vmul.f32 %v17676_v37, %v10343_v60 }
 0x98c   : > { %10412 = vst.msk [vmem:[#allocation2 + $0x13] sm:$0xff] %vm321_vm0, %v10376_v61  ;;  %v10377_v2 = vmul.f32 %v17683_v51, %v10341_v54  ;;  %v15733_v43 = vpop.f32.mrb[40].mxu0 }
 0x98d   : > { %10415 = vst.msk [vmem:[#allocation2 + $0x2b] sm:$0xff] %vm321_vm0, %v10379_v12  ;;  %v10310_v57 = vadd.f32 %v15733_v43, %v19303_v17  ;;  %v10133_v35 = vpop.f32.mrb[41].mxu0 }
 0x98e   : > { %10413 = vst.msk [vmem:[#allocation2 + $0x1b] sm:$0xff] %vm321_vm0, %v10377_v2  ;;  %v10308_v5 = vadd.f32 %v19303_v17, %v10133_v35  ;;  %v15734_v48 = vpop.f32.mrb[42].mxu0 }
 0x98f   : > { %v10346_v45 = vmax.f32 %v10310_v57, 0.0  ;;  %v10311_v58 = vadd.f32 %v15734_v48, %v19303_v17  ;;  %v10136_v24 = vpop.f32.mrb[43].mxu0 }
 0x990   : > { %v10344_v37 = vmax.f32 %v10308_v5, 0.0  ;;  %v10309_v11 = vadd.f32 %v19303_v17, %v10136_v24 }
 0x991   : > { %v10382_v51 = vmul.f32 %v17686_v52, %v10346_v45  ;;  %v10347_v49 = vmax.f32 %v10311_v58, 0.0 }
 0x992   : > { %v10380_v23 = vmul.f32 %v17738_v13, %v10344_v37  ;;  %v10345_v22 = vmax.f32 %v10309_v11, 0.0  ;;  %v10450_v11 = vld [vmem:[#allocation2 + $0x23] sm:$0xff] }
 0x993   : > { %10418 = vst.msk [vmem:[#allocation2 + $0x43] sm:$0xff] %vm321_vm0, %v10382_v51  ;;  %v10383_v29 = vmul.f32 %v17743_v14, %v10347_v49  ;;  %v10448_v60 = vld [vmem:[#allocation2 + $0x13] sm:$0xff] }
 0x994   : > { %10416 = vst.msk [vmem:[#allocation2 + $0x33] sm:$0xff] %vm321_vm0, %v10380_v23  ;;  %v10381_v46 = vmul.f32 %v17785_v38, %v10345_v22  ;;  %v15737_v53 = vpop.f32.mrb[44].mxu0  ;;  %v10451_v58 = vld [vmem:[#allocation2 + $0x2b] sm:$0xff] }
 0x995   : > { %10419 = vst.msk [vmem:[#allocation2 + $0x4b] sm:$0xff] %vm321_vm0, %v10383_v29  ;;  %v10314_v30 = vadd.f32 %v15737_v53, %v19303_v17  ;;  %v10149_v42 = vpop.f32.mrb[45].mxu0  ;;  %v10449_v52 = vld [vmem:[#allocation2 + $0x1b] sm:$0xff] }
 0x996   : > { %10417 = vst.msk [vmem:[#allocation2 + $0x3b] sm:$0xff] %vm321_vm0, %v10381_v46  ;;  %v10312_v13 = vadd.f32 %v19303_v17, %v10149_v42  ;;  %v15738_v61 = vpop.f32.mrb[46].mxu0  ;;  %v19331_v54 = vpack.c.bf16 %v10449_v52, %v10448_v60 }
 0x997   : > { %v10350_v14 = vmax.f32 %v10314_v30, 0.0  ;;  %v10315_v12 = vadd.f32 %v15738_v61, %v19303_v17  ;;  %v10152_v2 = vpop.f32.mrb[47].mxu0 }
 0x998   : > { %v10348_v38 = vmax.f32 %v10312_v13, 0.0  ;;  %v10313_v43 = vadd.f32 %v19303_v17, %v10152_v2  ;;  %14004 = vmatmul.mubr.msk.bf16.vlgmr.msra.gmra.mrb[72].mxu0 %vm321_vm0, %v19331_v54 }
 0x999   : > { %v10386_v57 = vmul.f32 %v17851_v8, %v10350_v14  ;;  %v10351_v35 = vmax.f32 %v10315_v12, 0.0  ;;  %10736 = vmatprep.mubr.bf16.mxu0 %v20807_v7  ;;  %10908 = vmatpush1.bf16.msra.mxu0 %v19222_v19 }
 0x99a   : > { %v10384_v5 = vmul.f32 %v17856_v9, %v10348_v38  ;;  %v10349_v48 = vmax.f32 %v10313_v43, 0.0  ;;  %10909 = vmatprep.subr.bf16.mxu0 %v19282_v62 }
 0x99b   : > { %10422 = vst.msk [vmem:[#allocation2 + $0x63] sm:$0xff] %vm321_vm0, %v10386_v57  ;;  %v10387_v45 = vmul.f32 %v17873_v15, %v10351_v35  ;;  %v19351_v15 = vpack.c.bf16 %v10451_v58, %v10450_v11  ;;  %v10452_v61 = vld [vmem:[#allocation2 + $0x33] sm:$0xff] }
 0x99c   : > { %10420 = vst.msk [vmem:[#allocation2 + $0x53] sm:$0xff] %vm321_vm0, %v10384_v5  ;;  %v10385_v24 = vmul.f32 %v17976_v63, %v10349_v48  ;;  %v15741_v8 = vpop.f32.mrb[48].mxu0  ;;  %v10455_v58 = vld [vmem:[#allocation2 + $0x4b] sm:$0xff] }
 0x99d   : > { %10423 = vst.msk [vmem:[#allocation2 + $0x6b] sm:$0xff] %vm321_vm0, %v10387_v45  ;;  %v10318_v37 = vadd.f32 %v15741_v8, %v19303_v17  ;;  %v10165_v19 = vpop.f32.mrb[49].mxu0  ;;  %10910 = vmatpush1.bf16.msra.mxu0 %v19280_v55  ;;  %v10453_v42 = vld [vmem:[#allocation2 + $0x3b] sm:$0xff] }
 0x99e   : > { %10421 = vst.msk [vmem:[#allocation2 + $0x5b] sm:$0xff] %vm321_vm0, %v10385_v24  ;;  %v10316_v9 = vadd.f32 %v19303_v17, %v10165_v19  ;;  %v15742_v62 = vpop.f32.mrb[50].mxu0  ;;  %v19368_v12 = vpack.c.bf16 %v10453_v42, %v10452_v61  ;;  %v10454_v19 = vld [vmem:[#allocation2 + $0x43] sm:$0xff] }
 0x99f   : > { %v10354_v51 = vmax.f32 %v10318_v37, 0.0  ;;  %v10319_v49 = vadd.f32 %v15742_v62, %v19303_v17  ;;  %v10168_v63 = vpop.f32.mrb[51].mxu0 }
 0x9a0   : > { %v10352_v23 = vmax.f32 %v10316_v9, 0.0  ;;  %v10317_v22 = vadd.f32 %v19303_v17, %v10168_v63  ;;  %14005 = vmatmul.mubr.msk.bf16.gmra.mrb[76].mxu0 %vm321_vm0, %v19351_v15  ;;  %v19385_v9 = vpack.c.bf16 %v10455_v58, %v10454_v19 }
 0x9a1   : > { %v10390_v29 = vmul.f32 %v17981_v3, %v10354_v51  ;;  %v10355_v55 = vmax.f32 %v10319_v49, 0.0  ;;  %10746 = vmatprep.mubr.bf16.mxu0 %v20807_v7 }
 0x9a2   : > { %v10388_v46 = vmul.f32 %v17986_v6, %v10352_v23  ;;  %v10353_v53 = vmax.f32 %v10317_v22, 0.0 }
 0x9a3   : > { %10426 = vst.msk [vmem:[#allocation2 + $0x83] sm:$0xff] %vm321_vm0, %v10390_v29  ;;  %v10391_v30 = vmul.f32 %v18004_v21, %v10355_v55 }
 0x9a4   : > { %10424 = vst.msk [vmem:[#allocation2 + $0x73] sm:$0xff] %vm321_vm0, %v10388_v46  ;;  %v10389_v60 = vmul.f32 %v18035_v31, %v10353_v53  ;;  %v15745_v52 = vpop.f32.mrb[52].mxu0 }
 0x9a5   : > { %10427 = vst.msk [vmem:[#allocation2 + $0x8b] sm:$0xff] %vm321_vm0, %v10391_v30  ;;  %v10322_v3 = vadd.f32 %v15745_v52, %v19303_v17  ;;  %v10181_v13 = vpop.f32.mrb[53].mxu0  ;;  %v10457_v46 = vld [vmem:[#allocation2 + $0x5b] sm:$0xff] }
 0x9a6   : > { %10425 = vst.msk [vmem:[#allocation2 + $0x7b] sm:$0xff] %vm321_vm0, %v10389_v60  ;;  %v10320_v6 = vadd.f32 %v19303_v17, %v10181_v13  ;;  %v15746_v14 = vpop.f32.mrb[54].mxu0  ;;  %v10456_v60 = vld [vmem:[#allocation2 + $0x53] sm:$0xff] }
 0x9a7   : > { %v10358_v21 = vmax.f32 %v10322_v3, 0.0  ;;  %v10323_v2 = vadd.f32 %v15746_v14, %v19303_v17  ;;  %v10184_v38 = vpop.f32.mrb[55].mxu0  ;;  %v19402_v3 = vpack.c.bf16 %v10457_v46, %v10456_v60 }
 0x9a8   : > { %v10356_v43 = vmax.f32 %v10320_v6, 0.0  ;;  %v10321_v31 = vadd.f32 %v19303_v17, %v10184_v38  ;;  %14006 = vmatmul.mubr.msk.bf16.gmra.mrb[80].mxu0 %vm321_vm0, %v19368_v12 }
 0x9a9   : > { %v10394_v57 = vmul.f32 %v18038_v32, %v10358_v21  ;;  %v10359_v35 = vmax.f32 %v10323_v2, 0.0  ;;  %10756 = vmatprep.mubr.bf16.mxu0 %v20807_v7 }
 0x9aa   : > { %v10392_v5 = vmul.f32 %v18041_v33, %v10356_v43  ;;  %v10357_v48 = vmax.f32 %v10321_v31, 0.0  ;;  %v10459_v31 = vld [vmem:[#allocation2 + $0x6b] sm:$0xff] }
 0x9ab   : > { %10430 = vst.msk [vmem:[#allocation2 + $0xa3] sm:$0xff] %vm321_vm0, %v10394_v57  ;;  %v10395_v45 = vmul.f32 %v18111_v25, %v10359_v35 }
 0x9ac   : > { %10428 = vst.msk [vmem:[#allocation2 + $0x93] sm:$0xff] %vm321_vm0, %v10392_v5  ;;  %v10393_v24 = vmul.f32 %v18126_v34, %v10357_v48  ;;  %v15749_v8 = vpop.f32.mrb[56].mxu0  ;;  %v10458_v48 = vld [vmem:[#allocation2 + $0x63] sm:$0xff]  ;;  %v10463_v16 = vld [vmem:[#allocation2 + $0x8b] sm:$0xff] }
 0x9ad   : > { %10431 = vst.msk [vmem:[#allocation2 + $0xab] sm:$0xff] %vm321_vm0, %v10395_v45  ;;  %v10326_v32 = vadd.f32 %v15749_v8, %v19303_v17  ;;  %v10197_v37 = vpop.f32.mrb[57].mxu0  ;;  %v19419_v58 = vpack.c.bf16 %v10459_v31, %v10458_v48 }
 0x9ae   : > { %10429 = vst.msk [vmem:[#allocation2 + $0x9b] sm:$0xff] %vm321_vm0, %v10393_v24  ;;  %v10324_v33 = vadd.f32 %v19303_v17, %v10197_v37  ;;  %v15750_v11 = vpop.f32.mrb[58].mxu0 }
 0x9af   : > { %v10362_v25 = vmax.f32 %v10326_v32, 0.0  ;;  %v10327_v62 = vadd.f32 %v15750_v11, %v19303_v17  ;;  %v10200_v51 = vpop.f32.mrb[59].mxu0 }
 0x9b0   : > { %v10360_v49 = vmax.f32 %v10324_v33, 0.0  ;;  %v10325_v34 = vadd.f32 %v19303_v17, %v10200_v51  ;;  %14007 = vmatmul.mubr.msk.bf16.gmra.mrb[84].mxu0 %vm321_vm0, %v19385_v9  ;;  %v10512_v51 = vld [vmem:[%s20798_s3 + $0x50] sm:$0xff] }
 0x9b1   : > { %v10398_v63 = vmul.f32 %v18131_v36, %v10362_v25  ;;  %v10363_v23 = vmax.f32 %v10327_v62, 0.0  ;;  %10766 = vmatprep.mubr.bf16.mxu0 %v20807_v7  ;;  %v10461_v62 = vld [vmem:[#allocation2 + $0x7b] sm:$0xff] }
 0x9b2   : > { %v10396_v22 = vmul.f32 %v18136_v39, %v10360_v49  ;;  %v10361_v29 = vmax.f32 %v10325_v34, 0.0  ;;  %v10516_v49 = vld [vmem:[%s20798_s3 + $0x70] sm:$0xff]  ;;  %v10466_v48 = vld [vmem:[#allocation2 + $0xa3] sm:$0xff] }
 0x9b3   : > { %10434 = vst.msk [vmem:[#allocation2 + $0xc3] sm:$0xff] %vm321_vm0, %v10398_v63  ;;  %v10399_v55 = vmul.f32 %v18175_v27, %v10363_v23 }
 0x9b4   : > { %10432 = vst.msk [vmem:[#allocation2 + $0xb3] sm:$0xff] %vm321_vm0, %v10396_v22  ;;  %v10397_v53 = vmul.f32 %v18190_v44, %v10361_v29  ;;  %v15753_v30 = vpop.f32.mrb[60].mxu0  ;;  %v10460_v29 = vld [vmem:[#allocation2 + $0x73] sm:$0xff] }
 0x9b5   : > { %10435 = vst.msk [vmem:[#allocation2 + $0xcb] sm:$0xff] %vm321_vm0, %v10399_v55  ;;  %v10330_v36 = vadd.f32 %v15753_v30, %v19303_v17  ;;  %v10213_v42 = vpop.f32.mrb[61].mxu0  ;;  %v14001_v30 = vcombine.high %v10512_v51, %v10516_v49 }
 0x9b6   : > { %10433 = vst.msk [vmem:[#allocation2 + $0xbb] sm:$0xff] %vm321_vm0, %v10397_v53  ;;  %v10328_v39 = vadd.f32 %v19303_v17, %v10213_v42  ;;  %v15754_v52 = vpop.f32.mrb[62].mxu0  ;;  %v19444_v53 = vpack.c.bf16 %v10461_v62, %v10460_v29 }
 0x9b7   : > { %v10366_v27 = vmax.f32 %v10330_v36, 0.0  ;;  %v10331_v13 = vadd.f32 %v15754_v52, %v19303_v17  ;;  %v10216_v61 = vpop.f32.mrb[63].mxu0  ;;  %v19454_v36 = vld [vmem:[%s20798_s3 + $0x38] sm:$0xff] }
 0x9b8   : > { %v10364_v6 = vmax.f32 %v10328_v39, 0.0  ;;  %v10329_v44 = vadd.f32 %v19303_v17, %v10216_v61  ;;  %14008 = vmatmul.mubr.msk.bf16.gmra.mrb[88].mxu0 %vm321_vm0, %v19402_v3 }
 0x9b9   : > { %v10402_v14 = vmul.f32 %v18372_v18, %v10366_v27  ;;  %v10367_v21 = vmax.f32 %v10331_v13, 0.0  ;;  %10776 = vmatprep.mubr.bf16.mxu0 %v20807_v7  ;;  %v14000_v13 = vcombine.low %v10512_v51, %v10516_v49 }
 0x9ba   : > { %v10400_v2 = vmul.f32 %v18388_v20, %v10364_v6  ;;  %v10365_v38 = vmax.f32 %v10329_v44, 0.0  ;;  %v10470_v51 = vld [vmem:[#allocation2 + $0xc3] sm:$0xff] }
 0x9bb   : > { %10438 = vst.msk [vmem:[#allocation2 + $0xe3] sm:$0xff] %vm321_vm0, %v10402_v14  ;;  %v10403_v43 = vmul.f32 %v18442_v0, %v10367_v21 }
 0x9bc   : > { %10436 = vst.msk [vmem:[#allocation2 + $0xd3] sm:$0xff] %vm321_vm0, %v10400_v2  ;;  %v10401_v57 = vmul.f32 %v18468_v59, %v10365_v38  ;;  %v15757_v35 = vpop.f32.mrb[64].mxu0 }
 0x9bd   : > { %10439 = vst.msk [vmem:[#allocation2 + $0xeb] sm:$0xff] %vm321_vm0, %v10403_v43  ;;  %v10334_v18 = vadd.f32 %v15757_v35, %v19303_v17  ;;  %v10229_v5 = vpop.f32.mrb[65].mxu0  ;;  %v10464_v43 = vld [vmem:[#allocation2 + $0x93] sm:$0xff] }
 0x9be   : > { %10437 = vst.msk [vmem:[#allocation2 + $0xdb] sm:$0xff] %vm321_vm0, %v10401_v57  ;;  %v10332_v20 = vadd.f32 %v19303_v17, %v10229_v5  ;;  %v15758_v45 = vpop.f32.mrb[66].mxu0 }
 0x9bf   : > { %v10370_v0 = vmax.f32 %v10334_v18, 0.0  ;;  %v10335_v24 = vadd.f32 %v15758_v45, %v19303_v17  ;;  %v10232_v8 = vpop.f32.mrb[67].mxu0  ;;  %v10467_v18 = vld [vmem:[#allocation2 + $0xab] sm:$0xff] }
 0x9c0   : > { %v10368_v32 = vmax.f32 %v10332_v20, 0.0  ;;  %v10333_v59 = vadd.f32 %v19303_v17, %v10232_v8  ;;  %14009 = vmatmul.mubr.msk.bf16.gmra.mrb[92].mxu0 %vm321_vm0, %v19419_v58  ;;  %v19497_v45 = vpack.c.bf16 %v10467_v18, %v10466_v48 }
 0x9c1   : > { %v10406_v37 = vmul.f32 %v18486_v40, %v10370_v0  ;;  %v10371_v19 = vmax.f32 %v10335_v24, 0.0  ;;  %10786 = vmatprep.mubr.bf16.mxu0 %v20807_v7  ;;  %v10469_v24 = vld [vmem:[#allocation2 + $0xbb] sm:$0xff] }
 0x9c2   : > { %v10404_v33 = vmul.f32 %v18497_v10, %v10368_v32  ;;  %v10369_v11 = vmax.f32 %v10333_v59, 0.0  ;;  %v10474_v10 = vld [vmem:[#allocation2 + $0xe3] sm:$0xff]  ;;  %v10468_v32 = vld [vmem:[#allocation2 + $0xb3] sm:$0xff] }
 0x9c3   : > { %10442 = vst.msk [vmem:[#allocation2 + $0x103] sm:$0xff] %vm321_vm0, %v10406_v37  ;;  %v10407_v25 = vmul.f32 %v18576_v1, %v10371_v19  ;;  %v19507_v37 = vpack.c.bf16 %v10469_v24, %v10468_v32 }
 0x9c4   : > { %10440 = vst.msk [vmem:[#allocation2 + $0xf3] sm:$0xff] %vm321_vm0, %v10404_v33  ;;  %v10405_v40 = vmul.f32 %v18592_v28, %v10369_v11  ;;  %v15761_v34 = vpop.f32.mrb[68].mxu0  ;;  %v10475_v63 = vld [vmem:[#allocation2 + $0xeb] sm:$0xff]  ;;  %v19449_v28 = vld [vmem:[%s20798_s3 + $0x18] sm:$0xff] }
 0x9c5   : > { %10443 = vst.msk [vmem:[#allocation2 + $0x10b] sm:$0xff] %vm321_vm0, %v10407_v25  ;;  %v10338_v1 = vadd.f32 %v15761_v34, %v19303_v17  ;;  %v10245_v23 = vpop.f32.mrb[69].mxu0  ;;  %v19440_v22 = vpack.c.bf16 %v10475_v63, %v10474_v10  ;;  %v13995_v44 = vcombine.high %v19449_v28, %v19454_v36  ;;  %v10471_v33 = vld [vmem:[#allocation2 + $0xcb] sm:$0xff]  ;;  %v10513_v11 = vld [vmem:[%s20798_s3 + $0x58] sm:$0xff]  ;;  %v13994_v62 = vcombine.low %v19449_v28, %v19454_v36 }
 0x9c6   : > { %10441 = vst.msk [vmem:[#allocation2 + $0xfb] sm:$0xff] %vm321_vm0, %v10405_v40  ;;  %v10336_v55 = vadd.f32 %v19303_v17, %v10245_v23  ;;  %v15762_v46 = vpop.f32.mrb[70].mxu0  ;;  %v10517_v25 = vld [vmem:[%s20798_s3 + $0x78] sm:$0xff]  ;;  %v19525_v49 = vpack.c.bf16 %v10471_v33, %v10470_v51  ;;  %v20937_v23 = vld [vmem:[#allocation3_spill] sm:$0xff] }
 0x9c7   : > { %v10374_v42 = vmax.f32 %v10338_v1, 0.0  ;;  %v10339_v60 = vadd.f32 %v15762_v46, %v19303_v17  ;;  %v10248_v39 = vpop.f32.mrb[71].mxu0  ;;  %14035 = vmatmul.mubr.msk.bf16.vlgmr.msra.gmra.mrb[36].mxu1 %vm321_vm0, %v19440_v22  ;;  %v14003_v40 = vcombine.high %v10513_v11, %v10517_v25  ;;  %v14002_v34 = vcombine.low %v10513_v11, %v10517_v25  ;;  %v10473_v10 = vld [vmem:[#allocation2 + $0xdb] sm:$0xff]  ;;  %v10472_v63 = vld [vmem:[#allocation2 + $0xd3] sm:$0xff] }
 0x9c8   : > { %v10372_v52 = vmax.f32 %v10336_v55, 0.0  ;;  %v10337_v27 = vadd.f32 %v19303_v17, %v10248_v39  ;;  %14010 = vmatmul.mubr.msk.bf16.gmra.mrb[96].mxu0 %vm321_vm0, %v19444_v53  ;;  %11121 = vmatpush1.bf16.msra.mxu1 %v13992_v47  ;;  %v10462_v47 = vld [vmem:[#allocation2 + $0x83] sm:$0xff]  ;;  %v19533_v1 = vpack.c.bf16 %v10473_v10, %v10472_v63  ;;  %v10522_v29 = vsub.s32 0, %v20937_v23 }
 0x9c9   : > { %v10410_v61 = vmul.f32 %v18615_v4, %v10374_v42  ;;  %v10375_v6 = vmax.f32 %v10339_v60, 0.0  ;;  %10796 = vmatprep.mubr.bf16.mxu0 %v20807_v7  ;;  %11079 = vmatprep.mubr.bf16.mxu1 %v20807_v7  ;;  %v19624_v55 = vld [vmem:[%s20799_s4] sm:$0xff]  ;;  %v10526_v46 = vsub.s32 1, %v20937_v23 }
 0x9ca   : > { %v10408_v17 = vmul.f32 %v18623_v26, %v10372_v52  ;;  %v10373_v14 = vmax.f32 %v10337_v27, 0.0  ;;  %11122 = vmatprep.subr.bf16.mxu1 %v14001_v30  ;;  %v19477_v26 = vpack.c.bf16 %v10463_v16, %v10462_v47  ;;  %v10478_v31 = vld [vmem:[#allocation2 + $0x103] sm:$0xff]  ;;  %v19632_v30 = vrot.slane %v19624_v55, %v10522_v29 }
 0x9cb   : > { %10446 = vst.msk [vmem:[#allocation2 + $0x123] sm:$0xff] %vm321_vm0, %v10410_v61  ;;  %v10411_v50 = vmul.f32 %v18627_v56, %v10375_v6  ;;  %v10476_v21 = vld [vmem:[#allocation2 + $0xf3] sm:$0xff]  ;;  %v10465_v56 = vld [vmem:[#allocation2 + $0x9b] sm:$0xff]  ;;  %v19635_v28 = vrot.slane %v19624_v55, %v10526_v46 }
 0x9cc   : > { %10444 = vst.msk [vmem:[#allocation2 + $0x113] sm:$0xff] %vm321_vm0, %v10408_v17  ;;  %v10409_v4 = vmul.f32 %v18633_v41, %v10373_v14  ;;  %11123 = vmatpush1.bf16.msra.mxu1 %v14000_v13  ;;  %v10479_v41 = vld [vmem:[#allocation2 + $0x10b] sm:$0xff]  ;;  %v19487_v57 = vpack.c.bf16 %v10465_v56, %v10464_v43 }
 0x9cd   : > { %10447 = vst.msk [vmem:[#allocation2 + $0x12b] sm:$0xff] %vm321_vm0, %v10411_v50  ;;  %v10477_v2 = vld [vmem:[#allocation2 + $0xfb] sm:$0xff]  ;;  %11333 = vmatprep.subr.bf16.mxu1 %v13995_v44  ;;  %v19489_v35 = vpack.c.bf16 %v10479_v41, %v10478_v31 }
 0x9ce   : > { %10445 = vst.msk [vmem:[#allocation2 + $0x11b] sm:$0xff] %vm321_vm0, %v10409_v4  ;;  %v19479_v38 = vpack.c.bf16 %v10477_v2, %v10476_v21 }
 0x9d0   : > { %14011 = vmatmul.mubr.msk.bf16.gmra.mrb[100].mxu0 %vm321_vm0, %v19477_v26  ;;  %14036 = vmatmul.mubr.msk.bf16.gmra.mrb[40].mxu1 %vm321_vm0, %v19479_v38 }
 0x9d1   : > { %10806 = vmatprep.mubr.bf16.mxu0 %v20807_v7  ;;  %11089 = vmatprep.mubr.bf16.mxu1 %v20807_v7 }
 0x9d2   : > { %v10482_v59 = vld [vmem:[#allocation2 + $0x123] sm:$0xff] }
 0x9d3   : > { %v10480_v20 = vld [vmem:[#allocation2 + $0x113] sm:$0xff] }
 0x9d4   : > { %v10483_v8 = vld [vmem:[#allocation2 + $0x12b] sm:$0xff] }
 0x9d5   : > { %v10481_v5 = vld [vmem:[#allocation2 + $0x11b] sm:$0xff]  ;;  %v19509_v19 = vpack.c.bf16 %v10483_v8, %v10482_v59 }
 0x9d6   : > { %v19499_v0 = vpack.c.bf16 %v10481_v5, %v10480_v20 }
 0x9d8   : > { %14012 = vmatmul.mubr.msk.bf16.gmra.mrb[104].mxu0 %vm321_vm0, %v19487_v57  ;;  %14037 = vmatmul.mubr.msk.bf16.gmra.mrb[44].mxu1 %vm321_vm0, %v19489_v35 }
 0x9d9   : > { %10816 = vmatprep.mubr.bf16.mxu0 %v20807_v7  ;;  %11099 = vmatprep.mubr.bf16.mxu1 %v20807_v7 }
 0x9e0   : > { %14013 = vmatmul.mubr.msk.bf16.gmra.mrb[108].mxu0 %vm321_vm0, %v19497_v45  ;;  %14038 = vmatmul.mubr.msk.bf16.gmra.mrb[48].mxu1 %vm321_vm0, %v19499_v0 }
 0x9e1   : > { %10826 = vmatprep.mubr.bf16.mxu0 %v20807_v7  ;;  %11109 = vmatprep.mubr.bf16.mxu1 %v20807_v7 }
 0x9e8   : > { %14014 = vmatmul.mubr.msk.bf16.gmra.mrb[112].mxu0 %vm321_vm0, %v19507_v37  ;;  %14039 = vmatmul.mubr.msk.bf16.gmra.mrb[52].mxu1 %vm321_vm0, %v19509_v19 }
 0x9e9   : > { %10836 = vmatprep.mubr.bf16.mxu0 %v20807_v7  ;;  %11152 = vmatprep.mubr.bf16.mxu1 %v20807_v7 }
 0x9f0   : > { %14015 = vmatmul.mubr.msk.bf16.gmra.mrb[116].mxu0 %vm321_vm0, %v19525_v49  ;;  %14040 = vmatmul.mubr.msk.bf16.vlgmr.msra.gmra.mrb[56].mxu1 %vm321_vm0, %v19331_v54 }
 0x9f1   : > { %11334 = vmatpush1.bf16.msra.mxu1 %v13994_v62  ;;  %10846 = vmatprep.mubr.bf16.mxu0 %v20807_v7  ;;  %v17021_v62 = vld [vmem:[%s20800_s5] sm:$0xff]  }
 0x9f2   : > { %11162 = vmatprep.mubr.bf16.mxu1 %v20807_v7  ;;  %11335 = vmatprep.subr.bf16.mxu1 %v14003_v40 }
 0x9f5   : > { %11336 = vmatpush1.bf16.msra.mxu1 %v14002_v34 }
 0x9f6   : > { %12497 = vmatprep.subr.bf16.mxu1 %v20807_v7 }
 0x9f8   : > { %14016 = vmatmul.mubr.msk.bf16.gmra.mrb[120].mxu0 %vm321_vm0, %v19533_v1  ;;  %14041 = vmatmul.mubr.msk.bf16.gmra.mrb[60].mxu1 %vm321_vm0, %v19351_v15 }
 0x9f9   : > { %10856 = vmatprep.mubr.bf16.mxu0 %v20807_v7  ;;  %11172 = vmatprep.mubr.bf16.mxu1 %v20807_v7 }
 0xa00   : > { %14017 = vmatmul.mubr.msk.bf16.gmra.mrb[124].mxu0 %vm321_vm0, %v19440_v22  ;;  %14042 = vmatmul.mubr.msk.bf16.gmra.mrb[64].mxu1 %vm321_vm0, %v19368_v12 }
 0xa01   : > { %10866 = vmatprep.mubr.bf16.mxu0 %v20807_v7  ;;  %11182 = vmatprep.mubr.bf16.mxu1 %v20807_v7 }
 0xa08   : > { %14018 = vmatmul.mubr.msk.bf16.gmra.mrb[128].mxu0 %vm321_vm0, %v19479_v38  ;;  %14043 = vmatmul.mubr.msk.bf16.gmra.mrb[68].mxu1 %vm321_vm0, %v19385_v9 }
 0xa09   : > { %10876 = vmatprep.mubr.bf16.mxu0 %v20807_v7  ;;  %11192 = vmatprep.mubr.bf16.mxu1 %v20807_v7 }
 0xa10   : > { %14019 = vmatmul.mubr.msk.bf16.gmra.mrb[132].mxu0 %vm321_vm0, %v19489_v35  ;;  %14044 = vmatmul.mubr.msk.bf16.gmra.mrb[72].mxu1 %vm321_vm0, %v19402_v3 }
 0xa11   : > { %10886 = vmatprep.mubr.bf16.mxu0 %v20807_v7  ;;  %11202 = vmatprep.mubr.bf16.mxu1 %v20807_v7 }
 0xa18   : > { %14020 = vmatmul.mubr.msk.bf16.gmra.mrb[136].mxu0 %vm321_vm0, %v19499_v0  ;;  %14045 = vmatmul.mubr.msk.bf16.gmra.mrb[76].mxu1 %vm321_vm0, %v19419_v58 }
 0xa19   : > { %10896 = vmatprep.mubr.bf16.mxu0 %v20807_v7  ;;  %11212 = vmatprep.mubr.bf16.mxu1 %v20807_v7 }
 0xa20   : > { %14021 = vmatmul.mubr.msk.bf16.gmra.mrb[140].mxu0 %vm321_vm0, %v19509_v19  ;;  %14046 = vmatmul.mubr.msk.bf16.gmra.mrb[80].mxu1 %vm321_vm0, %v19444_v53 }
 0xa21   : > { %10939 = vmatprep.mubr.bf16.mxu0 %v20807_v7  ;;  %11222 = vmatprep.mubr.bf16.mxu1 %v20807_v7 }
 0xa28   : > { %14022 = vmatmul.mubr.msk.bf16.vlgmr.msra.gmra.mrb[144].mxu0 %vm321_vm0, %v19331_v54  ;;  %14047 = vmatmul.mubr.msk.bf16.gmra.mrb[84].mxu1 %vm321_vm0, %v19477_v26 }
 0xa29   : > { %10949 = vmatprep.mubr.bf16.mxu0 %v20807_v7  ;;  %11232 = vmatprep.mubr.bf16.mxu1 %v20807_v7 }
 0xa30   : > { %14023 = vmatmul.mubr.msk.bf16.gmra.mrb[148].mxu0 %vm321_vm0, %v19351_v15  ;;  %14048 = vmatmul.mubr.msk.bf16.gmra.mrb[88].mxu1 %vm321_vm0, %v19487_v57 }
 0xa31   : > { %10959 = vmatprep.mubr.bf16.mxu0 %v20807_v7  ;;  %11242 = vmatprep.mubr.bf16.mxu1 %v20807_v7 }
 0xa38   : > { %14024 = vmatmul.mubr.msk.bf16.gmra.mrb[152].mxu0 %vm321_vm0, %v19368_v12  ;;  %14049 = vmatmul.mubr.msk.bf16.gmra.mrb[92].mxu1 %vm321_vm0, %v19497_v45 }
 0xa39   : > { %10969 = vmatprep.mubr.bf16.mxu0 %v20807_v7  ;;  %11252 = vmatprep.mubr.bf16.mxu1 %v20807_v7 }
 0xa40   : > { %14025 = vmatmul.mubr.msk.bf16.gmra.mrb[156].mxu0 %vm321_vm0, %v19385_v9  ;;  %14050 = vmatmul.mubr.msk.bf16.gmra.mrb[96].mxu1 %vm321_vm0, %v19507_v37 }
 0xa41   : > { %10979 = vmatprep.mubr.bf16.mxu0 %v20807_v7  ;;  %11262 = vmatprep.mubr.bf16.mxu1 %v20807_v7 }
 0xa48   : > { %14026 = vmatmul.mubr.msk.bf16.gmra.mrb[160].mxu0 %vm321_vm0, %v19402_v3  ;;  %14051 = vmatmul.mubr.msk.bf16.gmra.mrb[100].mxu1 %vm321_vm0, %v19525_v49 }
 0xa49   : > { %10989 = vmatprep.mubr.bf16.mxu0 %v20807_v7  ;;  %11272 = vmatprep.mubr.bf16.mxu1 %v20807_v7 }
 0xa50   : > { %14027 = vmatmul.mubr.msk.bf16.gmra.mrb[164].mxu0 %vm321_vm0, %v19419_v58  ;;  %14052 = vmatmul.mubr.msk.bf16.gmra.mrb[104].mxu1 %vm321_vm0, %v19533_v1 }
 0xa51   : > { %10999 = vmatprep.mubr.bf16.mxu0 %v20807_v7  ;;  %11282 = vmatprep.mubr.bf16.mxu1 %v20807_v7 }
 0xa58   : > { %14028 = vmatmul.mubr.msk.bf16.gmra.mrb[168].mxu0 %vm321_vm0, %v19444_v53  ;;  %14053 = vmatmul.mubr.msk.bf16.gmra.mrb[108].mxu1 %vm321_vm0, %v19440_v22 }
 0xa59   : > { %11009 = vmatprep.mubr.bf16.mxu0 %v20807_v7  ;;  %11292 = vmatprep.mubr.bf16.mxu1 %v20807_v7 }
 0xa60   : > { %14029 = vmatmul.mubr.msk.bf16.gmra.mrb[172].mxu0 %vm321_vm0, %v19477_v26  ;;  %14054 = vmatmul.mubr.msk.bf16.gmra.mrb[112].mxu1 %vm321_vm0, %v19479_v38 }
 0xa61   : > { %11019 = vmatprep.mubr.bf16.mxu0 %v20807_v7  ;;  %11302 = vmatprep.mubr.bf16.mxu1 %v20807_v7 }
 0xa68   : > { %14030 = vmatmul.mubr.msk.bf16.gmra.mrb[176].mxu0 %vm321_vm0, %v19487_v57  ;;  %14055 = vmatmul.mubr.msk.bf16.gmra.mrb[116].mxu1 %vm321_vm0, %v19489_v35 }
 0xa69   : > { %11029 = vmatprep.mubr.bf16.mxu0 %v20807_v7  ;;  %11312 = vmatprep.mubr.bf16.mxu1 %v20807_v7 }
 0xa6b   : > { %v10728_v36 = vpop.f32.mrb[72].mxu0 }
 0xa6c   : > { %v10729_v42 = vadd.f32 %v10728_v36, %v19632_v30  ;;  %v10730_v60 = vpop.f32.mrb[73].mxu0  ;;  %v17022_v36 = vld [vmem:[%s20800_s5 + $0x8] sm:$0xff]  }
 0xa6d   : > { %v10731_v39 = vadd.f32 %v10730_v60, %v19635_v28  ;;  %v10732_v52 = vpop.f32.mrb[74].mxu0 }
 0xa6e   : > { %v10733_v27 = vadd.f32 %v10732_v52, %v19632_v30  ;;  %v10734_v13 = vpop.f32.mrb[75].mxu0  ;;  %v11546_v6 = vmax.f32 %v10729_v42, 0.0 }
 0xa6f   : > { %v10735_v61 = vadd.f32 %v10734_v13, %v19635_v28  ;;  %v11547_v17 = vmax.f32 %v10731_v39, 0.0 }
 0xa70   : > { %v11554_v44 = vmax.f32 %v10733_v27, 0.0  ;;  %14031 = vmatmul.mubr.msk.bf16.gmra.mrb[180].mxu0 %vm321_vm0, %v19497_v45  ;;  %14056 = vmatmul.mubr.msk.bf16.gmra.mrb[120].mxu1 %vm321_vm0, %v19499_v0 }
 0xa71   : > { %v11555_v14 = vmax.f32 %v10735_v61, 0.0  ;;  %11039 = vmatprep.mubr.bf16.mxu0 %v20807_v7  ;;  %11322 = vmatprep.mubr.bf16.mxu1 %v20807_v7  ;;  %v17023_v61 = vld [vmem:[%s20800_s5 + $0x10] sm:$0xff]  }
 0xa72   : > { %v19649_v50 = vpack.c.bf16 %v11554_v44, %v11546_v6 }
 0xa73   : > { %v19651_v16 = vpack.c.bf16 %v11555_v14, %v11547_v17  ;;  %v10738_v4 = vpop.f32.mrb[76].mxu0 }
 0xa74   : > { %v10739_v47 = vadd.f32 %v10738_v4, %v19632_v30  ;;  %v10740_v21 = vpop.f32.mrb[77].mxu0 }
 0xa75   : > { %v10741_v2 = vadd.f32 %v10740_v21, %v19635_v28  ;;  %v10742_v56 = vpop.f32.mrb[78].mxu0 }
 0xa76   : > { %v10743_v41 = vadd.f32 %v10742_v56, %v19632_v30  ;;  %v10744_v43 = vpop.f32.mrb[79].mxu0  ;;  %v11562_v18 = vmax.f32 %v10739_v47, 0.0 }
 0xa77   : > { %v10745_v31 = vadd.f32 %v10744_v43, %v19635_v28  ;;  %v11563_v48 = vmax.f32 %v10741_v2, 0.0  ;;  %v17024_v2 = vld [vmem:[%s20800_s5 + $0x18] sm:$0xff]  }
 0xa78   : > { %v11570_v5 = vmax.f32 %v10743_v41, 0.0  ;;  %14032 = vmatmul.mubr.msk.bf16.gmra.mrb[184].mxu0 %vm321_vm0, %v19507_v37  ;;  %14057 = vmatmul.mubr.msk.bf16.gmra.mrb[124].mxu1 %vm321_vm0, %v19509_v19 }
 0xa79   : > { %v11571_v20 = vmax.f32 %v10745_v31, 0.0  ;;  %11049 = vmatprep.mubr.bf16.mxu0 %v20807_v7  ;;  %11365 = vmatprep.mubr.bf16.mxu1 %v20807_v7 }
 0xa7a   : > { %v19663_v24 = vpack.c.bf16 %v11570_v5, %v11562_v18 }
 0xa7b   : > { %v19665_v8 = vpack.c.bf16 %v11571_v20, %v11563_v48  ;;  %v10748_v32 = vpop.f32.mrb[80].mxu0  ;;  %v17025_v48 = vld [vmem:[%s20800_s5 + $0x20] sm:$0xff]  }
 0xa7c   : > { %v10749_v59 = vadd.f32 %v10748_v32, %v19632_v30  ;;  %v10750_v33 = vpop.f32.mrb[81].mxu0 }
 0xa7d   : > { %v10751_v11 = vadd.f32 %v10750_v33, %v19635_v28  ;;  %v10752_v25 = vpop.f32.mrb[82].mxu0 }
 0xa7e   : > { %v10753_v51 = vadd.f32 %v10752_v25, %v19632_v30  ;;  %v10754_v40 = vpop.f32.mrb[83].mxu0  ;;  %v11578_v10 = vmax.f32 %v10749_v59, 0.0 }
 0xa7f   : > { %v10755_v34 = vadd.f32 %v10754_v40, %v19635_v28  ;;  %v11579_v29 = vmax.f32 %v10751_v11, 0.0 }
 0xa80   : > { %v11586_v63 = vmax.f32 %v10753_v51, 0.0  ;;  %14033 = vmatmul.mubr.msk.bf16.gmra.mrb[188].mxu0 %vm321_vm0, %v19525_v49  ;;  %14058 = vmatmul.mubr.msk.bf16.vlgmr.msra.gmra.mrb[128].mxu1 %vm321_vm0, %v19331_v54  ;;  %v17026_v51 = vld [vmem:[%s20800_s5 + $0x28] sm:$0xff]  }
 0xa81   : > { %v11587_v46 = vmax.f32 %v10755_v34, 0.0  ;;  %12498 = vmatpush1.bf16.msra.mxu1 %v17021_v62  ;;  %11059 = vmatprep.mubr.bf16.mxu0 %v20807_v7 }
 0xa82   : > { %v19682_v42 = vpack.c.bf16 %v11586_v63, %v11578_v10  ;;  %11375 = vmatprep.mubr.bf16.mxu1 %v20807_v7  ;;  %12499 = vmatprep.subr.bf16.mxu1 %v20807_v7  ;;  %v10530_v63 = vsub.s32 2, %v20937_v23 }
 0xa83   : > { %v19686_v60 = vpack.c.bf16 %v11587_v46, %v11579_v29  ;;  %v10758_v39 = vpop.f32.mrb[84].mxu0  ;;  %v10534_v46 = vsub.s32 3, %v20937_v23 }
 0xa84   : > { %v10759_v54 = vadd.f32 %v10758_v39, %v19632_v30  ;;  %v10760_v52 = vpop.f32.mrb[85].mxu0 }
 0xa85   : > { %v10761_v27 = vadd.f32 %v10760_v52, %v19635_v28  ;;  %v10762_v13 = vpop.f32.mrb[86].mxu0  ;;  %12500 = vmatpush1.bf16.msra.mxu1 %v17022_v36 }
 0xa86   : > { %v10763_v6 = vadd.f32 %v10762_v13, %v19632_v30  ;;  %v10764_v44 = vpop.f32.mrb[87].mxu0  ;;  %12501 = vmatprep.subr.bf16.mxu1 %v20807_v7  ;;  %v11594_v14 = vmax.f32 %v10759_v54, 0.0  ;;  %v17027_v54 = vld [vmem:[%s20800_s5 + $0x30] sm:$0xff]  }
 0xa87   : > { %v10765_v17 = vadd.f32 %v10764_v44, %v19635_v28  ;;  %v11595_v47 = vmax.f32 %v10761_v27, 0.0 }
 0xa88   : > { %v11602_v4 = vmax.f32 %v10763_v6, 0.0  ;;  %14034 = vmatmul.mubr.msk.bf16.gmra.mrb[192].mxu0 %vm321_vm0, %v19533_v1  ;;  %14059 = vmatmul.mubr.msk.bf16.gmra.mrb[132].mxu1 %vm321_vm0, %v19351_v15 }
 0xa89   : > { %v11603_v21 = vmax.f32 %v10765_v17, 0.0  ;;  %11385 = vmatprep.mubr.bf16.mxu1 %v20807_v7  ;;  %12502 = vmatpush1.bf16.msra.mxu1 %v17023_v61  ;;  %v19739_v61 = vrot.slane %v19624_v55, %v10530_v63  ;;  %v19744_v17 = vrot.slane %v19624_v55, %v10534_v46 }
 0xa8a   : > { %v19704_v56 = vpack.c.bf16 %v11602_v4, %v11594_v14  ;;  %12503 = vmatprep.subr.bf16.mxu1 %v20807_v7 }
 0xa8b   : > { %v19707_v41 = vpack.c.bf16 %v11603_v21, %v11595_v47  ;;  %v10768_v43 = vpop.f32.mrb[88].mxu0  ;;  %v17028_v47 = vld [vmem:[%s20800_s5 + $0x38] sm:$0xff]  }
 0xa8c   : > { %v10769_v31 = vadd.f32 %v10768_v43, %v19632_v30  ;;  %v10770_v18 = vpop.f32.mrb[89].mxu0 }
 0xa8d   : > { %v10771_v15 = vadd.f32 %v10770_v18, %v19635_v28  ;;  %v10772_v5 = vpop.f32.mrb[90].mxu0  ;;  %12504 = vmatpush1.bf16.msra.mxu1 %v17024_v2 }
 0xa8e   : > { %v10773_v20 = vadd.f32 %v10772_v5, %v19632_v30  ;;  %v10774_v32 = vpop.f32.mrb[91].mxu0  ;;  %12505 = vmatprep.subr.bf16.mxu1 %v20807_v7  ;;  %v11610_v33 = vmax.f32 %v10769_v31, 0.0 }
 0xa8f   : > { %v10775_v59 = vadd.f32 %v10774_v32, %v19635_v28  ;;  %v11611_v25 = vmax.f32 %v10771_v15, 0.0 }
 0xa90   : > { %v11618_v11 = vmax.f32 %v10773_v20, 0.0  ;;  %14060 = vmatmul.mubr.msk.bf16.gmra.mrb[136].mxu1 %vm321_vm0, %v19368_v12 }
 0xa91   : > { %v11619_v62 = vmax.f32 %v10775_v59, 0.0  ;;  %11395 = vmatprep.mubr.bf16.mxu1 %v20807_v7  ;;  %12506 = vmatpush1.bf16.msra.mxu1 %v17025_v48 }
 0xa92   : > { %v19723_v40 = vpack.c.bf16 %v11618_v11, %v11610_v33  ;;  %12507 = vmatprep.subr.bf16.mxu1 %v20807_v7 }
 0xa93   : > { %v19726_v34 = vpack.c.bf16 %v11619_v62, %v11611_v25  ;;  %v10778_v10 = vpop.f32.mrb[92].mxu0  ;;  %v17029_v25 = vld [vmem:[%s20800_s5 + $0x40] sm:$0xff]  }
 0xa94   : > { %v10779_v12 = vadd.f32 %v10778_v10, %v19632_v30  ;;  %v10780_v29 = vpop.f32.mrb[93].mxu0 }
 0xa95   : > { %v10781_v36 = vadd.f32 %v10780_v29, %v19635_v28  ;;  %v10782_v39 = vpop.f32.mrb[94].mxu0  ;;  %12508 = vmatpush1.bf16.msra.mxu1 %v17026_v51 }
 0xa96   : > { %v10783_v52 = vadd.f32 %v10782_v39, %v19632_v30  ;;  %v10784_v27 = vpop.f32.mrb[95].mxu0  ;;  %12509 = vmatprep.subr.bf16.mxu1 %v20807_v7  ;;  %v11626_v6 = vmax.f32 %v10779_v12, 0.0 }
 0xa97   : > { %v10785_v13 = vadd.f32 %v10784_v27, %v19635_v28  ;;  %v11627_v14 = vmax.f32 %v10781_v36, 0.0 }
 0xa98   : > { %v11634_v44 = vmax.f32 %v10783_v52, 0.0  ;;  %14061 = vmatmul.mubr.msk.bf16.gmra.mrb[140].mxu1 %vm321_vm0, %v19385_v9 }
 0xa99   : > { %v11635_v4 = vmax.f32 %v10785_v13, 0.0  ;;  %11405 = vmatprep.mubr.bf16.mxu1 %v20807_v7  ;;  %12510 = vmatpush1.bf16.msra.mxu1 %v17027_v54 }
 0xa9a   : > { %v19750_v21 = vpack.c.bf16 %v11634_v44, %v11626_v6  ;;  %v11071_v2 = vpop.f32.mrb[36].mxu1  ;;  %12511 = vmatprep.subr.bf16.mxu1 %v20807_v7  ;;  %v17030_v6 = vld [vmem:[%s20800_s5 + $0x48] sm:$0xff]  }
 0xa9b   : > { %v19753_v43 = vpack.c.bf16 %v11635_v4, %v11627_v14  ;;  %v11072_v9 = vadd.f32 %v11071_v2, %v19739_v61  ;;  %v10788_v31 = vpop.f32.mrb[96].mxu0  ;;  %v11073_v18 = vpop.f32.mrb[37].mxu1 }
 0xa9c   : > { %v10789_v15 = vadd.f32 %v10788_v31, %v19632_v30  ;;  %v11074_v5 = vadd.f32 %v11073_v18, %v19744_v17  ;;  %v10790_v48 = vpop.f32.mrb[97].mxu0  ;;  %v11075_v20 = vpop.f32.mrb[38].mxu1 }
 0xa9d   : > { %v10791_v32 = vadd.f32 %v10790_v48, %v19635_v28  ;;  %v11076_v59 = vadd.f32 %v11075_v20, %v19739_v61  ;;  %v10792_v33 = vpop.f32.mrb[98].mxu0  ;;  %v11077_v11 = vpop.f32.mrb[39].mxu1  ;;  %12512 = vmatpush1.bf16.msra.mxu1 %v17028_v47  ;;  %v11756_v63 = vmax.f32 %v11072_v9, 0.0 }
 0xa9e   : > { %v10793_v62 = vadd.f32 %v10792_v33, %v19632_v30  ;;  %v11078_v51 = vadd.f32 %v11077_v11, %v19744_v17  ;;  %v10794_v10 = vpop.f32.mrb[99].mxu0  ;;  %12513 = vmatprep.subr.bf16.mxu1 %v20807_v7  ;;  %v11642_v46 = vmax.f32 %v10789_v15, 0.0  ;;  %v11757_v36 = vmax.f32 %v11074_v5, 0.0 }
 0xa9f   : > { %v11764_v12 = vmax.f32 %v11076_v59, 0.0  ;;  %v10795_v29 = vadd.f32 %v10794_v10, %v19635_v28  ;;  %v11643_v52 = vmax.f32 %v10791_v32, 0.0  ;;  %v17031_v32 = vld [vmem:[%s20800_s5 + $0x50] sm:$0xff]  }
 0xaa0   : > { %v11650_v39 = vmax.f32 %v10793_v62, 0.0  ;;  %v11765_v54 = vmax.f32 %v11078_v51, 0.0  ;;  %14062 = vmatmul.mubr.msk.bf16.gmra.mrb[144].mxu1 %vm321_vm0, %v19402_v3 }
 0xaa1   : > { %v19769_v27 = vpack.c.bf16 %v11764_v12, %v11756_v63  ;;  %v11651_v13 = vmax.f32 %v10795_v29, 0.0  ;;  %11415 = vmatprep.mubr.bf16.mxu1 %v20807_v7  ;;  %12514 = vmatpush1.bf16.msra.mxu1 %v17029_v25 }
 0xaa2   : > { %v19775_v44 = vpack.c.bf16 %v11650_v39, %v11642_v46  ;;  %v19777_v14 = vpack.c.bf16 %v11765_v54, %v11757_v36  ;;  %12515 = vmatprep.subr.bf16.mxu1 %v20807_v7 }
 0xaa3   : > { %20938 = vst [vmem:[#allocation3_spill] sm:$0xff] %v19769_v27  ;;  %v19780_v4 = vpack.c.bf16 %v11651_v13, %v11643_v52  ;;  %v10798_v3 = vpop.f32.mrb[100].mxu0  ;;  %v11081_v47 = vpop.f32.mrb[40].mxu1  ;;  %v17032_v52 = vld [vmem:[%s20800_s5 + $0x58] sm:$0xff]  }
 0xaa4   : > { %20939 = vst [vmem:[#allocation4_spill] sm:$0xff] %v19777_v14  ;;  %v10799_v2 = vadd.f32 %v10798_v3, %v19632_v30  ;;  %v11082_v9 = vadd.f32 %v11081_v47, %v19739_v61  ;;  %v10800_v31 = vpop.f32.mrb[101].mxu0  ;;  %v11083_v18 = vpop.f32.mrb[41].mxu1 }
 0xaa5   : > { %v10801_v15 = vadd.f32 %v10800_v31, %v19635_v28  ;;  %v11084_v5 = vadd.f32 %v11083_v18, %v19744_v17  ;;  %v10802_v48 = vpop.f32.mrb[102].mxu0  ;;  %v11085_v20 = vpop.f32.mrb[42].mxu1  ;;  %12516 = vmatpush1.bf16.msra.mxu1 %v17030_v6 }
 0xaa6   : > { %v10803_v59 = vadd.f32 %v10802_v48, %v19632_v30  ;;  %v11086_v33 = vadd.f32 %v11085_v20, %v19739_v61  ;;  %v10804_v11 = vpop.f32.mrb[103].mxu0  ;;  %v11087_v25 = vpop.f32.mrb[43].mxu1  ;;  %12517 = vmatprep.subr.bf16.mxu1 %v20807_v7  ;;  %v11658_v10 = vmax.f32 %v10799_v2, 0.0  ;;  %v11772_v63 = vmax.f32 %v11082_v9, 0.0 }
 0xaa7   : > { %v10805_v62 = vadd.f32 %v10804_v11, %v19635_v28  ;;  %v11088_v51 = vadd.f32 %v11087_v25, %v19744_v17  ;;  %v11659_v46 = vmax.f32 %v10801_v15, 0.0  ;;  %v11773_v36 = vmax.f32 %v11084_v5, 0.0 }
 0xaa8   : > { %v11666_v12 = vmax.f32 %v10803_v59, 0.0  ;;  %v11780_v29 = vmax.f32 %v11086_v33, 0.0  ;;  %14063 = vmatmul.mubr.msk.bf16.gmra.mrb[148].mxu1 %vm321_vm0, %v19419_v58  ;;  %v17033_v59 = vld [vmem:[%s20800_s5 + $0x60] sm:$0xff]  }
 0xaa9   : > { %v11667_v39 = vmax.f32 %v10805_v62, 0.0  ;;  %v11781_v54 = vmax.f32 %v11088_v51, 0.0  ;;  %11425 = vmatprep.mubr.bf16.mxu1 %v20807_v7  ;;  %12518 = vmatpush1.bf16.msra.mxu1 %v17031_v32 }
 0xaaa   : > { %v19800_v13 = vpack.c.bf16 %v11666_v12, %v11658_v10  ;;  %v19802_v6 = vpack.c.bf16 %v11780_v29, %v11772_v63  ;;  %12519 = vmatprep.subr.bf16.mxu1 %v20807_v7 }
 0xaab   : > { %v19805_v3 = vpack.c.bf16 %v11667_v39, %v11659_v46  ;;  %v19807_v58 = vpack.c.bf16 %v11781_v54, %v11773_v36  ;;  %v10808_v47 = vpop.f32.mrb[104].mxu0  ;;  %v11091_v2 = vpop.f32.mrb[44].mxu1 }
 0xaac   : > { %20940 = vst [vmem:[#allocation5_spill] sm:$0xff] %v19802_v6  ;;  %v10809_v9 = vadd.f32 %v10808_v47, %v19632_v30  ;;  %v11092_v31 = vadd.f32 %v11091_v2, %v19739_v61  ;;  %v10810_v18 = vpop.f32.mrb[105].mxu0  ;;  %v11093_v15 = vpop.f32.mrb[45].mxu1  ;;  %v17034_v47 = vld [vmem:[%s20800_s5 + $0x68] sm:$0xff]  }
 0xaad   : > { %20941 = vst [vmem:[#allocation6_spill] sm:$0xff] %v19807_v58  ;;  %v10811_v5 = vadd.f32 %v10810_v18, %v19635_v28  ;;  %v11094_v48 = vadd.f32 %v11093_v15, %v19744_v17  ;;  %v10812_v20 = vpop.f32.mrb[106].mxu0  ;;  %v11095_v32 = vpop.f32.mrb[46].mxu1  ;;  %12520 = vmatpush1.bf16.msra.mxu1 %v17032_v52 }
 0xaae   : > { %v10813_v33 = vadd.f32 %v10812_v20, %v19632_v30  ;;  %v11096_v11 = vadd.f32 %v11095_v32, %v19739_v61  ;;  %v10814_v25 = vpop.f32.mrb[107].mxu0  ;;  %v11097_v62 = vpop.f32.mrb[47].mxu1  ;;  %12521 = vmatprep.subr.bf16.mxu1 %v20807_v7  ;;  %v11674_v63 = vmax.f32 %v10809_v9, 0.0  ;;  %v11788_v12 = vmax.f32 %v11092_v31, 0.0 }
 0xaaf   : > { %v10815_v51 = vadd.f32 %v10814_v25, %v19635_v28  ;;  %v11098_v10 = vadd.f32 %v11097_v62, %v19744_v17  ;;  %v11675_v36 = vmax.f32 %v10811_v5, 0.0  ;;  %v11789_v39 = vmax.f32 %v11094_v48, 0.0  ;;  %v17035_v62 = vld [vmem:[%s20800_s5 + $0x70] sm:$0xff]  }
 0xab0   : > { %v11682_v29 = vmax.f32 %v10813_v33, 0.0  ;;  %v11796_v46 = vmax.f32 %v11096_v11, 0.0  ;;  %14064 = vmatmul.mubr.msk.bf16.gmra.mrb[152].mxu1 %vm321_vm0, %v19444_v53 }
 0xab1   : > { %v11683_v54 = vmax.f32 %v10815_v51, 0.0  ;;  %v11797_v52 = vmax.f32 %v11098_v10, 0.0  ;;  %11435 = vmatprep.mubr.bf16.mxu1 %v20807_v7  ;;  %12522 = vmatpush1.bf16.msra.mxu1 %v17033_v59 }
 0xab2   : > { %v19827_v2 = vpack.c.bf16 %v11682_v29, %v11674_v63  ;;  %v19829_v9 = vpack.c.bf16 %v11796_v46, %v11788_v12  ;;  %12523 = vmatprep.subr.bf16.mxu1 %v20807_v7 }
 0xab3   : > { %v19832_v31 = vpack.c.bf16 %v11683_v54, %v11675_v36  ;;  %v19834_v53 = vpack.c.bf16 %v11797_v52, %v11789_v39  ;;  %v10818_v18 = vpop.f32.mrb[108].mxu0  ;;  %v11101_v15 = vpop.f32.mrb[48].mxu1 }
 0xab4   : > { %20942 = vst [vmem:[#allocation7_spill] sm:$0xff] %v19829_v9  ;;  %v10819_v5 = vadd.f32 %v10818_v18, %v19632_v30  ;;  %v11102_v48 = vadd.f32 %v11101_v15, %v19739_v61  ;;  %v10820_v20 = vpop.f32.mrb[109].mxu0  ;;  %v11103_v32 = vpop.f32.mrb[49].mxu1 }
 0xab5   : > { %20943 = vst [vmem:[#allocation8_spill] sm:$0xff] %v19834_v53  ;;  %v10821_v59 = vadd.f32 %v10820_v20, %v19635_v28  ;;  %v11104_v33 = vadd.f32 %v11103_v32, %v19744_v17  ;;  %v10822_v11 = vpop.f32.mrb[110].mxu0  ;;  %v11105_v25 = vpop.f32.mrb[50].mxu1  ;;  %12524 = vmatpush1.bf16.msra.mxu1 %v17034_v47  ;;  %v17036_v32 = vld [vmem:[%s20800_s5 + $0x78] sm:$0xff]  }
 0xab6   : > { %v10823_v51 = vadd.f32 %v10822_v11, %v19632_v30  ;;  %v11106_v10 = vadd.f32 %v11105_v25, %v19739_v61  ;;  %v10824_v63 = vpop.f32.mrb[111].mxu0  ;;  %v11107_v12 = vpop.f32.mrb[51].mxu1  ;;  %12525 = vmatprep.subr.bf16.mxu1 %v20807_v7  ;;  %v11690_v36 = vmax.f32 %v10819_v5, 0.0  ;;  %v11804_v39 = vmax.f32 %v11102_v48, 0.0 }
 0xab7   : > { %v10825_v29 = vadd.f32 %v10824_v63, %v19635_v28  ;;  %v11108_v46 = vadd.f32 %v11107_v12, %v19744_v17  ;;  %v11691_v47 = vmax.f32 %v10821_v59, 0.0  ;;  %v11805_v18 = vmax.f32 %v11104_v33, 0.0 }
 0xab8   : > { %v11698_v54 = vmax.f32 %v10823_v51, 0.0  ;;  %v11812_v52 = vmax.f32 %v11106_v10, 0.0  ;;  %14065 = vmatmul.mubr.msk.bf16.gmra.mrb[156].mxu1 %vm321_vm0, %v19477_v26  ;;  %v10538_v25 = vsub.s32 4, %v20937_v23 }
 0xab9   : > { %v11699_v15 = vmax.f32 %v10825_v29, 0.0  ;;  %v11813_v20 = vmax.f32 %v11108_v46, 0.0  ;;  %11445 = vmatprep.mubr.bf16.mxu1 %v20807_v7  ;;  %12526 = vmatpush1.bf16.msra.mxu1 %v17035_v62  ;;  %v10542_v62 = vsub.s32 5, %v20937_v23 }
 0xaba   : > { %v19854_v11 = vpack.c.bf16 %v11698_v54, %v11690_v36  ;;  %v19856_v5 = vpack.c.bf16 %v11812_v52, %v11804_v39  ;;  %12527 = vmatprep.subr.bf16.mxu1 %v20807_v7 }
 0xabb   : > { %v19859_v48 = vpack.c.bf16 %v11699_v15, %v11691_v47  ;;  %v19861_v26 = vpack.c.bf16 %v11813_v20, %v11805_v18  ;;  %v10828_v59 = vpop.f32.mrb[112].mxu0  ;;  %v11111_v33 = vpop.f32.mrb[52].mxu1 }
 0xabc   : > { %20944 = vst [vmem:[#allocation9_spill] sm:$0xff] %v19856_v5  ;;  %v10829_v51 = vadd.f32 %v10828_v59, %v19632_v30  ;;  %v11112_v10 = vadd.f32 %v11111_v33, %v19739_v61  ;;  %v10830_v63 = vpop.f32.mrb[113].mxu0  ;;  %v11113_v12 = vpop.f32.mrb[53].mxu1  ;;  %v19875_v59 = vrot.slane %v19624_v55, %v10538_v25  ;;  %v19878_v33 = vrot.slane %v19624_v55, %v10542_v62 }
 0xabd   : > { %20945 = vst [vmem:[#allocation10_spill] sm:$0xff] %v19861_v26  ;;  %v10831_v29 = vadd.f32 %v10830_v63, %v19635_v28  ;;  %v11114_v46 = vadd.f32 %v11113_v12, %v19744_v17  ;;  %v10832_v36 = vpop.f32.mrb[114].mxu0  ;;  %v11115_v39 = vpop.f32.mrb[54].mxu1  ;;  %12528 = vmatpush1.bf16.msra.mxu1 %v17036_v32 }
 0xabe   : > { %v10833_v54 = vadd.f32 %v10832_v36, %v19632_v30  ;;  %v11116_v52 = vadd.f32 %v11115_v39, %v19739_v61  ;;  %v10834_v47 = vpop.f32.mrb[115].mxu0  ;;  %v11117_v18 = vpop.f32.mrb[55].mxu1  ;;  %12674 = vmatprep.subr.bf16.mxu1 %v20807_v7  ;;  %v11706_v63 = vmax.f32 %v10829_v51, 0.0  ;;  %v11820_v32 = vmax.f32 %v11112_v10, 0.0 }
 0xabf   : > { %v10835_v15 = vadd.f32 %v10834_v47, %v19635_v28  ;;  %v11118_v20 = vadd.f32 %v11117_v18, %v19744_v17  ;;  %v11707_v39 = vmax.f32 %v10831_v29, 0.0  ;;  %v11821_v5 = vmax.f32 %v11114_v46, 0.0 }
 0xac0   : > { %v11714_v12 = vmax.f32 %v10833_v54, 0.0  ;;  %v11828_v36 = vmax.f32 %v11116_v52, 0.0  ;;  %14066 = vmatmul.mubr.msk.bf16.gmra.mrb[160].mxu1 %vm321_vm0, %v19487_v57  ;;  %v20946_v47 = vmov 0  }
 0xac1   : > { %v11715_v7 = vmax.f32 %v10835_v15, 0.0  ;;  %v11829_v26 = vmax.f32 %v11118_v20, 0.0  ;;  %11455 = vmatprep.mubr.bf16.mxu1 %v20946_v47 }
 0xac2   : > { %v19883_v18 = vpack.c.bf16 %v11714_v12, %v11706_v63  ;;  %v19885_v25 = vpack.c.bf16 %v11828_v36, %v11820_v32 }
 0xac3   : > { %v19887_v9 = vpack.c.bf16 %v11715_v7, %v11707_v39  ;;  %v19889_v55 = vpack.c.bf16 %v11829_v26, %v11821_v5  ;;  %v10838_v62 = vpop.f32.mrb[116].mxu0  ;;  %v11154_v51 = vpop.f32.mrb[56].mxu1 }
 0xac4   : > { %20947 = vst [vmem:[#allocation11_spill] sm:$0xff] %v19885_v25  ;;  %v10839_v10 = vadd.f32 %v10838_v62, %v19632_v30  ;;  %v11155_v57 = vadd.f32 %v11154_v51, %v19875_v59  ;;  %v10840_v29 = vpop.f32.mrb[117].mxu0  ;;  %v11156_v46 = vpop.f32.mrb[57].mxu1 }
 0xac5   : > { %20948 = vst [vmem:[#allocation12_spill] sm:$0xff] %v19889_v55  ;;  %v10841_v54 = vadd.f32 %v10840_v29, %v19635_v28  ;;  %v11157_v52 = vadd.f32 %v11156_v46, %v19878_v33  ;;  %v10842_v15 = vpop.f32.mrb[118].mxu0  ;;  %v11158_v20 = vpop.f32.mrb[58].mxu1 }
 0xac6   : > { %v10843_v63 = vadd.f32 %v10842_v15, %v19632_v30  ;;  %v11159_v7 = vadd.f32 %v11158_v20, %v19875_v59  ;;  %v10844_v5 = vpop.f32.mrb[119].mxu0  ;;  %v11160_v26 = vpop.f32.mrb[59].mxu1  ;;  %v11722_v36 = vmax.f32 %v10839_v10, 0.0  ;;  %v11550_v39 = vmax.f32 %v11155_v57, 0.0 }
 0xac7   : > { %v10845_v32 = vadd.f32 %v10844_v5, %v19635_v28  ;;  %v11161_v12 = vadd.f32 %v11160_v26, %v19878_v33  ;;  %v11723_v29 = vmax.f32 %v10841_v54, 0.0  ;;  %v11551_v46 = vmax.f32 %v11157_v52, 0.0 }
 0xac8   : > { %v11730_v62 = vmax.f32 %v10843_v63, 0.0  ;;  %v11558_v51 = vmax.f32 %v11159_v7, 0.0  ;;  %14067 = vmatmul.mubr.msk.bf16.gmra.mrb[164].mxu1 %vm321_vm0, %v19497_v45 }
 0xac9   : > { %v11731_v25 = vmax.f32 %v10845_v32, 0.0  ;;  %v11559_v55 = vmax.f32 %v11161_v12, 0.0  ;;  %11465 = vmatprep.mubr.bf16.mxu1 %v20946_v47 }
 0xaca   : > { %v19902_v15 = vpack.c.bf16 %v11730_v62, %v11722_v36  ;;  %v19904_v20 = vpack.c.bf16 %v11558_v51, %v11550_v39 }
 0xacb   : > { %v19906_v5 = vpack.c.bf16 %v11731_v25, %v11723_v29  ;;  %v19908_v26 = vpack.c.bf16 %v11559_v55, %v11551_v46  ;;  %v10848_v10 = vpop.f32.mrb[120].mxu0  ;;  %v11164_v57 = vpop.f32.mrb[60].mxu1 }
 0xacc   : > { %20949 = vst [vmem:[#allocation13_spill] sm:$0xff] %v19904_v20  ;;  %v10849_v63 = vadd.f32 %v10848_v10, %v19632_v30  ;;  %v11165_v45 = vadd.f32 %v11164_v57, %v19875_v59  ;;  %v10850_v54 = vpop.f32.mrb[121].mxu0  ;;  %v11166_v52 = vpop.f32.mrb[61].mxu1 }
 0xacd   : > { %20950 = vst [vmem:[#allocation14_spill] sm:$0xff] %v19908_v26  ;;  %v10851_v7 = vadd.f32 %v10850_v54, %v19635_v28  ;;  %v11167_v32 = vadd.f32 %v11166_v52, %v19878_v33  ;;  %v10852_v12 = vpop.f32.mrb[122].mxu0  ;;  %v11168_v36 = vpop.f32.mrb[62].mxu1 }
 0xace   : > { %v10853_v39 = vadd.f32 %v10852_v12, %v19632_v30  ;;  %v11169_v25 = vadd.f32 %v11168_v36, %v19875_v59  ;;  %v10854_v55 = vpop.f32.mrb[123].mxu0  ;;  %v11170_v62 = vpop.f32.mrb[63].mxu1  ;;  %v11738_v46 = vmax.f32 %v10849_v63, 0.0  ;;  %v11566_v10 = vmax.f32 %v11165_v45, 0.0 }
 0xacf   : > { %v10855_v51 = vadd.f32 %v10854_v55, %v19635_v28  ;;  %v11171_v29 = vadd.f32 %v11170_v62, %v19878_v33  ;;  %v11739_v54 = vmax.f32 %v10851_v7, 0.0  ;;  %v11567_v52 = vmax.f32 %v11167_v32, 0.0 }
 0xad0   : > { %v11746_v57 = vmax.f32 %v10853_v39, 0.0  ;;  %v11574_v20 = vmax.f32 %v11169_v25, 0.0  ;;  %14068 = vmatmul.mubr.msk.bf16.gmra.mrb[168].mxu1 %vm321_vm0, %v19507_v37 }
 0xad1   : > { %v11747_v26 = vmax.f32 %v10855_v51, 0.0  ;;  %v11575_v53 = vmax.f32 %v11171_v29, 0.0  ;;  %11475 = vmatprep.mubr.bf16.mxu1 %v20946_v47 }
 0xad2   : > { %v19921_v12 = vpack.c.bf16 %v11746_v57, %v11738_v46  ;;  %v19923_v36 = vpack.c.bf16 %v11574_v20, %v11566_v10 }
 0xad3   : > { %v19925_v55 = vpack.c.bf16 %v11747_v26, %v11739_v54  ;;  %v19927_v62 = vpack.c.bf16 %v11575_v53, %v11567_v52  ;;  %v10858_v63 = vpop.f32.mrb[124].mxu0  ;;  %v11174_v45 = vpop.f32.mrb[64].mxu1 }
 0xad4   : > { %20951 = vst [vmem:[#allocation15_spill] sm:$0xff] %v19923_v36  ;;  %v10859_v39 = vadd.f32 %v10858_v63, %v19632_v30  ;;  %v11175_v37 = vadd.f32 %v11174_v45, %v19875_v59  ;;  %v10860_v7 = vpop.f32.mrb[125].mxu0  ;;  %v11176_v32 = vpop.f32.mrb[65].mxu1 }
 0xad5   : > { %20952 = vst [vmem:[#allocation16_spill] sm:$0xff] %v19927_v62  ;;  %v10861_v25 = vadd.f32 %v10860_v7, %v19635_v28  ;;  %v11177_v51 = vadd.f32 %v11176_v32, %v19878_v33  ;;  %v10862_v29 = vpop.f32.mrb[126].mxu0  ;;  %v11178_v46 = vpop.f32.mrb[66].mxu1 }
 0xad6   : > { %v10863_v20 = vadd.f32 %v10862_v29, %v19632_v30  ;;  %v11179_v26 = vadd.f32 %v11178_v46, %v19875_v59  ;;  %v10864_v53 = vpop.f32.mrb[127].mxu0  ;;  %v11180_v10 = vpop.f32.mrb[67].mxu1  ;;  %v11754_v52 = vmax.f32 %v10859_v39, 0.0  ;;  %v11582_v63 = vmax.f32 %v11175_v37, 0.0 }
 0xad7   : > { %v10865_v57 = vadd.f32 %v10864_v53, %v19635_v28  ;;  %v11181_v54 = vadd.f32 %v11180_v10, %v19878_v33  ;;  %v11755_v7 = vmax.f32 %v10861_v25, 0.0  ;;  %v11583_v32 = vmax.f32 %v11177_v51, 0.0 }
 0xad8   : > { %v11762_v45 = vmax.f32 %v10863_v20, 0.0  ;;  %v11590_v36 = vmax.f32 %v11179_v26, 0.0  ;;  %14069 = vmatmul.mubr.msk.bf16.gmra.mrb[172].mxu1 %vm321_vm0, %v19525_v49 }
 0xad9   : > { %v11763_v62 = vmax.f32 %v10865_v57, 0.0  ;;  %v11591_v6 = vmax.f32 %v11181_v54, 0.0  ;;  %11485 = vmatprep.mubr.bf16.mxu1 %v20946_v47 }
 0xada   : > { %v19940_v29 = vpack.c.bf16 %v11762_v45, %v11754_v52  ;;  %v19942_v46 = vpack.c.bf16 %v11590_v36, %v11582_v63 }
 0xadb   : > { %v19944_v53 = vpack.c.bf16 %v11763_v62, %v11755_v7  ;;  %v19946_v10 = vpack.c.bf16 %v11591_v6, %v11583_v32  ;;  %v10868_v39 = vpop.f32.mrb[128].mxu0  ;;  %v11184_v37 = vpop.f32.mrb[68].mxu1 }
 0xadc   : > { %20953 = vst [vmem:[#allocation17_spill] sm:$0xff] %v19942_v46  ;;  %v10869_v20 = vadd.f32 %v10868_v39, %v19632_v30  ;;  %v11185_v49 = vadd.f32 %v11184_v37, %v19875_v59  ;;  %v10870_v25 = vpop.f32.mrb[129].mxu0  ;;  %v11186_v51 = vpop.f32.mrb[69].mxu1 }
 0xadd   : > { %20954 = vst [vmem:[#allocation18_spill] sm:$0xff] %v19946_v10  ;;  %v10871_v26 = vadd.f32 %v10870_v25, %v19635_v28  ;;  %v11187_v57 = vadd.f32 %v11186_v51, %v19878_v33  ;;  %v10872_v54 = vpop.f32.mrb[130].mxu0  ;;  %v11188_v52 = vpop.f32.mrb[70].mxu1 }
 0xade   : > { %v10873_v36 = vadd.f32 %v10872_v54, %v19632_v30  ;;  %v11189_v62 = vadd.f32 %v11188_v52, %v19875_v59  ;;  %v10874_v6 = vpop.f32.mrb[131].mxu0  ;;  %v11190_v63 = vpop.f32.mrb[71].mxu1  ;;  %v11770_v32 = vmax.f32 %v10869_v20, 0.0  ;;  %v11598_v39 = vmax.f32 %v11185_v49, 0.0 }
 0xadf   : > { %v10875_v45 = vadd.f32 %v10874_v6, %v19635_v28  ;;  %v11191_v7 = vadd.f32 %v11190_v63, %v19878_v33  ;;  %v11771_v25 = vmax.f32 %v10871_v26, 0.0  ;;  %v11599_v51 = vmax.f32 %v11187_v57, 0.0 }
 0xae0   : > { %v11778_v37 = vmax.f32 %v10873_v36, 0.0  ;;  %v11606_v46 = vmax.f32 %v11189_v62, 0.0  ;;  %14070 = vmatmul.mubr.msk.bf16.gmra.mrb[176].mxu1 %vm321_vm0, %v19533_v1 }
 0xae1   : > { %v11779_v10 = vmax.f32 %v10875_v45, 0.0  ;;  %v11607_v58 = vmax.f32 %v11191_v7, 0.0  ;;  %11495 = vmatprep.mubr.bf16.mxu1 %v20946_v47 }
 0xae2   : > { %v19959_v54 = vpack.c.bf16 %v11778_v37, %v11770_v32  ;;  %v19961_v52 = vpack.c.bf16 %v11606_v46, %v11598_v39 }
 0xae3   : > { %v19963_v6 = vpack.c.bf16 %v11779_v10, %v11771_v25  ;;  %v19965_v63 = vpack.c.bf16 %v11607_v58, %v11599_v51  ;;  %v10878_v20 = vpop.f32.mrb[132].mxu0  ;;  %v11194_v49 = vpop.f32.mrb[72].mxu1 }
 0xae4   : > { %20955 = vst [vmem:[#allocation19_spill] sm:$0xff] %v19961_v52  ;;  %v10879_v36 = vadd.f32 %v10878_v20, %v19632_v30  ;;  %v11195_v1 = vadd.f32 %v11194_v49, %v19875_v59  ;;  %v10880_v26 = vpop.f32.mrb[133].mxu0  ;;  %v11196_v57 = vpop.f32.mrb[73].mxu1 }
 0xae5   : > { %20956 = vst [vmem:[#allocation20_spill] sm:$0xff] %v19965_v63  ;;  %v10881_v62 = vadd.f32 %v10880_v26, %v19635_v28  ;;  %v11197_v45 = vadd.f32 %v11196_v57, %v19878_v33  ;;  %v10882_v7 = vpop.f32.mrb[134].mxu0  ;;  %v11198_v32 = vpop.f32.mrb[74].mxu1 }
 0xae6   : > { %v10883_v46 = vadd.f32 %v10882_v7, %v19632_v30  ;;  %v11199_v10 = vadd.f32 %v11198_v32, %v19875_v59  ;;  %v10884_v58 = vpop.f32.mrb[135].mxu0  ;;  %v11200_v39 = vpop.f32.mrb[75].mxu1  ;;  %v11786_v51 = vmax.f32 %v10879_v36, 0.0  ;;  %v11614_v20 = vmax.f32 %v11195_v1, 0.0 }
 0xae7   : > { %v10885_v37 = vadd.f32 %v10884_v58, %v19635_v28  ;;  %v11201_v25 = vadd.f32 %v11200_v39, %v19878_v33  ;;  %v11787_v26 = vmax.f32 %v10881_v62, 0.0  ;;  %v11615_v57 = vmax.f32 %v11197_v45, 0.0 }
 0xae8   : > { %v11794_v49 = vmax.f32 %v10883_v46, 0.0  ;;  %v11622_v52 = vmax.f32 %v11199_v10, 0.0  ;;  %14071 = vmatmul.mubr.msk.bf16.gmra.mrb[180].mxu1 %vm321_vm0, %v19440_v22 }
 0xae9   : > { %v11795_v63 = vmax.f32 %v10885_v37, 0.0  ;;  %v11623_v27 = vmax.f32 %v11201_v25, 0.0  ;;  %11505 = vmatprep.mubr.bf16.mxu1 %v20946_v47 }
 0xaea   : > { %v19978_v7 = vpack.c.bf16 %v11794_v49, %v11786_v51  ;;  %v19980_v32 = vpack.c.bf16 %v11622_v52, %v11614_v20 }
 0xaeb   : > { %v19982_v58 = vpack.c.bf16 %v11795_v63, %v11787_v26  ;;  %v19984_v39 = vpack.c.bf16 %v11623_v27, %v11615_v57  ;;  %v10888_v36 = vpop.f32.mrb[136].mxu0  ;;  %v11204_v1 = vpop.f32.mrb[76].mxu1 }
 0xaec   : > { %20957 = vst [vmem:[#allocation21_spill] sm:$0xff] %v19980_v32  ;;  %v10889_v46 = vadd.f32 %v10888_v36, %v19632_v30  ;;  %v11205_v22 = vadd.f32 %v11204_v1, %v19875_v59  ;;  %v10890_v62 = vpop.f32.mrb[137].mxu0  ;;  %v11206_v45 = vpop.f32.mrb[77].mxu1 }
 0xaed   : > { %20958 = vst [vmem:[#allocation22_spill] sm:$0xff] %v19984_v39  ;;  %v10891_v10 = vadd.f32 %v10890_v62, %v19635_v28  ;;  %v11207_v37 = vadd.f32 %v11206_v45, %v19878_v33  ;;  %v10892_v25 = vpop.f32.mrb[138].mxu0  ;;  %v11208_v51 = vpop.f32.mrb[78].mxu1 }
 0xaee   : > { %v10893_v52 = vadd.f32 %v10892_v25, %v19632_v30  ;;  %v11209_v63 = vadd.f32 %v11208_v51, %v19875_v59  ;;  %v10894_v27 = vpop.f32.mrb[139].mxu0  ;;  %v11210_v20 = vpop.f32.mrb[79].mxu1  ;;  %v11802_v57 = vmax.f32 %v10889_v46, 0.0  ;;  %v11630_v36 = vmax.f32 %v11205_v22, 0.0 }
 0xaef   : > { %v10895_v49 = vadd.f32 %v10894_v27, %v19635_v28  ;;  %v11211_v26 = vadd.f32 %v11210_v20, %v19878_v33  ;;  %v11803_v62 = vmax.f32 %v10891_v10, 0.0  ;;  %v11631_v45 = vmax.f32 %v11207_v37, 0.0 }
 0xaf0   : > { %v11810_v1 = vmax.f32 %v10893_v52, 0.0  ;;  %v11638_v32 = vmax.f32 %v11209_v63, 0.0  ;;  %14072 = vmatmul.mubr.msk.bf16.gmra.mrb[184].mxu1 %vm321_vm0, %v19479_v38 }
 0xaf1   : > { %v11811_v39 = vmax.f32 %v10895_v49, 0.0  ;;  %v11639_v14 = vmax.f32 %v11211_v26, 0.0  ;;  %11515 = vmatprep.mubr.bf16.mxu1 %v20946_v47 }
 0xaf2   : > { %v19997_v25 = vpack.c.bf16 %v11810_v1, %v11802_v57  ;;  %v19999_v51 = vpack.c.bf16 %v11638_v32, %v11630_v36 }
 0xaf3   : > { %v20001_v27 = vpack.c.bf16 %v11811_v39, %v11803_v62  ;;  %v20003_v20 = vpack.c.bf16 %v11639_v14, %v11631_v45  ;;  %v10898_v46 = vpop.f32.mrb[140].mxu0  ;;  %v11214_v22 = vpop.f32.mrb[80].mxu1 }
 0xaf4   : > { %20959 = vst [vmem:[#allocation23_spill] sm:$0xff] %v19997_v25  ;;  %20960 = vst [vmem:[#allocation24_spill] sm:$0xff] %v19999_v51  ;;  %v10899_v52 = vadd.f32 %v10898_v46, %v19632_v30  ;;  %v11215_v38 = vadd.f32 %v11214_v22, %v19875_v59  ;;  %v10900_v10 = vpop.f32.mrb[141].mxu0  ;;  %v11216_v37 = vpop.f32.mrb[81].mxu1 }
 0xaf5   : > { %20961 = vst [vmem:[#allocation25_spill] sm:$0xff] %v20003_v20  ;;  %v10901_v63 = vadd.f32 %v10900_v10, %v19635_v28  ;;  %v11217_v49 = vadd.f32 %v11216_v37, %v19878_v33  ;;  %v10902_v26 = vpop.f32.mrb[142].mxu0  ;;  %v11218_v57 = vpop.f32.mrb[82].mxu1 }
 0xaf6   : > { %v10903_v32 = vadd.f32 %v10902_v26, %v19632_v30  ;;  %v11219_v39 = vadd.f32 %v11218_v57, %v19875_v59  ;;  %v10904_v14 = vpop.f32.mrb[143].mxu0  ;;  %v11220_v36 = vpop.f32.mrb[83].mxu1  ;;  %v11818_v45 = vmax.f32 %v10899_v52, 0.0  ;;  %v11646_v46 = vmax.f32 %v11215_v38, 0.0 }
 0xaf7   : > { %v10905_v1 = vadd.f32 %v10904_v14, %v19635_v28  ;;  %v11221_v62 = vadd.f32 %v11220_v36, %v19878_v33  ;;  %v11819_v10 = vmax.f32 %v10901_v63, 0.0  ;;  %v11647_v37 = vmax.f32 %v11217_v49, 0.0 }
 0xaf8   : > { %v11826_v22 = vmax.f32 %v10903_v32, 0.0  ;;  %v11654_v51 = vmax.f32 %v11219_v39, 0.0  ;;  %14073 = vmatmul.mubr.msk.bf16.gmra.mrb[188].mxu1 %vm321_vm0, %v19489_v35 }
 0xaf9   : > { %v11827_v20 = vmax.f32 %v10905_v1, 0.0  ;;  %v11655_v25 = vmax.f32 %v11221_v62, 0.0  ;;  %11525 = vmatprep.mubr.bf16.mxu1 %v20946_v47 }
 0xafa   : > { %v20016_v30 = vpack.c.bf16 %v11826_v22, %v11818_v45  ;;  %v20018_v26 = vpack.c.bf16 %v11654_v51, %v11646_v46 }
 0xafb   : > { %v20020_v28 = vpack.c.bf16 %v11827_v20, %v11819_v10  ;;  %v20022_v57 = vpack.c.bf16 %v11655_v25, %v11647_v37  ;;  %v10941_v52 = vpop.f32.mrb[144].mxu0  ;;  %v11224_v38 = vpop.f32.mrb[84].mxu1 }
 0xafc   : > { %20962 = vst [vmem:[#allocation26_spill] sm:$0xff] %v20018_v26  ;;  %v10942_v32 = vadd.f32 %v10941_v52, %v19739_v61  ;;  %v11225_v35 = vadd.f32 %v11224_v38, %v19875_v59  ;;  %v10943_v63 = vpop.f32.mrb[145].mxu0  ;;  %v11226_v49 = vpop.f32.mrb[85].mxu1 }
 0xafd   : > { %20963 = vst [vmem:[#allocation27_spill] sm:$0xff] %v20022_v57  ;;  %v10944_v39 = vadd.f32 %v10943_v63, %v19744_v17  ;;  %v11227_v14 = vadd.f32 %v11226_v49, %v19878_v33  ;;  %v10945_v36 = vpop.f32.mrb[146].mxu0  ;;  %v11228_v1 = vpop.f32.mrb[86].mxu1 }
 0xafe   : > { %v10946_v51 = vadd.f32 %v10945_v36, %v19739_v61  ;;  %v11229_v20 = vadd.f32 %v11228_v1, %v19875_v59  ;;  %v10947_v25 = vpop.f32.mrb[147].mxu0  ;;  %v11230_v62 = vpop.f32.mrb[87].mxu1  ;;  %v11548_v22 = vmax.f32 %v10942_v32, 0.0  ;;  %v11662_v10 = vmax.f32 %v11225_v35, 0.0 }
 0xaff   : > { %v10948_v45 = vadd.f32 %v10947_v25, %v19744_v17  ;;  %v11231_v46 = vadd.f32 %v11230_v62, %v19878_v33  ;;  %v11549_v38 = vmax.f32 %v10944_v39, 0.0  ;;  %v11663_v63 = vmax.f32 %v11227_v14, 0.0 }
 0xb00   : > { %v11556_v37 = vmax.f32 %v10946_v51, 0.0  ;;  %v11670_v52 = vmax.f32 %v11229_v20, 0.0  ;;  %14074 = vmatmul.mubr.msk.bf16.gmra.mrb[192].mxu1 %vm321_vm0, %v19499_v0 }
 0xb01   : > { %v11557_v49 = vmax.f32 %v10948_v45, 0.0  ;;  %v11671_v26 = vmax.f32 %v11231_v46, 0.0  ;;  %11535 = vmatprep.mubr.bf16.mxu1 %v20946_v47 }
 0xb02   : > { %v20035_v36 = vpack.c.bf16 %v11556_v37, %v11548_v22  ;;  %v20037_v1 = vpack.c.bf16 %v11670_v52, %v11662_v10 }
 0xb03   : > { %v20039_v25 = vpack.c.bf16 %v11557_v49, %v11549_v38  ;;  %v20041_v62 = vpack.c.bf16 %v11671_v26, %v11663_v63  ;;  %v10951_v32 = vpop.f32.mrb[148].mxu0  ;;  %v11234_v35 = vpop.f32.mrb[88].mxu1 }
 0xb04   : > { %20964 = vst [vmem:[#allocation28_spill] sm:$0xff] %v20037_v1  ;;  %v10952_v51 = vadd.f32 %v10951_v32, %v19739_v61  ;;  %v11235_v0 = vadd.f32 %v11234_v35, %v19875_v59  ;;  %v10953_v39 = vpop.f32.mrb[149].mxu0  ;;  %v11236_v14 = vpop.f32.mrb[89].mxu1 }
 0xb05   : > { %20965 = vst [vmem:[#allocation29_spill] sm:$0xff] %v20041_v62  ;;  %v10954_v20 = vadd.f32 %v10953_v39, %v19744_v17  ;;  %v11237_v45 = vadd.f32 %v11236_v14, %v19878_v33  ;;  %v10955_v46 = vpop.f32.mrb[150].mxu0  ;;  %v11238_v22 = vpop.f32.mrb[90].mxu1 }
 0xb06   : > { %v10956_v10 = vadd.f32 %v10955_v46, %v19739_v61  ;;  %v11239_v37 = vadd.f32 %v11238_v22, %v19875_v59  ;;  %v10957_v26 = vpop.f32.mrb[151].mxu0  ;;  %v11240_v52 = vpop.f32.mrb[91].mxu1  ;;  %v11564_v49 = vmax.f32 %v10952_v51, 0.0  ;;  %v11678_v32 = vmax.f32 %v11235_v0, 0.0 }
 0xb07   : > { %v10958_v38 = vadd.f32 %v10957_v26, %v19744_v17  ;;  %v11241_v63 = vadd.f32 %v11240_v52, %v19878_v33  ;;  %v11565_v39 = vmax.f32 %v10954_v20, 0.0  ;;  %v11679_v14 = vmax.f32 %v11237_v45, 0.0 }
 0xb08   : > { %v11572_v35 = vmax.f32 %v10956_v10, 0.0  ;;  %v11686_v1 = vmax.f32 %v11239_v37, 0.0  ;;  %14075 = vmatmul.mubr.msk.bf16.gmra.mrb[196].mxu1 %vm321_vm0, %v19509_v19 }
 0xb09   : > { %v11573_v62 = vmax.f32 %v10958_v38, 0.0  ;;  %v11687_v57 = vmax.f32 %v11241_v63, 0.0  ;;  %12529 = vmatprep.mubr.bf16.mxu1 %v19651_v16 }
 0xb0a   : > { %v20054_v46 = vpack.c.bf16 %v11572_v35, %v11564_v49  ;;  %v20056_v22 = vpack.c.bf16 %v11686_v1, %v11678_v32  ;;  %v17037_v1 = vld [vmem:[%s20800_s5 + $0x80] sm:$0xff]  }
 0xb0b   : > { %v20058_v26 = vpack.c.bf16 %v11573_v62, %v11565_v39  ;;  %v20060_v52 = vpack.c.bf16 %v11687_v57, %v11679_v14  ;;  %v10961_v51 = vpop.f32.mrb[152].mxu0  ;;  %v11244_v0 = vpop.f32.mrb[92].mxu1 }
 0xb0c   : > { %20966 = vst [vmem:[#allocation30_spill] sm:$0xff] %v20054_v46  ;;  %20967 = vst [vmem:[#allocation31_spill] sm:$0xff] %v20056_v22  ;;  %v10962_v10 = vadd.f32 %v10961_v51, %v19739_v61  ;;  %v11245_v19 = vadd.f32 %v11244_v0, %v19875_v59  ;;  %v10963_v20 = vpop.f32.mrb[153].mxu0  ;;  %v11246_v45 = vpop.f32.mrb[93].mxu1 }
 0xb0d   : > { %20968 = vst [vmem:[#allocation32_spill] sm:$0xff] %v20060_v52  ;;  %v10964_v37 = vadd.f32 %v10963_v20, %v19744_v17  ;;  %v11247_v16 = vadd.f32 %v11246_v45, %v19878_v33  ;;  %v10965_v38 = vpop.f32.mrb[154].mxu0  ;;  %v11248_v63 = vpop.f32.mrb[94].mxu1 }
 0xb0e   : > { %v10966_v57 = vadd.f32 %v10965_v38, %v19739_v61  ;;  %v11249_v62 = vadd.f32 %v11248_v63, %v19875_v59  ;;  %v10967_v49 = vpop.f32.mrb[155].mxu0  ;;  %v11250_v32 = vpop.f32.mrb[95].mxu1  ;;  %v11580_v14 = vmax.f32 %v10962_v10, 0.0  ;;  %v11694_v51 = vmax.f32 %v11245_v19, 0.0  ;;  %v17038_v38 = vld [vmem:[%s20800_s5 + $0x88] sm:$0xff]  }
 0xb0f   : > { %v10968_v35 = vadd.f32 %v10967_v49, %v19744_v17  ;;  %v11251_v39 = vadd.f32 %v11250_v32, %v19878_v33  ;;  %v11581_v45 = vmax.f32 %v10964_v37, 0.0  ;;  %v11695_v22 = vmax.f32 %v11247_v16, 0.0 }
 0xb10   : > { %v11588_v0 = vmax.f32 %v10966_v57, 0.0  ;;  %v11702_v20 = vmax.f32 %v11249_v62, 0.0  ;;  %12530 = vmatmul.mubr.bf16.vlgmr.msra.gmra.mrb[200].mxu1 %v19649_v50 }
 0xb11   : > { %v11589_v52 = vmax.f32 %v10968_v35, 0.0  ;;  %v11703_v46 = vmax.f32 %v11251_v39, 0.0  ;;  %12675 = vmatpush1.bf16.msra.mxu1 %v17037_v1  ;;  %12537 = vmatprep.mubr.bf16.mxu1 %v19665_v8 }
 0xb12   : > { %v20078_v63 = vpack.c.bf16 %v11588_v0, %v11580_v14  ;;  %v20080_v49 = vpack.c.bf16 %v11702_v20, %v11694_v51  ;;  %12676 = vmatprep.subr.bf16.mxu1 %v20946_v47 }
 0xb13   : > { %v20083_v10 = vpack.c.bf16 %v11589_v52, %v11581_v45  ;;  %v20085_v50 = vpack.c.bf16 %v11703_v46, %v11695_v22  ;;  %v10971_v19 = vpop.f32.mrb[156].mxu0  ;;  %v11254_v37 = vpop.f32.mrb[96].mxu1  ;;  %v17039_v46 = vld [vmem:[%s20800_s5 + $0x90] sm:$0xff]  }
 0xb14   : > { %20969 = vst [vmem:[#allocation33_spill] sm:$0xff] %v20080_v49  ;;  %v10972_v16 = vadd.f32 %v10971_v19, %v19739_v61  ;;  %v11255_v8 = vadd.f32 %v11254_v37, %v19875_v59  ;;  %v10973_v1 = vpop.f32.mrb[157].mxu0  ;;  %v11256_v57 = vpop.f32.mrb[97].mxu1 }
 0xb15   : > { %v10974_v62 = vadd.f32 %v10973_v1, %v19744_v17  ;;  %v11257_v32 = vadd.f32 %v11256_v57, %v19878_v33  ;;  %v10975_v35 = vpop.f32.mrb[158].mxu0  ;;  %v11258_v39 = vpop.f32.mrb[98].mxu1  ;;  %12677 = vmatpush1.bf16.msra.mxu1 %v17038_v38 }
 0xb16   : > { %v10976_v22 = vadd.f32 %v10975_v35, %v19739_v61  ;;  %v11259_v52 = vadd.f32 %v11258_v39, %v19875_v59  ;;  %v10977_v14 = vpop.f32.mrb[159].mxu0  ;;  %v11260_v51 = vpop.f32.mrb[99].mxu1  ;;  %12678 = vmatprep.subr.bf16.mxu1 %v20946_v47  ;;  %v11596_v45 = vmax.f32 %v10972_v16, 0.0  ;;  %v11710_v19 = vmax.f32 %v11255_v8, 0.0  ;;  %v17040_v39 = vld [vmem:[%s20800_s5 + $0x98] sm:$0xff]  }
 0xb17   : > { %v10978_v0 = vadd.f32 %v10977_v14, %v19744_v17  ;;  %v11261_v20 = vadd.f32 %v11260_v51, %v19878_v33  ;;  %v11597_v1 = vmax.f32 %v10974_v62, 0.0  ;;  %v11711_v57 = vmax.f32 %v11257_v32, 0.0 }
 0xb18   : > { %v11604_v37 = vmax.f32 %v10976_v22, 0.0  ;;  %v11718_v38 = vmax.f32 %v11259_v52, 0.0  ;;  %12538 = vmatmul.mubr.bf16.gmra.mrb[204].mxu1 %v19663_v24 }
 0xb19   : > { %v11605_v49 = vmax.f32 %v10978_v0, 0.0  ;;  %v11719_v35 = vmax.f32 %v11261_v20, 0.0  ;;  %12545 = vmatprep.mubr.bf16.mxu1 %v19686_v60  ;;  %12679 = vmatpush1.bf16.msra.mxu1 %v17039_v46 }
 0xb1a   : > { %v20104_v14 = vpack.c.bf16 %v11604_v37, %v11596_v45  ;;  %v20106_v51 = vpack.c.bf16 %v11718_v38, %v11710_v19  ;;  %12680 = vmatprep.subr.bf16.mxu1 %v20946_v47 }
 0xb1b   : > { %v20109_v16 = vpack.c.bf16 %v11605_v49, %v11597_v1  ;;  %v20111_v24 = vpack.c.bf16 %v11719_v35, %v11711_v57  ;;  %v10981_v8 = vpop.f32.mrb[160].mxu0  ;;  %v11264_v62 = vpop.f32.mrb[100].mxu1  ;;  %v17041_v49 = vld [vmem:[%s20800_s5 + $0xa0] sm:$0xff]  }
 0xb1c   : > { %20970 = vst [vmem:[#allocation34_spill] sm:$0xff] %v20106_v51  ;;  %v10982_v32 = vadd.f32 %v10981_v8, %v19739_v61  ;;  %v11265_v60 = vadd.f32 %v11264_v62, %v19875_v59  ;;  %v10983_v46 = vpop.f32.mrb[161].mxu0  ;;  %v11266_v22 = vpop.f32.mrb[101].mxu1 }
 0xb1d   : > { %20971 = vst [vmem:[#allocation35_spill] sm:$0xff] %v20111_v24  ;;  %v10984_v52 = vadd.f32 %v10983_v46, %v19744_v17  ;;  %v11267_v0 = vadd.f32 %v11266_v22, %v19878_v33  ;;  %v10985_v20 = vpop.f32.mrb[162].mxu0  ;;  %v11268_v45 = vpop.f32.mrb[102].mxu1  ;;  %12681 = vmatpush1.bf16.msra.mxu1 %v17040_v39 }
 0xb1e   : > { %v10986_v19 = vadd.f32 %v10985_v20, %v19739_v61  ;;  %v11269_v37 = vadd.f32 %v11268_v45, %v19875_v59  ;;  %v10987_v38 = vpop.f32.mrb[163].mxu0  ;;  %v11270_v1 = vpop.f32.mrb[103].mxu1  ;;  %12682 = vmatprep.subr.bf16.mxu1 %v20946_v47  ;;  %v11612_v8 = vmax.f32 %v10982_v32, 0.0  ;;  %v11726_v62 = vmax.f32 %v11265_v60, 0.0  ;;  %v17042_v45 = vld [vmem:[%s20800_s5 + $0xa8] sm:$0xff]  }
 0xb1f   : > { %v10988_v57 = vadd.f32 %v10987_v38, %v19744_v17  ;;  %v11271_v35 = vadd.f32 %v11270_v1, %v19878_v33  ;;  %v11613_v22 = vmax.f32 %v10984_v52, 0.0  ;;  %v11727_v51 = vmax.f32 %v11267_v0, 0.0 }
 0xb20   : > { %v11620_v46 = vmax.f32 %v10986_v19, 0.0  ;;  %v11734_v39 = vmax.f32 %v11269_v37, 0.0  ;;  %12546 = vmatmul.mubr.bf16.gmra.mrb[208].mxu1 %v19682_v42 }
 0xb21   : > { %v11621_v24 = vmax.f32 %v10988_v57, 0.0  ;;  %v11735_v20 = vmax.f32 %v11271_v35, 0.0  ;;  %12553 = vmatprep.mubr.bf16.mxu1 %v19707_v41  ;;  %12683 = vmatpush1.bf16.msra.mxu1 %v17041_v49 }
 0xb22   : > { %v20130_v38 = vpack.c.bf16 %v11620_v46, %v11612_v8  ;;  %v20132_v1 = vpack.c.bf16 %v11734_v39, %v11726_v62  ;;  %12684 = vmatprep.subr.bf16.mxu1 %v20946_v47 }
 0xb23   : > { %v20135_v32 = vpack.c.bf16 %v11621_v24, %v11613_v22  ;;  %v20137_v42 = vpack.c.bf16 %v11735_v20, %v11727_v51  ;;  %v10991_v60 = vpop.f32.mrb[164].mxu0  ;;  %v11274_v52 = vpop.f32.mrb[104].mxu1  ;;  %v17043_v51 = vld [vmem:[%s20800_s5 + $0xb0] sm:$0xff]  }
 0xb24   : > { %20972 = vst [vmem:[#allocation36_spill] sm:$0xff] %v20132_v1  ;;  %v10992_v0 = vadd.f32 %v10991_v60, %v19739_v61  ;;  %v11275_v41 = vadd.f32 %v11274_v52, %v19875_v59  ;;  %v10993_v49 = vpop.f32.mrb[165].mxu0  ;;  %v11276_v19 = vpop.f32.mrb[105].mxu1 }
 0xb25   : > { %20973 = vst [vmem:[#allocation37_spill] sm:$0xff] %v20137_v42  ;;  %v10994_v37 = vadd.f32 %v10993_v49, %v19744_v17  ;;  %v11277_v57 = vadd.f32 %v11276_v19, %v19878_v33  ;;  %v10995_v35 = vpop.f32.mrb[166].mxu0  ;;  %v11278_v8 = vpop.f32.mrb[106].mxu1  ;;  %12685 = vmatpush1.bf16.msra.mxu1 %v17042_v45 }
 0xb26   : > { %v10996_v24 = vadd.f32 %v10995_v35, %v19739_v61  ;;  %v11279_v62 = vadd.f32 %v11278_v8, %v19875_v59  ;;  %v10997_v46 = vpop.f32.mrb[167].mxu0  ;;  %v11280_v39 = vpop.f32.mrb[107].mxu1  ;;  %12686 = vmatprep.subr.bf16.mxu1 %v20946_v47  ;;  %v11628_v60 = vmax.f32 %v10992_v0, 0.0  ;;  %v11742_v52 = vmax.f32 %v11275_v41, 0.0  ;;  %v17044_v8 = vld [vmem:[%s20800_s5 + $0xb8] sm:$0xff]  }
 0xb27   : > { %v10998_v22 = vadd.f32 %v10997_v46, %v19744_v17  ;;  %v11281_v20 = vadd.f32 %v11280_v39, %v19878_v33  ;;  %v11629_v19 = vmax.f32 %v10994_v37, 0.0  ;;  %v11743_v1 = vmax.f32 %v11277_v57, 0.0 }
 0xb28   : > { %v11636_v49 = vmax.f32 %v10996_v24, 0.0  ;;  %v11750_v45 = vmax.f32 %v11279_v62, 0.0  ;;  %12554 = vmatmul.mubr.bf16.gmra.mrb[212].mxu1 %v19704_v56 }
 0xb29   : > { %v11637_v42 = vmax.f32 %v10998_v22, 0.0  ;;  %v11751_v35 = vmax.f32 %v11281_v20, 0.0  ;;  %12561 = vmatprep.mubr.bf16.mxu1 %v19726_v34  ;;  %12687 = vmatpush1.bf16.msra.mxu1 %v17043_v51 }
 0xb2a   : > { %v20156_v46 = vpack.c.bf16 %v11636_v49, %v11628_v60  ;;  %v20158_v39 = vpack.c.bf16 %v11750_v45, %v11742_v52  ;;  %12688 = vmatprep.subr.bf16.mxu1 %v20946_v47 }
 0xb2b   : > { %v20161_v0 = vpack.c.bf16 %v11637_v42, %v11629_v19  ;;  %v20163_v56 = vpack.c.bf16 %v11751_v35, %v11743_v1  ;;  %v11001_v41 = vpop.f32.mrb[168].mxu0  ;;  %v11284_v37 = vpop.f32.mrb[108].mxu1  ;;  %v17045_v1 = vld [vmem:[%s20800_s5 + $0xc0] sm:$0xff]  }
 0xb2c   : > { %20974 = vst [vmem:[#allocation38_spill] sm:$0xff] %v20158_v39  ;;  %v11002_v57 = vadd.f32 %v11001_v41, %v19739_v61  ;;  %v11285_v34 = vadd.f32 %v11284_v37, %v19875_v59  ;;  %v11003_v51 = vpop.f32.mrb[169].mxu0  ;;  %v11286_v24 = vpop.f32.mrb[109].mxu1 }
 0xb2d   : > { %20975 = vst [vmem:[#allocation39_spill] sm:$0xff] %v20163_v56  ;;  %v11004_v62 = vadd.f32 %v11003_v51, %v19744_v17  ;;  %v11287_v22 = vadd.f32 %v11286_v24, %v19878_v33  ;;  %v11005_v20 = vpop.f32.mrb[170].mxu0  ;;  %v11288_v60 = vpop.f32.mrb[110].mxu1  ;;  %12689 = vmatpush1.bf16.msra.mxu1 %v17044_v8 }
 0xb2e   : > { %v11006_v42 = vadd.f32 %v11005_v20, %v19739_v61  ;;  %v11289_v52 = vadd.f32 %v11288_v60, %v19875_v59  ;;  %v11007_v49 = vpop.f32.mrb[171].mxu0  ;;  %v11290_v45 = vpop.f32.mrb[111].mxu1  ;;  %12690 = vmatprep.subr.bf16.mxu1 %v20946_v47  ;;  %v11644_v41 = vmax.f32 %v11002_v57, 0.0  ;;  %v11758_v37 = vmax.f32 %v11285_v34, 0.0  ;;  %v17046_v60 = vld [vmem:[%s20800_s5 + $0xc8] sm:$0xff]  }
 0xb2f   : > { %v11008_v19 = vadd.f32 %v11007_v49, %v19744_v17  ;;  %v11291_v35 = vadd.f32 %v11290_v45, %v19878_v33  ;;  %v11645_v24 = vmax.f32 %v11004_v62, 0.0  ;;  %v11759_v39 = vmax.f32 %v11287_v22, 0.0 }
 0xb30   : > { %v11652_v51 = vmax.f32 %v11006_v42, 0.0  ;;  %v11766_v8 = vmax.f32 %v11289_v52, 0.0  ;;  %12562 = vmatmul.mubr.bf16.gmra.mrb[216].mxu1 %v19723_v40 }
 0xb31   : > { %v11653_v56 = vmax.f32 %v11008_v19, 0.0  ;;  %v11767_v20 = vmax.f32 %v11291_v35, 0.0  ;;  %12569 = vmatprep.mubr.bf16.mxu1 %v19753_v43  ;;  %12691 = vmatpush1.bf16.msra.mxu1 %v17045_v1 }
 0xb32   : > { %v20182_v49 = vpack.c.bf16 %v11652_v51, %v11644_v41  ;;  %v20184_v45 = vpack.c.bf16 %v11766_v8, %v11758_v37  ;;  %12692 = vmatprep.subr.bf16.mxu1 %v20946_v47 }
 0xb33   : > { %v20187_v57 = vpack.c.bf16 %v11653_v56, %v11645_v24  ;;  %v20189_v40 = vpack.c.bf16 %v11767_v20, %v11759_v39  ;;  %v11011_v34 = vpop.f32.mrb[172].mxu0  ;;  %v11294_v62 = vpop.f32.mrb[112].mxu1  ;;  %v17047_v39 = vld [vmem:[%s20800_s5 + $0xd0] sm:$0xff]  }
 0xb34   : > { %20976 = vst [vmem:[#allocation40_spill] sm:$0xff] %v20184_v45  ;;  %v11012_v22 = vadd.f32 %v11011_v34, %v19739_v61  ;;  %v11295_v43 = vadd.f32 %v11294_v62, %v19875_v59  ;;  %v11013_v1 = vpop.f32.mrb[173].mxu0  ;;  %v11296_v42 = vpop.f32.mrb[113].mxu1 }
 0xb35   : > { %20977 = vst [vmem:[#allocation41_spill] sm:$0xff] %v20189_v40  ;;  %v11014_v52 = vadd.f32 %v11013_v1, %v19744_v17  ;;  %v11297_v19 = vadd.f32 %v11296_v42, %v19878_v33  ;;  %v11015_v35 = vpop.f32.mrb[174].mxu0  ;;  %v11298_v41 = vpop.f32.mrb[114].mxu1  ;;  %12693 = vmatpush1.bf16.msra.mxu1 %v17046_v60 }
 0xb36   : > { %v11016_v56 = vadd.f32 %v11015_v35, %v19739_v61  ;;  %v11299_v37 = vadd.f32 %v11298_v41, %v19875_v59  ;;  %v11017_v51 = vpop.f32.mrb[175].mxu0  ;;  %v11300_v8 = vpop.f32.mrb[115].mxu1  ;;  %12694 = vmatprep.subr.bf16.mxu1 %v20946_v47  ;;  %v11660_v34 = vmax.f32 %v11012_v22, 0.0  ;;  %v11774_v62 = vmax.f32 %v11295_v43, 0.0  ;;  %v17048_v41 = vld [vmem:[%s20800_s5 + $0xd8] sm:$0xff]  }
 0xb37   : > { %v11018_v24 = vadd.f32 %v11017_v51, %v19744_v17  ;;  %v11301_v20 = vadd.f32 %v11300_v8, %v19878_v33  ;;  %v11661_v42 = vmax.f32 %v11014_v52, 0.0  ;;  %v11775_v45 = vmax.f32 %v11297_v19, 0.0 }
 0xb38   : > { %v11668_v1 = vmax.f32 %v11016_v56, 0.0  ;;  %v11782_v60 = vmax.f32 %v11299_v37, 0.0  ;;  %12570 = vmatmul.mubr.bf16.gmra.mrb[220].mxu1 %v19750_v21 }
 0xb39   : > { %v11669_v40 = vmax.f32 %v11018_v24, 0.0  ;;  %v11783_v35 = vmax.f32 %v11301_v20, 0.0  ;;  %12577 = vmatprep.mubr.bf16.mxu1 %v19780_v4  ;;  %12695 = vmatpush1.bf16.msra.mxu1 %v17047_v39 }
 0xb3a   : > { %v20208_v51 = vpack.c.bf16 %v11668_v1, %v11660_v34  ;;  %v20210_v8 = vpack.c.bf16 %v11782_v60, %v11774_v62  ;;  %12696 = vmatprep.subr.bf16.mxu1 %v20946_v47 }
 0xb3b   : > { %v20213_v22 = vpack.c.bf16 %v11669_v40, %v11661_v42  ;;  %v20215_v21 = vpack.c.bf16 %v11783_v35, %v11775_v45  ;;  %v11021_v43 = vpop.f32.mrb[176].mxu0  ;;  %v11304_v52 = vpop.f32.mrb[116].mxu1  ;;  %v17049_v45 = vld [vmem:[%s20800_s5 + $0xe0] sm:$0xff]  }
 0xb3c   : > { %20978 = vst [vmem:[#allocation42_spill] sm:$0xff] %v20210_v8  ;;  %v11022_v19 = vadd.f32 %v11021_v43, %v19739_v61  ;;  %v11305_v4 = vadd.f32 %v11304_v52, %v19875_v59  ;;  %v11023_v39 = vpop.f32.mrb[177].mxu0  ;;  %v11306_v56 = vpop.f32.mrb[117].mxu1 }
 0xb3d   : > { %20979 = vst [vmem:[#allocation43_spill] sm:$0xff] %v20215_v21  ;;  %v11024_v37 = vadd.f32 %v11023_v39, %v19744_v17  ;;  %v11307_v24 = vadd.f32 %v11306_v56, %v19878_v33  ;;  %v11025_v20 = vpop.f32.mrb[178].mxu0  ;;  %v11308_v34 = vpop.f32.mrb[118].mxu1  ;;  %12697 = vmatpush1.bf16.msra.mxu1 %v17048_v41 }
 0xb3e   : > { %v11026_v40 = vadd.f32 %v11025_v20, %v19739_v61  ;;  %v11309_v62 = vadd.f32 %v11308_v34, %v19875_v59  ;;  %v11027_v1 = vpop.f32.mrb[179].mxu0  ;;  %v11310_v60 = vpop.f32.mrb[119].mxu1  ;;  %12698 = vmatprep.subr.bf16.mxu1 %v20946_v47  ;;  %v11676_v43 = vmax.f32 %v11022_v19, 0.0  ;;  %v11790_v52 = vmax.f32 %v11305_v4, 0.0  ;;  %v17050_v34 = vld [vmem:[%s20800_s5 + $0xe8] sm:$0xff]  }
 0xb3f   : > { %v11028_v42 = vadd.f32 %v11027_v1, %v19744_v17  ;;  %v11311_v35 = vadd.f32 %v11310_v60, %v19878_v33  ;;  %v11677_v56 = vmax.f32 %v11024_v37, 0.0  ;;  %v11791_v8 = vmax.f32 %v11307_v24, 0.0 }
 0xb40   : > { %v11684_v39 = vmax.f32 %v11026_v40, 0.0  ;;  %v11798_v41 = vmax.f32 %v11309_v62, 0.0  ;;  %12578 = vmatmul.mubr.bf16.gmra.mrb[224].mxu1 %v19775_v44 }
 0xb41   : > { %v11685_v21 = vmax.f32 %v11028_v42, 0.0  ;;  %v11799_v20 = vmax.f32 %v11311_v35, 0.0  ;;  %12585 = vmatprep.mubr.bf16.mxu1 %v19805_v3  ;;  %12699 = vmatpush1.bf16.msra.mxu1 %v17049_v45 }
 0xb42   : > { %v20234_v1 = vpack.c.bf16 %v11684_v39, %v11676_v43  ;;  %v20236_v60 = vpack.c.bf16 %v11798_v41, %v11790_v52  ;;  %12700 = vmatprep.subr.bf16.mxu1 %v20946_v47 }
 0xb43   : > { %v20239_v19 = vpack.c.bf16 %v11685_v21, %v11677_v56  ;;  %v20241_v44 = vpack.c.bf16 %v11799_v20, %v11791_v8  ;;  %v11031_v4 = vpop.f32.mrb[180].mxu0  ;;  %v11314_v37 = vpop.f32.mrb[120].mxu1  ;;  %v17051_v8 = vld [vmem:[%s20800_s5 + $0xf0] sm:$0xff]  }
 0xb44   : > { %20980 = vst [vmem:[#allocation44_spill] sm:$0xff] %v20236_v60  ;;  %v11032_v24 = vadd.f32 %v11031_v4, %v19739_v61  ;;  %v11315_v3 = vadd.f32 %v11314_v37, %v19875_v59  ;;  %v11033_v45 = vpop.f32.mrb[181].mxu0  ;;  %v11316_v40 = vpop.f32.mrb[121].mxu1 }
 0xb45   : > { %20981 = vst [vmem:[#allocation45_spill] sm:$0xff] %v20241_v44  ;;  %v11034_v62 = vadd.f32 %v11033_v45, %v19744_v17  ;;  %v11317_v42 = vadd.f32 %v11316_v40, %v19878_v33  ;;  %v11035_v35 = vpop.f32.mrb[182].mxu0  ;;  %v11318_v43 = vpop.f32.mrb[122].mxu1  ;;  %12701 = vmatpush1.bf16.msra.mxu1 %v17050_v34 }
 0xb46   : > { %v11036_v21 = vadd.f32 %v11035_v35, %v19739_v61  ;;  %v11319_v52 = vadd.f32 %v11318_v43, %v19875_v59  ;;  %v11037_v39 = vpop.f32.mrb[183].mxu0  ;;  %v11320_v41 = vpop.f32.mrb[123].mxu1  ;;  %12702 = vmatprep.subr.bf16.mxu1 %v20946_v47  ;;  %v11692_v4 = vmax.f32 %v11032_v24, 0.0  ;;  %v11806_v37 = vmax.f32 %v11315_v3, 0.0  ;;  %v17052_v43 = vld [vmem:[%s20800_s5 + $0xf8] sm:$0xff]  }
 0xb47   : > { %v11038_v56 = vadd.f32 %v11037_v39, %v19744_v17  ;;  %v11321_v20 = vadd.f32 %v11320_v41, %v19878_v33  ;;  %v11693_v40 = vmax.f32 %v11034_v62, 0.0  ;;  %v11807_v60 = vmax.f32 %v11317_v42, 0.0 }
 0xb48   : > { %v11700_v45 = vmax.f32 %v11036_v21, 0.0  ;;  %v11814_v34 = vmax.f32 %v11319_v52, 0.0  ;;  %12586 = vmatmul.mubr.bf16.gmra.mrb[228].mxu1 %v19800_v13  ;;  %v10546_v42 = vsub.s32 6, %v20937_v23 }
 0xb49   : > { %v11701_v44 = vmax.f32 %v11038_v56, 0.0  ;;  %v11815_v35 = vmax.f32 %v11321_v20, 0.0  ;;  %12593 = vmatprep.mubr.bf16.mxu1 %v19832_v31  ;;  %12703 = vmatpush1.bf16.msra.mxu1 %v17051_v8  ;;  %v10550_v31 = vsub.s32 7, %v20937_v23 }
 0xb4a   : > { %v20260_v39 = vpack.c.bf16 %v11700_v45, %v11692_v4  ;;  %v20262_v41 = vpack.c.bf16 %v11814_v34, %v11806_v37  ;;  %12704 = vmatprep.subr.bf16.mxu1 %v20946_v47 }
 0xb4b   : > { %v20265_v24 = vpack.c.bf16 %v11701_v44, %v11693_v40  ;;  %v20267_v13 = vpack.c.bf16 %v11815_v35, %v11807_v60  ;;  %v11041_v3 = vpop.f32.mrb[184].mxu0  ;;  %v11324_v62 = vpop.f32.mrb[124].mxu1 }
 0xb4c   : > { %20982 = vst [vmem:[#allocation46_spill] sm:$0xff] %v20262_v41  ;;  %v11042_v8 = vadd.f32 %v11041_v3, %v19739_v61  ;;  %v11325_v21 = vadd.f32 %v11324_v62, %v19875_v59  ;;  %v11043_v52 = vpop.f32.mrb[185].mxu0  ;;  %v11326_v56 = vpop.f32.mrb[125].mxu1  ;;  %v17085_v3 = vld [vmem:[%s20799_s4] sm:$0xff] }
 0xb4d   : > { %20983 = vst [vmem:[#allocation47_spill] sm:$0xff] %v20267_v13  ;;  %v11044_v20 = vadd.f32 %v11043_v52, %v19744_v17  ;;  %v11327_v4 = vadd.f32 %v11326_v56, %v19878_v33  ;;  %v11045_v44 = vpop.f32.mrb[186].mxu0  ;;  %v11328_v37 = vpop.f32.mrb[126].mxu1  ;;  %12705 = vmatpush1.bf16.msra.mxu1 %v17052_v43  ;;  %v20283_v62 = vrot.slane %v17085_v3, %v10546_v42 }
 0xb4e   : > { %v11046_v60 = vadd.f32 %v11045_v44, %v19739_v61  ;;  %v11329_v45 = vadd.f32 %v11328_v37, %v19875_v59  ;;  %v11047_v34 = vpop.f32.mrb[187].mxu0  ;;  %v11330_v40 = vpop.f32.mrb[127].mxu1  ;;  %12851 = vmatprep.subr.bf16.mxu1 %v20946_v47  ;;  %v20285_v52 = vrot.slane %v17085_v3, %v10550_v31  ;;  %v11708_v43 = vmax.f32 %v11042_v8, 0.0 }
 0xb4f   : > { %v11048_v23 = vadd.f32 %v11047_v34, %v19744_v17  ;;  %v11331_v35 = vadd.f32 %v11330_v40, %v19878_v33  ;;  %v11822_v56 = vmax.f32 %v11325_v21, 0.0  ;;  %v11709_v37 = vmax.f32 %v11044_v20, 0.0 }
 0xb50   : > { %v11716_v44 = vmax.f32 %v11046_v60, 0.0  ;;  %v11830_v59 = vmax.f32 %v11329_v45, 0.0  ;;  %12594 = vmatmul.mubr.bf16.gmra.mrb[232].mxu1 %v19827_v2  ;;  %v11823_v41 = vmax.f32 %v11327_v4, 0.0 }
 0xb51   : > { %v11717_v13 = vmax.f32 %v11048_v23, 0.0  ;;  %v11831_v34 = vmax.f32 %v11331_v35, 0.0  ;;  %12601 = vmatprep.mubr.bf16.mxu1 %v19859_v48 }
 0xb52   : > { %v20289_v33 = vpack.c.bf16 %v11716_v44, %v11708_v43  ;;  %v20291_v40 = vpack.c.bf16 %v11830_v59, %v11822_v56 }
 0xb53   : > { %v20293_v42 = vpack.c.bf16 %v11717_v13, %v11709_v37  ;;  %v20295_v31 = vpack.c.bf16 %v11831_v34, %v11823_v41  ;;  %v11051_v8 = vpop.f32.mrb[188].mxu0  ;;  %v11367_v21 = vpop.f32.mrb[128].mxu1 }
 0xb54   : > { %20984 = vst [vmem:[#allocation48_spill] sm:$0xff] %v20291_v40  ;;  %v11052_v60 = vadd.f32 %v11051_v8, %v19739_v61  ;;  %v11368_v2 = vadd.f32 %v11367_v21, %v20283_v62  ;;  %v11053_v20 = vpop.f32.mrb[189].mxu0  ;;  %v11369_v4 = vpop.f32.mrb[129].mxu1 }
 0xb55   : > { %20985 = vst [vmem:[#allocation49_spill] sm:$0xff] %v20295_v31  ;;  %v11054_v45 = vadd.f32 %v11053_v20, %v19744_v17  ;;  %v11370_v48 = vadd.f32 %v11369_v4, %v20285_v52  ;;  %v11055_v23 = vpop.f32.mrb[190].mxu0  ;;  %v11371_v35 = vpop.f32.mrb[130].mxu1 }
 0xb56   : > { %v11056_v3 = vadd.f32 %v11055_v23, %v19739_v61  ;;  %v11372_v13 = vadd.f32 %v11371_v35, %v20283_v62  ;;  %v11057_v41 = vpop.f32.mrb[191].mxu0  ;;  %v11373_v43 = vpop.f32.mrb[131].mxu1  ;;  %v11724_v59 = vmax.f32 %v11052_v60, 0.0  ;;  %v11552_v37 = vmax.f32 %v11368_v2, 0.0 }
 0xb57   : > { %v11058_v56 = vadd.f32 %v11057_v41, %v19744_v17  ;;  %v11374_v44 = vadd.f32 %v11373_v43, %v20285_v52  ;;  %v11725_v21 = vmax.f32 %v11054_v45, 0.0  ;;  %v11553_v20 = vmax.f32 %v11370_v48, 0.0 }
 0xb58   : > { %v11732_v34 = vmax.f32 %v11056_v3, 0.0  ;;  %v11560_v8 = vmax.f32 %v11372_v13, 0.0  ;;  %12602 = vmatmul.mubr.bf16.gmra.mrb[236].mxu1 %v19854_v11 }
 0xb59   : > { %v11733_v4 = vmax.f32 %v11058_v56, 0.0  ;;  %v11561_v40 = vmax.f32 %v11374_v44, 0.0  ;;  %12609 = vmatprep.mubr.bf16.mxu1 %v19887_v9 }
 0xb5a   : > { %v20307_v23 = vpack.c.bf16 %v11732_v34, %v11724_v59  ;;  %v20309_v35 = vpack.c.bf16 %v11560_v8, %v11552_v37 }
 0xb5b   : > { %v20311_v31 = vpack.c.bf16 %v11733_v4, %v11725_v21  ;;  %v20313_v41 = vpack.c.bf16 %v11561_v40, %v11553_v20  ;;  %v11061_v60 = vpop.f32.mrb[192].mxu0  ;;  %v11377_v2 = vpop.f32.mrb[132].mxu1 }
 0xb5c   : > { %20986 = vst [vmem:[#allocation50_spill] sm:$0xff] %v20309_v35  ;;  %v11062_v3 = vadd.f32 %v11061_v60, %v19739_v61  ;;  %v11378_v11 = vadd.f32 %v11377_v2, %v20283_v62  ;;  %v11063_v45 = vpop.f32.mrb[193].mxu0  ;;  %v11379_v48 = vpop.f32.mrb[133].mxu1 }
 0xb5d   : > { %v11064_v13 = vadd.f32 %v11063_v45, %v19744_v17  ;;  %v11380_v9 = vadd.f32 %v11379_v48, %v20285_v52  ;;  %v11065_v43 = vpop.f32.mrb[194].mxu0  ;;  %v11381_v56 = vpop.f32.mrb[134].mxu1 }
 0xb5e   : > { %v11066_v44 = vadd.f32 %v11065_v43, %v19739_v61  ;;  %v11382_v59 = vadd.f32 %v11381_v56, %v20283_v62  ;;  %v11067_v40 = vpop.f32.mrb[195].mxu0  ;;  %v11383_v37 = vpop.f32.mrb[135].mxu1  ;;  %v11740_v21 = vmax.f32 %v11062_v3, 0.0  ;;  %v11568_v20 = vmax.f32 %v11378_v11, 0.0 }
 0xb5f   : > { %v11068_v34 = vadd.f32 %v11067_v40, %v19744_v17  ;;  %v11384_v8 = vadd.f32 %v11383_v37, %v20285_v52  ;;  %v11741_v2 = vmax.f32 %v11064_v13, 0.0  ;;  %v11569_v45 = vmax.f32 %v11380_v9, 0.0 }
 0xb60   : > { %v11748_v4 = vmax.f32 %v11066_v44, 0.0  ;;  %v11576_v60 = vmax.f32 %v11382_v59, 0.0  ;;  %12610 = vmatmul.mubr.bf16.gmra.mrb[240].mxu1 %v19883_v18 }
 0xb61   : > { %v11749_v48 = vmax.f32 %v11068_v34, 0.0  ;;  %v11577_v35 = vmax.f32 %v11384_v8, 0.0  ;;  %12617 = vmatprep.mubr.bf16.mxu1 %v19906_v5 }
 0xb62   : > { %v20325_v61 = vpack.c.bf16 %v11748_v4, %v11740_v21  ;;  %v20327_v43 = vpack.c.bf16 %v11576_v60, %v11568_v20 }
 0xb63   : > { %v20329_v56 = vpack.c.bf16 %v11749_v48, %v11741_v2  ;;  %v20331_v17 = vpack.c.bf16 %v11577_v35, %v11569_v45  ;;  %v11387_v3 = vpop.f32.mrb[136].mxu1 }
 0xb64   : > { %v11388_v11 = vadd.f32 %v11387_v3, %v20283_v62  ;;  %v11389_v44 = vpop.f32.mrb[137].mxu1 }
 0xb65   : > { %v11390_v18 = vadd.f32 %v11389_v44, %v20285_v52  ;;  %v11391_v13 = vpop.f32.mrb[138].mxu1 }
 0xb66   : > { %v11392_v9 = vadd.f32 %v11391_v13, %v20283_v62  ;;  %v11393_v59 = vpop.f32.mrb[139].mxu1  ;;  %v11584_v40 = vmax.f32 %v11388_v11, 0.0 }
 0xb67   : > { %v11394_v5 = vadd.f32 %v11393_v59, %v20285_v52  ;;  %v11585_v34 = vmax.f32 %v11390_v18, 0.0 }
 0xb68   : > { %v11592_v37 = vmax.f32 %v11392_v9, 0.0  ;;  %12618 = vmatmul.mubr.bf16.gmra.mrb[244].mxu1 %v19902_v15 }
 0xb69   : > { %v11593_v8 = vmax.f32 %v11394_v5, 0.0  ;;  %12625 = vmatprep.mubr.bf16.mxu1 %v19925_v55 }
 0xb6a   : > { %v20339_v35 = vpack.c.bf16 %v11592_v37, %v11584_v40 }
 0xb6b   : > { %v20341_v21 = vpack.c.bf16 %v11593_v8, %v11585_v34  ;;  %v11397_v20 = vpop.f32.mrb[140].mxu1 }
 0xb6c   : > { %v11398_v4 = vadd.f32 %v11397_v20, %v20283_v62  ;;  %v11399_v60 = vpop.f32.mrb[141].mxu1 }
 0xb6d   : > { %v11400_v2 = vadd.f32 %v11399_v60, %v20285_v52  ;;  %v11401_v45 = vpop.f32.mrb[142].mxu1 }
 0xb6e   : > { %v11402_v48 = vadd.f32 %v11401_v45, %v20283_v62  ;;  %v11403_v3 = vpop.f32.mrb[143].mxu1  ;;  %v11600_v11 = vmax.f32 %v11398_v4, 0.0 }
 0xb6f   : > { %v11404_v15 = vadd.f32 %v11403_v3, %v20285_v52  ;;  %v11601_v55 = vmax.f32 %v11400_v2, 0.0 }
 0xb70   : > { %v11608_v44 = vmax.f32 %v11402_v48, 0.0  ;;  %12626 = vmatmul.mubr.bf16.gmra.mrb[248].mxu1 %v19921_v12 }
 0xb71   : > { %v11609_v18 = vmax.f32 %v11404_v15, 0.0  ;;  %12633 = vmatprep.mubr.bf16.mxu1 %v19944_v53 }
 0xb72   : > { %v20349_v13 = vpack.c.bf16 %v11608_v44, %v11600_v11 }
 0xb73   : > { %v20351_v9 = vpack.c.bf16 %v11609_v18, %v11601_v55  ;;  %v11407_v59 = vpop.f32.mrb[144].mxu1 }
 0xb74   : > { %v11408_v5 = vadd.f32 %v11407_v59, %v20283_v62  ;;  %v11409_v40 = vpop.f32.mrb[145].mxu1 }
 0xb75   : > { %v11410_v37 = vadd.f32 %v11409_v40, %v20285_v52  ;;  %v11411_v34 = vpop.f32.mrb[146].mxu1 }
 0xb76   : > { %v11412_v8 = vadd.f32 %v11411_v34, %v20283_v62  ;;  %v11413_v20 = vpop.f32.mrb[147].mxu1  ;;  %v11616_v4 = vmax.f32 %v11408_v5, 0.0 }
 0xb77   : > { %v11414_v12 = vadd.f32 %v11413_v20, %v20285_v52  ;;  %v11617_v53 = vmax.f32 %v11410_v37, 0.0 }
 0xb78   : > { %v11624_v60 = vmax.f32 %v11412_v8, 0.0  ;;  %12634 = vmatmul.mubr.bf16.gmra.mrb[252].mxu1 %v19940_v29 }
 0xb79   : > { %v11625_v2 = vmax.f32 %v11414_v12, 0.0  ;;  %12641 = vmatprep.mubr.bf16.mxu1 %v19963_v6 }
 0xb7a   : > { %v20359_v45 = vpack.c.bf16 %v11624_v60, %v11616_v4 }
 0xb7b   : > { %v20361_v48 = vpack.c.bf16 %v11625_v2, %v11617_v53  ;;  %v11417_v3 = vpop.f32.mrb[148].mxu1 }
 0xb7c   : > { %v11418_v15 = vadd.f32 %v11417_v3, %v20283_v62  ;;  %v11419_v11 = vpop.f32.mrb[149].mxu1 }
 0xb7d   : > { %v11420_v44 = vadd.f32 %v11419_v11, %v20285_v52  ;;  %v11421_v55 = vpop.f32.mrb[150].mxu1 }
 0xb7e   : > { %v11422_v18 = vadd.f32 %v11421_v55, %v20283_v62  ;;  %v11423_v59 = vpop.f32.mrb[151].mxu1  ;;  %v11632_v5 = vmax.f32 %v11418_v15, 0.0 }
 0xb7f   : > { %v11424_v29 = vadd.f32 %v11423_v59, %v20285_v52  ;;  %v11633_v6 = vmax.f32 %v11420_v44, 0.0 }
 0xb80   : > { %v11640_v40 = vmax.f32 %v11422_v18, 0.0  ;;  %12642 = vmatmul.mubr.bf16.gmra.mrb[0].mxu1 %v19959_v54 }
 0xb81   : > { %v11641_v37 = vmax.f32 %v11424_v29, 0.0  ;;  %12649 = vmatprep.mubr.bf16.mxu1 %v19982_v58 }
 0xb82   : > { %v20369_v34 = vpack.c.bf16 %v11640_v40, %v11632_v5 }
 0xb83   : > { %v20371_v8 = vpack.c.bf16 %v11641_v37, %v11633_v6  ;;  %v11427_v20 = vpop.f32.mrb[152].mxu1 }
 0xb84   : > { %v11428_v12 = vadd.f32 %v11427_v20, %v20283_v62  ;;  %v11429_v4 = vpop.f32.mrb[153].mxu1 }
 0xb85   : > { %v11430_v60 = vadd.f32 %v11429_v4, %v20285_v52  ;;  %v11431_v53 = vpop.f32.mrb[154].mxu1 }
 0xb86   : > { %v11432_v2 = vadd.f32 %v11431_v53, %v20283_v62  ;;  %v11433_v3 = vpop.f32.mrb[155].mxu1  ;;  %v11648_v15 = vmax.f32 %v11428_v12, 0.0 }
 0xb87   : > { %v11434_v54 = vadd.f32 %v11433_v3, %v20285_v52  ;;  %v11649_v58 = vmax.f32 %v11430_v60, 0.0  ;;  %v20987_v60 = vld [vmem:[#allocation23_spill] sm:$0xff] }
 0xb88   : > { %v11656_v11 = vmax.f32 %v11432_v2, 0.0  ;;  %12650 = vmatmul.mubr.bf16.gmra.mrb[4].mxu1 %v19978_v7 }
 0xb89   : > { %v11657_v44 = vmax.f32 %v11434_v54, 0.0  ;;  %12657 = vmatprep.mubr.bf16.mxu1 %v20001_v27 }
 0xb8a   : > { %v20379_v55 = vpack.c.bf16 %v11656_v11, %v11648_v15 }
 0xb8b   : > { %v20381_v18 = vpack.c.bf16 %v11657_v44, %v11649_v58  ;;  %v11437_v59 = vpop.f32.mrb[156].mxu1 }
 0xb8c   : > { %v11438_v29 = vadd.f32 %v11437_v59, %v20283_v62  ;;  %v11439_v5 = vpop.f32.mrb[157].mxu1 }
 0xb8d   : > { %v11440_v40 = vadd.f32 %v11439_v5, %v20285_v52  ;;  %v11441_v6 = vpop.f32.mrb[158].mxu1 }
 0xb8e   : > { %v11442_v37 = vadd.f32 %v11441_v6, %v20283_v62  ;;  %v11443_v20 = vpop.f32.mrb[159].mxu1  ;;  %v11664_v12 = vmax.f32 %v11438_v29, 0.0 }
 0xb8f   : > { %v11444_v7 = vadd.f32 %v11443_v20, %v20285_v52  ;;  %v11665_v27 = vmax.f32 %v11440_v40, 0.0 }
 0xb90   : > { %v11672_v4 = vmax.f32 %v11442_v37, 0.0  ;;  %12658 = vmatmul.mubr.bf16.gmra.mrb[8].mxu1 %v20987_v60 }
 0xb91   : > { %v11673_v53 = vmax.f32 %v11444_v7, 0.0  ;;  %12665 = vmatprep.mubr.bf16.mxu1 %v20020_v28 }
 0xb92   : > { %v20389_v2 = vpack.c.bf16 %v11672_v4, %v11664_v12 }
 0xb93   : > { %v20391_v3 = vpack.c.bf16 %v11673_v53, %v11665_v27  ;;  %v11447_v54 = vpop.f32.mrb[160].mxu1 }
 0xb94   : > { %v11448_v15 = vadd.f32 %v11447_v54, %v20283_v62  ;;  %v11449_v11 = vpop.f32.mrb[161].mxu1  ;;  %v17053_v54 = vld [vmem:[%s20800_s5 + $0x100] sm:$0xff]  }
 0xb95   : > { %v11450_v58 = vadd.f32 %v11449_v11, %v20285_v52  ;;  %v11451_v44 = vpop.f32.mrb[162].mxu1 }
 0xb96   : > { %v11452_v59 = vadd.f32 %v11451_v44, %v20283_v62  ;;  %v11453_v29 = vpop.f32.mrb[163].mxu1  ;;  %v11680_v40 = vmax.f32 %v11448_v15, 0.0 }
 0xb97   : > { %v11454_v5 = vadd.f32 %v11453_v29, %v20285_v52  ;;  %v11681_v28 = vmax.f32 %v11450_v58, 0.0  ;;  %v17054_v29 = vld [vmem:[%s20800_s5 + $0x108] sm:$0xff]  }
 0xb98   : > { %v11688_v6 = vmax.f32 %v11452_v59, 0.0  ;;  %12666 = vmatmul.mubr.bf16.gmra.mrb[12].mxu1 %v20016_v30 }
 0xb99   : > { %v11689_v37 = vmax.f32 %v11454_v5, 0.0  ;;  %12706 = vmatprep.mubr.bf16.mxu1 %v20039_v25 }
 0xb9a   : > { %v20399_v20 = vpack.c.bf16 %v11688_v6, %v11680_v40 }
 0xb9b   : > { %v20401_v7 = vpack.c.bf16 %v11689_v37, %v11681_v28  ;;  %v11457_v12 = vpop.f32.mrb[164].mxu1 }
 0xb9c   : > { %v11458_v4 = vadd.f32 %v11457_v12, %v20283_v62  ;;  %v11459_v60 = vpop.f32.mrb[165].mxu1 }
 0xb9d   : > { %v11460_v27 = vadd.f32 %v11459_v60, %v20285_v52  ;;  %v11461_v53 = vpop.f32.mrb[166].mxu1 }
 0xb9e   : > { %v11462_v30 = vadd.f32 %v11461_v53, %v20283_v62  ;;  %v11463_v15 = vpop.f32.mrb[167].mxu1  ;;  %v11696_v11 = vmax.f32 %v11458_v4, 0.0 }
 0xb9f   : > { %v11464_v25 = vadd.f32 %v11463_v15, %v20285_v52  ;;  %v11697_v44 = vmax.f32 %v11460_v27, 0.0 }
 0xba0   : > { %v11704_v58 = vmax.f32 %v11462_v30, 0.0  ;;  %12707 = vmatmul.mubr.bf16.vlgmr.msra.gmra.mrb[200].mxu1 %v20035_v36  ;;  %v20988_v30 = vld [vmem:[#allocation30_spill] sm:$0xff] }
 0xba1   : > { %v11705_v59 = vmax.f32 %v11464_v25, 0.0  ;;  %12852 = vmatpush1.bf16.msra.mxu1 %v17053_v54  ;;  %12714 = vmatprep.mubr.bf16.mxu1 %v20058_v26  ;;  %v17055_v26 = vld [vmem:[%s20800_s5 + $0x110] sm:$0xff]  }
 0xba2   : > { %v20415_v5 = vpack.c.bf16 %v11704_v58, %v11696_v11  ;;  %12853 = vmatprep.subr.bf16.mxu1 %v20946_v47  ;;  %v17056_v11 = vld [vmem:[%s20800_s5 + $0x118] sm:$0xff]  }
 0xba3   : > { %v20418_v40 = vpack.c.bf16 %v11705_v59, %v11697_v44  ;;  %v11467_v6 = vpop.f32.mrb[168].mxu1 }
 0xba4   : > { %v11468_v28 = vadd.f32 %v11467_v6, %v20283_v62  ;;  %v11469_v37 = vpop.f32.mrb[169].mxu1 }
 0xba5   : > { %v11470_v36 = vadd.f32 %v11469_v37, %v20285_v52  ;;  %v11471_v12 = vpop.f32.mrb[170].mxu1  ;;  %12854 = vmatpush1.bf16.msra.mxu1 %v17054_v29 }
 0xba6   : > { %v11472_v4 = vadd.f32 %v11471_v12, %v20283_v62  ;;  %v11473_v60 = vpop.f32.mrb[171].mxu1  ;;  %12855 = vmatprep.subr.bf16.mxu1 %v20946_v47  ;;  %v11712_v53 = vmax.f32 %v11468_v28, 0.0 }
 0xba7   : > { %v11474_v27 = vadd.f32 %v11473_v60, %v20285_v52  ;;  %v11713_v15 = vmax.f32 %v11470_v36, 0.0 }
 0xba8   : > { %v11720_v54 = vmax.f32 %v11472_v4, 0.0  ;;  %12715 = vmatmul.mubr.bf16.gmra.mrb[204].mxu1 %v20988_v30 }
 0xba9   : > { %v11721_v25 = vmax.f32 %v11474_v27, 0.0  ;;  %12722 = vmatprep.mubr.bf16.mxu1 %v20083_v10  ;;  %12856 = vmatpush1.bf16.msra.mxu1 %v17055_v26  ;;  %v17057_v10 = vld [vmem:[%s20800_s5 + $0x120] sm:$0xff]  }
 0xbaa   : > { %v20433_v58 = vpack.c.bf16 %v11720_v54, %v11712_v53  ;;  %12857 = vmatprep.subr.bf16.mxu1 %v20946_v47  ;;  %v17058_v54 = vld [vmem:[%s20800_s5 + $0x128] sm:$0xff]  }
 0xbab   : > { %v20436_v44 = vpack.c.bf16 %v11721_v25, %v11713_v15  ;;  %v11477_v59 = vpop.f32.mrb[172].mxu1 }
 0xbac   : > { %v11478_v29 = vadd.f32 %v11477_v59, %v20283_v62  ;;  %v11479_v6 = vpop.f32.mrb[173].mxu1 }
 0xbad   : > { %v11480_v28 = vadd.f32 %v11479_v6, %v20285_v52  ;;  %v11481_v37 = vpop.f32.mrb[174].mxu1  ;;  %12858 = vmatpush1.bf16.msra.mxu1 %v17056_v11 }
 0xbae   : > { %v11482_v36 = vadd.f32 %v11481_v37, %v20283_v62  ;;  %v11483_v12 = vpop.f32.mrb[175].mxu1  ;;  %12859 = vmatprep.subr.bf16.mxu1 %v20946_v47  ;;  %v11728_v4 = vmax.f32 %v11478_v29, 0.0 }
 0xbaf   : > { %v11484_v26 = vadd.f32 %v11483_v12, %v20285_v52  ;;  %v11729_v27 = vmax.f32 %v11480_v28, 0.0 }
 0xbb0   : > { %v11736_v60 = vmax.f32 %v11482_v36, 0.0  ;;  %12723 = vmatmul.mubr.bf16.gmra.mrb[208].mxu1 %v20078_v63 }
 0xbb1   : > { %v11737_v53 = vmax.f32 %v11484_v26, 0.0  ;;  %12730 = vmatprep.mubr.bf16.mxu1 %v20109_v16  ;;  %12860 = vmatpush1.bf16.msra.mxu1 %v17057_v10  ;;  %v17059_v16 = vld [vmem:[%s20800_s5 + $0x130] sm:$0xff]  }
 0xbb2   : > { %v20451_v30 = vpack.c.bf16 %v11736_v60, %v11728_v4  ;;  %12861 = vmatprep.subr.bf16.mxu1 %v20946_v47  ;;  %v17060_v4 = vld [vmem:[%s20800_s5 + $0x138] sm:$0xff]  }
 0xbb3   : > { %v20454_v15 = vpack.c.bf16 %v11737_v53, %v11729_v27  ;;  %v11487_v25 = vpop.f32.mrb[176].mxu1 }
 0xbb4   : > { %v11488_v11 = vadd.f32 %v11487_v25, %v20283_v62  ;;  %v11489_v59 = vpop.f32.mrb[177].mxu1 }
 0xbb5   : > { %v11490_v63 = vadd.f32 %v11489_v59, %v20285_v52  ;;  %v11491_v29 = vpop.f32.mrb[178].mxu1  ;;  %12862 = vmatpush1.bf16.msra.mxu1 %v17058_v54 }
 0xbb6   : > { %v11492_v6 = vadd.f32 %v11491_v29, %v20283_v62  ;;  %v11493_v28 = vpop.f32.mrb[179].mxu1  ;;  %12863 = vmatprep.subr.bf16.mxu1 %v20946_v47  ;;  %v11744_v10 = vmax.f32 %v11488_v11, 0.0 }
 0xbb7   : > { %v11494_v37 = vadd.f32 %v11493_v28, %v20285_v52  ;;  %v11745_v12 = vmax.f32 %v11490_v63, 0.0 }
 0xbb8   : > { %v11752_v36 = vmax.f32 %v11492_v6, 0.0  ;;  %12731 = vmatmul.mubr.bf16.gmra.mrb[212].mxu1 %v20104_v14 }
 0xbb9   : > { %v11753_v26 = vmax.f32 %v11494_v37, 0.0  ;;  %12738 = vmatprep.mubr.bf16.mxu1 %v20135_v32  ;;  %12864 = vmatpush1.bf16.msra.mxu1 %v17059_v16  ;;  %v17061_v32 = vld [vmem:[%s20800_s5 + $0x140] sm:$0xff]  }
 0xbba   : > { %v20469_v60 = vpack.c.bf16 %v11752_v36, %v11744_v10  ;;  %12865 = vmatprep.subr.bf16.mxu1 %v20946_v47  ;;  %v17062_v10 = vld [vmem:[%s20800_s5 + $0x148] sm:$0xff]  }
 0xbbb   : > { %v20472_v27 = vpack.c.bf16 %v11753_v26, %v11745_v12  ;;  %v11497_v53 = vpop.f32.mrb[180].mxu1 }
 0xbbc   : > { %v11498_v54 = vadd.f32 %v11497_v53, %v20283_v62  ;;  %v11499_v25 = vpop.f32.mrb[181].mxu1 }
 0xbbd   : > { %v11500_v14 = vadd.f32 %v11499_v25, %v20285_v52  ;;  %v11501_v11 = vpop.f32.mrb[182].mxu1  ;;  %12866 = vmatpush1.bf16.msra.mxu1 %v17060_v4 }
 0xbbe   : > { %v11502_v59 = vadd.f32 %v11501_v11, %v20283_v62  ;;  %v11503_v63 = vpop.f32.mrb[183].mxu1  ;;  %12867 = vmatprep.subr.bf16.mxu1 %v20946_v47  ;;  %v11760_v16 = vmax.f32 %v11498_v54, 0.0 }
 0xbbf   : > { %v11504_v29 = vadd.f32 %v11503_v63, %v20285_v52  ;;  %v11761_v28 = vmax.f32 %v11500_v14, 0.0 }
 0xbc0   : > { %v11768_v6 = vmax.f32 %v11502_v59, 0.0  ;;  %12739 = vmatmul.mubr.bf16.gmra.mrb[216].mxu1 %v20130_v38 }
 0xbc1   : > { %v11769_v37 = vmax.f32 %v11504_v29, 0.0  ;;  %12746 = vmatprep.mubr.bf16.mxu1 %v20161_v0  ;;  %12868 = vmatpush1.bf16.msra.mxu1 %v17061_v32  ;;  %v17063_v0 = vld [vmem:[%s20800_s5 + $0x150] sm:$0xff]  }
 0xbc2   : > { %v20487_v36 = vpack.c.bf16 %v11768_v6, %v11760_v16  ;;  %12869 = vmatprep.subr.bf16.mxu1 %v20946_v47  ;;  %v17064_v16 = vld [vmem:[%s20800_s5 + $0x158] sm:$0xff]  }
 0xbc3   : > { %v20490_v12 = vpack.c.bf16 %v11769_v37, %v11761_v28  ;;  %v11507_v26 = vpop.f32.mrb[184].mxu1 }
 0xbc4   : > { %v11508_v4 = vadd.f32 %v11507_v26, %v20283_v62  ;;  %v11509_v53 = vpop.f32.mrb[185].mxu1 }
 0xbc5   : > { %v11510_v38 = vadd.f32 %v11509_v53, %v20285_v52  ;;  %v11511_v54 = vpop.f32.mrb[186].mxu1  ;;  %12870 = vmatpush1.bf16.msra.mxu1 %v17062_v10 }
 0xbc6   : > { %v11512_v25 = vadd.f32 %v11511_v54, %v20283_v62  ;;  %v11513_v14 = vpop.f32.mrb[187].mxu1  ;;  %12871 = vmatprep.subr.bf16.mxu1 %v20946_v47  ;;  %v11776_v32 = vmax.f32 %v11508_v4, 0.0 }
 0xbc7   : > { %v11514_v11 = vadd.f32 %v11513_v14, %v20285_v52  ;;  %v11777_v63 = vmax.f32 %v11510_v38, 0.0 }
 0xbc8   : > { %v11784_v59 = vmax.f32 %v11512_v25, 0.0  ;;  %12747 = vmatmul.mubr.bf16.gmra.mrb[220].mxu1 %v20156_v46 }
 0xbc9   : > { %v11785_v29 = vmax.f32 %v11514_v11, 0.0  ;;  %12754 = vmatprep.mubr.bf16.mxu1 %v20187_v57  ;;  %12872 = vmatpush1.bf16.msra.mxu1 %v17063_v0  ;;  %v17065_v57 = vld [vmem:[%s20800_s5 + $0x160] sm:$0xff]  }
 0xbca   : > { %v20505_v6 = vpack.c.bf16 %v11784_v59, %v11776_v32  ;;  %12873 = vmatprep.subr.bf16.mxu1 %v20946_v47  ;;  %v17066_v32 = vld [vmem:[%s20800_s5 + $0x168] sm:$0xff]  }
 0xbcb   : > { %v20508_v28 = vpack.c.bf16 %v11785_v29, %v11777_v63  ;;  %v11517_v37 = vpop.f32.mrb[188].mxu1 }
 0xbcc   : > { %v11518_v10 = vadd.f32 %v11517_v37, %v20283_v62  ;;  %v11519_v26 = vpop.f32.mrb[189].mxu1 }
 0xbcd   : > { %v11520_v46 = vadd.f32 %v11519_v26, %v20285_v52  ;;  %v11521_v4 = vpop.f32.mrb[190].mxu1  ;;  %12874 = vmatpush1.bf16.msra.mxu1 %v17064_v16 }
 0xbce   : > { %v11522_v53 = vadd.f32 %v11521_v4, %v20283_v62  ;;  %v11523_v38 = vpop.f32.mrb[191].mxu1  ;;  %12875 = vmatprep.subr.bf16.mxu1 %v20946_v47  ;;  %v11792_v0 = vmax.f32 %v11518_v10, 0.0 }
 0xbcf   : > { %v11524_v54 = vadd.f32 %v11523_v38, %v20285_v52  ;;  %v11793_v14 = vmax.f32 %v11520_v46, 0.0 }
 0xbd0   : > { %v11800_v25 = vmax.f32 %v11522_v53, 0.0  ;;  %12755 = vmatmul.mubr.bf16.gmra.mrb[224].mxu1 %v20182_v49 }
 0xbd1   : > { %v11801_v11 = vmax.f32 %v11524_v54, 0.0  ;;  %12762 = vmatprep.mubr.bf16.mxu1 %v20213_v22  ;;  %12876 = vmatpush1.bf16.msra.mxu1 %v17065_v57  ;;  %v17067_v22 = vld [vmem:[%s20800_s5 + $0x170] sm:$0xff]  }
 0xbd2   : > { %v20523_v59 = vpack.c.bf16 %v11800_v25, %v11792_v0  ;;  %12877 = vmatprep.subr.bf16.mxu1 %v20946_v47  ;;  %v17068_v0 = vld [vmem:[%s20800_s5 + $0x178] sm:$0xff]  }
 0xbd3   : > { %v20526_v63 = vpack.c.bf16 %v11801_v11, %v11793_v14  ;;  %v11527_v29 = vpop.f32.mrb[192].mxu1 }
 0xbd4   : > { %v11528_v16 = vadd.f32 %v11527_v29, %v20283_v62  ;;  %v11529_v37 = vpop.f32.mrb[193].mxu1 }
 0xbd5   : > { %v11530_v49 = vadd.f32 %v11529_v37, %v20285_v52  ;;  %v11531_v10 = vpop.f32.mrb[194].mxu1  ;;  %12878 = vmatpush1.bf16.msra.mxu1 %v17066_v32 }
 0xbd6   : > { %v11532_v26 = vadd.f32 %v11531_v10, %v20283_v62  ;;  %v11533_v46 = vpop.f32.mrb[195].mxu1  ;;  %12879 = vmatprep.subr.bf16.mxu1 %v20946_v47  ;;  %v11808_v57 = vmax.f32 %v11528_v16, 0.0 }
 0xbd7   : > { %v11534_v4 = vadd.f32 %v11533_v46, %v20285_v52  ;;  %v11809_v38 = vmax.f32 %v11530_v49, 0.0 }
 0xbd8   : > { %v11816_v53 = vmax.f32 %v11532_v26, 0.0  ;;  %12763 = vmatmul.mubr.bf16.gmra.mrb[228].mxu1 %v20208_v51 }
 0xbd9   : > { %v11817_v54 = vmax.f32 %v11534_v4, 0.0  ;;  %12770 = vmatprep.mubr.bf16.mxu1 %v20239_v19  ;;  %12880 = vmatpush1.bf16.msra.mxu1 %v17067_v22 }
 0xbda   : > { %v20541_v25 = vpack.c.bf16 %v11816_v53, %v11808_v57  ;;  %12881 = vmatprep.subr.bf16.mxu1 %v20946_v47  ;;  %v17069_v53 = vld [vmem:[%s20800_s5 + $0x180] sm:$0xff]  }
 0xbdb   : > { %v20544_v14 = vpack.c.bf16 %v11817_v54, %v11809_v38  ;;  %v11537_v11 = vpop.f32.mrb[196].mxu1  ;;  %v21000_v38 = vld [vmem:[#allocation13_spill] sm:$0xff]  ;;  %v21001_v54 = vld [vmem:[#allocation16_spill] sm:$0xff] }
 0xbdc   : > { %v11538_v32 = vadd.f32 %v11537_v11, %v20283_v62  ;;  %v11539_v29 = vpop.f32.mrb[197].mxu1  ;;  %v17071_v11 = vld [vmem:[%s20800_s5 + $0x190] sm:$0xff]  }
 0xbdd   : > { %v11540_v51 = vadd.f32 %v11539_v29, %v20285_v52  ;;  %v11541_v16 = vpop.f32.mrb[198].mxu1  ;;  %12882 = vmatpush1.bf16.msra.mxu1 %v17068_v0  ;;  %v17070_v0 = vld [vmem:[%s20800_s5 + $0x188] sm:$0xff]   ;;  %v21003_v29 = vld [vmem:[#allocation18_spill] sm:$0xff] }
 0xbde   : > { %v11542_v19 = vadd.f32 %v11541_v16, %v20283_v62  ;;  %v11543_v37 = vpop.f32.mrb[199].mxu1  ;;  %13028 = vmatprep.subr.bf16.mxu1 %v20946_v47  ;;  %v11824_v10 = vmax.f32 %v11538_v32, 0.0  ;;  %v20991_v62 = vld [vmem:[#allocation6_spill] sm:$0xff]  ;;  %v21002_v32 = vld [vmem:[#allocation15_spill] sm:$0xff] }
 0xbdf   : > { %v11544_v49 = vadd.f32 %v11543_v37, %v20285_v52  ;;  %v11825_v26 = vmax.f32 %v11540_v51, 0.0  ;;  %v20992_v52 = vld [vmem:[#allocation5_spill] sm:$0xff]  ;;  %v17073_v16 = vld [vmem:[%s20800_s5 + $0x1a0] sm:$0xff]   ;;  %v21005_v37 = vld [vmem:[#allocation20_spill] sm:$0xff] }
 0xbe0   : > { %v11832_v22 = vmax.f32 %v11542_v19, 0.0  ;;  %12771 = vmatmul.mubr.bf16.gmra.mrb[232].mxu1 %v20234_v1  ;;  %v20989_v1 = vld [vmem:[#allocation4_spill] sm:$0xff]  ;;  %v17072_v51 = vld [vmem:[%s20800_s5 + $0x198] sm:$0xff]  }
 0xbe1   : > { %v11833_v46 = vmax.f32 %v11544_v49, 0.0  ;;  %12778 = vmatprep.mubr.bf16.mxu1 %v20265_v24  ;;  %v20990_v24 = vld [vmem:[#allocation3_spill] sm:$0xff]  ;;  %v21004_v19 = vld [vmem:[#allocation17_spill] sm:$0xff] }
 0xbe2   : > { %v20553_v4 = vpack.c.bf16 %v11832_v22, %v11824_v10  ;;  %v17074_v49 = vld [vmem:[%s20800_s5 + $0x1a8] sm:$0xff]   ;;  %v17075_v10 = vld [vmem:[%s20800_s5 + $0x1b0] sm:$0xff]  }
 0xbe3   : > { %v20555_v57 = vpack.c.bf16 %v11833_v46, %v11825_v26  ;;  %v21006_v22 = vld [vmem:[#allocation19_spill] sm:$0xff]  ;;  %v21007_v26 = vld [vmem:[#allocation22_spill] sm:$0xff]  ;;  %v17076_v46 = vld [vmem:[%s20800_s5 + $0x1b8] sm:$0xff]  }
 0xbe8   : > { %12779 = vmatmul.mubr.bf16.gmra.mrb[236].mxu1 %v20260_v39  ;;  %v20993_v39 = vld [vmem:[#allocation8_spill] sm:$0xff] }
 0xbe9   : > { %12786 = vmatprep.mubr.bf16.mxu1 %v20293_v42  ;;  %v20994_v42 = vld [vmem:[#allocation7_spill] sm:$0xff] }
 0xbf0   : > { %12787 = vmatmul.mubr.bf16.gmra.mrb[240].mxu1 %v20289_v33  ;;  %v20995_v33 = vld [vmem:[#allocation10_spill] sm:$0xff] }
 0xbf1   : > { %12794 = vmatprep.mubr.bf16.mxu1 %v20311_v31  ;;  %v20996_v31 = vld [vmem:[#allocation9_spill] sm:$0xff] }
 0xbf8   : > { %12795 = vmatmul.mubr.bf16.gmra.mrb[244].mxu1 %v20307_v23  ;;  %v20997_v23 = vld [vmem:[#allocation12_spill] sm:$0xff] }
 0xbf9   : > { %12802 = vmatprep.mubr.bf16.mxu1 %v20329_v56  ;;  %v20998_v56 = vld [vmem:[#allocation11_spill] sm:$0xff] }
 0xc00   : > { %12803 = vmatmul.mubr.bf16.gmra.mrb[248].mxu1 %v20325_v61  ;;  %v20999_v61 = vld [vmem:[#allocation14_spill] sm:$0xff] }
 0xc01   : > { %12810 = vmatprep.mubr.bf16.mxu1 %v20989_v1  ;;  %v17077_v1 = vld [vmem:[%s20800_s5 + $0x1c0] sm:$0xff]  }
 0xc08   : > { %12811 = vmatmul.mubr.bf16.gmra.mrb[252].mxu1 %v20990_v24  ;;  %v21008_v24 = vld [vmem:[#allocation21_spill] sm:$0xff] }
 0xc09   : > { %12818 = vmatprep.mubr.bf16.mxu1 %v20991_v62  ;;  %v21009_v62 = vld [vmem:[#allocation25_spill] sm:$0xff] }
 0xc10   : > { %12819 = vmatmul.mubr.bf16.gmra.mrb[0].mxu1 %v20992_v52  ;;  %v17078_v52 = vld [vmem:[%s20800_s5 + $0x1c8] sm:$0xff]  }
 0xc11   : > { %12826 = vmatprep.mubr.bf16.mxu1 %v20993_v39  ;;  %v17079_v39 = vld [vmem:[%s20800_s5 + $0x1d0] sm:$0xff]  }
 0xc18   : > { %12827 = vmatmul.mubr.bf16.gmra.mrb[4].mxu1 %v20994_v42  ;;  %v21010_v42 = vld [vmem:[#allocation24_spill] sm:$0xff] }
 0xc19   : > { %12834 = vmatprep.mubr.bf16.mxu1 %v20995_v33  ;;  %v21011_v33 = vld [vmem:[#allocation27_spill] sm:$0xff] }
 0xc20   : > { %12835 = vmatmul.mubr.bf16.gmra.mrb[8].mxu1 %v20996_v31  ;;  %v17080_v31 = vld [vmem:[%s20800_s5 + $0x1d8] sm:$0xff]  }
 0xc21   : > { %12842 = vmatprep.mubr.bf16.mxu1 %v20997_v23  ;;  %v17081_v23 = vld [vmem:[%s20800_s5 + $0x1e0] sm:$0xff]  }
 0xc28   : > { %12843 = vmatmul.mubr.bf16.gmra.mrb[12].mxu1 %v20998_v56  ;;  %v21012_v56 = vld [vmem:[#allocation26_spill] sm:$0xff] }
 0xc29   : > { %12883 = vmatprep.mubr.bf16.mxu1 %v20999_v61  ;;  %v21013_v61 = vld [vmem:[#allocation29_spill] sm:$0xff] }
 0xc30   : > { %12884 = vmatmul.mubr.bf16.vlgmr.msra.gmra.mrb[200].mxu1 %v21000_v38  ;;  %v17083_v38 = vld [vmem:[%s20800_s5 + $0x1f0] sm:$0xff]  }
 0xc31   : > { %13029 = vmatpush1.bf16.msra.mxu1 %v17069_v53  ;;  %12891 = vmatprep.mubr.bf16.mxu1 %v21001_v54  ;;  %v17082_v53 = vld [vmem:[%s20800_s5 + $0x1e8] sm:$0xff]   ;;  %v21014_v54 = vld [vmem:[#allocation28_spill] sm:$0xff] }
 0xc32   : > { %13030 = vmatprep.subr.bf16.mxu1 %v20946_v47 }
 0xc35   : > { %13031 = vmatpush1.bf16.msra.mxu1 %v17070_v0  ;;  %v21015_v0 = vld [vmem:[#allocation32_spill] sm:$0xff] }
 0xc36   : > { %13032 = vmatprep.subr.bf16.mxu1 %v20946_v47 }
 0xc38   : > { %12892 = vmatmul.mubr.bf16.gmra.mrb[204].mxu1 %v21002_v32  ;;  %v21016_v32 = vld [vmem:[#allocation31_spill] sm:$0xff] }
 0xc39   : > { %12899 = vmatprep.mubr.bf16.mxu1 %v21003_v29  ;;  %13033 = vmatpush1.bf16.msra.mxu1 %v17071_v11  ;;  %v17084_v11 = vld [vmem:[%s20800_s5 + $0x1f8] sm:$0xff]  }
 0xc3a   : > { %13034 = vmatprep.subr.bf16.mxu1 %v20946_v47  ;;  %v21017_v29 = vld [vmem:[#allocation33_spill] sm:$0xff] }
 0xc3d   : > { %13035 = vmatpush1.bf16.msra.mxu1 %v17072_v51  ;;  %v21018_v51 = vld [vmem:[#allocation35_spill] sm:$0xff] }
 0xc3e   : > { %13036 = vmatprep.subr.bf16.mxu1 %v20946_v47 }
 0xc40   : > { %12900 = vmatmul.mubr.bf16.gmra.mrb[208].mxu1 %v21004_v19  ;;  %v21020_v19 = vld [vmem:[#allocation37_spill] sm:$0xff] }
 0xc41   : > { %12907 = vmatprep.mubr.bf16.mxu1 %v21005_v37  ;;  %13037 = vmatpush1.bf16.msra.mxu1 %v17073_v16  ;;  %v21019_v16 = vld [vmem:[#allocation34_spill] sm:$0xff]  ;;  %v21021_v37 = vld [vmem:[#allocation36_spill] sm:$0xff] }
 0xc42   : > { %13038 = vmatprep.subr.bf16.mxu1 %v20946_v47 }
 0xc45   : > { %13039 = vmatpush1.bf16.msra.mxu1 %v17074_v49  ;;  %v21022_v49 = vld [vmem:[#allocation39_spill] sm:$0xff] }
 0xc46   : > { %13040 = vmatprep.subr.bf16.mxu1 %v20946_v47 }
 0xc48   : > { %12908 = vmatmul.mubr.bf16.gmra.mrb[212].mxu1 %v21006_v22  ;;  %v21025_v22 = vld [vmem:[#allocation40_spill] sm:$0xff] }
 0xc49   : > { %12915 = vmatprep.mubr.bf16.mxu1 %v21007_v26  ;;  %13041 = vmatpush1.bf16.msra.mxu1 %v17075_v10  ;;  %v21023_v10 = vld [vmem:[#allocation38_spill] sm:$0xff]  ;;  %v21026_v26 = vld [vmem:[#allocation43_spill] sm:$0xff] }
 0xc4a   : > { %13042 = vmatprep.subr.bf16.mxu1 %v20946_v47 }
 0xc4d   : > { %13043 = vmatpush1.bf16.msra.mxu1 %v17076_v46  ;;  %v21028_v46 = vld [vmem:[#allocation45_spill] sm:$0xff] }
 0xc4e   : > { %13044 = vmatprep.subr.bf16.mxu1 %v20946_v47 }
 0xc50   : > { %12916 = vmatmul.mubr.bf16.gmra.mrb[216].mxu1 %v21008_v24  ;;  %v21030_v24 = vld [vmem:[#allocation47_spill] sm:$0xff] }
 0xc51   : > { %12923 = vmatprep.mubr.bf16.mxu1 %v21009_v62  ;;  %13045 = vmatpush1.bf16.msra.mxu1 %v17077_v1  ;;  %v21029_v1 = vld [vmem:[#allocation44_spill] sm:$0xff]  ;;  %v21031_v62 = vld [vmem:[#allocation46_spill] sm:$0xff] }
 0xc52   : > { %13046 = vmatprep.subr.bf16.mxu1 %v20946_v47 }
 0xc55   : > { %13047 = vmatpush1.bf16.msra.mxu1 %v17078_v52  ;;  %v21032_v52 = vld [vmem:[#allocation49_spill] sm:$0xff] }
 0xc56   : > { %13048 = vmatprep.subr.bf16.mxu1 %v20946_v47 }
 0xc58   : > { %12924 = vmatmul.mubr.bf16.gmra.mrb[220].mxu1 %v21010_v42  ;;  %v21034_v42 = vld [vmem:[#allocation50_spill] sm:$0xff] }
 0xc59   : > { %12931 = vmatprep.mubr.bf16.mxu1 %v21011_v33  ;;  %13049 = vmatpush1.bf16.msra.mxu1 %v17079_v39  ;;  %v21033_v39 = vld [vmem:[#allocation48_spill] sm:$0xff] }
 0xc5a   : > { %13050 = vmatprep.subr.bf16.mxu1 %v20946_v47 }
 0xc5d   : > { %13051 = vmatpush1.bf16.msra.mxu1 %v17080_v31 }
 0xc5e   : > { %13052 = vmatprep.subr.bf16.mxu1 %v20946_v47 }
 0xc60   : > { %12932 = vmatmul.mubr.bf16.gmra.mrb[224].mxu1 %v21012_v56 }
 0xc61   : > { %12939 = vmatprep.mubr.bf16.mxu1 %v21013_v61  ;;  %13053 = vmatpush1.bf16.msra.mxu1 %v17081_v23 }
 0xc62   : > { %13054 = vmatprep.subr.bf16.mxu1 %v20946_v47 }
 0xc65   : > { %13055 = vmatpush1.bf16.msra.mxu1 %v17082_v53 }
 0xc66   : > { %13056 = vmatprep.subr.bf16.mxu1 %v20946_v47 }
 0xc68   : > { %12940 = vmatmul.mubr.bf16.gmra.mrb[228].mxu1 %v21014_v54 }
 0xc69   : > { %12947 = vmatprep.mubr.bf16.mxu1 %v21015_v0  ;;  %13057 = vmatpush1.bf16.msra.mxu1 %v17083_v38 }
 0xc6a   : > { %13058 = vmatprep.subr.bf16.mxu1 %v20946_v47  ;;  %v21024_v47 = vld [vmem:[#allocation41_spill] sm:$0xff] }
 0xc6d   : > { %13059 = vmatpush1.bf16.msra.mxu1 %v17084_v11 }
 0xc70   : > { %12948 = vmatmul.mubr.bf16.gmra.mrb[232].mxu1 %v21016_v32 }
 0xc71   : > { %12955 = vmatprep.mubr.bf16.mxu1 %v20085_v50  ;;  %v21027_v50 = vld [vmem:[#allocation42_spill] sm:$0xff] }
 0xc78   : > { %12956 = vmatmul.mubr.bf16.gmra.mrb[236].mxu1 %v21017_v29 }
 0xc79   : > { %12963 = vmatprep.mubr.bf16.mxu1 %v21018_v51 }
 0xc80   : > { %12964 = vmatmul.mubr.bf16.gmra.mrb[240].mxu1 %v21019_v16 }
 0xc81   : > { %12971 = vmatprep.mubr.bf16.mxu1 %v21020_v19 }
 0xc88   : > { %12972 = vmatmul.mubr.bf16.gmra.mrb[244].mxu1 %v21021_v37 }
 0xc89   : > { %12979 = vmatprep.mubr.bf16.mxu1 %v21022_v49 }
 0xc90   : > { %12980 = vmatmul.mubr.bf16.gmra.mrb[248].mxu1 %v21023_v10 }
 0xc91   : > { %12987 = vmatprep.mubr.bf16.mxu1 %v21024_v47 }
 0xc98   : > { %12988 = vmatmul.mubr.bf16.gmra.mrb[252].mxu1 %v21025_v22 }
 0xc99   : > { %12995 = vmatprep.mubr.bf16.mxu1 %v21026_v26 }
 0xca0   : > { %12996 = vmatmul.mubr.bf16.gmra.mrb[0].mxu1 %v21027_v50 }
 0xca1   : > { %13003 = vmatprep.mubr.bf16.mxu1 %v21028_v46 }
 0xca8   : > { %13004 = vmatmul.mubr.bf16.gmra.mrb[4].mxu1 %v21029_v1 }
 0xca9   : > { %13011 = vmatprep.mubr.bf16.mxu1 %v21030_v24 }
 0xcb0   : > { %13012 = vmatmul.mubr.bf16.gmra.mrb[8].mxu1 %v21031_v62 }
 0xcb1   : > { %13019 = vmatprep.mubr.bf16.mxu1 %v21032_v52 }
 0xcb8   : > { %13020 = vmatmul.mubr.bf16.gmra.mrb[12].mxu1 %v21033_v39 }
 0xcb9   : > { %13060 = vmatprep.mubr.bf16.mxu1 %v20313_v41  ;;  %v20713_v41 = vld [vmem:[%s20801_s6] ss:$0 sm:$0xff] }
 0xcc0   : > { %13061 = vmatmul.mubr.bf16.vlgmr.msra.gmra.mrb[200].mxu1 %v21034_v42 }
 0xcc1   : > { %13068 = vmatprep.mubr.bf16.mxu1 %v20331_v17 }
 0xcc8   : > { %13069 = vmatmul.mubr.bf16.gmra.mrb[204].mxu1 %v20327_v43 }
 0xcc9   : > { %13076 = vmatprep.mubr.bf16.mxu1 %v20341_v21 }
 0xcd0   : > { %13077 = vmatmul.mubr.bf16.gmra.mrb[208].mxu1 %v20339_v35 }
 0xcd1   : > { %13084 = vmatprep.mubr.bf16.mxu1 %v20351_v9 }
 0xcd8   : > { %13085 = vmatmul.mubr.bf16.gmra.mrb[212].mxu1 %v20349_v13 }
 0xcd9   : > { %13092 = vmatprep.mubr.bf16.mxu1 %v20361_v48 }
 0xce0   : > { %13093 = vmatmul.mubr.bf16.gmra.mrb[216].mxu1 %v20359_v45 }
 0xce1   : > { %13100 = vmatprep.mubr.bf16.mxu1 %v20371_v8 }
 0xce8   : > { %13101 = vmatmul.mubr.bf16.gmra.mrb[220].mxu1 %v20369_v34 }
 0xce9   : > { %13108 = vmatprep.mubr.bf16.mxu1 %v20381_v18 }
 0xcf0   : > { %13109 = vmatmul.mubr.bf16.gmra.mrb[224].mxu1 %v20379_v55 }
 0xcf1   : > { %13116 = vmatprep.mubr.bf16.mxu1 %v20391_v3 }
 0xcf8   : > { %13117 = vmatmul.mubr.bf16.gmra.mrb[228].mxu1 %v20389_v2 }
 0xcf9   : > { %13124 = vmatprep.mubr.bf16.mxu1 %v20401_v7 }
 0xd00   : > { %13125 = vmatmul.mubr.bf16.gmra.mrb[232].mxu1 %v20399_v20 }
 0xd01   : > { %13132 = vmatprep.mubr.bf16.mxu1 %v20418_v40 }
 0xd08   : > { %13133 = vmatmul.mubr.bf16.gmra.mrb[236].mxu1 %v20415_v5 }
 0xd09   : > { %13140 = vmatprep.mubr.bf16.mxu1 %v20436_v44 }
 0xd10   : > { %13141 = vmatmul.mubr.bf16.gmra.mrb[240].mxu1 %v20433_v58 }
 0xd11   : > { %13148 = vmatprep.mubr.bf16.mxu1 %v20454_v15 }
 0xd18   : > { %13149 = vmatmul.mubr.bf16.gmra.mrb[244].mxu1 %v20451_v30 }
 0xd19   : > { %13156 = vmatprep.mubr.bf16.mxu1 %v20472_v27 }
 0xd20   : > { %13157 = vmatmul.mubr.bf16.gmra.mrb[248].mxu1 %v20469_v60 }
 0xd21   : > { %13164 = vmatprep.mubr.bf16.mxu1 %v20490_v12 }
 0xd28   : > { %13165 = vmatmul.mubr.bf16.gmra.mrb[252].mxu1 %v20487_v36 }
 0xd29   : > { %13172 = vmatprep.mubr.bf16.mxu1 %v20508_v28 }
 0xd30   : > { %13173 = vmatmul.mubr.bf16.gmra.mrb[0].mxu1 %v20505_v6 }
 0xd31   : > { %13180 = vmatprep.mubr.bf16.mxu1 %v20526_v63 }
 0xd38   : > { %13181 = vmatmul.mubr.bf16.gmra.mrb[4].mxu1 %v20523_v59 }
 0xd39   : > { %13188 = vmatprep.mubr.bf16.mxu1 %v20544_v14 }
 0xd40   : > { %13189 = vmatmul.mubr.bf16.gmra.mrb[8].mxu1 %v20541_v25 }
 0xd41   : > { %13196 = vmatprep.mubr.bf16.mxu1 %v20555_v57 }
 0xd48   : > { %13197 = vmatmul.mubr.bf16.gmra.mrb[12].mxu1 %v20553_v4 }
 0xd93   : > { %v13062_v43 = vpop.f32.mrb[200].mxu1 }
 0xd94   : > { %v15767_v17 = vadd.f32 %v20713_v41, %v13062_v43  ;;  %v13064_v35 = vpop.f32.mrb[201].mxu1 }
 0xd95   : > { %v13065_v21 = vpop.f32.mrb[202].mxu1 }
 0xd96   : > { %13205 = vst [vmem:[%s20718_s17] sm:$0xff] %v15767_v17  ;;  %v15768_v13 = vadd.f32 %v20713_v41, %v13065_v21  ;;  %v13067_v9 = vpop.f32.mrb[203].mxu1 }
 0xd98   : > { %13206 = vst [vmem:[%s20718_s17 + $0x8] sm:$0xff] %v15768_v13 }
 0xd9b   : > { %v13070_v45 = vpop.f32.mrb[204].mxu1 }
 0xd9c   : > { %v15769_v48 = vadd.f32 %v20713_v41, %v13070_v45  ;;  %v13072_v34 = vpop.f32.mrb[205].mxu1 }
 0xd9d   : > { %v13073_v8 = vpop.f32.mrb[206].mxu1 }
 0xd9e   : > { %13207 = vst [vmem:[%s20718_s17 + $0x10] sm:$0xff] %v15769_v48  ;;  %v15770_v55 = vadd.f32 %v20713_v41, %v13073_v8  ;;  %v13075_v18 = vpop.f32.mrb[207].mxu1 }
 0xda0   : > { %13208 = vst [vmem:[%s20718_s17 + $0x18] sm:$0xff] %v15770_v55 }
 0xda3   : > { %v13078_v2 = vpop.f32.mrb[208].mxu1 }
 0xda4   : > { %v15771_v3 = vadd.f32 %v20713_v41, %v13078_v2  ;;  %v13080_v20 = vpop.f32.mrb[209].mxu1 }
 0xda5   : > { %v13081_v7 = vpop.f32.mrb[210].mxu1 }
 0xda6   : > { %13209 = vst [vmem:[%s20718_s17 + $0x20] sm:$0xff] %v15771_v3  ;;  %v15772_v5 = vadd.f32 %v20713_v41, %v13081_v7  ;;  %v13083_v40 = vpop.f32.mrb[211].mxu1 }
 0xda8   : > { %13210 = vst [vmem:[%s20718_s17 + $0x28] sm:$0xff] %v15772_v5 }
 0xdab   : > { %v13086_v58 = vpop.f32.mrb[212].mxu1 }
 0xdac   : > { %v15773_v44 = vadd.f32 %v20713_v41, %v13086_v58  ;;  %v13088_v30 = vpop.f32.mrb[213].mxu1 }
 0xdad   : > { %v13089_v15 = vpop.f32.mrb[214].mxu1 }
 0xdae   : > { %13211 = vst [vmem:[%s20718_s17 + $0x30] sm:$0xff] %v15773_v44  ;;  %v15774_v60 = vadd.f32 %v20713_v41, %v13089_v15  ;;  %v13091_v27 = vpop.f32.mrb[215].mxu1 }
 0xdb0   : > { %13212 = vst [vmem:[%s20718_s17 + $0x38] sm:$0xff] %v15774_v60 }
 0xdb3   : > { %v13094_v36 = vpop.f32.mrb[216].mxu1 }
 0xdb4   : > { %v15775_v12 = vadd.f32 %v20713_v41, %v13094_v36  ;;  %v13096_v6 = vpop.f32.mrb[217].mxu1 }
 0xdb5   : > { %v13097_v28 = vpop.f32.mrb[218].mxu1 }
 0xdb6   : > { %13213 = vst [vmem:[%s20718_s17 + $0x40] sm:$0xff] %v15775_v12  ;;  %v15776_v59 = vadd.f32 %v20713_v41, %v13097_v28  ;;  %v13099_v63 = vpop.f32.mrb[219].mxu1 }
 0xdb8   : > { %13214 = vst [vmem:[%s20718_s17 + $0x48] sm:$0xff] %v15776_v59 }
 0xdbb   : > { %v13102_v25 = vpop.f32.mrb[220].mxu1 }
 0xdbc   : > { %v15777_v14 = vadd.f32 %v20713_v41, %v13102_v25  ;;  %v13104_v4 = vpop.f32.mrb[221].mxu1 }
 0xdbd   : > { %v13105_v57 = vpop.f32.mrb[222].mxu1 }
 0xdbe   : > { %13215 = vst [vmem:[%s20718_s17 + $0x50] sm:$0xff] %v15777_v14  ;;  %v15778_v33 = vadd.f32 %v20713_v41, %v13105_v57  ;;  %v13107_v31 = vpop.f32.mrb[223].mxu1 }
 0xdc0   : > { %13216 = vst [vmem:[%s20718_s17 + $0x58] sm:$0xff] %v15778_v33 }
 0xdc3   : > { %v13110_v23 = vpop.f32.mrb[224].mxu1 }
 0xdc4   : > { %v15779_v56 = vadd.f32 %v20713_v41, %v13110_v23  ;;  %v13112_v61 = vpop.f32.mrb[225].mxu1 }
 0xdc5   : > { %v13113_v53 = vpop.f32.mrb[226].mxu1 }
 0xdc6   : > { %13217 = vst [vmem:[%s20718_s17 + $0x60] sm:$0xff] %v15779_v56  ;;  %v15780_v38 = vadd.f32 %v20713_v41, %v13113_v53  ;;  %v13115_v54 = vpop.f32.mrb[227].mxu1 }
 0xdc8   : > { %13218 = vst [vmem:[%s20718_s17 + $0x68] sm:$0xff] %v15780_v38 }
 0xdcb   : > { %v13118_v0 = vpop.f32.mrb[228].mxu1 }
 0xdcc   : > { %v15781_v11 = vadd.f32 %v20713_v41, %v13118_v0  ;;  %v13120_v32 = vpop.f32.mrb[229].mxu1 }
 0xdcd   : > { %v13121_v29 = vpop.f32.mrb[230].mxu1 }
 0xdce   : > { %13219 = vst [vmem:[%s20718_s17 + $0x70] sm:$0xff] %v15781_v11  ;;  %v15782_v51 = vadd.f32 %v20713_v41, %v13121_v29  ;;  %v13123_v16 = vpop.f32.mrb[231].mxu1 }
 0xdd0   : > { %13220 = vst [vmem:[%s20718_s17 + $0x78] sm:$0xff] %v15782_v51 }
 0xdd3   : > { %v13126_v19 = vpop.f32.mrb[232].mxu1 }
 0xdd4   : > { %v15783_v37 = vadd.f32 %v20713_v41, %v13126_v19  ;;  %v13128_v49 = vpop.f32.mrb[233].mxu1 }
 0xdd5   : > { %v13129_v10 = vpop.f32.mrb[234].mxu1 }
 0xdd6   : > { %13221 = vst [vmem:[%s20718_s17 + $0x80] sm:$0xff] %v15783_v37  ;;  %v15784_v47 = vadd.f32 %v20713_v41, %v13129_v10  ;;  %v13131_v22 = vpop.f32.mrb[235].mxu1 }
 0xdd8   : > { %13222 = vst [vmem:[%s20718_s17 + $0x88] sm:$0xff] %v15784_v47 }
 0xddb   : > { %v13134_v26 = vpop.f32.mrb[236].mxu1 }
 0xddc   : > { %v15785_v50 = vadd.f32 %v20713_v41, %v13134_v26  ;;  %v13136_v46 = vpop.f32.mrb[237].mxu1 }
 0xddd   : > { %v13137_v1 = vpop.f32.mrb[238].mxu1 }
 0xdde   : > { %13223 = vst [vmem:[%s20718_s17 + $0x90] sm:$0xff] %v15785_v50  ;;  %v15786_v24 = vadd.f32 %v20713_v41, %v13137_v1  ;;  %v13139_v62 = vpop.f32.mrb[239].mxu1 }
 0xde0   : > { %13224 = vst [vmem:[%s20718_s17 + $0x98] sm:$0xff] %v15786_v24 }
 0xde3   : > { %v13142_v52 = vpop.f32.mrb[240].mxu1 }
 0xde4   : > { %v15787_v39 = vadd.f32 %v20713_v41, %v13142_v52  ;;  %v13144_v42 = vpop.f32.mrb[241].mxu1 }
 0xde5   : > { %v13145_v43 = vpop.f32.mrb[242].mxu1 }
 0xde6   : > { %13225 = vst [vmem:[%s20718_s17 + $0xa0] sm:$0xff] %v15787_v39  ;;  %v15788_v17 = vadd.f32 %v20713_v41, %v13145_v43  ;;  %v13147_v35 = vpop.f32.mrb[243].mxu1 }
 0xde8   : > { %13226 = vst [vmem:[%s20718_s17 + $0xa8] sm:$0xff] %v15788_v17 }
 0xdeb   : > { %v13150_v21 = vpop.f32.mrb[244].mxu1 }
 0xdec   : > { %v15789_v13 = vadd.f32 %v20713_v41, %v13150_v21  ;;  %v13152_v9 = vpop.f32.mrb[245].mxu1 }
 0xded   : > { %v13153_v45 = vpop.f32.mrb[246].mxu1 }
 0xdee   : > { %13227 = vst [vmem:[%s20718_s17 + $0xb0] sm:$0xff] %v15789_v13  ;;  %v15790_v48 = vadd.f32 %v20713_v41, %v13153_v45  ;;  %v13155_v34 = vpop.f32.mrb[247].mxu1 }
 0xdf0   : > { %13228 = vst [vmem:[%s20718_s17 + $0xb8] sm:$0xff] %v15790_v48 }
 0xdf3   : > { %v13158_v8 = vpop.f32.mrb[248].mxu1 }
 0xdf4   : > { %v15791_v55 = vadd.f32 %v20713_v41, %v13158_v8  ;;  %v13160_v18 = vpop.f32.mrb[249].mxu1 }
 0xdf5   : > { %v13161_v2 = vpop.f32.mrb[250].mxu1 }
 0xdf6   : > { %13229 = vst [vmem:[%s20718_s17 + $0xc0] sm:$0xff] %v15791_v55  ;;  %v15792_v3 = vadd.f32 %v20713_v41, %v13161_v2  ;;  %v13163_v20 = vpop.f32.mrb[251].mxu1 }
 0xdf8   : > { %13230 = vst [vmem:[%s20718_s17 + $0xc8] sm:$0xff] %v15792_v3 }
 0xdfb   : > { %v13166_v7 = vpop.f32.mrb[252].mxu1 }
 0xdfc   : > { %v15793_v5 = vadd.f32 %v20713_v41, %v13166_v7  ;;  %v13168_v40 = vpop.f32.mrb[253].mxu1 }
 0xdfd   : > { %v13169_v58 = vpop.f32.mrb[254].mxu1 }
 0xdfe   : > { %13231 = vst [vmem:[%s20718_s17 + $0xd0] sm:$0xff] %v15793_v5  ;;  %v15794_v44 = vadd.f32 %v20713_v41, %v13169_v58  ;;  %v13171_v30 = vpop.f32.mrb[255].mxu1 }
 0xe00   : > { %13232 = vst [vmem:[%s20718_s17 + $0xd8] sm:$0xff] %v15794_v44 }
 0xe03   : > { %v13174_v15 = vpop.f32.mrb[0].mxu1 }
 0xe04   : > { %v15795_v60 = vadd.f32 %v20713_v41, %v13174_v15  ;;  %v13176_v27 = vpop.f32.mrb[1].mxu1 }
 0xe05   : > { %v13177_v36 = vpop.f32.mrb[2].mxu1 }
 0xe06   : > { %13233 = vst [vmem:[%s20718_s17 + $0xe0] sm:$0xff] %v15795_v60  ;;  %v15796_v12 = vadd.f32 %v20713_v41, %v13177_v36  ;;  %v13179_v6 = vpop.f32.mrb[3].mxu1 }
 0xe08   : > { %13234 = vst [vmem:[%s20718_s17 + $0xe8] sm:$0xff] %v15796_v12 }
 0xe0b   : > { %v13182_v28 = vpop.f32.mrb[4].mxu1 }
 0xe0c   : > { %v15797_v59 = vadd.f32 %v20713_v41, %v13182_v28  ;;  %v13184_v63 = vpop.f32.mrb[5].mxu1 }
 0xe0d   : > { %v13185_v25 = vpop.f32.mrb[6].mxu1 }
 0xe0e   : > { %13235 = vst [vmem:[%s20718_s17 + $0xf0] sm:$0xff] %v15797_v59  ;;  %v15798_v14 = vadd.f32 %v20713_v41, %v13185_v25  ;;  %v13187_v4 = vpop.f32.mrb[7].mxu1 }
 0xe10   : > { %13236 = vst [vmem:[%s20718_s17 + $0xf8] sm:$0xff] %v15798_v14 }
 0xe13   : > { %v13190_v57 = vpop.f32.mrb[8].mxu1 }
 0xe14   : > { %v15799_v33 = vadd.f32 %v20713_v41, %v13190_v57  ;;  %v13192_v31 = vpop.f32.mrb[9].mxu1 }
 0xe15   : > { %v13193_v23 = vpop.f32.mrb[10].mxu1 }
 0xe16   : > { %13237 = vst [vmem:[%s20718_s17 + $0x100] sm:$0xff] %v15799_v33  ;;  %v15800_v56 = vadd.f32 %v20713_v41, %v13193_v23  ;;  %v13195_v61 = vpop.f32.mrb[11].mxu1 }
 0xe18   : > { %13238 = vst [vmem:[%s20718_s17 + $0x108] sm:$0xff] %v15800_v56 }
 0xe1b   : > { %v13198_v53 = vpop.f32.mrb[12].mxu1 }
 0xe1c   : > { %v15801_v38 = vadd.f32 %v20713_v41, %v13198_v53  ;;  %v13200_v54 = vpop.f32.mrb[13].mxu1 }
 0xe1d   : > { %v13201_v0 = vpop.f32.mrb[14].mxu1 }
 0xe1e   : > { %13239 = vst [vmem:[%s20718_s17 + $0x110] sm:$0xff] %v15801_v38  ;;  %v15802_v11 = vadd.f32 %v20713_v41, %v13201_v0  ;;  %v13203_v32 = vpop.f32.mrb[15].mxu1 }
 0xe20   : > { %13240 = vst [vmem:[%s20718_s17 + $0x118] sm:$0xff] %v15802_v11 }
 0xe21 PF: > { %s17_s24 = sadd.s32 1, %s17092_s24  }
 0xe22   : > { %p14_p4 = scmp.ge.s32.totalorder %s17_s24, 4  }
 0xe24   :  { %16 = sbr.rel (!%p14_p4) target bundleno = 1 (0x1), region = 106 }

</bundles_post_ra>
